<compile_context>
chip_gen: v6e
topology: v6e:2x2x1
jax: 0.10.0
libtpu: 0.0.40
codegen_flags: <defaults>
</compile_context>

<pallas_src>
import functools
import math

import jax
import jax.numpy as jnp
from jax.experimental import pallas as pl
from jax.experimental.pallas import tpu as pltpu


# ------------------------------ helpers -------------------------------------

def _gelu(x):
    # TODO(synk): HF HuBERT uses exact erf GELU; tanh approximation used here.
    return jax.nn.gelu(x, approximate=True)


def _ln(x, g, b, eps):
    mu = jnp.mean(x, axis=-1, keepdims=True)
    var = jnp.mean(jnp.square(x - mu), axis=-1, keepdims=True)
    return (x - mu) * jax.lax.rsqrt(var + eps) * g + b


# --------------------------- fused encoder kernel -----------------------------
# Grid: (B, num_layers).  Per step: one transformer layer for one batch element.
#   layer == 0            : compute hidden from conv1 patches (frontend)
#   every step            : pre-LN attention + pre-LN FFN, carried in VMEM scratch
#   layer == num_layers-1 : final LayerNorm, write to the output block

def _encoder_kernel(patches_ref, wc_ref, cg_ref, cb_ref, fg_ref, fb_ref,
                    wp_ref, bp_ref,
                    ln1g_ref, ln1b_ref, wqkv_ref, bqkv_ref, wo_ref, bo_ref,
                    ln2g_ref, ln2b_ref, w1_ref, b1_ref, w2_ref, b2_ref,
                    flg_ref, flb_ref,
                    out_ref, hid_ref, *, num_heads, eps):
    layer = pl.program_id(1)

    @pl.when(layer == 0)
    def _frontend():
        # conv layer 1 (kernel==stride, bias=False) as matmul + channel LN + GELU
        h = jnp.dot(patches_ref[...], wc_ref[...],
                    preferred_element_type=jnp.float32)
        h = _gelu(_ln(h, cg_ref[...], cb_ref[...], eps))
        # feature projection: LayerNorm + Linear(C -> D)
        hn = _ln(h, fg_ref[...], fb_ref[...], eps)
        hid_ref[...] = (jnp.dot(hn.astype(jnp.bfloat16), wp_ref[...],
                                preferred_element_type=jnp.float32)
                        + bp_ref[...])
        # TODO(synk): HuBERT's grouped-conv positional embedding is omitted.

    x = hid_ref[...]                                   # [S, D] f32 (carry)
    D = x.shape[-1]
    Dh = D // num_heads
    scale = 1.0 / math.sqrt(Dh)

    # ---------------- self-attention block (pre-LN) ----------------
    xn = _ln(x, ln1g_ref[...], ln1b_ref[...], eps)
    qkv = jnp.dot(xn.astype(jnp.bfloat16), wqkv_ref[...],
                  preferred_element_type=jnp.float32) + bqkv_ref[...]
    q = qkv[:, :D] * scale                             # scale folded into q
    k = qkv[:, D:2 * D]
    v = qkv[:, 2 * D:]

    heads = []
    for h_idx in range(num_heads):                     # Dh == 128: whole-vreg slices
        lo = h_idx * Dh
        qh = q[:, lo:lo + Dh].astype(jnp.bfloat16)
        kh = k[:, lo:lo + Dh].astype(jnp.bfloat16)
        vh = v[:, lo:lo + Dh].astype(jnp.bfloat16)
        s = jax.lax.dot_general(qh, kh, (((1,), (1,)), ((), ())),
                                preferred_element_type=jnp.float32)
        m = jnp.max(s, axis=-1, keepdims=True)
        p = jnp.exp(s - m)
        p = p * pl.reciprocal(jnp.sum(p, axis=-1, keepdims=True), approx=True)
        heads.append(jnp.dot(p.astype(jnp.bfloat16), vh,
                             preferred_element_type=jnp.float32))
    attn = heads[0] if num_heads == 1 else jnp.concatenate(heads, axis=-1)

    y = x + jnp.dot(attn.astype(jnp.bfloat16), wo_ref[...],
                    preferred_element_type=jnp.float32) + bo_ref[...]

    # ---------------- feed-forward block (pre-LN) ----------------
    yn = _ln(y, ln2g_ref[...], ln2b_ref[...], eps)
    ff = jnp.dot(yn.astype(jnp.bfloat16), w1_ref[...],
                 preferred_element_type=jnp.float32) + b1_ref[...]
    ff = _gelu(ff)
    z = y + jnp.dot(ff.astype(jnp.bfloat16), w2_ref[...],
                    preferred_element_type=jnp.float32) + b2_ref[...]

    hid_ref[...] = z                                    # carry to next layer

    @pl.when(layer == pl.num_programs(1) - 1)
    def _final():
        # final encoder LayerNorm (stable_layer_norm=True) fused as epilogue
        out_ref[...] = _ln(z, flg_ref[...], flb_ref[...], eps).astype(out_ref.dtype)


# ------------------------- model (glue around the kernel) --------------------

def transformer_audio_encoder_forward(x, params, num_heads=2, eps=1e-5):
    """x: [B, T] raw audio -> last_hidden_state [B, S, D]."""
    B, T = x.shape

    # --- conv feature extractor, layer 0 (C_in=1, K=4, S=4) in plain XLA ---
    # A 4-wide contraction would waste 124/128 MXU / vreg lanes in a kernel,
    # so this ~0.26 MFLOP layer is left to XLA (no extra launch / round trip).
    # TODO(synk): real HuBERT conv layers have overlapping kernels (k=10, s=5);
    # the reshape-based im2col here requires kernel == stride.
    w0 = params["conv0_w"]                      # [k0, C]
    k0, C = w0.shape
    L1 = T // k0
    h0 = x.reshape(B * L1, k0) @ w0
    mu = jnp.mean(h0, axis=-1, keepdims=True)
    var = jnp.mean(jnp.square(h0 - mu), axis=-1, keepdims=True)
    h0 = (h0 - mu) * jax.lax.rsqrt(var + eps) * params["conv0_ln_g"] \
        + params["conv0_ln_b"]
    h0 = _gelu(h0)

    # --- conv layer 1 im2col (kernel == stride == 2 -> pure reshape) ---
    k1 = params["wc"].shape[0] // C
    S = L1 // k1
    patches = h0.reshape(B, S, k1 * C).astype(jnp.bfloat16)   # bf16: MXU operand

    D = params["fp_w"].shape[1]
    F = params["w1"].shape[2]
    n_layers = params["wqkv"].shape[0]
    three_d = 3 * D

    kernel = functools.partial(_encoder_kernel, num_heads=num_heads, eps=eps)

    rep2 = lambda b, l: (0, 0)
    per_batch = lambda b, l: (b, 0, 0)
    per_layer = lambda b, l: (l, 0, 0)

    out = pl.pallas_call(
        kernel,
        out_shape=jax.ShapeDtypeStruct((B, S, D), jnp.float32),
        grid=(B, n_layers),
        in_specs=[
            pl.BlockSpec((None, S, k1 * C), per_batch),    # conv1 patches
            pl.BlockSpec((k1 * C, C), rep2),               # conv1 weight
            pl.BlockSpec((1, C), rep2),                    # conv1 LN gamma
            pl.BlockSpec((1, C), rep2),                    # conv1 LN beta
            pl.BlockSpec((1, C), rep2),                    # feat-proj LN gamma
            pl.BlockSpec((1, C), rep2),                    # feat-proj LN beta
            pl.BlockSpec((C, D), rep2),                    # feat-proj weight
            pl.BlockSpec((1, D), rep2),                    # feat-proj bias
            pl.BlockSpec((None, 1, D), per_layer),         # ln1 gamma
            pl.BlockSpec((None, 1, D), per_layer),         # ln1 beta
            pl.BlockSpec((None, D, three_d), per_layer),   # fused QKV weight
            pl.BlockSpec((None, 1, three_d), per_layer),   # fused QKV bias
            pl.BlockSpec((None, D, D), per_layer),         # out-proj weight
            pl.BlockSpec((None, 1, D), per_layer),         # out-proj bias
            pl.BlockSpec((None, 1, D), per_layer),         # ln2 gamma
            pl.BlockSpec((None, 1, D), per_layer),         # ln2 beta
            pl.BlockSpec((None, D, F), per_layer),         # FFN1 weight
            pl.BlockSpec((None, 1, F), per_layer),         # FFN1 bias
            pl.BlockSpec((None, F, D), per_layer),         # FFN2 weight
            pl.BlockSpec((None, 1, D), per_layer),         # FFN2 bias
            pl.BlockSpec((1, D), rep2),                    # final LN gamma
            pl.BlockSpec((1, D), rep2),                    # final LN beta
        ],
        out_specs=pl.BlockSpec((None, S, D), per_batch),
        scratch_shapes=[pltpu.VMEM((S, D), jnp.float32)],  # hidden-state carry
        compiler_params=pltpu.CompilerParams(
            dimension_semantics=("parallel", "arbitrary")),
    )(patches, params["wc"], params["conv1_ln_g"], params["conv1_ln_b"],
      params["fp_ln_g"], params["fp_ln_b"], params["fp_w"], params["fp_b"],
      params["ln1_g"], params["ln1_b"], params["wqkv"], params["bqkv"],
      params["wo"], params["bo"], params["ln2_g"], params["ln2_b"],
      params["w1"], params["b1"], params["w2"], params["b2"],
      params["final_ln_g"], params["final_ln_b"])
    return out


# ------------------------------ parameter init --------------------------------

def init_params(key, conv_dim=256, hidden=256, ffn=1024, num_layers=2):
    keys = iter(jax.random.split(key, 128))

    def dense(k, fan_in, fan_out):
        w = (jax.random.normal(k, (fan_in, fan_out), jnp.float32)
             * (1.0 / math.sqrt(fan_in)))
        b = jnp.zeros((1, fan_out), jnp.float32)
        return w, b

    # scaled-down conv stack: (1 -> conv_dim, k=s=4), (conv_dim -> conv_dim, k=s=2)
    w0 = jax.random.normal(next(keys), (conv_dim, 1, 4), jnp.float32) * 0.5
    conv0_w = jnp.transpose(w0, (2, 1, 0)).reshape(4, conv_dim)   # [(k,Cin), Cout]
    w1c = jax.random.normal(next(keys), (conv_dim, conv_dim, 2), jnp.float32) * (
        1.0 / math.sqrt(2 * conv_dim))
    wc = jnp.transpose(w1c, (2, 1, 0)).reshape(2 * conv_dim, conv_dim)

    fp_w, fp_b = dense(next(keys), conv_dim, hidden)

    layers = []
    for _ in range(num_layers):
        wq, bq = dense(next(keys), hidden, hidden)
        wk, bk = dense(next(keys), hidden, hidden)
        wv, bv = dense(next(keys), hidden, hidden)
        wo, bo = dense(next(keys), hidden, hidden)
        w1, b1 = dense(next(keys), hidden, ffn)
        w2, b2 = dense(next(keys), ffn, hidden)
        layers.append(dict(
            ln1_g=jnp.ones((1, hidden), jnp.float32),
            ln1_b=jnp.zeros((1, hidden), jnp.float32),
            ln2_g=jnp.ones((1, hidden), jnp.float32),
            ln2_b=jnp.zeros((1, hidden), jnp.float32),
            wqkv=jnp.concatenate([wq, wk, wv], axis=1),   # fused QKV [D, 3D]
            bqkv=jnp.concatenate([bq, bk, bv], axis=1),
            wo=wo, bo=bo, w1=w1, b1=b1, w2=w2, b2=b2))

    def stack(name, dtype=jnp.float32):
        return jnp.stack([l[name] for l in layers]).astype(dtype)

    return dict(
        conv0_w=conv0_w,
        conv0_ln_g=jnp.ones((1, conv_dim), jnp.float32),
        conv0_ln_b=jnp.zeros((1, conv_dim), jnp.float32),
        wc=wc.astype(jnp.bfloat16),
        conv1_ln_g=jnp.ones((1, conv_dim), jnp.float32),
        conv1_ln_b=jnp.zeros((1, conv_dim), jnp.float32),
        fp_ln_g=jnp.ones((1, conv_dim), jnp.float32),
        fp_ln_b=jnp.zeros((1, conv_dim), jnp.float32),
        fp_w=fp_w.astype(jnp.bfloat16), fp_b=fp_b,
        ln1_g=stack("ln1_g"), ln1_b=stack("ln1_b"),
        wqkv=stack("wqkv", jnp.bfloat16), bqkv=stack("bqkv"),
        wo=stack("wo", jnp.bfloat16), bo=stack("bo"),
        ln2_g=stack("ln2_g"), ln2_b=stack("ln2_b"),
        w1=stack("w1", jnp.bfloat16), b1=stack("b1"),
        w2=stack("w2", jnp.bfloat16), b2=stack("b2"),
        final_ln_g=jnp.ones((1, hidden), jnp.float32),
        final_ln_b=jnp.zeros((1, hidden), jnp.float32),
    )


# ---------------------------------- main --------------------------------------

if __name__ == "__main__":
    key = jax.random.PRNGKey(0)
    k_param, k_x = jax.random.split(key)
    params = init_params(k_param)

    B, T = 2, 1024                       # raw audio: [batch, samples]
    x = jax.random.normal(k_x, (B, T), jnp.float32)

    fwd = jax.jit(transformer_audio_encoder_forward)
    out = fwd(x, params)                 # last_hidden_state [B, S, D]
    out = jax.block_until_ready(out)

    assert out.shape == (2, 128, 256), out.shape
    assert bool(jnp.all(jnp.isfinite(out)))
    print("KERNEL_OK")
</pallas_src>

<mosaic_0001>
module attributes {stable_mosaic.version = 11 : i64} {
  func.func @_encoder_kernel(%arg0: i32, %arg1: i32, %arg2: memref<1x128x512xbf16, #tpu.memory_space<vmem>>, %arg3: memref<512x256xbf16, #tpu.memory_space<vmem>>, %arg4: memref<1x256xf32, #tpu.memory_space<vmem>>, %arg5: memref<1x256xf32, #tpu.memory_space<vmem>>, %arg6: memref<1x256xf32, #tpu.memory_space<vmem>>, %arg7: memref<1x256xf32, #tpu.memory_space<vmem>>, %arg8: memref<256x256xbf16, #tpu.memory_space<vmem>>, %arg9: memref<1x256xf32, #tpu.memory_space<vmem>>, %arg10: memref<1x1x256xf32, #tpu.memory_space<vmem>>, %arg11: memref<1x1x256xf32, #tpu.memory_space<vmem>>, %arg12: memref<1x256x768xbf16, #tpu.memory_space<vmem>>, %arg13: memref<1x1x768xf32, #tpu.memory_space<vmem>>, %arg14: memref<1x256x256xbf16, #tpu.memory_space<vmem>>, %arg15: memref<1x1x256xf32, #tpu.memory_space<vmem>>, %arg16: memref<1x1x256xf32, #tpu.memory_space<vmem>>, %arg17: memref<1x1x256xf32, #tpu.memory_space<vmem>>, %arg18: memref<1x256x1024xbf16, #tpu.memory_space<vmem>>, %arg19: memref<1x1x1024xf32, #tpu.memory_space<vmem>>, %arg20: memref<1x1024x256xbf16, #tpu.memory_space<vmem>>, %arg21: memref<1x1x256xf32, #tpu.memory_space<vmem>>, %arg22: memref<1x256xf32, #tpu.memory_space<vmem>>, %arg23: memref<1x256xf32, #tpu.memory_space<vmem>>, %arg24: memref<1x128x256xf32, #tpu.memory_space<vmem>>, %arg25: memref<128x256xf32, #tpu.memory_space<vmem>>) attributes {dimension_semantics = [#tpu.dimension_semantics<parallel>, #tpu.dimension_semantics<arbitrary>], iteration_bounds = array<i64: 2, 2>, scalar_prefetch = 0 : i64, scratch_operands = 1 : i64, tpu.core_type = #tpu.core_type<tc>, window_params = [{transform_indices = @transform_0, window_bounds = array<i64: 1, 128, 512>}, {pipeline_mode = #tpu.pipeline_mode<synchronous>, transform_indices = @transform_1, window_bounds = array<i64: 512, 256>}, {pipeline_mode = #tpu.pipeline_mode<synchronous>, transform_indices = @transform_2, window_bounds = array<i64: 1, 256>}, {pipeline_mode = #tpu.pipeline_mode<synchronous>, transform_indices = @transform_3, window_bounds = array<i64: 1, 256>}, {pipeline_mode = #tpu.pipeline_mode<synchronous>, transform_indices = @transform_4, window_bounds = array<i64: 1, 256>}, {pipeline_mode = #tpu.pipeline_mode<synchronous>, transform_indices = @transform_5, window_bounds = array<i64: 1, 256>}, {pipeline_mode = #tpu.pipeline_mode<synchronous>, transform_indices = @transform_6, window_bounds = array<i64: 256, 256>}, {pipeline_mode = #tpu.pipeline_mode<synchronous>, transform_indices = @transform_7, window_bounds = array<i64: 1, 256>}, {transform_indices = @transform_8, window_bounds = array<i64: 1, 1, 256>}, {transform_indices = @transform_9, window_bounds = array<i64: 1, 1, 256>}, {transform_indices = @transform_10, window_bounds = array<i64: 1, 256, 768>}, {transform_indices = @transform_11, window_bounds = array<i64: 1, 1, 768>}, {transform_indices = @transform_12, window_bounds = array<i64: 1, 256, 256>}, {transform_indices = @transform_13, window_bounds = array<i64: 1, 1, 256>}, {transform_indices = @transform_14, window_bounds = array<i64: 1, 1, 256>}, {transform_indices = @transform_15, window_bounds = array<i64: 1, 1, 256>}, {transform_indices = @transform_16, window_bounds = array<i64: 1, 256, 1024>}, {transform_indices = @transform_17, window_bounds = array<i64: 1, 1, 1024>}, {transform_indices = @transform_18, window_bounds = array<i64: 1, 1024, 256>}, {transform_indices = @transform_19, window_bounds = array<i64: 1, 1, 256>}, {pipeline_mode = #tpu.pipeline_mode<synchronous>, transform_indices = @transform_20, window_bounds = array<i64: 1, 256>}, {pipeline_mode = #tpu.pipeline_mode<synchronous>, transform_indices = @transform_21, window_bounds = array<i64: 1, 256>}, {transform_indices = @transform_22, window_bounds = array<i64: 1, 128, 256>}]} {
    %c0_i32 = arith.constant 0 : i32
    %0 = arith.cmpi eq, %arg1, %c0_i32 : i32
    %1 = arith.extui %0 : i1 to i32
    %c0_i32_0 = arith.constant 0 : i32
    %2 = arith.cmpi ne, %1, %c0_i32_0 : i32
    scf.if %2 {
      %c0_67 = arith.constant 0 : index
      %c0_68 = arith.constant 0 : index
      %c0_69 = arith.constant 0 : index
      %151 = vector.load %arg2[%c0_67, %c0_68, %c0_69] : memref<1x128x512xbf16, #tpu.memory_space<vmem>>, vector<1x128x512xbf16>
      %152 = vector.shape_cast %151 : vector<1x128x512xbf16> to vector<128x512xbf16>
      %c0_70 = arith.constant 0 : index
      %c0_71 = arith.constant 0 : index
      %153 = vector.load %arg3[%c0_70, %c0_71] : memref<512x256xbf16, #tpu.memory_space<vmem>>, vector<512x256xbf16>
      %cst_72 = arith.constant dense<0.000000e+00> : vector<128x256xf32>
      %154 = tpu.matmul %152, %153, %cst_72 {dimension_numbers = #tpu.dot_dimension_numbers<[1], [0], [0], [1], [0, 0, 1, 1], [], []>} : vector<128x512xbf16>, vector<512x256xbf16>, vector<128x256xf32> -> vector<128x256xf32>
      %c0_73 = arith.constant 0 : index
      %c0_74 = arith.constant 0 : index
      %155 = vector.load %arg4[%c0_73, %c0_74] : memref<1x256xf32, #tpu.memory_space<vmem>>, vector<1x256xf32>
      %c0_75 = arith.constant 0 : index
      %c0_76 = arith.constant 0 : index
      %156 = vector.load %arg5[%c0_75, %c0_76] : memref<1x256xf32, #tpu.memory_space<vmem>>, vector<1x256xf32>
      %cst_77 = arith.constant dense<0.000000e+00> : vector<128xf32>
      %157 = vector.multi_reduction <add>, %154, %cst_77 [1] : vector<128x256xf32> to vector<128xf32>
      %158 = vector.shape_cast %157 : vector<128xf32> to vector<128x1xf32>
      %cst_78 = arith.constant 2.560000e+02 : f32
      %159 = vector.broadcast %cst_78 : f32 to vector<128x1xf32>
      %160 = arith.divf %158, %159 : vector<128x1xf32>
      %161 = vector.broadcast %160 : vector<128x1xf32> to vector<128x256xf32>
      %162 = arith.subf %154, %161 : vector<128x256xf32>
      %163 = arith.mulf %162, %162 : vector<128x256xf32>
      %cst_79 = arith.constant dense<0.000000e+00> : vector<128xf32>
      %164 = vector.multi_reduction <add>, %163, %cst_79 [1] : vector<128x256xf32> to vector<128xf32>
      %165 = vector.shape_cast %164 : vector<128xf32> to vector<128x1xf32>
      %cst_80 = arith.constant 2.560000e+02 : f32
      %166 = vector.broadcast %cst_80 : f32 to vector<128x1xf32>
      %167 = arith.divf %165, %166 : vector<128x1xf32>
      %168 = vector.broadcast %160 : vector<128x1xf32> to vector<128x256xf32>
      %169 = arith.subf %154, %168 : vector<128x256xf32>
      %cst_81 = arith.constant 9.99999974E-6 : f32
      %170 = vector.broadcast %cst_81 : f32 to vector<128x1xf32>
      %171 = arith.addf %167, %170 : vector<128x1xf32>
      %172 = math.rsqrt %171 : vector<128x1xf32>
      %173 = vector.broadcast %172 : vector<128x1xf32> to vector<128x256xf32>
      %174 = arith.mulf %169, %173 : vector<128x256xf32>
      %175 = vector.broadcast %155 : vector<1x256xf32> to vector<128x256xf32>
      %176 = arith.mulf %174, %175 : vector<128x256xf32>
      %177 = vector.broadcast %156 : vector<1x256xf32> to vector<128x256xf32>
      %178 = arith.addf %176, %177 : vector<128x256xf32>
      %179 = arith.mulf %178, %178 : vector<128x256xf32>
      %180 = arith.mulf %178, %179 : vector<128x256xf32>
      %cst_82 = arith.constant 4.471500e-02 : f32
      %181 = vector.broadcast %cst_82 : f32 to vector<128x256xf32>
      %182 = arith.mulf %181, %180 : vector<128x256xf32>
      %183 = arith.addf %178, %182 : vector<128x256xf32>
      %cst_83 = arith.constant 0.797884583 : f32
      %184 = vector.broadcast %cst_83 : f32 to vector<128x256xf32>
      %185 = arith.mulf %184, %183 : vector<128x256xf32>
      %186 = math.tanh %185 : vector<128x256xf32>
      %cst_84 = arith.constant 1.000000e+00 : f32
      %187 = vector.broadcast %cst_84 : f32 to vector<128x256xf32>
      %188 = arith.addf %187, %186 : vector<128x256xf32>
      %cst_85 = arith.constant 5.000000e-01 : f32
      %189 = vector.broadcast %cst_85 : f32 to vector<128x256xf32>
      %190 = arith.mulf %189, %188 : vector<128x256xf32>
      %191 = arith.mulf %178, %190 : vector<128x256xf32>
      %c0_86 = arith.constant 0 : index
      %c0_87 = arith.constant 0 : index
      %192 = vector.load %arg6[%c0_86, %c0_87] : memref<1x256xf32, #tpu.memory_space<vmem>>, vector<1x256xf32>
      %c0_88 = arith.constant 0 : index
      %c0_89 = arith.constant 0 : index
      %193 = vector.load %arg7[%c0_88, %c0_89] : memref<1x256xf32, #tpu.memory_space<vmem>>, vector<1x256xf32>
      %cst_90 = arith.constant dense<0.000000e+00> : vector<128xf32>
      %194 = vector.multi_reduction <add>, %191, %cst_90 [1] : vector<128x256xf32> to vector<128xf32>
      %195 = vector.shape_cast %194 : vector<128xf32> to vector<128x1xf32>
      %cst_91 = arith.constant 2.560000e+02 : f32
      %196 = vector.broadcast %cst_91 : f32 to vector<128x1xf32>
      %197 = arith.divf %195, %196 : vector<128x1xf32>
      %198 = vector.broadcast %197 : vector<128x1xf32> to vector<128x256xf32>
      %199 = arith.subf %191, %198 : vector<128x256xf32>
      %200 = arith.mulf %199, %199 : vector<128x256xf32>
      %cst_92 = arith.constant dense<0.000000e+00> : vector<128xf32>
      %201 = vector.multi_reduction <add>, %200, %cst_92 [1] : vector<128x256xf32> to vector<128xf32>
      %202 = vector.shape_cast %201 : vector<128xf32> to vector<128x1xf32>
      %cst_93 = arith.constant 2.560000e+02 : f32
      %203 = vector.broadcast %cst_93 : f32 to vector<128x1xf32>
      %204 = arith.divf %202, %203 : vector<128x1xf32>
      %205 = vector.broadcast %197 : vector<128x1xf32> to vector<128x256xf32>
      %206 = arith.subf %191, %205 : vector<128x256xf32>
      %cst_94 = arith.constant 9.99999974E-6 : f32
      %207 = vector.broadcast %cst_94 : f32 to vector<128x1xf32>
      %208 = arith.addf %204, %207 : vector<128x1xf32>
      %209 = math.rsqrt %208 : vector<128x1xf32>
      %210 = vector.broadcast %209 : vector<128x1xf32> to vector<128x256xf32>
      %211 = arith.mulf %206, %210 : vector<128x256xf32>
      %212 = vector.broadcast %192 : vector<1x256xf32> to vector<128x256xf32>
      %213 = arith.mulf %211, %212 : vector<128x256xf32>
      %214 = vector.broadcast %193 : vector<1x256xf32> to vector<128x256xf32>
      %215 = arith.addf %213, %214 : vector<128x256xf32>
      %216 = arith.truncf %215 : vector<128x256xf32> to vector<128x256xbf16>
      %c0_95 = arith.constant 0 : index
      %c0_96 = arith.constant 0 : index
      %217 = vector.load %arg8[%c0_95, %c0_96] : memref<256x256xbf16, #tpu.memory_space<vmem>>, vector<256x256xbf16>
      %cst_97 = arith.constant dense<0.000000e+00> : vector<128x256xf32>
      %218 = tpu.matmul %216, %217, %cst_97 {dimension_numbers = #tpu.dot_dimension_numbers<[1], [0], [0], [1], [0, 0, 1, 1], [], []>} : vector<128x256xbf16>, vector<256x256xbf16>, vector<128x256xf32> -> vector<128x256xf32>
      %c0_98 = arith.constant 0 : index
      %c0_99 = arith.constant 0 : index
      %219 = vector.load %arg9[%c0_98, %c0_99] : memref<1x256xf32, #tpu.memory_space<vmem>>, vector<1x256xf32>
      %220 = vector.broadcast %219 : vector<1x256xf32> to vector<128x256xf32>
      %221 = arith.addf %218, %220 : vector<128x256xf32>
      %c0_100 = arith.constant 0 : index
      %c0_101 = arith.constant 0 : index
      %222 = vector.load %arg25[%c0_100, %c0_101] : memref<128x256xf32, #tpu.memory_space<vmem>>, vector<128x256xf32>
      tpu.vector_store %arg25[%c0_100, %c0_101], %221 {strides = array<i32>} : memref<128x256xf32, #tpu.memory_space<vmem>>, vector<128x256xf32>,
    } else {
    }
    %c0 = arith.constant 0 : index
    %c0_1 = arith.constant 0 : index
    %3 = vector.load %arg25[%c0, %c0_1] : memref<128x256xf32, #tpu.memory_space<vmem>>, vector<128x256xf32>
    %c0_2 = arith.constant 0 : index
    %c0_3 = arith.constant 0 : index
    %c0_4 = arith.constant 0 : index
    %4 = vector.load %arg10[%c0_2, %c0_3, %c0_4] : memref<1x1x256xf32, #tpu.memory_space<vmem>>, vector<1x1x256xf32>
    %5 = vector.shape_cast %4 : vector<1x1x256xf32> to vector<1x256xf32>
    %c0_5 = arith.constant 0 : index
    %c0_6 = arith.constant 0 : index
    %c0_7 = arith.constant 0 : index
    %6 = vector.load %arg11[%c0_5, %c0_6, %c0_7] : memref<1x1x256xf32, #tpu.memory_space<vmem>>, vector<1x1x256xf32>
    %7 = vector.shape_cast %6 : vector<1x1x256xf32> to vector<1x256xf32>
    %cst = arith.constant dense<0.000000e+00> : vector<128xf32>
    %8 = vector.multi_reduction <add>, %3, %cst [1] : vector<128x256xf32> to vector<128xf32>
    %9 = vector.shape_cast %8 : vector<128xf32> to vector<128x1xf32>
    %cst_8 = arith.constant 2.560000e+02 : f32
    %10 = vector.broadcast %cst_8 : f32 to vector<128x1xf32>
    %11 = arith.divf %9, %10 : vector<128x1xf32>
    %12 = vector.broadcast %11 : vector<128x1xf32> to vector<128x256xf32>
    %13 = arith.subf %3, %12 : vector<128x256xf32>
    %14 = arith.mulf %13, %13 : vector<128x256xf32>
    %cst_9 = arith.constant dense<0.000000e+00> : vector<128xf32>
    %15 = vector.multi_reduction <add>, %14, %cst_9 [1] : vector<128x256xf32> to vector<128xf32>
    %16 = vector.shape_cast %15 : vector<128xf32> to vector<128x1xf32>
    %cst_10 = arith.constant 2.560000e+02 : f32
    %17 = vector.broadcast %cst_10 : f32 to vector<128x1xf32>
    %18 = arith.divf %16, %17 : vector<128x1xf32>
    %19 = vector.broadcast %11 : vector<128x1xf32> to vector<128x256xf32>
    %20 = arith.subf %3, %19 : vector<128x256xf32>
    %cst_11 = arith.constant 9.99999974E-6 : f32
    %21 = vector.broadcast %cst_11 : f32 to vector<128x1xf32>
    %22 = arith.addf %18, %21 : vector<128x1xf32>
    %23 = math.rsqrt %22 : vector<128x1xf32>
    %24 = vector.broadcast %23 : vector<128x1xf32> to vector<128x256xf32>
    %25 = arith.mulf %20, %24 : vector<128x256xf32>
    %26 = vector.broadcast %5 : vector<1x256xf32> to vector<128x256xf32>
    %27 = arith.mulf %25, %26 : vector<128x256xf32>
    %28 = vector.broadcast %7 : vector<1x256xf32> to vector<128x256xf32>
    %29 = arith.addf %27, %28 : vector<128x256xf32>
    %30 = arith.truncf %29 : vector<128x256xf32> to vector<128x256xbf16>
    %c0_12 = arith.constant 0 : index
    %c0_13 = arith.constant 0 : index
    %c0_14 = arith.constant 0 : index
    %31 = vector.load %arg12[%c0_12, %c0_13, %c0_14] : memref<1x256x768xbf16, #tpu.memory_space<vmem>>, vector<1x256x768xbf16>
    %32 = vector.shape_cast %31 : vector<1x256x768xbf16> to vector<256x768xbf16>
    %cst_15 = arith.constant dense<0.000000e+00> : vector<128x768xf32>
    %33 = tpu.matmul %30, %32, %cst_15 {dimension_numbers = #tpu.dot_dimension_numbers<[1], [0], [0], [1], [0, 0, 1, 1], [], []>} : vector<128x256xbf16>, vector<256x768xbf16>, vector<128x768xf32> -> vector<128x768xf32>
    %c0_16 = arith.constant 0 : index
    %c0_17 = arith.constant 0 : index
    %c0_18 = arith.constant 0 : index
    %34 = vector.load %arg13[%c0_16, %c0_17, %c0_18] : memref<1x1x768xf32, #tpu.memory_space<vmem>>, vector<1x1x768xf32>
    %35 = vector.shape_cast %34 : vector<1x1x768xf32> to vector<1x768xf32>
    %36 = vector.broadcast %35 : vector<1x768xf32> to vector<128x768xf32>
    %37 = arith.addf %33, %36 : vector<128x768xf32>
    %38 = vector.extract_strided_slice %37 {offsets = [0, 0], sizes = [128, 256], strides = [1, 1]} : vector<128x768xf32> to vector<128x256xf32>
    %cst_19 = arith.constant 0.0883883461 : f32
    %39 = vector.broadcast %cst_19 : f32 to vector<128x256xf32>
    %40 = arith.mulf %38, %39 : vector<128x256xf32>
    %41 = vector.extract_strided_slice %37 {offsets = [0, 256], sizes = [128, 256], strides = [1, 1]} : vector<128x768xf32> to vector<128x256xf32>
    %42 = vector.extract_strided_slice %37 {offsets = [0, 512], sizes = [128, 256], strides = [1, 1]} : vector<128x768xf32> to vector<128x256xf32>
    %43 = vector.extract_strided_slice %40 {offsets = [0, 0], sizes = [128, 128], strides = [1, 1]} : vector<128x256xf32> to vector<128x128xf32>
    %44 = arith.truncf %43 : vector<128x128xf32> to vector<128x128xbf16>
    %45 = vector.extract_strided_slice %41 {offsets = [0, 0], sizes = [128, 128], strides = [1, 1]} : vector<128x256xf32> to vector<128x128xf32>
    %46 = arith.truncf %45 : vector<128x128xf32> to vector<128x128xbf16>
    %47 = vector.extract_strided_slice %42 {offsets = [0, 0], sizes = [128, 128], strides = [1, 1]} : vector<128x256xf32> to vector<128x128xf32>
    %48 = arith.truncf %47 : vector<128x128xf32> to vector<128x128xbf16>
    %cst_20 = arith.constant dense<0.000000e+00> : vector<128x128xf32>
    %49 = tpu.matmul %44, %46, %cst_20 {dimension_numbers = #tpu.dot_dimension_numbers<[1], [1], [0], [0], [0, 0, 1, 0], [], []>} : vector<128x128xbf16>, vector<128x128xbf16>, vector<128x128xf32> -> vector<128x128xf32>
    %cst_21 = arith.constant dense<0xFF800000> : vector<128xf32>
    %50 = vector.multi_reduction <maximumf>, %49, %cst_21 [1] : vector<128x128xf32> to vector<128xf32>
    %51 = vector.shape_cast %50 : vector<128xf32> to vector<128x1xf32>
    %52 = vector.broadcast %51 : vector<128x1xf32> to vector<128x128xf32>
    %53 = arith.subf %49, %52 : vector<128x128xf32>
    %54 = math.exp %53 : vector<128x128xf32>
    %cst_22 = arith.constant dense<0.000000e+00> : vector<128xf32>
    %55 = vector.multi_reduction <add>, %54, %cst_22 [1] : vector<128x128xf32> to vector<128xf32>
    %56 = vector.shape_cast %55 : vector<128xf32> to vector<128x1xf32>
    %57 = tpu.reciprocal %56 {approx = true} : vector<128x1xf32> -> vector<128x1xf32>
    %58 = vector.broadcast %57 : vector<128x1xf32> to vector<128x128xf32>
    %59 = arith.mulf %54, %58 : vector<128x128xf32>
    %60 = arith.truncf %59 : vector<128x128xf32> to vector<128x128xbf16>
    %cst_23 = arith.constant dense<0.000000e+00> : vector<128x128xf32>
    %61 = tpu.matmul %60, %48, %cst_23 {dimension_numbers = #tpu.dot_dimension_numbers<[1], [0], [0], [1], [0, 0, 1, 1], [], []>} : vector<128x128xbf16>, vector<128x128xbf16>, vector<128x128xf32> -> vector<128x128xf32>
    %62 = vector.extract_strided_slice %40 {offsets = [0, 128], sizes = [128, 128], strides = [1, 1]} : vector<128x256xf32> to vector<128x128xf32>
    %63 = arith.truncf %62 : vector<128x128xf32> to vector<128x128xbf16>
    %64 = vector.extract_strided_slice %41 {offsets = [0, 128], sizes = [128, 128], strides = [1, 1]} : vector<128x256xf32> to vector<128x128xf32>
    %65 = arith.truncf %64 : vector<128x128xf32> to vector<128x128xbf16>
    %66 = vector.extract_strided_slice %42 {offsets = [0, 128], sizes = [128, 128], strides = [1, 1]} : vector<128x256xf32> to vector<128x128xf32>
    %67 = arith.truncf %66 : vector<128x128xf32> to vector<128x128xbf16>
    %cst_24 = arith.constant dense<0.000000e+00> : vector<128x128xf32>
    %68 = tpu.matmul %63, %65, %cst_24 {dimension_numbers = #tpu.dot_dimension_numbers<[1], [1], [0], [0], [0, 0, 1, 0], [], []>} : vector<128x128xbf16>, vector<128x128xbf16>, vector<128x128xf32> -> vector<128x128xf32>
    %cst_25 = arith.constant dense<0xFF800000> : vector<128xf32>
    %69 = vector.multi_reduction <maximumf>, %68, %cst_25 [1] : vector<128x128xf32> to vector<128xf32>
    %70 = vector.shape_cast %69 : vector<128xf32> to vector<128x1xf32>
    %71 = vector.broadcast %70 : vector<128x1xf32> to vector<128x128xf32>
    %72 = arith.subf %68, %71 : vector<128x128xf32>
    %73 = math.exp %72 : vector<128x128xf32>
    %cst_26 = arith.constant dense<0.000000e+00> : vector<128xf32>
    %74 = vector.multi_reduction <add>, %73, %cst_26 [1] : vector<128x128xf32> to vector<128xf32>
    %75 = vector.shape_cast %74 : vector<128xf32> to vector<128x1xf32>
    %76 = tpu.reciprocal %75 {approx = true} : vector<128x1xf32> -> vector<128x1xf32>
    %77 = vector.broadcast %76 : vector<128x1xf32> to vector<128x128xf32>
    %78 = arith.mulf %73, %77 : vector<128x128xf32>
    %79 = arith.truncf %78 : vector<128x128xf32> to vector<128x128xbf16>
    %cst_27 = arith.constant dense<0.000000e+00> : vector<128x128xf32>
    %80 = tpu.matmul %79, %67, %cst_27 {dimension_numbers = #tpu.dot_dimension_numbers<[1], [0], [0], [1], [0, 0, 1, 1], [], []>} : vector<128x128xbf16>, vector<128x128xbf16>, vector<128x128xf32> -> vector<128x128xf32>
    %81 = tpu.concatenate %61, %80 in 1 : vector<128x128xf32>, vector<128x128xf32> -> vector<128x256xf32>
    %82 = arith.truncf %81 : vector<128x256xf32> to vector<128x256xbf16>
    %c0_28 = arith.constant 0 : index
    %c0_29 = arith.constant 0 : index
    %c0_30 = arith.constant 0 : index
    %83 = vector.load %arg14[%c0_28, %c0_29, %c0_30] : memref<1x256x256xbf16, #tpu.memory_space<vmem>>, vector<1x256x256xbf16>
    %84 = vector.shape_cast %83 : vector<1x256x256xbf16> to vector<256x256xbf16>
    %cst_31 = arith.constant dense<0.000000e+00> : vector<128x256xf32>
    %85 = tpu.matmul %82, %84, %cst_31 {dimension_numbers = #tpu.dot_dimension_numbers<[1], [0], [0], [1], [0, 0, 1, 1], [], []>} : vector<128x256xbf16>, vector<256x256xbf16>, vector<128x256xf32> -> vector<128x256xf32>
    %86 = arith.addf %3, %85 : vector<128x256xf32>
    %c0_32 = arith.constant 0 : index
    %c0_33 = arith.constant 0 : index
    %c0_34 = arith.constant 0 : index
    %87 = vector.load %arg15[%c0_32, %c0_33, %c0_34] : memref<1x1x256xf32, #tpu.memory_space<vmem>>, vector<1x1x256xf32>
    %88 = vector.shape_cast %87 : vector<1x1x256xf32> to vector<1x256xf32>
    %89 = vector.broadcast %88 : vector<1x256xf32> to vector<128x256xf32>
    %90 = arith.addf %86, %89 : vector<128x256xf32>
    %c0_35 = arith.constant 0 : index
    %c0_36 = arith.constant 0 : index
    %c0_37 = arith.constant 0 : index
    %91 = vector.load %arg16[%c0_35, %c0_36, %c0_37] : memref<1x1x256xf32, #tpu.memory_space<vmem>>, vector<1x1x256xf32>
    %92 = vector.shape_cast %91 : vector<1x1x256xf32> to vector<1x256xf32>
    %c0_38 = arith.constant 0 : index
    %c0_39 = arith.constant 0 : index
    %c0_40 = arith.constant 0 : index
    %93 = vector.load %arg17[%c0_38, %c0_39, %c0_40] : memref<1x1x256xf32, #tpu.memory_space<vmem>>, vector<1x1x256xf32>
    %94 = vector.shape_cast %93 : vector<1x1x256xf32> to vector<1x256xf32>
    %cst_41 = arith.constant dense<0.000000e+00> : vector<128xf32>
    %95 = vector.multi_reduction <add>, %90, %cst_41 [1] : vector<128x256xf32> to vector<128xf32>
    %96 = vector.shape_cast %95 : vector<128xf32> to vector<128x1xf32>
    %cst_42 = arith.constant 2.560000e+02 : f32
    %97 = vector.broadcast %cst_42 : f32 to vector<128x1xf32>
    %98 = arith.divf %96, %97 : vector<128x1xf32>
    %99 = vector.broadcast %98 : vector<128x1xf32> to vector<128x256xf32>
    %100 = arith.subf %90, %99 : vector<128x256xf32>
    %101 = arith.mulf %100, %100 : vector<128x256xf32>
    %cst_43 = arith.constant dense<0.000000e+00> : vector<128xf32>
    %102 = vector.multi_reduction <add>, %101, %cst_43 [1] : vector<128x256xf32> to vector<128xf32>
    %103 = vector.shape_cast %102 : vector<128xf32> to vector<128x1xf32>
    %cst_44 = arith.constant 2.560000e+02 : f32
    %104 = vector.broadcast %cst_44 : f32 to vector<128x1xf32>
    %105 = arith.divf %103, %104 : vector<128x1xf32>
    %106 = vector.broadcast %98 : vector<128x1xf32> to vector<128x256xf32>
    %107 = arith.subf %90, %106 : vector<128x256xf32>
    %cst_45 = arith.constant 9.99999974E-6 : f32
    %108 = vector.broadcast %cst_45 : f32 to vector<128x1xf32>
    %109 = arith.addf %105, %108 : vector<128x1xf32>
    %110 = math.rsqrt %109 : vector<128x1xf32>
    %111 = vector.broadcast %110 : vector<128x1xf32> to vector<128x256xf32>
    %112 = arith.mulf %107, %111 : vector<128x256xf32>
    %113 = vector.broadcast %92 : vector<1x256xf32> to vector<128x256xf32>
    %114 = arith.mulf %112, %113 : vector<128x256xf32>
    %115 = vector.broadcast %94 : vector<1x256xf32> to vector<128x256xf32>
    %116 = arith.addf %114, %115 : vector<128x256xf32>
    %117 = arith.truncf %116 : vector<128x256xf32> to vector<128x256xbf16>
    %c0_46 = arith.constant 0 : index
    %c0_47 = arith.constant 0 : index
    %c0_48 = arith.constant 0 : index
    %118 = vector.load %arg18[%c0_46, %c0_47, %c0_48] : memref<1x256x1024xbf16, #tpu.memory_space<vmem>>, vector<1x256x1024xbf16>
    %119 = vector.shape_cast %118 : vector<1x256x1024xbf16> to vector<256x1024xbf16>
    %cst_49 = arith.constant dense<0.000000e+00> : vector<128x1024xf32>
    %120 = tpu.matmul %117, %119, %cst_49 {dimension_numbers = #tpu.dot_dimension_numbers<[1], [0], [0], [1], [0, 0, 1, 1], [], []>} : vector<128x256xbf16>, vector<256x1024xbf16>, vector<128x1024xf32> -> vector<128x1024xf32>
    %c0_50 = arith.constant 0 : index
    %c0_51 = arith.constant 0 : index
    %c0_52 = arith.constant 0 : index
    %121 = vector.load %arg19[%c0_50, %c0_51, %c0_52] : memref<1x1x1024xf32, #tpu.memory_space<vmem>>, vector<1x1x1024xf32>
    %122 = vector.shape_cast %121 : vector<1x1x1024xf32> to vector<1x1024xf32>
    %123 = vector.broadcast %122 : vector<1x1024xf32> to vector<128x1024xf32>
    %124 = arith.addf %120, %123 : vector<128x1024xf32>
    %125 = arith.mulf %124, %124 : vector<128x1024xf32>
    %126 = arith.mulf %124, %125 : vector<128x1024xf32>
    %cst_53 = arith.constant 4.471500e-02 : f32
    %127 = vector.broadcast %cst_53 : f32 to vector<128x1024xf32>
    %128 = arith.mulf %127, %126 : vector<128x1024xf32>
    %129 = arith.addf %124, %128 : vector<128x1024xf32>
    %cst_54 = arith.constant 0.797884583 : f32
    %130 = vector.broadcast %cst_54 : f32 to vector<128x1024xf32>
    %131 = arith.mulf %130, %129 : vector<128x1024xf32>
    %132 = math.tanh %131 : vector<128x1024xf32>
    %cst_55 = arith.constant 1.000000e+00 : f32
    %133 = vector.broadcast %cst_55 : f32 to vector<128x1024xf32>
    %134 = arith.addf %133, %132 : vector<128x1024xf32>
    %cst_56 = arith.constant 5.000000e-01 : f32
    %135 = vector.broadcast %cst_56 : f32 to vector<128x1024xf32>
    %136 = arith.mulf %135, %134 : vector<128x1024xf32>
    %137 = arith.mulf %124, %136 : vector<128x1024xf32>
    %138 = arith.truncf %137 : vector<128x1024xf32> to vector<128x1024xbf16>
    %c0_57 = arith.constant 0 : index
    %c0_58 = arith.constant 0 : index
    %c0_59 = arith.constant 0 : index
    %139 = vector.load %arg20[%c0_57, %c0_58, %c0_59] : memref<1x1024x256xbf16, #tpu.memory_space<vmem>>, vector<1x1024x256xbf16>
    %140 = vector.shape_cast %139 : vector<1x1024x256xbf16> to vector<1024x256xbf16>
    %cst_60 = arith.constant dense<0.000000e+00> : vector<128x256xf32>
    %141 = tpu.matmul %138, %140, %cst_60 {dimension_numbers = #tpu.dot_dimension_numbers<[1], [0], [0], [1], [0, 0, 1, 1], [], []>} : vector<128x1024xbf16>, vector<1024x256xbf16>, vector<128x256xf32> -> vector<128x256xf32>
    %142 = arith.addf %90, %141 : vector<128x256xf32>
    %c0_61 = arith.constant 0 : index
    %c0_62 = arith.constant 0 : index
    %c0_63 = arith.constant 0 : index
    %143 = vector.load %arg21[%c0_61, %c0_62, %c0_63] : memref<1x1x256xf32, #tpu.memory_space<vmem>>, vector<1x1x256xf32>
    %144 = vector.shape_cast %143 : vector<1x1x256xf32> to vector<1x256xf32>
    %145 = vector.broadcast %144 : vector<1x256xf32> to vector<128x256xf32>
    %146 = arith.addf %142, %145 : vector<128x256xf32>
    %c0_64 = arith.constant 0 : index
    %c0_65 = arith.constant 0 : index
    %147 = vector.load %arg25[%c0_64, %c0_65] : memref<128x256xf32, #tpu.memory_space<vmem>>, vector<128x256xf32>
    tpu.vector_store %arg25[%c0_64, %c0_65], %146 {strides = array<i32>} : memref<128x256xf32, #tpu.memory_space<vmem>>, vector<128x256xf32>,
    %c1_i32 = arith.constant 1 : i32
    %148 = arith.cmpi eq, %arg1, %c1_i32 : i32
    %149 = arith.extui %148 : i1 to i32
    %c0_i32_66 = arith.constant 0 : i32
    %150 = arith.cmpi ne, %149, %c0_i32_66 : i32
    scf.if %150 {
      %c0_67 = arith.constant 0 : index
      %c0_68 = arith.constant 0 : index
      %151 = vector.load %arg22[%c0_67, %c0_68] : memref<1x256xf32, #tpu.memory_space<vmem>>, vector<1x256xf32>
      %c0_69 = arith.constant 0 : index
      %c0_70 = arith.constant 0 : index
      %152 = vector.load %arg23[%c0_69, %c0_70] : memref<1x256xf32, #tpu.memory_space<vmem>>, vector<1x256xf32>
      %cst_71 = arith.constant dense<0.000000e+00> : vector<128xf32>
      %153 = vector.multi_reduction <add>, %146, %cst_71 [1] : vector<128x256xf32> to vector<128xf32>
      %154 = vector.shape_cast %153 : vector<128xf32> to vector<128x1xf32>
      %cst_72 = arith.constant 2.560000e+02 : f32
      %155 = vector.broadcast %cst_72 : f32 to vector<128x1xf32>
      %156 = arith.divf %154, %155 : vector<128x1xf32>
      %157 = vector.broadcast %156 : vector<128x1xf32> to vector<128x256xf32>
      %158 = arith.subf %146, %157 : vector<128x256xf32>
      %159 = arith.mulf %158, %158 : vector<128x256xf32>
      %cst_73 = arith.constant dense<0.000000e+00> : vector<128xf32>
      %160 = vector.multi_reduction <add>, %159, %cst_73 [1] : vector<128x256xf32> to vector<128xf32>
      %161 = vector.shape_cast %160 : vector<128xf32> to vector<128x1xf32>
      %cst_74 = arith.constant 2.560000e+02 : f32
      %162 = vector.broadcast %cst_74 : f32 to vector<128x1xf32>
      %163 = arith.divf %161, %162 : vector<128x1xf32>
      %164 = vector.broadcast %156 : vector<128x1xf32> to vector<128x256xf32>
      %165 = arith.subf %146, %164 : vector<128x256xf32>
      %cst_75 = arith.constant 9.99999974E-6 : f32
      %166 = vector.broadcast %cst_75 : f32 to vector<128x1xf32>
      %167 = arith.addf %163, %166 : vector<128x1xf32>
      %168 = math.rsqrt %167 : vector<128x1xf32>
      %169 = vector.broadcast %168 : vector<128x1xf32> to vector<128x256xf32>
      %170 = arith.mulf %165, %169 : vector<128x256xf32>
      %171 = vector.broadcast %151 : vector<1x256xf32> to vector<128x256xf32>
      %172 = arith.mulf %170, %171 : vector<128x256xf32>
      %173 = vector.broadcast %152 : vector<1x256xf32> to vector<128x256xf32>
      %174 = arith.addf %172, %173 : vector<128x256xf32>
      %c0_76 = arith.constant 0 : index
      %c0_77 = arith.constant 0 : index
      %c0_78 = arith.constant 0 : index
      %175 = vector.load %arg24[%c0_76, %c0_77, %c0_78] : memref<1x128x256xf32, #tpu.memory_space<vmem>>, vector<1x128x256xf32>
      %176 = vector.shape_cast %175 : vector<1x128x256xf32> to vector<128x256xf32>
      %177 = vector.shape_cast %174 : vector<128x256xf32> to vector<1x128x256xf32>
      tpu.vector_store %arg24[%c0_76, %c0_77, %c0_78], %177 {strides = array<i32>} : memref<1x128x256xf32, #tpu.memory_space<vmem>>, vector<1x128x256xf32>,
    } else {
    }
    return
  }
  func.func @transform_0(%arg0: i32, %arg1: i32) -> (i32, i32, i32) {
    %c0_i32 = arith.constant 0 : i32
    %c0_i32_0 = arith.constant 0 : i32
    %c0_i32_1 = arith.constant 0 : i32
    return %arg0, %c0_i32, %c0_i32_0 : i32, i32, i32
  }
  func.func @transform_1(%arg0: i32, %arg1: i32) -> (i32, i32) {
    %c0_i32 = arith.constant 0 : i32
    %c0_i32_0 = arith.constant 0 : i32
    %c0_i32_1 = arith.constant 0 : i32
    return %c0_i32, %c0_i32_0 : i32, i32
  }
  func.func @transform_2(%arg0: i32, %arg1: i32) -> (i32, i32) {
    %c0_i32 = arith.constant 0 : i32
    %c0_i32_0 = arith.constant 0 : i32
    %c0_i32_1 = arith.constant 0 : i32
    return %c0_i32, %c0_i32_0 : i32, i32
  }
  func.func @transform_3(%arg0: i32, %arg1: i32) -> (i32, i32) {
    %c0_i32 = arith.constant 0 : i32
    %c0_i32_0 = arith.constant 0 : i32
    %c0_i32_1 = arith.constant 0 : i32
    return %c0_i32, %c0_i32_0 : i32, i32
  }
  func.func @transform_4(%arg0: i32, %arg1: i32) -> (i32, i32) {
    %c0_i32 = arith.constant 0 : i32
    %c0_i32_0 = arith.constant 0 : i32
    %c0_i32_1 = arith.constant 0 : i32
    return %c0_i32, %c0_i32_0 : i32, i32
  }
  func.func @transform_5(%arg0: i32, %arg1: i32) -> (i32, i32) {
    %c0_i32 = arith.constant 0 : i32
    %c0_i32_0 = arith.constant 0 : i32
    %c0_i32_1 = arith.constant 0 : i32
    return %c0_i32, %c0_i32_0 : i32, i32
  }
  func.func @transform_6(%arg0: i32, %arg1: i32) -> (i32, i32) {
    %c0_i32 = arith.constant 0 : i32
    %c0_i32_0 = arith.constant 0 : i32
    %c0_i32_1 = arith.constant 0 : i32
    return %c0_i32, %c0_i32_0 : i32, i32
  }
  func.func @transform_7(%arg0: i32, %arg1: i32) -> (i32, i32) {
    %c0_i32 = arith.constant 0 : i32
    %c0_i32_0 = arith.constant 0 : i32
    %c0_i32_1 = arith.constant 0 : i32
    return %c0_i32, %c0_i32_0 : i32, i32
  }
  func.func @transform_8(%arg0: i32, %arg1: i32) -> (i32, i32, i32) {
    %c0_i32 = arith.constant 0 : i32
    %c0_i32_0 = arith.constant 0 : i32
    %c0_i32_1 = arith.constant 0 : i32
    return %arg1, %c0_i32, %c0_i32_0 : i32, i32, i32
  }
  func.func @transform_9(%arg0: i32, %arg1: i32) -> (i32, i32, i32) {
    %c0_i32 = arith.constant 0 : i32
    %c0_i32_0 = arith.constant 0 : i32
    %c0_i32_1 = arith.constant 0 : i32
    return %arg1, %c0_i32, %c0_i32_0 : i32, i32, i32
  }
  func.func @transform_10(%arg0: i32, %arg1: i32) -> (i32, i32, i32) {
    %c0_i32 = arith.constant 0 : i32
    %c0_i32_0 = arith.constant 0 : i32
    %c0_i32_1 = arith.constant 0 : i32
    return %arg1, %c0_i32, %c0_i32_0 : i32, i32, i32
  }
  func.func @transform_11(%arg0: i32, %arg1: i32) -> (i32, i32, i32) {
    %c0_i32 = arith.constant 0 : i32
    %c0_i32_0 = arith.constant 0 : i32
    %c0_i32_1 = arith.constant 0 : i32
    return %arg1, %c0_i32, %c0_i32_0 : i32, i32, i32
  }
  func.func @transform_12(%arg0: i32, %arg1: i32) -> (i32, i32, i32) {
    %c0_i32 = arith.constant 0 : i32
    %c0_i32_0 = arith.constant 0 : i32
    %c0_i32_1 = arith.constant 0 : i32
    return %arg1, %c0_i32, %c0_i32_0 : i32, i32, i32
  }
  func.func @transform_13(%arg0: i32, %arg1: i32) -> (i32, i32, i32) {
    %c0_i32 = arith.constant 0 : i32
    %c0_i32_0 = arith.constant 0 : i32
    %c0_i32_1 = arith.constant 0 : i32
    return %arg1, %c0_i32, %c0_i32_0 : i32, i32, i32
  }
  func.func @transform_14(%arg0: i32, %arg1: i32) -> (i32, i32, i32) {
    %c0_i32 = arith.constant 0 : i32
    %c0_i32_0 = arith.constant 0 : i32
    %c0_i32_1 = arith.constant 0 : i32
    return %arg1, %c0_i32, %c0_i32_0 : i32, i32, i32
  }
  func.func @transform_15(%arg0: i32, %arg1: i32) -> (i32, i32, i32) {
    %c0_i32 = arith.constant 0 : i32
    %c0_i32_0 = arith.constant 0 : i32
    %c0_i32_1 = arith.constant 0 : i32
    return %arg1, %c0_i32, %c0_i32_0 : i32, i32, i32
  }
  func.func @transform_16(%arg0: i32, %arg1: i32) -> (i32, i32, i32) {
    %c0_i32 = arith.constant 0 : i32
    %c0_i32_0 = arith.constant 0 : i32
    %c0_i32_1 = arith.constant 0 : i32
    return %arg1, %c0_i32, %c0_i32_0 : i32, i32, i32
  }
  func.func @transform_17(%arg0: i32, %arg1: i32) -> (i32, i32, i32) {
    %c0_i32 = arith.constant 0 : i32
    %c0_i32_0 = arith.constant 0 : i32
    %c0_i32_1 = arith.constant 0 : i32
    return %arg1, %c0_i32, %c0_i32_0 : i32, i32, i32
  }
  func.func @transform_18(%arg0: i32, %arg1: i32) -> (i32, i32, i32) {
    %c0_i32 = arith.constant 0 : i32
    %c0_i32_0 = arith.constant 0 : i32
    %c0_i32_1 = arith.constant 0 : i32
    return %arg1, %c0_i32, %c0_i32_0 : i32, i32, i32
  }
  func.func @transform_19(%arg0: i32, %arg1: i32) -> (i32, i32, i32) {
    %c0_i32 = arith.constant 0 : i32
    %c0_i32_0 = arith.constant 0 : i32
    %c0_i32_1 = arith.constant 0 : i32
    return %arg1, %c0_i32, %c0_i32_0 : i32, i32, i32
  }
  func.func @transform_20(%arg0: i32, %arg1: i32) -> (i32, i32) {
    %c0_i32 = arith.constant 0 : i32
    %c0_i32_0 = arith.constant 0 : i32
    %c0_i32_1 = arith.constant 0 : i32
    return %c0_i32, %c0_i32_0 : i32, i32
  }
  func.func @transform_21(%arg0: i32, %arg1: i32) -> (i32, i32) {
    %c0_i32 = arith.constant 0 : i32
    %c0_i32_0 = arith.constant 0 : i32
    %c0_i32_1 = arith.constant 0 : i32
    return %c0_i32, %c0_i32_0 : i32, i32
  }
  func.func @transform_22(%arg0: i32, %arg1: i32) -> (i32, i32, i32) {
    %c0_i32 = arith.constant 0 : i32
    %c0_i32_0 = arith.constant 0 : i32
    %c0_i32_1 = arith.constant 0 : i32
    return %arg0, %c0_i32, %c0_i32_0 : i32, i32, i32
  }
}

</mosaic_0001>

<bundles_post_ra>
// kernel: transformer_audio_encoder_forward.1
= control target key start
LH: loop header
LB: loop body
LE: loop exit
PB: predicated region body
PF: predicated region fallthrough
CT: control target
= control target key end

     0   :  { %s18772_s0 = inlined_call_operand.vmem [shape: bf16[2,128,512], index: 0, kind: input, shape index: {}]   ;;  %s18773_s1 = inlined_call_operand.vmem [shape: bf16[512,256], index: 1, kind: input, shape index: {}]   ;;  %s18774_s2 = inlined_call_operand.vmem [shape: f32[1,256], index: 2, kind: input, shape index: {}]   ;;  %s18775_s3 = inlined_call_operand.vmem [shape: f32[1,256], index: 3, kind: input, shape index: {}]   ;;  %s18776_s4 = inlined_call_operand.vmem [shape: f32[1,256], index: 4, kind: input, shape index: {}]   ;;  %s18777_s5 = inlined_call_operand.vmem [shape: f32[1,256], index: 5, kind: input, shape index: {}]   ;;  %s18778_s6 = inlined_call_operand.hbm [shape: bf16[256,256], index: 6, kind: input, shape index: {}]   ;;  %s18779_s7 = inlined_call_operand.vmem [shape: f32[1,256], index: 7, kind: input, shape index: {}]   ;;  %s18780_s8 = inlined_call_operand.vmem [shape: f32[2,1,256], index: 8, kind: input, shape index: {}]   ;;  %s18781_s9 = inlined_call_operand.vmem [shape: f32[2,1,256], index: 9, kind: input, shape index: {}]   ;;  %s18782_s10 = inlined_call_operand.vmem [shape: bf16[2,256,768], index: 10, kind: input, shape index: {}]   ;;  %s18783_s11 = inlined_call_operand.vmem [shape: f32[2,1,768], index: 11, kind: input, shape index: {}]   ;;  %s18784_s12 = inlined_call_operand.hbm [shape: bf16[2,256,256], index: 12, kind: input, shape index: {}]   ;;  %s18785_s13 = inlined_call_operand.vmem [shape: f32[2,1,256], index: 13, kind: input, shape index: {}]   ;;  %s18786_s14 = inlined_call_operand.vmem [shape: f32[2,1,256], index: 14, kind: input, shape index: {}]   ;;  %s18787_s15 = inlined_call_operand.vmem [shape: f32[2,1,256], index: 15, kind: input, shape index: {}]   ;;  %s18788_s16 = inlined_call_operand.vmem [shape: bf16[2,256,1024], index: 16, kind: input, shape index: {}]   ;;  %s18789_s17 = inlined_call_operand.vmem [shape: f32[2,1,1024], index: 17, kind: input, shape index: {}]   ;;  %s18790_s18 = inlined_call_operand.vmem [shape: bf16[2,1024,256], index: 18, kind: input, shape index: {}]   ;;  %s18791_s19 = inlined_call_operand.vmem [shape: f32[2,1,256], index: 19, kind: input, shape index: {}]   ;;  %s18792_s20 = inlined_call_operand.vmem [shape: f32[1,256], index: 20, kind: input, shape index: {}]   ;;  %s18793_s21 = inlined_call_operand.vmem [shape: f32[1,256], index: 21, kind: input, shape index: {}]   ;;  %s18794_s22 = inlined_call_operand.hbm [shape: f32[2,128,256], index: 22, kind: output, shape index: {}]  }
   0x1   :  { %18924 = sst [smem:[#allocation90_spill]] %s18772_s0 }
   0x2   :  { %18925 = sst [smem:[#allocation91_spill]] %s18773_s1 }
   0x3   :  { %18926 = sst [smem:[#allocation92_spill]] %s18774_s2 }
   0x4   :  { %18927 = sst [smem:[#allocation93_spill]] %s18775_s3 }
   0x5   :  { %18928 = sst [smem:[#allocation94_spill]] %s18776_s4 }
   0x6   :  { %18929 = sst [smem:[#allocation95_spill]] %s18777_s5 }
   0x7   :  { %18930 = sst [smem:[#allocation96_spill]] %s18778_s6 }
   0x8   :  { %18931 = sst [smem:[#allocation97_spill]] %s18779_s7 }
   0x9   :  { %18932 = sst [smem:[#allocation98_spill]] %s18782_s10 }
   0xa   :  { %18933 = sst [smem:[#allocation99_spill]] %s18783_s11 }
   0xb   :  { %18934 = sst [smem:[#allocation100_spill]] %s18784_s12 }
   0xc   :  { %18935 = sst [smem:[#allocation101_spill]] %s18786_s14 }
   0xd   :  { %18936 = sst [smem:[#allocation102_spill]] %s18787_s15 }
   0xe   :  { %18937 = sst [smem:[#allocation103_spill]] %s18788_s16 }
   0xf   :  { %18938 = sst [smem:[#allocation104_spill]] %s18789_s17 }
  0x10   :  { %18939 = sst [smem:[#allocation105_spill]] %s18790_s18 }
  0x11   :  { %18940 = sst [smem:[#allocation106_spill]] %s18791_s19 }
  0x12   :  { %18941 = sst [smem:[#allocation107_spill]] %s18792_s20 }
  0x13   :  { %18942 = sst [smem:[#allocation108_spill]] %s18793_s21 }
  0x14   :  { %18943 = sst [smem:[#allocation109_spill]] %s18794_s22 }
  0x15   :  { %27 = vsyncpa [#allocation4], 0 }
  0x16   :  { %28 = vsyncpa [#allocation7], 0 }
  0x17   :  { %30 = vsyncpa [#allocation7 + $0x1], 0 }
  0x18   :  { %31 = vsyncpa [#allocation5], 0 }
  0x19   :  { %33 = vsyncpa [#allocation5 + $0x1], 0  ;;  %s12879_s3 = smov 0   ;;  %s12881_s28 = smov 0  }
  0x1a   :  { %s12883_s29 = smov 0   ;;  %s12885_s30 = smov 0  }
  0x1b   :  { %s12887_s4 = smov 0   ;;  %s12889_s0 = smov 0  }
  0x1c   :  { %s12891_s23 = smov 0   ;;  %s12893_s1 = smov 0  }
  0x1d   :  { %s12895_s5 = smov 0   ;;  %s12897_s24 = smov 0  }
  0x1e   :  { %s12899_s6 = smov 0  }
  0x1f LB: > { %18944 = sst [smem:[#allocation12_spill]] %s12715_s3  ;;  %s10403_s25 = sadd.s32 4294967295, %s12755_s6   ;;  %s12755_s6 = sphi %s12899_s6, %s39_s6   ;;  %s12751_s24 = sphi %s12897_s24, %s19289_s24   ;;  %s12747_s5 = sphi %s12895_s5, %s19288_s5   ;;  %s12743_s1 = sphi %s12893_s1, %s19287_s1   ;;  %s12739_s23 = sphi %s12891_s23, %s19286_s23   ;;  %s12735_s0 = sphi %s12889_s0, %s19285_s0   ;;  %s12731_s4 = sphi %s12887_s4, %s19284_s4   ;;  %s12727_s30 = sphi %s12885_s30, %s19283_s30   ;;  %s12723_s29 = sphi %s12883_s29, %s19282_s29   ;;  %s12719_s28 = sphi %s12881_s28, %s19281_s28   ;;  %s12715_s3 = sphi %s12879_s3, %s19280_s3  }
  0x20   : > { %18945 = sst [smem:[#allocation13_spill]] %s12719_s28  ;;  %s10404_s26 = sadd.s32 4294967294, %s12755_s6  }
  0x21   : > { %18946 = sst [smem:[#allocation14_spill]] %s12723_s29  ;;  %p348_p0 = scmp.ne.s32.totalorder %s12731_s4, %s12727_s30 }
  0x22   : > { %18947 = sst [smem:[#allocation15_spill]] %s12731_s4  ;;  %p12935_p1 = scmp.eq.s32.totalorder %s10403_s25, 0 }
  0x23   : > { %18948 = sst [smem:[#allocation16_spill]] %s12735_s0  ;;  %p595_p2 = scmp.ne.s32.totalorder %s12723_s29, %s12719_s28 }
  0x24   : > { %18949 = sst [smem:[#allocation17_spill]] %s12743_s1  ;;  %p12944_p3 = por %p12935_p1, %p348_p0 }
  0x25   : > { %18950 = sst [smem:[#allocation18_spill]] %s12747_s5  ;;  %p596_p4 = scmp.eq.s32.totalorder %s10403_s25, 3 }
  0x26   : > { %18951 = sst [smem:[#allocation19_spill]] %s12751_s24  ;;  %p601_p5 = scmp.ne.s32.totalorder %s12719_s28, %s12715_s3 }
  0x27   : > { %18952 = sst [smem:[#allocation20_spill]] %s12755_s6  ;;  %p602_p6 = scmp.eq.s32.totalorder %s10404_s26, 3 }
  0x28   : > { %p12950_p7 = por %p596_p4, %p595_p2  ;;  %p10405_p8 = scmp.ge.s32.totalorder %s12755_s6, 1 }
  0x29   : > { %p12955_p9 = por %p602_p6, %p601_p5  ;;  %p609_p10 = scmp.lt.s32.totalorder %s12755_s6, 5 }
  0x2a   : > { %s18955_s21 = scalar_select %p12950_p7, 1, 0 }
  0x2b   : > { %s18957_s30 = scalar_select %p12955_p9, 1, 0 }
  0x2c   : > { %18956 = sst [smem:[#allocation21_spill]] %s18955_s21  ;;  %p12960_p11 = pnand %p10405_p8, %p609_p10 }
  0x2d   : > { %18958 = sst [smem:[#allocation22_spill]] %s18957_s30  ;;  %s12757_s20 = smov [#allocation3]  }
  0x2e   : > { %s636_s7 = sshll.u32 %s12757_s20, 4  ;;  %p11219_p12 = pneg %p12960_p11  ;;  %s637_s7 = int_to_ptr.vmem [resolvable:$true] %s636_s7 }
  0x2f   : > { %s12588_s25 = scalar_lea.vmem %s637_s7, 4096  ;;  %p12596_p6 = scmp.lt.s32.totalorder %s637_s7, %s637_s7 }
  0x30   : > { %p11220_p13 = pnand %p11219_p12, %p12935_p1  ;;  %p12589_p2 = scmp.ne.s32.totalorder %s637_s7, %s12588_s25 }
  0x31   : > { %p12597_p9 = scmp.lt.s32.totalorder %s12588_s25, %s12588_s25 }
  0x32   : > { %p12579_p0 = pneg %p11220_p13 }
  0x33   : > { %p12598_p7 = por %p12597_p9, %p12596_p6 }
  0x34   : > { %p12591_p4 = pnand %p12589_p2, %p12579_p0 }
  0x36   : > { %p12592_p5 = pneg %p12591_p4 }
  0x38   : > { %p12599_p8 = pnand %p12598_p7, %p12592_p5 }
  0x3a   : > { %12602 = shalt.err (!%p12599_p8)
}
  0x3b   : > { %s18802_s26 = smov 128   ;;  %s18803_s20 = smov 8  }
  0x3c   : > { %s18960_s25 = sld [smem:[#allocation96_spill]]  ;;  %s48_s21 = sadd.s32 1, %s12747_s5 }
  0x3d   : > { %p49_p7 = scmp.ge.s32.totalorder %s48_s21, 2  ;;  %s51_s19 = sadd.s32 1, %s12751_s24 }
  0x3e   : > { %s335_s18 = sadd.s32 1, %s12735_s0  ;;  %p342_p9 = scmp.ne.s32.totalorder %s12735_s0, %s12731_s4 }
  0x3f   : > { %s19291_s21 = smov (%p49_p7, %s48_s21), 0  ;;  %s19293_s19 = smov (!%p49_p7, %s51_s19), %s12751_s24 }
  0x40   : > { %18961 = sst [smem:[#allocation23_spill]] %s19291_s21  ;;  %s332_s17 = ssub.s32 %s12747_s5, %s19291_s21 }
  0x41   : > { %p343_p10 = scmp.eq.s32.totalorder %s12755_s6, 0  ;;  %p53_p12 = scmp.ge.s32.totalorder %s19293_s19, 2 }
  0x42   : > { %11222 = dma.hbm_to_vmem [thread:$0]  (!%p11220_p13), %s18960_s25, 4096, %s637_s7, [#allocation4], %s18802_s26, %s18802_s26, %s18803_s20  }
  0x43   : > { %p333_p0 = scmp.eq.s32.totalorder %s332_s17, 0  ;;  %p12985_p2 = por %p343_p10, %p342_p9 }
  0x44   : > { %p11232_p13 = scmp.lt.s32.totalorder %s12755_s6, 4  ;;  %s19295_s19 = smov (%p53_p12, %s19293_s19), 0 }
  0x45   : > { %18963 = sst [smem:[#allocation24_spill]] %s19295_s19  ;;  %s582_s30 = ssub.s32 %s12751_s24, %s19295_s19 }
  0x46   : > { %s12993_s3 = scalar_select %p333_p0, %s12735_s0, %s335_s18  }
  0x47   : > { %s696_s25 = sand.u32 1, %s12735_s0   ;;  %p583_p4 = scmp.eq.s32.totalorder %s582_s30, 0 }
  0x48   : > { %18964 = sst [smem:[#allocation25_spill]] %s12993_s3  ;;  %s10408_s26 = sshll.u32 %s696_s25, 8 }
  0x49   : > { %s10948_s20 = sshll.u32 %s12747_s5, 12  ;;  %s18965_s21 = sadd.s32 1, %s12723_s29 }
  0x4a   : > { %s13002_s16 = scalar_select %p583_p4, %s12723_s29, %s18965_s21  }
  0x4b   : > { %s18967_s12 = sld [smem:[#allocation100_spill]]  ;;  %s700_s10 = scalar_lea.vmem [#allocation6], %s10408_s26 }
  0x4c   : > { %18966 = sst [smem:[#allocation26_spill]] %s13002_s16  ;;  %s707_s14 = sshll.u32 %s700_s10, 4  ;;  %s708_s14 = int_to_ptr.vmem [resolvable:$true] %s707_s14 }
  0x4d   : > { %p13009_p5 = pnand %p11232_p13, %p12985_p2  ;;  %s697_s18 = scalar_lea.sflag [#allocation7], %s696_s25 }
  0x4e   : > { %s12616_s30 = scalar_lea.vmem %s708_s14, 4096  ;;  %s12760_s21 = smov [#allocation6]  }
  0x4f   : > { %p12605_p6 = pneg %p13009_p5  ;;  %p12617_p8 = scmp.ne.s32.totalorder %s708_s14, %s12616_s30 }
  0x50   : > { %s12621_s19 = sshll.u32 %s12760_s21, 4  ;;  %s12622_s19 = int_to_ptr.vmem [resolvable:$false] %s12621_s19 }
  0x51   : > { %s706_s15 = scalar_lea.hbm %s18967_s12, %s10948_s20  ;;  %p12619_p7 = pnand %p12617_p8, %p12605_p6 }
  0x52   : > { %s12623_s11 = scalar_lea.vmem %s12622_s19, 8192  ;;  %p12624_p10 = scmp.lt.s32.totalorder %s708_s14, %s12622_s19 }
  0x53   : > { %p12620_p9 = pneg %p12619_p7  ;;  %p12625_p12 = scmp.lt.s32.totalorder %s12623_s11, %s12616_s30 }
  0x55   : > { %p12626_p0 = por %p12625_p12, %p12624_p10 }
  0x57   : > { %p12627_p2 = pnand %p12626_p0, %p12620_p9 }
  0x59   : > { %12630 = shalt.err (!%p12627_p2)
}
  0x5a   : > { %s18969_s10 = smov 8   ;;  %s18970_s26 = smov 128  }
  0x5b   : > { %11226 = dma.hbm_to_vmem [thread:$0]  (!%p13009_p5), %s706_s15, 4096, %s708_s14, %s697_s18, %s18970_s26, %s18970_s26, %s18969_s10  }
  0x5c   : > { %770 = sbr.rel (%p12960_p11) target bundleno = 4407 (0x1137), region = 108 }
  0x61   : > { %12702 = dma.done.wait (%p12935_p1), [#allocation4], 4096  }
  0x62   : > { %12704 = vsyncadd (%p12935_p1), [#allocation4], 4294963200  ;;  %s776_s19 = sand.u32 1, %s12731_s4  }
  0x63   : > { %s10413_s20 = sshll.u32 %s776_s19, 8  ;;  %s777_s7 = scalar_lea.sflag [#allocation7], %s776_s19 }
  0x64   : > { %s13027_s25 = scalar_lea.vmem [#allocation6], %s10413_s20 }
  0x65   : > { %12706 = dma.done.wait (%p12944_p3), %s777_s7, 4096  }
  0x66   : > { %12708 = vsyncadd (%p12944_p3), %s777_s7, 4294963200  ;;  %s18808_s14 = sand.u32 1, %s12719_s28   ;;  %p893_p1 = scmp.lt.s32.totalorder %s12743_s1, 1 }
  0x67   : > { %s10414_s15 = sshll.u32 %s18808_s14, 8  ;;  %p898_p11 = scmp.lt.s32.totalorder %s12739_s23, 1 }
  0x68   : > { %s894_s6 = scalar_select %p893_p1, %s12743_s1, 1 }
  0x69   : > { %s899_s2 = scalar_select %p898_p11, %s12739_s23, 1 }
  0x6a   : > { %s10949_s27 = sshll.u32 %s894_s6, 8  ;;  %s18971_s30 = sld [smem:[#allocation90_spill]] }
  0x6b   : > { %s13045_s22 = sshll.u32 %s899_s2, 1  ;;  %s11209_s6 = smul.u32 768, %s899_s2 }
  0x6c   : > { %s18972_s24 = sld [smem:[#allocation101_spill]]  ;;  %s10950_s17 = sshll.u32 %s899_s2, 10 }
  0x6d   : > { %s18973_s3 = sld [smem:[#allocation98_spill]]  ;;  %s13096_s19 = scalar_lea.vmem [#allocation8], %s10414_s15 }
  0x6e   : > { %s18975_s29 = sld [smem:[#allocation99_spill]]  ;;  %p10429_p3 = scmp.ne.s32.totalorder %s12739_s23, 0 }
  0x6f   : > { %s18976_s1 = sld [smem:[#allocation103_spill]] }
  0x70   : > { %s13043_s21 = scalar_lea.vmem %s18971_s30, %s10949_s27  ;;  %s11210_s30 = smul.u32 6, %s899_s2 }
  0x71   : > { %s18978_s16 = sld [smem:[#allocation105_spill]] }
  0x72   : > { %s922_s11 = scalar_lea.vmem %s18972_s24, %s13045_s22  ;;  %s10425_s24 = sshll.u32 %s899_s2, 3 }
  0x73   : > { %s13066_s0 = scalar_lea.vmem %s18973_s3, %s11209_s6  ;;  %s18977_s3 = sld [smem:[#allocation104_spill]] }
  0x74   : > { %s13075_s28 = scalar_lea.vmem %s18975_s29, %s11210_s30  ;;  %s18979_s30 = sld [smem:[#allocation106_spill]] }
  0x75   : > { %s13080_s12 = scalar_lea.vmem %s18976_s1, %s10950_s17 }
  0x76   : > { %949 = sbr.rel (%p10429_p3) target bundleno = 1357 (0x54d), region = 120 }
  0x77   : > { %s13090_s26 = scalar_lea.vmem %s18978_s16, %s10950_s17 }
  0x79   : > { %s13085_s6 = scalar_lea.vmem %s18977_s3, %s10425_s24 }
  0x7a   : > { %s944_s20 = scalar_lea.vmem %s18979_s30, %s13045_s22 }
  0x7b   : > { %s18980_s18 = sld [smem:[#allocation91_spill]]  ;;  %v11426_v49 = vld [vmem:[%s13043_s21 + $0x4] ss:$16 sps:$4 sm:$0xff]   ;;  %v11429_v51 = vld [vmem:[%s13043_s21 + $0xc] ss:$16 sps:$4 sm:$0xff]  }
  0x7c   : > { %1558 = vmatprep.mubr.bf16.mxu0 %v11426_v49  ;;  %1671 = vmatprep.mubr.bf16.mxu1 %v11429_v51  ;;  %s18983_s10 = sld [smem:[#allocation92_spill]] }
  0x7d   : > { %s18984_s7 = sld [smem:[#allocation93_spill]] }
  0x7e   : > { %s18985_s1 = sld [smem:[#allocation94_spill]] }
  0x7f   : > { %s18986_s24 = sld [smem:[#allocation95_spill]] }
  0x80   : > { %s18989_s5 = sld [smem:[#allocation97_spill]] }
  0x81   : > { %v11328_v0 = vld [vmem:[%s18980_s18 + $0x74] ss:$8 sps:$4 sm:$0xff]   ;;  %v11332_v2 = vld [vmem:[%s18980_s18 + $0x70] ss:$8 sps:$4 sm:$0xff]   ;;  %v11334_v4 = vld [vmem:[%s18980_s18 + $0x64] ss:$8 sps:$4 sm:$0xff]  }
  0x82   : > { %v11330_v1 = vld [vmem:[%s18980_s18 + $0x174] ss:$8 sps:$4 sm:$0xff]   ;;  %1526 = vmatprep.subr.bf16.mxu0 %v11328_v0  ;;  %v11333_v3 = vld [vmem:[%s18980_s18 + $0x170] ss:$8 sps:$4 sm:$0xff]   ;;  %v11336_v5 = vld [vmem:[%s18980_s18 + $0x164] ss:$8 sps:$4 sm:$0xff]  }
  0x83   : > { %1639 = vmatprep.subr.bf16.mxu1 %v11330_v1  ;;  %1527 = vmatpush1.bf16.msra.mxu0 %v11332_v2  ;;  %v11338_v6 = vld [vmem:[%s18980_s18 + $0x60] ss:$8 sps:$4 sm:$0xff]   ;;  %v11340_v8 = vld [vmem:[%s18980_s18 + $0x54] ss:$8 sps:$4 sm:$0xff]   ;;  %v11344_v10 = vld [vmem:[%s18980_s18 + $0x50] ss:$8 sps:$4 sm:$0xff]  }
  0x84   : > { %1640 = vmatpush1.bf16.msra.mxu1 %v11333_v3  ;;  %1528 = vmatprep.subr.bf16.mxu0 %v11334_v4  ;;  %v11339_v7 = vld [vmem:[%s18980_s18 + $0x160] ss:$8 sps:$4 sm:$0xff]   ;;  %v11342_v9 = vld [vmem:[%s18980_s18 + $0x154] ss:$8 sps:$4 sm:$0xff]   ;;  %v11345_v11 = vld [vmem:[%s18980_s18 + $0x150] ss:$8 sps:$4 sm:$0xff]  }
  0x85   : > { %1641 = vmatprep.subr.bf16.mxu1 %v11336_v5  ;;  %v11346_v12 = vld [vmem:[%s18980_s18 + $0x44] ss:$8 sps:$4 sm:$0xff]   ;;  %v11350_v14 = vld [vmem:[%s18980_s18 + $0x40] ss:$8 sps:$4 sm:$0xff]   ;;  %v11352_v16 = vld [vmem:[%s18980_s18 + $0x34] ss:$8 sps:$4 sm:$0xff]  }
  0x86   : > { %v11348_v13 = vld [vmem:[%s18980_s18 + $0x144] ss:$8 sps:$4 sm:$0xff]   ;;  %v11351_v15 = vld [vmem:[%s18980_s18 + $0x140] ss:$8 sps:$4 sm:$0xff]   ;;  %v11354_v17 = vld [vmem:[%s18980_s18 + $0x134] ss:$8 sps:$4 sm:$0xff]  }
  0x87   : > { %1529 = vmatpush1.bf16.msra.mxu0 %v11338_v6  ;;  %v11356_v18 = vld [vmem:[%s18980_s18 + $0x30] ss:$8 sps:$4 sm:$0xff]   ;;  %v11358_v20 = vld [vmem:[%s18980_s18 + $0x24] ss:$8 sps:$4 sm:$0xff]   ;;  %v11362_v22 = vld [vmem:[%s18980_s18 + $0x20] ss:$8 sps:$4 sm:$0xff]  }
  0x88   : > { %1642 = vmatpush1.bf16.msra.mxu1 %v11339_v7  ;;  %1530 = vmatprep.subr.bf16.mxu0 %v11340_v8  ;;  %v11357_v19 = vld [vmem:[%s18980_s18 + $0x130] ss:$8 sps:$4 sm:$0xff]   ;;  %v11360_v21 = vld [vmem:[%s18980_s18 + $0x124] ss:$8 sps:$4 sm:$0xff]   ;;  %v11363_v23 = vld [vmem:[%s18980_s18 + $0x120] ss:$8 sps:$4 sm:$0xff]  }
  0x89   : > { %1643 = vmatprep.subr.bf16.mxu1 %v11342_v9  ;;  %v11364_v24 = vld [vmem:[%s18980_s18 + $0x14] ss:$8 sps:$4 sm:$0xff]   ;;  %v11368_v26 = vld [vmem:[%s18980_s18 + $0x10] ss:$8 sps:$4 sm:$0xff]   ;;  %v11370_v28 = vld [vmem:[%s18980_s18 + $0x4] ss:$8 sps:$4 sm:$0xff]  }
  0x8a   : > { %v11366_v25 = vld [vmem:[%s18980_s18 + $0x114] ss:$8 sps:$4 sm:$0xff]   ;;  %v11369_v27 = vld [vmem:[%s18980_s18 + $0x110] ss:$8 sps:$4 sm:$0xff]   ;;  %v11372_v29 = vld [vmem:[%s18980_s18 + $0x104] ss:$8 sps:$4 sm:$0xff]  }
  0x8b   : > { %1531 = vmatpush1.bf16.msra.mxu0 %v11344_v10  ;;  %v11374_v30 = vld [vmem:[%s18980_s18] ss:$8 sps:$4 sm:$0xff]   ;;  %v11376_v32 = vld [vmem:[%s18980_s18 + $0xf4] ss:$8 sps:$4 sm:$0xff]   ;;  %v11380_v34 = vld [vmem:[%s18980_s18 + $0xf0] ss:$8 sps:$4 sm:$0xff]  }
  0x8c   : > { %1644 = vmatpush1.bf16.msra.mxu1 %v11345_v11  ;;  %1532 = vmatprep.subr.bf16.mxu0 %v11346_v12  ;;  %v11375_v31 = vld [vmem:[%s18980_s18 + $0x100] ss:$8 sps:$4 sm:$0xff]   ;;  %v11378_v33 = vld [vmem:[%s18980_s18 + $0x1f4] ss:$8 sps:$4 sm:$0xff]   ;;  %v11381_v35 = vld [vmem:[%s18980_s18 + $0x1f0] ss:$8 sps:$4 sm:$0xff]  }
  0x8d   : > { %1645 = vmatprep.subr.bf16.mxu1 %v11348_v13  ;;  %v11382_v36 = vld [vmem:[%s18980_s18 + $0xe4] ss:$8 sps:$4 sm:$0xff]   ;;  %v11386_v38 = vld [vmem:[%s18980_s18 + $0xe0] ss:$8 sps:$4 sm:$0xff]   ;;  %v11388_v40 = vld [vmem:[%s18980_s18 + $0xd4] ss:$8 sps:$4 sm:$0xff]  }
  0x8e   : > { %v11384_v37 = vld [vmem:[%s18980_s18 + $0x1e4] ss:$8 sps:$4 sm:$0xff]   ;;  %v11387_v39 = vld [vmem:[%s18980_s18 + $0x1e0] ss:$8 sps:$4 sm:$0xff]   ;;  %v11390_v41 = vld [vmem:[%s18980_s18 + $0x1d4] ss:$8 sps:$4 sm:$0xff]  }
  0x8f   : > { %1533 = vmatpush1.bf16.msra.mxu0 %v11350_v14  ;;  %v11392_v42 = vld [vmem:[%s18980_s18 + $0xd0] ss:$8 sps:$4 sm:$0xff]   ;;  %v11394_v44 = vld [vmem:[%s18980_s18 + $0xc4] ss:$8 sps:$4 sm:$0xff]   ;;  %v11398_v46 = vld [vmem:[%s18980_s18 + $0xc0] ss:$8 sps:$4 sm:$0xff]  }
  0x90   : > { %1646 = vmatpush1.bf16.msra.mxu1 %v11351_v15  ;;  %1534 = vmatprep.subr.bf16.mxu0 %v11352_v16  ;;  %v11393_v43 = vld [vmem:[%s18980_s18 + $0x1d0] ss:$8 sps:$4 sm:$0xff]   ;;  %v11396_v45 = vld [vmem:[%s18980_s18 + $0x1c4] ss:$8 sps:$4 sm:$0xff]   ;;  %v11399_v47 = vld [vmem:[%s18980_s18 + $0x1c0] ss:$8 sps:$4 sm:$0xff]  }
  0x91   : > { %1647 = vmatprep.subr.bf16.mxu1 %v11354_v17  ;;  %v11400_v48 = vld [vmem:[%s18980_s18 + $0xb4] ss:$8 sps:$4 sm:$0xff]   ;;  %v11404_v52 = vld [vmem:[%s18980_s18 + $0xb0] ss:$8 sps:$4 sm:$0xff]   ;;  %v11406_v54 = vld [vmem:[%s18980_s18 + $0xa4] ss:$8 sps:$4 sm:$0xff]  }
  0x92   : > { %v11402_v50 = vld [vmem:[%s18980_s18 + $0x1b4] ss:$8 sps:$4 sm:$0xff]   ;;  %v11405_v53 = vld [vmem:[%s18980_s18 + $0x1b0] ss:$8 sps:$4 sm:$0xff]   ;;  %v11408_v55 = vld [vmem:[%s18980_s18 + $0x1a4] ss:$8 sps:$4 sm:$0xff]  }
  0x93   : > { %1535 = vmatpush1.bf16.msra.mxu0 %v11356_v18  ;;  %v11410_v56 = vld [vmem:[%s18980_s18 + $0xa0] ss:$8 sps:$4 sm:$0xff]   ;;  %v11412_v58 = vld [vmem:[%s18980_s18 + $0x94] ss:$8 sps:$4 sm:$0xff]   ;;  %v11416_v60 = vld [vmem:[%s18980_s18 + $0x90] ss:$8 sps:$4 sm:$0xff]  }
  0x94   : > { %1648 = vmatpush1.bf16.msra.mxu1 %v11357_v19  ;;  %1536 = vmatprep.subr.bf16.mxu0 %v11358_v20  ;;  %v11411_v57 = vld [vmem:[%s18980_s18 + $0x1a0] ss:$8 sps:$4 sm:$0xff]   ;;  %v11414_v59 = vld [vmem:[%s18980_s18 + $0x194] ss:$8 sps:$4 sm:$0xff]   ;;  %v11417_v61 = vld [vmem:[%s18980_s18 + $0x190] ss:$8 sps:$4 sm:$0xff]  }
  0x95   : > { %1649 = vmatprep.subr.bf16.mxu1 %v11360_v21  ;;  %v11418_v62 = vld [vmem:[%s18980_s18 + $0x84] ss:$8 sps:$4 sm:$0xff]   ;;  %v11422_v0 = vld [vmem:[%s18980_s18 + $0x80] ss:$8 sps:$4 sm:$0xff]  }
  0x96   : > { %v11420_v63 = vld [vmem:[%s18980_s18 + $0x184] ss:$8 sps:$4 sm:$0xff]   ;;  %v11423_v1 = vld [vmem:[%s18980_s18 + $0x180] ss:$8 sps:$4 sm:$0xff]  }
  0x97   : > { %1537 = vmatpush1.bf16.msra.mxu0 %v11362_v22  ;;  %v11424_v2 = vld [vmem:[%s13043_s21] ss:$16 sps:$4 sm:$0xff]   ;;  %v11427_v3 = vld [vmem:[%s13043_s21 + $0x8] ss:$16 sps:$4 sm:$0xff]   ;;  %v11430_v4 = vld [vmem:[%s13043_s21 + $0x24] ss:$16 sps:$4 sm:$0xff]  }
  0x98   : > { %1650 = vmatpush1.bf16.msra.mxu1 %v11363_v23  ;;  %1538 = vmatprep.subr.bf16.mxu0 %v11364_v24  ;;  %v11432_v5 = vld [vmem:[%s13043_s21 + $0x2c] ss:$16 sps:$4 sm:$0xff]   ;;  %v11434_v6 = vld [vmem:[%s13043_s21 + $0x20] ss:$16 sps:$4 sm:$0xff]   ;;  %v11435_v7 = vld [vmem:[%s13043_s21 + $0x28] ss:$16 sps:$4 sm:$0xff]  }
  0x99   : > { %1651 = vmatprep.subr.bf16.mxu1 %v11366_v25  ;;  %v11436_v8 = vld [vmem:[%s13043_s21 + $0x44] ss:$16 sps:$4 sm:$0xff]   ;;  %v11438_v9 = vld [vmem:[%s13043_s21 + $0x4c] ss:$16 sps:$4 sm:$0xff]   ;;  %v11440_v10 = vld [vmem:[%s13043_s21 + $0x40] ss:$16 sps:$4 sm:$0xff]  }
  0x9a   : > { %v11441_v11 = vld [vmem:[%s13043_s21 + $0x48] ss:$16 sps:$4 sm:$0xff]   ;;  %v11442_v12 = vld [vmem:[%s13043_s21 + $0x64] ss:$16 sps:$4 sm:$0xff]   ;;  %v11444_v13 = vld [vmem:[%s13043_s21 + $0x6c] ss:$16 sps:$4 sm:$0xff]  }
  0x9b   : > { %1539 = vmatpush1.bf16.msra.mxu0 %v11368_v26  ;;  %v11446_v14 = vld [vmem:[%s13043_s21 + $0x60] ss:$16 sps:$4 sm:$0xff]   ;;  %v11447_v15 = vld [vmem:[%s13043_s21 + $0x68] ss:$16 sps:$4 sm:$0xff]   ;;  %v11448_v16 = vld [vmem:[%s13043_s21 + $0x84] ss:$16 sps:$4 sm:$0xff]  }
  0x9c   : > { %1652 = vmatpush1.bf16.msra.mxu1 %v11369_v27  ;;  %1540 = vmatprep.subr.bf16.mxu0 %v11370_v28  ;;  %v11450_v17 = vld [vmem:[%s13043_s21 + $0x8c] ss:$16 sps:$4 sm:$0xff]   ;;  %v11452_v18 = vld [vmem:[%s13043_s21 + $0x80] ss:$16 sps:$4 sm:$0xff]   ;;  %v11453_v19 = vld [vmem:[%s13043_s21 + $0x88] ss:$16 sps:$4 sm:$0xff]  }
  0x9d   : > { %1653 = vmatprep.subr.bf16.mxu1 %v11372_v29  ;;  %v11454_v20 = vld [vmem:[%s13043_s21 + $0xa4] ss:$16 sps:$4 sm:$0xff]   ;;  %v11456_v21 = vld [vmem:[%s13043_s21 + $0xac] ss:$16 sps:$4 sm:$0xff]   ;;  %v11458_v22 = vld [vmem:[%s13043_s21 + $0xa0] ss:$16 sps:$4 sm:$0xff]  }
  0x9e   : > { %v11459_v23 = vld [vmem:[%s13043_s21 + $0xa8] ss:$16 sps:$4 sm:$0xff]   ;;  %v11460_v24 = vld [vmem:[%s13043_s21 + $0xc4] ss:$16 sps:$4 sm:$0xff]   ;;  %v11462_v25 = vld [vmem:[%s13043_s21 + $0xcc] ss:$16 sps:$4 sm:$0xff]  }
  0x9f   : > { %1541 = vmatpush1.bf16.msra.mxu0 %v11374_v30  ;;  %v11464_v26 = vld [vmem:[%s13043_s21 + $0xc0] ss:$16 sps:$4 sm:$0xff]   ;;  %v11465_v27 = vld [vmem:[%s13043_s21 + $0xc8] ss:$16 sps:$4 sm:$0xff]   ;;  %v11466_v28 = vld [vmem:[%s13043_s21 + $0xe4] ss:$16 sps:$4 sm:$0xff]  }
  0xa0   : > { %1654 = vmatpush1.bf16.msra.mxu1 %v11375_v31  ;;  %1542 = vmatprep.subr.bf16.mxu0 %v11376_v32  ;;  %v11468_v29 = vld [vmem:[%s13043_s21 + $0xec] ss:$16 sps:$4 sm:$0xff]   ;;  %v11470_v30 = vld [vmem:[%s13043_s21 + $0xe0] ss:$16 sps:$4 sm:$0xff]   ;;  %v11471_v31 = vld [vmem:[%s13043_s21 + $0xe8] ss:$16 sps:$4 sm:$0xff]  }
  0xa1   : > { %1655 = vmatprep.subr.bf16.mxu1 %v11378_v33 }
  0xa3   : > { %1543 = vmatpush2.bf16.msra.mxu0 %v11380_v34 }
  0xa4   : > { %1656 = vmatpush2.bf16.msra.mxu1 %v11381_v35  ;;  %1544 = vmatprep.subr.bf16.mxu0 %v11382_v36 }
  0xa5   : > { %1657 = vmatprep.subr.bf16.mxu1 %v11384_v37 }
  0xa7   : > { %1545 = vmatpush2.bf16.msra.mxu0 %v11386_v38 }
  0xa8   : > { %1658 = vmatpush2.bf16.msra.mxu1 %v11387_v39  ;;  %1546 = vmatprep.subr.bf16.mxu0 %v11388_v40 }
  0xa9   : > { %1659 = vmatprep.subr.bf16.mxu1 %v11390_v41 }
  0xab   : > { %1547 = vmatpush2.bf16.msra.mxu0 %v11392_v42 }
  0xac   : > { %1660 = vmatpush2.bf16.msra.mxu1 %v11393_v43  ;;  %1548 = vmatprep.subr.bf16.mxu0 %v11394_v44 }
  0xad   : > { %1661 = vmatprep.subr.bf16.mxu1 %v11396_v45 }
  0xaf   : > { %1549 = vmatpush2.bf16.msra.mxu0 %v11398_v46 }
  0xb0   : > { %1662 = vmatpush2.bf16.msra.mxu1 %v11399_v47  ;;  %1550 = vmatprep.subr.bf16.mxu0 %v11400_v48 }
  0xb1   : > { %1663 = vmatprep.subr.bf16.mxu1 %v11402_v50 }
  0xb3   : > { %1551 = vmatpush2.bf16.msra.mxu0 %v11404_v52 }
  0xb4   : > { %1664 = vmatpush2.bf16.msra.mxu1 %v11405_v53  ;;  %1552 = vmatprep.subr.bf16.mxu0 %v11406_v54 }
  0xb5   : > { %1665 = vmatprep.subr.bf16.mxu1 %v11408_v55 }
  0xb7   : > { %1553 = vmatpush2.bf16.msra.mxu0 %v11410_v56 }
  0xb8   : > { %1666 = vmatpush2.bf16.msra.mxu1 %v11411_v57  ;;  %1554 = vmatprep.subr.bf16.mxu0 %v11412_v58 }
  0xb9   : > { %1667 = vmatprep.subr.bf16.mxu1 %v11414_v59 }
  0xbb   : > { %1555 = vmatpush2.bf16.msra.mxu0 %v11416_v60 }
  0xbc   : > { %1668 = vmatpush2.bf16.msra.mxu1 %v11417_v61  ;;  %1556 = vmatprep.subr.bf16.mxu0 %v11418_v62 }
  0xbd   : > { %1669 = vmatprep.subr.bf16.mxu1 %v11420_v63 }
  0xbf   : > { %1557 = vmatpush2.bf16.msra.mxu0 %v11422_v0 }
  0xc0   : > { %1670 = vmatpush2.bf16.msra.mxu1 %v11423_v1 }
  0xc2   : > { %1559 = vmatmul.mubr.bf16.vlgmr.msra.gmra.mxu0 %v11424_v2 }
  0xc3   : > { %1672 = vmatmul.mubr.bf16.vlgmr.msra.gmra.mxu1 %v11427_v3  ;;  %1568 = vmatprep.mubr.bf16.mxu0 %v11430_v4 }
  0xc4   : > { %1681 = vmatprep.mubr.bf16.mxu1 %v11432_v5 }
  0xca   : > { %1569 = vmatmul.mubr.bf16.gmra.mxu0 %v11434_v6 }
  0xcb   : > { %1682 = vmatmul.mubr.bf16.gmra.mxu1 %v11435_v7  ;;  %1578 = vmatprep.mubr.bf16.mxu0 %v11436_v8 }
  0xcc   : > { %1691 = vmatprep.mubr.bf16.mxu1 %v11438_v9 }
  0xd2   : > { %1579 = vmatmul.mubr.bf16.gmra.mxu0 %v11440_v10 }
  0xd3   : > { %1692 = vmatmul.mubr.bf16.gmra.mxu1 %v11441_v11  ;;  %1588 = vmatprep.mubr.bf16.mxu0 %v11442_v12 }
  0xd4   : > { %1701 = vmatprep.mubr.bf16.mxu1 %v11444_v13 }
  0xda   : > { %1589 = vmatmul.mubr.bf16.gmra.mxu0 %v11446_v14 }
  0xdb   : > { %1702 = vmatmul.mubr.bf16.gmra.mxu1 %v11447_v15  ;;  %1598 = vmatprep.mubr.bf16.mxu0 %v11448_v16 }
  0xdc   : > { %1711 = vmatprep.mubr.bf16.mxu1 %v11450_v17 }
  0xe2   : > { %1599 = vmatmul.mubr.bf16.gmra.mxu0 %v11452_v18 }
  0xe3   : > { %1712 = vmatmul.mubr.bf16.gmra.mxu1 %v11453_v19  ;;  %1608 = vmatprep.mubr.bf16.mxu0 %v11454_v20 }
  0xe4   : > { %1721 = vmatprep.mubr.bf16.mxu1 %v11456_v21 }
  0xea   : > { %1609 = vmatmul.mubr.bf16.gmra.mxu0 %v11458_v22 }
  0xeb   : > { %1722 = vmatmul.mubr.bf16.gmra.mxu1 %v11459_v23  ;;  %1618 = vmatprep.mubr.bf16.mxu0 %v11460_v24 }
  0xec   : > { %1731 = vmatprep.mubr.bf16.mxu1 %v11462_v25 }
  0xf2   : > { %1619 = vmatmul.mubr.bf16.gmra.mxu0 %v11464_v26 }
  0xf3   : > { %1732 = vmatmul.mubr.bf16.gmra.mxu1 %v11465_v27  ;;  %1628 = vmatprep.mubr.bf16.mxu0 %v11466_v28 }
  0xf4   : > { %1741 = vmatprep.mubr.bf16.mxu1 %v11468_v29 }
  0xfa   : > { %1629 = vmatmul.mubr.bf16.gmra.mxu0 %v11470_v30 }
  0xfb   : > { %1742 = vmatmul.mubr.bf16.gmra.mxu1 %v11471_v31 }
 0x182   : > { %v1560_v32 = vpop.f32.mrf.mxu0 }
 0x183   : > { %v1673_v33 = vpop.f32.mrf.mxu1 }
 0x184   : > { %v1562_v34 = vpop.f32.mrf.mxu0  ;;  %v13323_v36 = vadd.f32 %v1673_v33, %v1560_v32 }
 0x185   : > { %v1675_v35 = vpop.f32.mrf.mxu1 }
 0x186   : > { %v13325_v37 = vadd.f32 %v1675_v35, %v1562_v34  ;;  %v1564_v38 = vpop.f32.mrf.mxu0 }
 0x187   : > { %v1677_v39 = vpop.f32.mrf.mxu1 }
 0x188   : > { %v1754_v40 = vadd.f32 %v13325_v37, %v13323_v36  ;;  %v1566_v41 = vpop.f32.mrf.mxu0  ;;  %v13329_v43 = vadd.f32 %v1677_v39, %v1564_v38 }
 0x189   : > { %v1679_v42 = vpop.f32.mrf.mxu1 }
 0x18a   : > { %v13331_v44 = vadd.f32 %v1679_v42, %v1566_v41  ;;  %1755 = vadd.xlane.f32.xlu0 %v1754_v40  ;;  %v1570_v45 = vpop.f32.mrf.mxu0 }
 0x18b   : > { %v1683_v46 = vpop.f32.mrf.mxu1 }
 0x18c   : > { %v1757_v47 = vadd.f32 %v13331_v44, %v13329_v43  ;;  %v1572_v48 = vpop.f32.mrf.mxu0  ;;  %v13335_v50 = vadd.f32 %v1683_v46, %v1570_v45 }
 0x18d   : > { %v1685_v49 = vpop.f32.mrf.mxu1 }
 0x18e   : > { %v13337_v51 = vadd.f32 %v1685_v49, %v1572_v48  ;;  %1758 = vadd.xlane.f32.xlu0 %v1757_v47  ;;  %v1574_v52 = vpop.f32.mrf.mxu0 }
 0x18f   : > { %v1687_v53 = vpop.f32.mrf.mxu1 }
 0x190   : > { %v1760_v54 = vadd.f32 %v13337_v51, %v13335_v50  ;;  %v1576_v55 = vpop.f32.mrf.mxu0  ;;  %v13365_v28 = vadd.f32 %v1687_v53, %v1574_v52 }
 0x191   : > { %v1689_v56 = vpop.f32.mrf.mxu1 }
 0x192   : > { %1761 = vadd.xlane.f32.xlu0 %v1760_v54  ;;  %v1580_v57 = vpop.f32.mrf.mxu0  ;;  %v13361_v24 = vadd.f32 %v1689_v56, %v1576_v55 }
 0x193   : > { %v1693_v58 = vpop.f32.mrf.mxu1 }
 0x194   : > { %v1582_v59 = vpop.f32.mrf.mxu0  ;;  %v1763_v34 = vadd.f32 %v13361_v24, %v13365_v28  ;;  %v13377_v40 = vadd.f32 %v1693_v58, %v1580_v57 }
 0x195   : > { %v1695_v60 = vpop.f32.mrf.mxu1 }
 0x196   : > { %v1584_v61 = vpop.f32.mrf.mxu0  ;;  %v13371_v33 = vadd.f32 %v1695_v60, %v1582_v59 }
 0x197   : > { %v1697_v62 = vpop.f32.mrf.mxu1 }
 0x198   : > { %v1586_v63 = vpop.f32.mrf.mxu0  ;;  %v1766_v48 = vadd.f32 %v13371_v33, %v13377_v40  ;;  %v13389_v54 = vadd.f32 %v1697_v62, %v1584_v61 }
 0x199   : > { %v1699_v0 = vpop.f32.mrf.mxu1 }
 0x19a   : > { %v13341_v1 = vpop.f32.mrf.mxu0  ;;  %v13383_v47 = vadd.f32 %v1699_v0, %v1586_v63 }
 0x19b   : > { %v1703_v2 = vpop.f32.mrf.mxu1 }
 0x19c   : > { %v1592_v3 = vpop.f32.mrf.mxu0  ;;  %v1769_v60 = vadd.f32 %v13383_v47, %v13389_v54  ;;  %v13402_v61 = vadd.f32 %v1703_v2, %v13341_v1 }
 0x19d   : > { %v1705_v4 = vpop.f32.mrf.mxu1 }
 0x19e   : > { %v13343_v5 = vpop.f32.mrf.mxu0  ;;  %v13395_v59 = vadd.f32 %v1705_v4, %v1592_v3 }
 0x19f   : > { %v13345_v6 = vpop.f32.mrf.mxu1 }
 0x1a0   : > { %v13347_v7 = vpop.f32.mrf.mxu0 }
 0x1a1   : > { %v13349_v8 = vpop.f32.mrf.mxu1 }
 0x1a2   : > { %v1600_v9 = vpop.f32.mrf.mxu0  ;;  %v13410_v4 = vadd.f32 %v13349_v8, %v13347_v7 }
 0x1a3   : > { %v1713_v10 = vpop.f32.mrf.mxu1 }
 0x1a4   : > { %v1602_v11 = vpop.f32.mrf.mxu0  ;;  %v13351_v13 = vadd.f32 %v1713_v10, %v1600_v9 }
 0x1a5   : > { %v1715_v12 = vpop.f32.mrf.mxu1 }
 0x1a6   : > { %v13353_v14 = vadd.f32 %v1715_v12, %v1602_v11  ;;  %v1604_v15 = vpop.f32.mrf.mxu0  ;;  %v1772_v12 = vadd.f32 %v13395_v59, %v13402_v61 }
 0x1a7   : > { %v1717_v16 = vpop.f32.mrf.mxu1 }
 0x1a8   : > { %v1778_v17 = vadd.f32 %v13353_v14, %v13351_v13  ;;  %v1606_v18 = vpop.f32.mrf.mxu0  ;;  %v13357_v20 = vadd.f32 %v1717_v16, %v1604_v15  ;;  %v13418_v16 = vadd.f32 %v13345_v6, %v13343_v5 }
 0x1a9   : > { %v1719_v19 = vpop.f32.mrf.mxu1 }
 0x1aa   : > { %v13359_v21 = vadd.f32 %v1719_v19, %v1606_v18  ;;  %1779 = vadd.xlane.f32.xlu1 %v1778_v17  ;;  %v1610_v22 = vpop.f32.mrf.mxu0  ;;  %v1775_v19 = vadd.f32 %v13410_v4, %v13418_v16 }
 0x1ab   : > { %v1723_v23 = vpop.f32.mrf.mxu1 }
 0x1ac   : > { %v1781_v25 = vadd.f32 %v13359_v21, %v13357_v20  ;;  %v1612_v26 = vpop.f32.mrf.mxu0  ;;  %v13367_v29 = vadd.f32 %v1723_v23, %v1610_v22 }
 0x1ad   : > { %v1725_v27 = vpop.f32.mrf.mxu1 }
 0x1ae   : > { %v13369_v30 = vadd.f32 %v1725_v27, %v1612_v26  ;;  %1782 = vadd.xlane.f32.xlu1 %v1781_v25  ;;  %v1614_v31 = vpop.f32.mrf.mxu0 }
 0x1af   : > { %v1727_v32 = vpop.f32.mrf.mxu1 }
 0x1b0   : > { %v1784_v35 = vadd.f32 %v13369_v30, %v13367_v29  ;;  %v1616_v38 = vpop.f32.mrf.mxu0  ;;  %v13379_v41 = vadd.f32 %v1727_v32, %v1614_v31 }
 0x1b1   : > { %v1729_v39 = vpop.f32.mrf.mxu1 }
 0x1b2   : > { %v13381_v42 = vadd.f32 %v1729_v39, %v1616_v38  ;;  %1764 = vadd.xlane.f32.xlu1 %v1763_v34  ;;  %1785 = vadd.xlane.f32.xlu0 %v1784_v35  ;;  %v1620_v45 = vpop.f32.mrf.mxu0 }
 0x1b3   : > { %v1733_v46 = vpop.f32.mrf.mxu1 }
 0x1b4   : > { %v1787_v49 = vadd.f32 %v13381_v42, %v13379_v41  ;;  %v1622_v52 = vpop.f32.mrf.mxu0  ;;  %v13391_v55 = vadd.f32 %v1733_v46, %v1620_v45 }
 0x1b5   : > { %v1735_v53 = vpop.f32.mrf.mxu1 }
 0x1b6   : > { %v13393_v56 = vadd.f32 %v1735_v53, %v1622_v52  ;;  %1767 = vadd.xlane.f32.xlu0 %v1766_v48  ;;  %1788 = vadd.xlane.f32.xlu1 %v1787_v49  ;;  %v1624_v57 = vpop.f32.mrf.mxu0 }
 0x1b7   : > { %v1737_v58 = vpop.f32.mrf.mxu1 }
 0x1b8   : > { %v1790_v63 = vadd.f32 %v13393_v56, %v13391_v55  ;;  %v1626_v0 = vpop.f32.mrf.mxu0  ;;  %v13404_v62 = vadd.f32 %v1737_v58, %v1624_v57 }
 0x1b9   : > { %v1739_v9 = vpop.f32.mrf.mxu1 }
 0x1ba   : > { %v13406_v10 = vadd.f32 %v1739_v9, %v1626_v0  ;;  %1770 = vadd.xlane.f32.xlu1 %v1769_v60  ;;  %1791 = vadd.xlane.f32.xlu0 %v1790_v63  ;;  %v1630_v11 = vpop.f32.mrf.mxu0 }
 0x1bb   : > { %v1743_v3 = vpop.f32.mrf.mxu1 }
 0x1bc   : > { %v1793_v15 = vadd.f32 %v13406_v10, %v13404_v62  ;;  %v1632_v1 = vpop.f32.mrf.mxu0  ;;  %v13420_v17 = vadd.f32 %v1743_v3, %v1630_v11 }
 0x1bd   : > { %v1745_v2 = vpop.f32.mrf.mxu1 }
 0x1be   : > { %v13422_v18 = vadd.f32 %v1745_v2, %v1632_v1  ;;  %1773 = vadd.xlane.f32.xlu0 %v1772_v12  ;;  %1794 = vadd.xlane.f32.xlu1 %v1793_v15  ;;  %v1634_v7 = vpop.f32.mrf.mxu0 }
 0x1bf   : > { %v1747_v8 = vpop.f32.mrf.mxu1 }
 0x1c0   : > { %v1796_v22 = vadd.f32 %v13422_v18, %v13420_v17  ;;  %v1636_v23 = vpop.f32.mrf.mxu0  ;;  %v13428_v26 = vadd.f32 %v1747_v8, %v1634_v7 }
 0x1c1   : > { %v1749_v25 = vpop.f32.mrf.mxu1 }
 0x1c2   : > { %v13430_v5 = vadd.f32 %v1749_v25, %v1636_v23  ;;  %1776 = vadd.xlane.f32.xlu1 %v1775_v19  ;;  %1797 = vadd.xlane.f32.xlu0 %v1796_v22 }
 0x1c4   : > { %v1799_v6 = vadd.f32 %v13430_v5, %v13428_v26 }
 0x1c6   : > { %1800 = vadd.xlane.f32.xlu1 %v1799_v6 }
 0x213   : > { %v1756_v27 = vpop.xlane.xlu0 %1755 }
 0x214   : > { %v1803_v31 = vmul.f32 0.00390625, %v1756_v27 }
 0x216   : > { %v13435_v32 = vsub.f32 %v13323_v36, %v1803_v31  ;;  %v13438_v34 = vsub.f32 %v13325_v37, %v1803_v31 }
 0x217   : > { %v1759_v35 = vpop.xlane.xlu0 %1758 }
 0x218   : > { %v1804_v38 = vmul.f32 0.00390625, %v1759_v35  ;;  %v1851_v39 = vmul.f32 %v13435_v32, %v13435_v32  ;;  %v1852_v45 = vmul.f32 %v13438_v34, %v13438_v34 }
 0x21a   : > { %v13445_v46 = vsub.f32 %v13329_v43, %v1804_v38  ;;  %v13448_v48 = vsub.f32 %v13331_v44, %v1804_v38  ;;  %v1883_v49 = vadd.f32 %v1852_v45, %v1851_v39 }
 0x21b   : > { %v1762_v53 = vpop.xlane.xlu0 %1761 }
 0x21c   : > { %1884 = vadd.xlane.f32.xlu0 %v1883_v49  ;;  %v1853_v36 = vmul.f32 %v13445_v46, %v13445_v46  ;;  %v1854_v37 = vmul.f32 %v13448_v48, %v13448_v48  ;;  %v1805_v57 = vmul.f32 0.00390625, %v1762_v53 }
 0x21e   : > { %v1886_v52 = vadd.f32 %v1854_v37, %v1853_v36  ;;  %v13455_v43 = vsub.f32 %v13335_v50, %v1805_v57  ;;  %v13458_v44 = vsub.f32 %v13337_v51, %v1805_v57 }
 0x220   : > { %1887 = vadd.xlane.f32.xlu1 %v1886_v52  ;;  %v1855_v50 = vmul.f32 %v13455_v43, %v13455_v43  ;;  %v1856_v51 = vmul.f32 %v13458_v44, %v13458_v44 }
 0x222   : > { %v1889_v23 = vadd.f32 %v1856_v51, %v1855_v50 }
 0x233   : > { %v1780_v58 = vpop.xlane.xlu1 %1779 }
 0x234   : > { %v1811_v60 = vmul.f32 0.00390625, %v1780_v58 }
 0x236   : > { %v13461_v63 = vsub.f32 %v13351_v13, %v1811_v60  ;;  %v13464_v0 = vsub.f32 %v13353_v14, %v1811_v60 }
 0x237   : > { %v1783_v9 = vpop.xlane.xlu1 %1782 }
 0x238   : > { %v1812_v11 = vmul.f32 0.00390625, %v1783_v9  ;;  %v1867_v3 = vmul.f32 %v13461_v63, %v13461_v63  ;;  %v1868_v12 = vmul.f32 %v13464_v0, %v13464_v0 }
 0x23a   : > { %v13475_v13 = vsub.f32 %v13357_v20, %v1812_v11  ;;  %v13478_v14 = vsub.f32 %v13359_v21, %v1812_v11  ;;  %v1907_v15 = vadd.f32 %v1868_v12, %v1867_v3 }
 0x23b   : > { %v1765_v1 = vpop.xlane.xlu1 %1764  ;;  %v1786_v2 = vpop.xlane.xlu0 %1785 }
 0x23c   : > { %v1806_v7 = vmul.f32 0.00390625, %v1765_v1  ;;  %v1813_v8 = vmul.f32 0.00390625, %v1786_v2  ;;  %1908 = vadd.xlane.f32.xlu0 %v1907_v15  ;;  %v1869_v19 = vmul.f32 %v13475_v13, %v13475_v13  ;;  %v1870_v22 = vmul.f32 %v13478_v14, %v13478_v14 }
 0x23e   : > { %v13485_v25 = vsub.f32 %v13365_v28, %v1806_v7  ;;  %v13488_v20 = vsub.f32 %v13361_v24, %v1806_v7  ;;  %v13491_v21 = vsub.f32 %v13367_v29, %v1813_v8  ;;  %v13494_v6 = vsub.f32 %v13369_v30, %v1813_v8 }
 0x23f   : > { %v1768_v27 = vpop.xlane.xlu0 %1767  ;;  %v1789_v31 = vpop.xlane.xlu1 %1788  ;;  %v1910_v35 = vadd.f32 %v1870_v22, %v1869_v19 }
 0x240   : > { %v1807_v38 = vmul.f32 0.00390625, %v1768_v27  ;;  %v1814_v39 = vmul.f32 0.00390625, %v1789_v31  ;;  %1890 = vadd.xlane.f32.xlu0 %v1889_v23  ;;  %v1871_v45 = vmul.f32 %v13491_v21, %v13491_v21  ;;  %v1872_v28 = vmul.f32 %v13494_v6, %v13494_v6 }
 0x241   : > { %1911 = vadd.xlane.f32.xlu1 %v1910_v35  ;;  %v1857_v24 = vmul.f32 %v13485_v25, %v13485_v25  ;;  %v1858_v29 = vmul.f32 %v13488_v20, %v13488_v20 }
 0x242   : > { %v13505_v30 = vsub.f32 %v13377_v40, %v1807_v38  ;;  %v13508_v49 = vsub.f32 %v13371_v33, %v1807_v38  ;;  %v13511_v36 = vsub.f32 %v13379_v41, %v1814_v39  ;;  %v13514_v37 = vsub.f32 %v13381_v42, %v1814_v39 }
 0x243   : > { %v1771_v52 = vpop.xlane.xlu1 %1770  ;;  %v1792_v53 = vpop.xlane.xlu0 %1791  ;;  %v1913_v57 = vadd.f32 %v1872_v28, %v1871_v45  ;;  %v1892_v58 = vadd.f32 %v1858_v29, %v1857_v24 }
 0x244   : > { %v1808_v60 = vmul.f32 0.00390625, %v1771_v52  ;;  %v1815_v9 = vmul.f32 0.00390625, %v1792_v53  ;;  %v1859_v11 = vmul.f32 %v13505_v30, %v13505_v30  ;;  %v1860_v40 = vmul.f32 %v13508_v49, %v13508_v49 }
 0x245   : > { %1914 = vadd.xlane.f32.xlu0 %v1913_v57  ;;  %1893 = vadd.xlane.f32.xlu1 %v1892_v58  ;;  %v1873_v33 = vmul.f32 %v13511_v36, %v13511_v36  ;;  %v1874_v41 = vmul.f32 %v13514_v37, %v13514_v37 }
 0x246   : > { %v13525_v42 = vsub.f32 %v13389_v54, %v1808_v60  ;;  %v13528_v3 = vsub.f32 %v13383_v47, %v1808_v60  ;;  %v13531_v12 = vsub.f32 %v13391_v55, %v1815_v9  ;;  %v13534_v50 = vsub.f32 %v13393_v56, %v1815_v9 }
 0x247   : > { %v1774_v51 = vpop.xlane.xlu0 %1773  ;;  %v1795_v15 = vpop.xlane.xlu1 %1794  ;;  %v1895_v1 = vadd.f32 %v1860_v40, %v1859_v11  ;;  %v1916_v2 = vadd.f32 %v1874_v41, %v1873_v33 }
 0x248   : > { %v1809_v7 = vmul.f32 0.00390625, %v1774_v51  ;;  %v1816_v8 = vmul.f32 0.00390625, %v1795_v15  ;;  %v1875_v19 = vmul.f32 %v13531_v12, %v13531_v12  ;;  %v1876_v54 = vmul.f32 %v13534_v50, %v13534_v50 }
 0x249   : > { %1896 = vadd.xlane.f32.xlu0 %v1895_v1  ;;  %1917 = vadd.xlane.f32.xlu1 %v1916_v2  ;;  %v1861_v47 = vmul.f32 %v13525_v42, %v13525_v42  ;;  %v1862_v55 = vmul.f32 %v13528_v3, %v13528_v3 }
 0x24a   : > { %v13545_v56 = vsub.f32 %v13402_v61, %v1809_v7  ;;  %v13548_v22 = vsub.f32 %v13395_v59, %v1809_v7  ;;  %v13551_v23 = vsub.f32 %v13404_v62, %v1816_v8  ;;  %v13554_v27 = vsub.f32 %v13406_v10, %v1816_v8 }
 0x24b   : > { %v1777_v31 = vpop.xlane.xlu1 %1776  ;;  %v1798_v35 = vpop.xlane.xlu0 %1797  ;;  %v1919_v38 = vadd.f32 %v1876_v54, %v1875_v19  ;;  %v1898_v39 = vadd.f32 %v1862_v55, %v1861_v47 }
 0x24c   : > { %v1810_v45 = vmul.f32 0.00390625, %v1777_v31  ;;  %v1817_v28 = vmul.f32 0.00390625, %v1798_v35  ;;  %v1863_v24 = vmul.f32 %v13545_v56, %v13545_v56  ;;  %v1864_v61 = vmul.f32 %v13548_v22, %v13548_v22  ;;  %v1752_v35 = vld [vmem:[%s18983_s10] sm:$0x3] }
 0x24d   : > { %1920 = vadd.xlane.f32.xlu0 %v1919_v38  ;;  %1899 = vadd.xlane.f32.xlu1 %v1898_v39  ;;  %v1877_v59 = vmul.f32 %v13551_v23, %v13551_v23  ;;  %v1878_v62 = vmul.f32 %v13554_v27, %v13554_v27  ;;  %v1753_v38 = vld [vmem:[%s18984_s7] sm:$0x3] }
 0x24e   : > { %v13565_v10 = vsub.f32 %v13418_v16, %v1810_v45  ;;  %v13568_v29 = vsub.f32 %v13410_v4, %v1810_v45  ;;  %v13571_v52 = vsub.f32 %v13420_v17, %v1817_v28  ;;  %v13574_v53 = vsub.f32 %v13422_v18, %v1817_v28 }
 0x24f   : > { %v1801_v57 = vpop.xlane.xlu1 %1800  ;;  %v1901_v58 = vadd.f32 %v1864_v61, %v1863_v24  ;;  %v1922_v60 = vadd.f32 %v1878_v62, %v1877_v59 }
 0x250   : > { %v1818_v9 = vmul.f32 0.00390625, %v1801_v57  ;;  %v1879_v11 = vmul.f32 %v13571_v52, %v13571_v52  ;;  %v1880_v16 = vmul.f32 %v13574_v53, %v13574_v53  ;;  %v1865_v4 = vmul.f32 %v13565_v10, %v13565_v10 }
 0x251   : > { %1902 = vadd.xlane.f32.xlu0 %v1901_v58  ;;  %1923 = vadd.xlane.f32.xlu1 %v1922_v60  ;;  %v1866_v17 = vmul.f32 %v13568_v29, %v13568_v29 }
 0x252   : > { %v13585_v18 = vsub.f32 %v13428_v26, %v1818_v9  ;;  %v13588_v40 = vsub.f32 %v13430_v5, %v1818_v9  ;;  %v1925_v33 = vadd.f32 %v1880_v16, %v1879_v11  ;;  %v2012_v5 = vlaneseq }
 0x253   : > { %v1904_v41 = vadd.f32 %v1866_v17, %v1865_v4 }
 0x254   : > { %v1881_v51 = vmul.f32 %v13585_v18, %v13585_v18  ;;  %v1882_v15 = vmul.f32 %v13588_v40, %v13588_v40  ;;  %v2013_v47 = vshrl.u32 %v2012_v5, 7 }
 0x255   : > { %1926 = vadd.xlane.f32.xlu0 %v1925_v33  ;;  %1905 = vadd.xlane.f32.xlu1 %v1904_v41 }
 0x256   : > { %v1928_v1 = vadd.f32 %v1882_v15, %v1881_v51  ;;  %v13594_v55 = vsub.s32 0, %v2013_v47  ;;  %v13596_v31 = vsub.s32 1, %v2013_v47 }
 0x258   : > { %18981 = vst [vmem:[#allocation27_spill] sm:$0xff] %v13594_v55  ;;  %18982 = vst [vmem:[#allocation28_spill] sm:$0xff] %v13596_v31  ;;  %v13605_v39 = vrot.slane %v1752_v35, %v13594_v55  ;;  %v13608_v45 = vrot.slane %v1752_v35, %v13596_v31  ;;  %v13613_v59 = vrot.slane %v1753_v38, %v13594_v55 }
 0x259   : > { %1929 = vadd.xlane.f32.xlu1 %v1928_v1  ;;  %v13616_v62 = vrot.slane %v1753_v38, %v13596_v31 }
 0x2a5   : > { %v1885_v2 = vpop.xlane.xlu0 %1884 }
 0x2a6   : > { %v1931_v7 = vmul.f32 0.00390625, %v1885_v2 }
 0x2a8   : > { %v1947_v8 = vadd.f32 1e-05, %v1931_v7 }
 0x2a9   : > { %v1888_v26 = vpop.xlane.xlu1 %1887 }
 0x2aa   : > { %11520 = vrsqrt.f32 %v1947_v8  ;;  %v1932_v19 = vmul.f32 0.00390625, %v1888_v26 }
 0x2ac   : > { %v1948_v54 = vadd.f32 1e-05, %v1932_v19 }
 0x2ae   : > { %11522 = vrsqrt.f32 %v1948_v54 }
 0x2b7   : > { %v11521_v28 = vpop.eup %11520 }
 0x2b8   : > { %v1979_v24 = vmul.f32 %v11521_v28, %v13435_v32  ;;  %v1980_v61 = vmul.f32 %v11521_v28, %v13438_v34 }
 0x2ba   : > { %v2022_v57 = vmul.f32 %v13605_v39, %v1979_v24  ;;  %v2023_v58 = vmul.f32 %v13608_v45, %v1980_v61 }
 0x2bb   : > { %v11523_v60 = vpop.eup %11522 }
 0x2bc   : > { %v13621_v9 = vadd.f32 %v13613_v59, %v2022_v57  ;;  %v13624_v11 = vadd.f32 %v13616_v62, %v2023_v58  ;;  %v1981_v32 = vmul.f32 %v11523_v60, %v13445_v46  ;;  %v1982_v34 = vmul.f32 %v11523_v60, %v13448_v48 }
 0x2be   : > { %v2097_v16 = vmul.f32 %v13621_v9, %v13621_v9  ;;  %v2098_v4 = vmul.f32 %v13624_v11, %v13624_v11  ;;  %v2024_v17 = vmul.f32 %v13605_v39, %v1981_v32  ;;  %v2025_v33 = vmul.f32 %v13608_v45, %v1982_v34 }
 0x2c0   : > { %v2129_v41 = vmul.f32 %v2097_v16, %v13621_v9  ;;  %v2130_v51 = vmul.f32 %v2098_v4, %v13624_v11  ;;  %v13637_v15 = vadd.f32 %v13613_v59, %v2024_v17  ;;  %v13640_v46 = vadd.f32 %v13616_v62, %v2025_v33 }
 0x2c2   : > { %v2161_v48 = vmul.f32 0.044715, %v2129_v41  ;;  %v2162_v1 = vmul.f32 0.044715, %v2130_v51  ;;  %v2099_v2 = vmul.f32 %v13637_v15, %v13637_v15  ;;  %v2100_v7 = vmul.f32 %v13640_v46, %v13640_v46 }
 0x2c4   : > { %v2193_v8 = vadd.f32 %v2161_v48, %v13621_v9  ;;  %v2194_v26 = vadd.f32 %v2162_v1, %v13624_v11  ;;  %v2131_v19 = vmul.f32 %v2099_v2, %v13637_v15  ;;  %v2132_v5 = vmul.f32 %v2100_v7, %v13640_v46 }
 0x2c5   : > { %v1909_v54 = vpop.xlane.xlu0 %1908 }
 0x2c6   : > { %v1939_v47 = vmul.f32 0.00390625, %v1909_v54  ;;  %v2225_v35 = vmul.f32 0.7978846, %v2193_v8  ;;  %v2226_v38 = vmul.f32 0.7978846, %v2194_v26 }
 0x2c7   : > { %v2163_v28 = vmul.f32 0.044715, %v2131_v19  ;;  %v2164_v24 = vmul.f32 0.044715, %v2132_v5 }
 0x2c8   : > { %v1955_v61 = vadd.f32 1e-05, %v1939_v47  ;;  %11524 = vtanh.f32 %v2225_v35 }
 0x2c9   : > { %v1891_v57 = vpop.xlane.xlu0 %1890  ;;  %11526 = vtanh.f32 %v2226_v38  ;;  %v2195_v58 = vadd.f32 %v2163_v28, %v13637_v15  ;;  %v2196_v60 = vadd.f32 %v2164_v24, %v13640_v46 }
 0x2ca   : > { %11528 = vrsqrt.f32 %v1955_v61  ;;  %v1933_v32 = vmul.f32 0.00390625, %v1891_v57  ;;  %v1912_v34 = vpop.xlane.xlu1 %1911 }
 0x2cb   : > { %v1940_v16 = vmul.f32 0.00390625, %v1912_v34  ;;  %v2227_v4 = vmul.f32 0.7978846, %v2195_v58  ;;  %v2228_v33 = vmul.f32 0.7978846, %v2196_v60 }
 0x2cc   : > { %v1949_v17 = vadd.f32 1e-05, %v1933_v32 }
 0x2cd   : > { %11530 = vtanh.f32 %v2227_v4  ;;  %v1956_v41 = vadd.f32 1e-05, %v1940_v16 }
 0x2ce   : > { %11532 = vrsqrt.f32 %v1949_v17  ;;  %v1915_v51 = vpop.xlane.xlu0 %1914  ;;  %v1894_v48 = vpop.xlane.xlu1 %1893 }
 0x2cf   : > { %v1941_v1 = vmul.f32 0.00390625, %v1915_v51  ;;  %v1934_v2 = vmul.f32 0.00390625, %v1894_v48  ;;  %11534 = vtanh.f32 %v2228_v33 }
 0x2d0   : > { %11536 = vrsqrt.f32 %v1956_v41 }
 0x2d1   : > { %v1957_v7 = vadd.f32 1e-05, %v1941_v1  ;;  %v1950_v54 = vadd.f32 1e-05, %v1934_v2 }
 0x2d2   : > { %v1897_v8 = vpop.xlane.xlu0 %1896  ;;  %v1918_v26 = vpop.xlane.xlu1 %1917 }
 0x2d3   : > { %v1935_v19 = vmul.f32 0.00390625, %v1897_v8  ;;  %v1942_v5 = vmul.f32 0.00390625, %v1918_v26  ;;  %11538 = vrsqrt.f32 %v1957_v7 }
 0x2d4   : > { %11540 = vrsqrt.f32 %v1950_v54 }
 0x2d5   : > { %v11525_v47 = vpop.eup %11524  ;;  %v1951_v35 = vadd.f32 1e-05, %v1935_v19  ;;  %v1958_v28 = vadd.f32 1e-05, %v1942_v5 }
 0x2d6   : > { %v11527_v38 = vpop.eup %11526  ;;  %v1921_v24 = vpop.xlane.xlu0 %1920  ;;  %v2289_v57 = vadd.f32 1.0, %v11525_v47 }
 0x2d7   : > { %v1900_v61 = vpop.xlane.xlu1 %1899  ;;  %v11529_v58 = vpop.eup %11528  ;;  %v1943_v60 = vmul.f32 0.00390625, %v1921_v24  ;;  %v2290_v34 = vadd.f32 1.0, %v11527_v38  ;;  %11542 = vrsqrt.f32 %v1951_v35 }
 0x2d8   : > { %v1936_v32 = vmul.f32 0.00390625, %v1900_v61  ;;  %v2321_v16 = vmul.f32 0.5, %v2289_v57  ;;  %v1995_v4 = vmul.f32 %v11529_v58, %v13461_v63  ;;  %v1996_v17 = vmul.f32 %v11529_v58, %v13464_v0 }
 0x2d9   : > { %v1959_v33 = vadd.f32 1e-05, %v1943_v60  ;;  %v2322_v51 = vmul.f32 0.5, %v2290_v34  ;;  %11544 = vrsqrt.f32 %v1958_v28 }
 0x2da   : > { %v1952_v41 = vadd.f32 1e-05, %v1936_v32  ;;  %v11531_v48 = vpop.eup %11530  ;;  %v1903_v1 = vpop.xlane.xlu0 %1902  ;;  %v13655_v7 = vmul.f32 %v2321_v16, %v13621_v9  ;;  %v2038_v8 = vmul.f32 %v13605_v39, %v1995_v4  ;;  %v2039_v26 = vmul.f32 %v13608_v45, %v1996_v17 }
 0x2db   : > { %v1924_v2 = vpop.xlane.xlu1 %1923  ;;  %v11533_v19 = vpop.eup %11532  ;;  %11546 = vrsqrt.f32 %v1959_v33  ;;  %v1937_v63 = vmul.f32 0.00390625, %v1903_v1  ;;  %v13660_v0 = vmul.f32 %v2322_v51, %v13624_v11  ;;  %v2291_v54 = vadd.f32 1.0, %v11531_v48 }
 0x2dc   : > { %v1944_v5 = vmul.f32 0.00390625, %v1924_v2  ;;  %11548 = vrsqrt.f32 %v1952_v41  ;;  %v13663_v47 = vadd.f32 %v13613_v59, %v2038_v8  ;;  %v13666_v35 = vadd.f32 %v13616_v62, %v2039_v26  ;;  %v11535_v9 = vpop.eup %11534 }
 0x2dd   : > { %v1953_v38 = vadd.f32 1e-05, %v1937_v63  ;;  %v2387_v24 = vadd.f32 %v13660_v0, %v13655_v7  ;;  %v1983_v61 = vmul.f32 %v11533_v19, %v13455_v43  ;;  %v2292_v11 = vadd.f32 1.0, %v11535_v9  ;;  %v11537_v16 = vpop.eup %11536 }
 0x2de   : > { %v1960_v28 = vadd.f32 1e-05, %v1944_v5  ;;  %v1927_v57 = vpop.xlane.xlu0 %1926  ;;  %v2323_v60 = vmul.f32 0.5, %v2291_v54  ;;  %v2113_v32 = vmul.f32 %v13663_v47, %v13663_v47  ;;  %v2114_v34 = vmul.f32 %v13666_v35, %v13666_v35 }
 0x2df   : > { %v1906_v58 = vpop.xlane.xlu1 %1905  ;;  %11550 = vrsqrt.f32 %v1953_v38  ;;  %v1945_v4 = vmul.f32 0.00390625, %v1927_v57  ;;  %2388 = vadd.xlane.f32.xlu0 %v2387_v24  ;;  %v1984_v33 = vmul.f32 %v11533_v19, %v13458_v44  ;;  %v2324_v41 = vmul.f32 0.5, %v2292_v11 }
 0x2e0   : > { %v1938_v17 = vmul.f32 0.00390625, %v1906_v58  ;;  %11552 = vrsqrt.f32 %v1960_v28  ;;  %v13677_v43 = vmul.f32 %v2323_v60, %v13637_v15  ;;  %v2145_v51 = vmul.f32 %v2113_v32, %v13663_v47  ;;  %v11539_v54 = vpop.eup %11538 }
 0x2e1   : > { %v1961_v48 = vadd.f32 1e-05, %v1945_v4  ;;  %v2146_v2 = vmul.f32 %v2114_v34, %v13666_v35  ;;  %v2026_v8 = vmul.f32 %v13605_v39, %v1983_v61  ;;  %v13683_v63 = vmul.f32 %v2324_v41, %v13640_v46  ;;  %v11541_v61 = vpop.eup %11540 }
 0x2e2   : > { %v1954_v1 = vadd.f32 1e-05, %v1938_v17  ;;  %v2177_v5 = vmul.f32 0.044715, %v2145_v51  ;;  %v2027_v44 = vmul.f32 %v13608_v45, %v1984_v33  ;;  %v1997_v19 = vmul.f32 %v11537_v16, %v13475_v13 }
 0x2e3   : > { %v1930_v26 = vpop.xlane.xlu1 %1929  ;;  %11554 = vrsqrt.f32 %v1961_v48  ;;  %v2178_v9 = vmul.f32 0.044715, %v2146_v2  ;;  %v13688_v38 = vadd.f32 %v13613_v59, %v2026_v8  ;;  %v2390_v28 = vadd.f32 %v13683_v63, %v13677_v43 }
 0x2e4   : > { %v1946_v15 = vmul.f32 0.00390625, %v1930_v26  ;;  %11556 = vrsqrt.f32 %v1954_v1  ;;  %v2209_v24 = vadd.f32 %v2177_v5, %v13663_v47  ;;  %v13694_v46 = vadd.f32 %v13616_v62, %v2027_v44  ;;  %v11543_v60 = vpop.eup %11542 }
 0x2e5   : > { %v2210_v13 = vadd.f32 %v2178_v9, %v13666_v35  ;;  %v2101_v58 = vmul.f32 %v13688_v38, %v13688_v38  ;;  %v1998_v11 = vmul.f32 %v11537_v16, %v13478_v14  ;;  %2391 = vadd.xlane.f32.xlu1 %v2390_v28  ;;  %v2040_v4 = vmul.f32 %v13605_v39, %v1997_v19 }
 0x2e6   : > { %v1962_v57 = vadd.f32 1e-05, %v1946_v15  ;;  %v2241_v32 = vmul.f32 0.7978846, %v2209_v24  ;;  %v2102_v34 = vmul.f32 %v13694_v46, %v13694_v46  ;;  %v1999_v17 = vmul.f32 %v11539_v54, %v13491_v21  ;;  %v13704_v33 = vpop.eup %11544 }
 0x2e7   : > { %v2242_v41 = vmul.f32 0.7978846, %v2210_v13  ;;  %v2133_v51 = vmul.f32 %v2101_v58, %v13688_v38  ;;  %v2041_v48 = vmul.f32 %v13608_v45, %v1998_v11  ;;  %v13712_v16 = vadd.f32 %v13613_v59, %v2040_v4 }
 0x2e8   : > { %11558 = vrsqrt.f32 %v1962_v57  ;;  %v13708_v1 = vpop.eup %11546  ;;  %v2134_v14 = vmul.f32 %v2102_v34, %v13694_v46  ;;  %v2000_v2 = vmul.f32 %v11539_v54, %v13494_v6  ;;  %v2042_v5 = vmul.f32 %v13605_v39, %v1999_v17 }
 0x2e9   : > { %11560 = vtanh.f32 %v2241_v32  ;;  %v13715_v8 = vpop.eup %11548  ;;  %v2165_v21 = vmul.f32 0.044715, %v2133_v51  ;;  %v13718_v26 = vadd.f32 %v13616_v62, %v2041_v48  ;;  %v2115_v19 = vmul.f32 %v13712_v16, %v13712_v16 }
 0x2ea   : > { %11562 = vtanh.f32 %v2242_v41  ;;  %v2166_v44 = vmul.f32 0.044715, %v2134_v14  ;;  %v2043_v15 = vmul.f32 %v13608_v45, %v2000_v2  ;;  %v1985_v9 = vmul.f32 %v11541_v61, %v13485_v25 }
 0x2eb   : > { %v2197_v28 = vadd.f32 %v2165_v21, %v13688_v38  ;;  %v2116_v6 = vmul.f32 %v13718_v26, %v13718_v26  ;;  %v13729_v54 = vadd.f32 %v13613_v59, %v2042_v5  ;;  %v1986_v24 = vmul.f32 %v11541_v61, %v13488_v20 }
 0x2ec   : > { %v13732_v57 = vpop.eup %11550  ;;  %v2198_v13 = vadd.f32 %v2166_v44, %v13694_v46  ;;  %v2147_v58 = vmul.f32 %v2115_v19, %v13712_v16  ;;  %v13737_v11 = vadd.f32 %v13616_v62, %v2043_v15  ;;  %v2028_v25 = vmul.f32 %v13605_v39, %v1985_v9 }
 0x2ed   : > { %v13740_v32 = vpop.eup %11552  ;;  %v2229_v34 = vmul.f32 0.7978846, %v2197_v28  ;;  %v2148_v4 = vmul.f32 %v2116_v6, %v13718_v26  ;;  %v2117_v17 = vmul.f32 %v13729_v54, %v13729_v54  ;;  %v2029_v20 = vmul.f32 %v13608_v45, %v1986_v24 }
 0x2ee   : > { %v2230_v61 = vmul.f32 0.7978846, %v2198_v13  ;;  %v2179_v41 = vmul.f32 0.044715, %v2147_v58  ;;  %v2118_v51 = vmul.f32 %v13737_v11, %v13737_v11  ;;  %v13749_v48 = vadd.f32 %v13613_v59, %v2028_v25 }
 0x2ef   : > { %11564 = vtanh.f32 %v2229_v34  ;;  %v2180_v14 = vmul.f32 0.044715, %v2148_v4  ;;  %v2149_v2 = vmul.f32 %v2117_v17, %v13729_v54  ;;  %v13753_v21 = vadd.f32 %v13616_v62, %v2029_v20 }
 0x2f0   : > { %v13755_v5 = vpop.eup %11554  ;;  %11566 = vtanh.f32 %v2230_v61  ;;  %v2211_v44 = vadd.f32 %v2179_v41, %v13712_v16  ;;  %v2150_v19 = vmul.f32 %v2118_v51, %v13737_v11  ;;  %v2103_v15 = vmul.f32 %v13749_v48, %v13749_v48 }
 0x2f1   : > { %v13761_v9 = vpop.eup %11556  ;;  %v2212_v28 = vadd.f32 %v2180_v14, %v13718_v26  ;;  %v2181_v6 = vmul.f32 0.044715, %v2149_v2  ;;  %v2104_v24 = vmul.f32 %v13753_v21, %v13753_v21  ;;  %v1987_v13 = vmul.f32 %v11543_v60, %v13505_v30 }
 0x2f2   : > { %v2243_v58 = vmul.f32 0.7978846, %v2211_v44  ;;  %v2182_v25 = vmul.f32 0.044715, %v2150_v19  ;;  %v2135_v34 = vmul.f32 %v2103_v15, %v13749_v48  ;;  %v1988_v4 = vmul.f32 %v11543_v60, %v13508_v49 }
 0x2f3   : > { %v2244_v17 = vmul.f32 0.7978846, %v2212_v28  ;;  %v2213_v20 = vadd.f32 %v2181_v6, %v13729_v54  ;;  %v2136_v61 = vmul.f32 %v2104_v24, %v13753_v21  ;;  %v2030_v41 = vmul.f32 %v13605_v39, %v1987_v13 }
 0x2f4   : > { %11568 = vtanh.f32 %v2243_v58  ;;  %v2214_v14 = vadd.f32 %v2182_v25, %v13737_v11  ;;  %v2167_v2 = vmul.f32 0.044715, %v2135_v34  ;;  %v2031_v30 = vmul.f32 %v13608_v45, %v1988_v4 }
 0x2f5   : > { %v13772_v51 = vpop.eup %11558  ;;  %11570 = vtanh.f32 %v2244_v17  ;;  %v2245_v19 = vmul.f32 0.7978846, %v2213_v20  ;;  %v2168_v15 = vmul.f32 0.044715, %v2136_v61  ;;  %v13777_v49 = vadd.f32 %v13613_v59, %v2030_v41 }
 0x2f6   : > { %v11561_v44 = vpop.eup %11560  ;;  %v2246_v6 = vmul.f32 0.7978846, %v2214_v14  ;;  %v2199_v24 = vadd.f32 %v2167_v2, %v13749_v48  ;;  %v13781_v13 = vadd.f32 %v13616_v62, %v2031_v30  ;;  %v2001_v2 = vmul.f32 %v13704_v33, %v13511_v36 }
 0x2f7   : > { %v11563_v60 = vpop.eup %11562  ;;  %v2305_v28 = vadd.f32 1.0, %v11561_v44  ;;  %11572 = vtanh.f32 %v2245_v19  ;;  %v2200_v25 = vadd.f32 %v2168_v15, %v13753_v21  ;;  %v2105_v34 = vmul.f32 %v13777_v49, %v13777_v49 }
 0x2f8   : > { %v2306_v58 = vadd.f32 1.0, %v11563_v60  ;;  %11574 = vtanh.f32 %v2246_v6  ;;  %v2231_v17 = vmul.f32 0.7978846, %v2199_v24  ;;  %v2106_v20 = vmul.f32 %v13781_v13, %v13781_v13 }
 0x2f9   : > { %v2337_v4 = vmul.f32 0.5, %v2305_v28  ;;  %v2232_v41 = vmul.f32 0.7978846, %v2200_v25  ;;  %v2137_v14 = vmul.f32 %v2105_v34, %v13777_v49  ;;  %v2002_v19 = vmul.f32 %v13704_v33, %v13514_v37 }
 0x2fa   : > { %v2338_v61 = vmul.f32 0.5, %v2306_v58  ;;  %11576 = vtanh.f32 %v2231_v17  ;;  %v2138_v44 = vmul.f32 %v2106_v20, %v13781_v13  ;;  %v2044_v28 = vmul.f32 %v13605_v39, %v2001_v2 }
 0x2fb   : > { %v13792_v30 = vmul.f32 %v2337_v4, %v13663_v47  ;;  %11578 = vtanh.f32 %v2232_v41  ;;  %v2169_v60 = vmul.f32 0.044715, %v2137_v14  ;;  %v2045_v36 = vmul.f32 %v13608_v45, %v2002_v19 }
 0x2fc   : > { %v13798_v15 = vmul.f32 %v2338_v61, %v13666_v35  ;;  %v11565_v6 = vpop.eup %11564  ;;  %v2170_v24 = vmul.f32 0.044715, %v2138_v44  ;;  %v2003_v47 = vmul.f32 %v13708_v1, %v13531_v12  ;;  %v2004_v58 = vmul.f32 %v13708_v1, %v13534_v50 }
 0x2fd   : > { %v11567_v25 = vpop.eup %11566  ;;  %v2293_v35 = vadd.f32 1.0, %v11565_v6  ;;  %v2201_v33 = vadd.f32 %v2169_v60, %v13777_v49  ;;  %v13810_v34 = vadd.f32 %v13613_v59, %v2044_v28  ;;  %v13814_v20 = vadd.f32 %v13616_v62, %v2045_v36 }
 0x2fe   : > { %v2411_v37 = vadd.f32 %v13798_v15, %v13792_v30  ;;  %v2294_v4 = vadd.f32 1.0, %v11567_v25  ;;  %v2202_v17 = vadd.f32 %v2170_v24, %v13781_v13  ;;  %v2046_v12 = vmul.f32 %v13605_v39, %v2003_v47 }
 0x2ff   : > { %v2325_v50 = vmul.f32 0.5, %v2293_v35  ;;  %v2233_v1 = vmul.f32 0.7978846, %v2201_v33  ;;  %v2119_v61 = vmul.f32 %v13810_v34, %v13810_v34  ;;  %v2047_v41 = vmul.f32 %v13608_v45, %v2004_v58 }
 0x300   : > { %2412 = vadd.xlane.f32.xlu0 %v2411_v37  ;;  %v2326_v14 = vmul.f32 0.5, %v2294_v4  ;;  %v2234_v2 = vmul.f32 0.7978846, %v2202_v17  ;;  %v2120_v44 = vmul.f32 %v13814_v20, %v13814_v20  ;;  %v13823_v19 = vadd.f32 %v13613_v59, %v2046_v12 }
 0x301   : > { %v11569_v60 = vpop.eup %11568  ;;  %v13826_v28 = vmul.f32 %v2325_v50, %v13688_v38  ;;  %11580 = vtanh.f32 %v2233_v1  ;;  %v2151_v6 = vmul.f32 %v2119_v61, %v13810_v34  ;;  %v13830_v24 = vadd.f32 %v13616_v62, %v2047_v41 }
 0x302   : > { %v11571_v36 = vpop.eup %11570  ;;  %v13833_v47 = vmul.f32 %v2326_v14, %v13694_v46  ;;  %v2307_v58 = vadd.f32 1.0, %v11569_v60  ;;  %11582 = vtanh.f32 %v2234_v2  ;;  %v2152_v25 = vmul.f32 %v2120_v44, %v13814_v20 }
 0x303   : > { %v2308_v37 = vadd.f32 1.0, %v11571_v36  ;;  %v2183_v35 = vmul.f32 0.044715, %v2151_v6  ;;  %v2121_v38 = vmul.f32 %v13823_v19, %v13823_v19  ;;  %v2122_v33 = vmul.f32 %v13830_v24, %v13830_v24 }
 0x304   : > { %v11573_v4 = vpop.eup %11572  ;;  %v2393_v17 = vadd.f32 %v13833_v47, %v13826_v28  ;;  %v2339_v12 = vmul.f32 0.5, %v2307_v58  ;;  %v2184_v50 = vmul.f32 0.044715, %v2152_v25  ;;  %v1989_v46 = vmul.f32 %v13715_v8, %v13525_v42 }
 0x305   : > { %v11575_v1 = vpop.eup %11574  ;;  %v2340_v61 = vmul.f32 0.5, %v2308_v37  ;;  %v2309_v41 = vadd.f32 1.0, %v11573_v4  ;;  %v2215_v14 = vadd.f32 %v2183_v35, %v13810_v34  ;;  %v2153_v2 = vmul.f32 %v2121_v38, %v13823_v19 }
 0x306   : > { %2394 = vadd.xlane.f32.xlu0 %v2393_v17  ;;  %v13847_v44 = vmul.f32 %v2339_v12, %v13712_v16  ;;  %v2310_v60 = vadd.f32 1.0, %v11575_v1  ;;  %v2216_v6 = vadd.f32 %v2184_v50, %v13814_v20  ;;  %v2154_v36 = vmul.f32 %v2122_v33, %v13830_v24 }
 0x307   : > { %v11577_v58 = vpop.eup %11576  ;;  %v13852_v25 = vmul.f32 %v2340_v61, %v13718_v26  ;;  %v2341_v42 = vmul.f32 0.5, %v2309_v41  ;;  %v2247_v37 = vmul.f32 0.7978846, %v2215_v14  ;;  %v2185_v4 = vmul.f32 0.044715, %v2153_v2 }
 0x308   : > { %v11579_v31 = vpop.eup %11578  ;;  %v2342_v35 = vmul.f32 0.5, %v2310_v60  ;;  %v2295_v55 = vadd.f32 1.0, %v11577_v58  ;;  %v2248_v38 = vmul.f32 0.7978846, %v2216_v6  ;;  %v2186_v17 = vmul.f32 0.044715, %v2154_v36 }
 0x309   : > { %v2414_v16 = vadd.f32 %v13852_v25, %v13847_v44  ;;  %v13857_v12 = vmul.f32 %v2341_v42, %v13729_v54  ;;  %v2296_v50 = vadd.f32 1.0, %v11579_v31  ;;  %11584 = vtanh.f32 %v2247_v37 }
 0x30a   : > { %v13860_v33 = vmul.f32 %v2342_v35, %v13737_v11  ;;  %v2327_v26 = vmul.f32 0.5, %v2295_v55  ;;  %11586 = vtanh.f32 %v2248_v38  ;;  %v2217_v1 = vadd.f32 %v2185_v4, %v13823_v19 }
 0x30b   : > { %2415 = vadd.xlane.f32.xlu1 %v2414_v16  ;;  %v2328_v61 = vmul.f32 0.5, %v2296_v50  ;;  %v2218_v41 = vadd.f32 %v2186_v17, %v13830_v24  ;;  %v1990_v14 = vmul.f32 %v13715_v8, %v13528_v3  ;;  %v2032_v2 = vmul.f32 %v13605_v39, %v1989_v46 }
 0x30c   : > { %v2417_v31 = vadd.f32 %v13860_v33, %v13857_v12  ;;  %v13870_v54 = vmul.f32 %v2327_v26, %v13749_v48  ;;  %v2249_v11 = vmul.f32 0.7978846, %v2217_v1  ;;  %v1991_v55 = vmul.f32 %v13732_v57, %v13545_v56 }
 0x30d   : > { %v13875_v60 = vmul.f32 %v2328_v61, %v13753_v21  ;;  %v2250_v6 = vmul.f32 0.7978846, %v2218_v41  ;;  %v2033_v36 = vmul.f32 %v13608_v45, %v1990_v14  ;;  %v13879_v3 = vadd.f32 %v13613_v59, %v2032_v2 }
 0x30e   : > { %v11581_v8 = vpop.eup %11580  ;;  %2418 = vadd.xlane.f32.xlu0 %v2417_v31  ;;  %11588 = vtanh.f32 %v2249_v11  ;;  %v1992_v48 = vmul.f32 %v13732_v57, %v13548_v22  ;;  %v2034_v46 = vmul.f32 %v13605_v39, %v1991_v55  ;;  %v2005_v56 = vmul.f32 %v13740_v32, %v13551_v23 }
 0x30f   : > { %v11583_v58 = vpop.eup %11582  ;;  %v2396_v21 = vadd.f32 %v13875_v60, %v13870_v54  ;;  %v2297_v42 = vadd.f32 1.0, %v11581_v8  ;;  %11590 = vtanh.f32 %v2250_v6  ;;  %v13889_v37 = vadd.f32 %v13616_v62, %v2033_v36 }
 0x310   : > { %v2298_v4 = vadd.f32 1.0, %v11583_v58  ;;  %v2107_v35 = vmul.f32 %v13879_v3, %v13879_v3  ;;  %v2035_v22 = vmul.f32 %v13608_v45, %v1992_v48  ;;  %v13895_v57 = vadd.f32 %v13613_v59, %v2034_v46 }
 0x311   : > { %2397 = vadd.xlane.f32.xlu1 %v2396_v21  ;;  %v2329_v23 = vmul.f32 0.5, %v2297_v42  ;;  %v2108_v38 = vmul.f32 %v13889_v37, %v13889_v37  ;;  %v2006_v17 = vmul.f32 %v13740_v32, %v13554_v27  ;;  %v2048_v16 = vmul.f32 %v13605_v39, %v2005_v56 }
 0x312   : > { %v2330_v50 = vmul.f32 0.5, %v2298_v4  ;;  %v2139_v26 = vmul.f32 %v2107_v35, %v13879_v3  ;;  %v13904_v1 = vadd.f32 %v13616_v62, %v2035_v22  ;;  %v2109_v61 = vmul.f32 %v13895_v57, %v13895_v57 }
 0x313   : > { %v13909_v41 = vmul.f32 %v2329_v23, %v13777_v49  ;;  %v2140_v14 = vmul.f32 %v2108_v38, %v13889_v37  ;;  %v2049_v2 = vmul.f32 %v13608_v45, %v2006_v17  ;;  %v13914_v27 = vadd.f32 %v13613_v59, %v2048_v16 }
 0x314   : > { %v13917_v32 = vmul.f32 %v2330_v50, %v13781_v13  ;;  %v2171_v31 = vmul.f32 0.044715, %v2139_v26  ;;  %v2110_v11 = vmul.f32 %v13904_v1, %v13904_v1  ;;  %v2141_v55 = vmul.f32 %v2109_v61, %v13895_v57 }
 0x315   : > { %v2172_v6 = vmul.f32 0.044715, %v2140_v14  ;;  %v13923_v49 = vadd.f32 %v13616_v62, %v2049_v2  ;;  %v2123_v36 = vmul.f32 %v13914_v27, %v13914_v27  ;;  %v2007_v8 = vmul.f32 %v13755_v5, %v13571_v52 }
 0x316   : > { %v11585_v48 = vpop.eup %11584  ;;  %v2399_v13 = vadd.f32 %v13917_v32, %v13909_v41  ;;  %v2203_v46 = vadd.f32 %v2171_v31, %v13879_v3  ;;  %v2142_v56 = vmul.f32 %v2110_v11, %v13904_v1  ;;  %v2173_v58 = vmul.f32 0.044715, %v2141_v55 }
 0x317   : > { %v11587_v21 = vpop.eup %11586  ;;  %v2311_v42 = vadd.f32 1.0, %v11585_v48  ;;  %v2204_v4 = vadd.f32 %v2172_v6, %v13889_v37  ;;  %v2124_v35 = vmul.f32 %v13923_v49, %v13923_v49  ;;  %v2155_v22 = vmul.f32 %v2123_v36, %v13914_v27 }
 0x318   : > { %2400 = vadd.xlane.f32.xlu0 %v2399_v13  ;;  %v2312_v52 = vadd.f32 1.0, %v11587_v21  ;;  %v2235_v23 = vmul.f32 0.7978846, %v2203_v46  ;;  %v2174_v38 = vmul.f32 0.044715, %v2142_v56  ;;  %v2205_v17 = vadd.f32 %v2173_v58, %v13895_v57 }
 0x319   : > { %v2343_v16 = vmul.f32 0.5, %v2311_v42  ;;  %v2236_v50 = vmul.f32 0.7978846, %v2204_v4  ;;  %v2156_v26 = vmul.f32 %v2124_v35, %v13923_v49  ;;  %v2187_v61 = vmul.f32 0.044715, %v2155_v22 }
 0x31a   : > { %v2344_v14 = vmul.f32 0.5, %v2312_v52  ;;  %11592 = vtanh.f32 %v2235_v23  ;;  %v2206_v2 = vadd.f32 %v2174_v38, %v13904_v1  ;;  %v2237_v31 = vmul.f32 0.7978846, %v2205_v17 }
 0x31b   : > { %v11589_v11 = vpop.eup %11588  ;;  %v13941_v55 = vmul.f32 %v2343_v16, %v13810_v34  ;;  %11594 = vtanh.f32 %v2236_v50  ;;  %v2188_v6 = vmul.f32 0.044715, %v2156_v26  ;;  %v2219_v36 = vadd.f32 %v2187_v61, %v13914_v27 }
 0x31c   : > { %v11591_v48 = vpop.eup %11590  ;;  %v13945_v13 = vmul.f32 %v2344_v14, %v13814_v20  ;;  %v2313_v46 = vadd.f32 1.0, %v11589_v11  ;;  %v2238_v56 = vmul.f32 0.7978846, %v2206_v2  ;;  %11596 = vtanh.f32 %v2237_v31 }
 0x31d   : > { %v2314_v58 = vadd.f32 1.0, %v11591_v48  ;;  %v2220_v21 = vadd.f32 %v2188_v6, %v13923_v49  ;;  %v2251_v42 = vmul.f32 0.7978846, %v2219_v36  ;;  %v2008_v4 = vmul.f32 %v13755_v5, %v13574_v53 }
 0x31e   : > { %v2420_v34 = vadd.f32 %v13945_v13, %v13941_v55  ;;  %v2345_v35 = vmul.f32 0.5, %v2313_v46  ;;  %11598 = vtanh.f32 %v2238_v56  ;;  %v2050_v22 = vmul.f32 %v13605_v39, %v2007_v8 }
 0x31f   : > { %v2346_v52 = vmul.f32 0.5, %v2314_v58  ;;  %v2252_v20 = vmul.f32 0.7978846, %v2220_v21  ;;  %11600 = vtanh.f32 %v2251_v42  ;;  %v2051_v23 = vmul.f32 %v13608_v45, %v2008_v4 }
 0x320   : > { %2421 = vadd.xlane.f32.xlu1 %v2420_v34  ;;  %v13955_v38 = vmul.f32 %v2345_v35, %v13823_v19  ;;  %v13958_v17 = vadd.f32 %v13613_v59, %v2050_v22  ;;  %v1993_v53 = vmul.f32 %v13761_v9, %v13565_v10  ;;  %v1994_v5 = vmul.f32 %v13761_v9, %v13568_v29 }
 0x321   : > { %v13965_v8 = vmul.f32 %v2346_v52, %v13830_v24  ;;  %11602 = vtanh.f32 %v2252_v20  ;;  %v13968_v16 = vadd.f32 %v13616_v62, %v2051_v23  ;;  %v2009_v19 = vmul.f32 %v13772_v51, %v13585_v18 }
 0x322   : > { %v2125_v50 = vmul.f32 %v13958_v17, %v13958_v17  ;;  %v2036_v26 = vmul.f32 %v13605_v39, %v1993_v53  ;;  %v2037_v10 = vmul.f32 %v13608_v45, %v1994_v5  ;;  %v2010_v29 = vmul.f32 %v13772_v51, %v13588_v40 }
 0x323   : > { %v2423_v9 = vadd.f32 %v13965_v8, %v13955_v38  ;;  %v2126_v24 = vmul.f32 %v13968_v16, %v13968_v16  ;;  %v2052_v61 = vmul.f32 %v13605_v39, %v2009_v19 }
 0x324   : > { %v2157_v18 = vmul.f32 %v2125_v50, %v13958_v17  ;;  %v13985_v14 = vadd.f32 %v13613_v59, %v2036_v26  ;;  %v13988_v2 = vadd.f32 %v13616_v62, %v2037_v10  ;;  %v2053_v31 = vmul.f32 %v13608_v45, %v2010_v29 }
 0x325   : > { %2424 = vadd.xlane.f32.xlu0 %v2423_v9  ;;  %v2158_v40 = vmul.f32 %v2126_v24, %v13968_v16  ;;  %v13993_v51 = vadd.f32 %v13613_v59, %v2052_v61 }
 0x326   : > { %v2189_v11 = vmul.f32 0.044715, %v2157_v18  ;;  %v2111_v39 = vmul.f32 %v13985_v14, %v13985_v14  ;;  %v2112_v6 = vmul.f32 %v13988_v2, %v13988_v2  ;;  %v14000_v36 = vadd.f32 %v13616_v62, %v2053_v31 }
 0x327   : > { %v11593_v48 = vpop.eup %11592  ;;  %v2190_v46 = vmul.f32 0.044715, %v2158_v40  ;;  %v2127_v45 = vmul.f32 %v13993_v51, %v13993_v51 }
 0x328   : > { %v11595_v56 = vpop.eup %11594  ;;  %v2299_v58 = vadd.f32 1.0, %v11593_v48  ;;  %v2221_v59 = vadd.f32 %v2189_v11, %v13958_v17  ;;  %v2143_v21 = vmul.f32 %v2111_v39, %v13985_v14  ;;  %v2144_v42 = vmul.f32 %v2112_v6, %v13988_v2 }
 0x329   : > { %v11597_v4 = vpop.eup %11596  ;;  %v2300_v34 = vadd.f32 1.0, %v11595_v56  ;;  %v2222_v35 = vadd.f32 %v2190_v46, %v13968_v16  ;;  %v2128_v62 = vmul.f32 %v14000_v36, %v14000_v36  ;;  %v2159_v22 = vmul.f32 %v2127_v45, %v13993_v51 }
 0x32a   : > { %v2331_v52 = vmul.f32 0.5, %v2299_v58  ;;  %v2301_v20 = vadd.f32 1.0, %v11597_v4  ;;  %v2253_v23 = vmul.f32 0.7978846, %v2221_v59  ;;  %v2175_v53 = vmul.f32 0.044715, %v2143_v21 }
 0x32b   : > { %v11599_v5 = vpop.eup %11598  ;;  %v2332_v19 = vmul.f32 0.5, %v2300_v34  ;;  %v2254_v50 = vmul.f32 0.7978846, %v2222_v35  ;;  %v2176_v26 = vmul.f32 0.044715, %v2144_v42  ;;  %v2160_v10 = vmul.f32 %v2128_v62, %v14000_v36 }
 0x32c   : > { %v11601_v29 = vpop.eup %11600  ;;  %v14013_v9 = vmul.f32 %v2331_v52, %v13879_v3  ;;  %v2302_v24 = vadd.f32 1.0, %v11599_v5  ;;  %v2333_v61 = vmul.f32 0.5, %v2301_v20  ;;  %11604 = vtanh.f32 %v2253_v23 }
 0x32d   : > { %v14016_v18 = vmul.f32 %v2332_v19, %v13889_v37  ;;  %v2315_v31 = vadd.f32 1.0, %v11601_v29  ;;  %11606 = vtanh.f32 %v2254_v50  ;;  %v2207_v40 = vadd.f32 %v2175_v53, %v13985_v14 }
 0x32e   : > { %v11603_v11 = vpop.eup %11602  ;;  %v2334_v39 = vmul.f32 0.5, %v2302_v24  ;;  %v14020_v6 = vmul.f32 %v2333_v61, %v13895_v57  ;;  %v2208_v48 = vadd.f32 %v2176_v26, %v13988_v2  ;;  %v2191_v46 = vmul.f32 0.044715, %v2159_v22 }
 0x32f   : > { %v2402_v3 = vadd.f32 %v14016_v18, %v14013_v9  ;;  %v2316_v45 = vadd.f32 1.0, %v11603_v11  ;;  %v2347_v56 = vmul.f32 0.5, %v2315_v31  ;;  %v2239_v58 = vmul.f32 0.7978846, %v2207_v40 }
 0x330   : > { %v14026_v37 = vmul.f32 %v2334_v39, %v13904_v1  ;;  %v2240_v59 = vmul.f32 0.7978846, %v2208_v48  ;;  %v2192_v21 = vmul.f32 0.044715, %v2160_v10  ;;  %v2223_v42 = vadd.f32 %v2191_v46, %v13993_v51 }
 0x331   : > { %2403 = vadd.xlane.f32.xlu1 %v2402_v3  ;;  %v2348_v4 = vmul.f32 0.5, %v2316_v45  ;;  %v14030_v57 = vmul.f32 %v2347_v56, %v13914_v27  ;;  %11608 = vtanh.f32 %v2239_v58 }
 0x332   : > { %v2405_v34 = vadd.f32 %v14026_v37, %v14020_v6  ;;  %11610 = vtanh.f32 %v2240_v59  ;;  %v2224_v35 = vadd.f32 %v2192_v21, %v14000_v36  ;;  %v2255_v62 = vmul.f32 0.7978846, %v2223_v42  ;;  %v11472_v21 = vld [vmem:[#allocation3 + $0x70] ss:$8 sps:$4 sm:$0xff]   ;;  %v11477_v42 = vld [vmem:[#allocation3 + $0x64] ss:$8 sps:$4 sm:$0xff]  }
 0x333   : > { %v14036_v1 = vmul.f32 %v2348_v4, %v13923_v49  ;;  %v11475_v4 = vld [vmem:[#allocation3 + $0x60] ss:$8 sps:$4 sm:$0xff]  }
 0x334   : > { %2406 = vadd.xlane.f32.xlu0 %v2405_v34  ;;  %v2256_v22 = vmul.f32 0.7978846, %v2224_v35  ;;  %11612 = vtanh.f32 %v2255_v62  ;;  %v11480_v34 = vld [vmem:[#allocation3 + $0x54] ss:$8 sps:$4 sm:$0xff]  }
 0x335   : > { %v2426_v52 = vadd.f32 %v14036_v1, %v14030_v57 }
 0x336   : > { %11614 = vtanh.f32 %v2256_v22  ;;  %v11481_v22 = vld [vmem:[#allocation3 + $0x40] ss:$8 sps:$4 sm:$0xff]  }
 0x337   : > { %2427 = vadd.xlane.f32.xlu1 %v2426_v52  ;;  %v11486_v52 = vld [vmem:[#allocation3 + $0x34] ss:$8 sps:$4 sm:$0xff]  }
 0x339   : > { %v11605_v27 = vpop.eup %11604 }
 0x33a   : > { %v11607_v20 = vpop.eup %11606  ;;  %v2317_v23 = vadd.f32 1.0, %v11605_v27 }
 0x33b   : > { %v2318_v53 = vadd.f32 1.0, %v11607_v20 }
 0x33c   : > { %v2349_v5 = vmul.f32 0.5, %v2317_v23 }
 0x33d   : > { %v2350_v19 = vmul.f32 0.5, %v2318_v53 }
 0x33e   : > { %v11609_v50 = vpop.eup %11608  ;;  %v14041_v26 = vmul.f32 %v2349_v5, %v13958_v17  ;;  %v11484_v5 = vld [vmem:[#allocation3 + $0x30] ss:$8 sps:$4 sm:$0xff]  }
 0x33f   : > { %v11611_v49 = vpop.eup %11610  ;;  %v14044_v10 = vmul.f32 %v2350_v19, %v13968_v16  ;;  %v2303_v29 = vadd.f32 1.0, %v11609_v50  ;;  %v11489_v19 = vld [vmem:[#allocation3 + $0x24] ss:$8 sps:$4 sm:$0xff]  }
 0x340   : > { %v2304_v24 = vadd.f32 1.0, %v11611_v49 }
 0x341   : > { %v11613_v61 = vpop.eup %11612  ;;  %v2429_v31 = vadd.f32 %v14044_v10, %v14041_v26  ;;  %v2335_v40 = vmul.f32 0.5, %v2303_v29 }
 0x342   : > { %v2336_v11 = vmul.f32 0.5, %v2304_v24  ;;  %v2319_v39 = vadd.f32 1.0, %v11613_v61  ;;  %v11492_v61 = vld [vmem:[#allocation3 + $0x14] ss:$8 sps:$4 sm:$0xff]  }
 0x343   : > { %v11615_v48 = vpop.eup %11614  ;;  %2430 = vadd.xlane.f32.xlu0 %v2429_v31  ;;  %v14049_v46 = vmul.f32 %v2335_v40, %v13985_v14 }
 0x344   : > { %v14052_v17 = vmul.f32 %v2336_v11, %v13988_v2  ;;  %v2320_v3 = vadd.f32 1.0, %v11615_v48  ;;  %v2351_v16 = vmul.f32 0.5, %v2319_v39  ;;  %v11474_v2 = vld [vmem:[#allocation3 + $0x74] ss:$8 sps:$4 sm:$0xff]   ;;  %v11490_v11 = vld [vmem:[#allocation3 + $0x10] ss:$8 sps:$4 sm:$0xff]  }
 0x345   : > { %2949 = vmatprep.subr.bf16.mxu0 %v11474_v2  ;;  %11145 = vmatprep.subr.bf16.mxu1 %v11474_v2  ;;  %v11495_v48 = vld [vmem:[#allocation3 + $0x4] ss:$8 sps:$4 sm:$0xff]  }
 0x346   : > { %v2408_v45 = vadd.f32 %v14052_v17, %v14049_v46  ;;  %v2352_v56 = vmul.f32 0.5, %v2320_v3  ;;  %v14057_v58 = vmul.f32 %v2351_v16, %v13993_v51  ;;  %2950 = vmatpush1.bf16.msra.mxu0 %v11472_v21  ;;  %11161 = vmatpush1.bf16.msra.mxu1 %v11472_v21  ;;  %v11478_v51 = vld [vmem:[#allocation3 + $0x50] ss:$8 sps:$4 sm:$0xff]  }
 0x347   : > { %2951 = vmatprep.subr.bf16.mxu0 %v11477_v42  ;;  %11146 = vmatprep.subr.bf16.mxu1 %v11477_v42  ;;  %v11496_v3 = vld [vmem:[#allocation3 + $0xf0] ss:$8 sps:$4 sm:$0xff]   ;;  %v11499_v42 = vld [vmem:[#allocation3 + $0xe0] ss:$8 sps:$4 sm:$0xff]  }
 0x348   : > { %2409 = vadd.xlane.f32.xlu1 %v2408_v45  ;;  %v14060_v59 = vmul.f32 %v2352_v56, %v14000_v36  ;;  %v11483_v36 = vld [vmem:[#allocation3 + $0x44] ss:$8 sps:$4 sm:$0xff]  }
 0x34a   : > { %v2432_v14 = vadd.f32 %v14060_v59, %v14057_v58  ;;  %2952 = vmatpush1.bf16.msra.mxu0 %v11475_v4  ;;  %11162 = vmatpush1.bf16.msra.mxu1 %v11475_v4  ;;  %v11501_v4 = vld [vmem:[#allocation3 + $0xe4] ss:$8 sps:$4 sm:$0xff]  }
 0x34b   : > { %2953 = vmatprep.subr.bf16.mxu0 %v11480_v34  ;;  %11147 = vmatprep.subr.bf16.mxu1 %v11480_v34 }
 0x34c   : > { %2433 = vadd.xlane.f32.xlu1 %v2432_v14 }
 0x34e   : > { %2954 = vmatpush1.bf16.msra.mxu0 %v11478_v51  ;;  %11163 = vmatpush1.bf16.msra.mxu1 %v11478_v51 }
 0x34f   : > { %2955 = vmatprep.subr.bf16.mxu0 %v11483_v36  ;;  %11148 = vmatprep.subr.bf16.mxu1 %v11483_v36 }
 0x352   : > { %2956 = vmatpush1.bf16.msra.mxu0 %v11481_v22  ;;  %11164 = vmatpush1.bf16.msra.mxu1 %v11481_v22 }
 0x353   : > { %2957 = vmatprep.subr.bf16.mxu0 %v11486_v52  ;;  %11149 = vmatprep.subr.bf16.mxu1 %v11486_v52  ;;  %v11502_v52 = vld [vmem:[#allocation3 + $0xd0] ss:$8 sps:$4 sm:$0xff]  }
 0x356   : > { %2958 = vmatpush1.bf16.msra.mxu0 %v11484_v5  ;;  %11165 = vmatpush1.bf16.msra.mxu1 %v11484_v5  ;;  %v11507_v5 = vld [vmem:[#allocation3 + $0xc4] ss:$8 sps:$4 sm:$0xff]  }
 0x357   : > { %2959 = vmatprep.subr.bf16.mxu0 %v11489_v19  ;;  %11150 = vmatprep.subr.bf16.mxu1 %v11489_v19 }
 0x368   : > { %v2389_v35 = vpop.xlane.xlu0 %2388 }
 0x369   : > { %v2435_v62 = vmul.f32 0.00390625, %v2389_v35 }
 0x36b   : > { %v14065_v27 = vsub.f32 %v13655_v7, %v2435_v62  ;;  %v14068_v20 = vsub.f32 %v13660_v0, %v2435_v62  ;;  %v11487_v7 = vld [vmem:[#allocation3 + $0x20] ss:$8 sps:$4 sm:$0xff]  }
 0x36c   : > { %2960 = vmatpush1.bf16.msra.mxu0 %v11487_v7  ;;  %11166 = vmatpush1.bf16.msra.mxu1 %v11487_v7  ;;  %v11510_v7 = vld [vmem:[#allocation3 + $0xb4] ss:$8 sps:$4 sm:$0xff]  }
 0x36d   : > { %v2483_v23 = vmul.f32 %v14065_v27, %v14065_v27  ;;  %v2484_v53 = vmul.f32 %v14068_v20, %v14068_v20  ;;  %2961 = vmatprep.subr.bf16.mxu0 %v11492_v61  ;;  %11151 = vmatprep.subr.bf16.mxu1 %v11492_v61 }
 0x36e   : > { %v2392_v50 = vpop.xlane.xlu1 %2391 }
 0x36f   : > { %v2515_v49 = vadd.f32 %v2484_v53, %v2483_v23  ;;  %v2436_v29 = vmul.f32 0.00390625, %v2392_v50  ;;  %v11504_v23 = vld [vmem:[#allocation3 + $0xd4] ss:$8 sps:$4 sm:$0xff]  }
 0x370   : > { %2962 = vmatpush1.bf16.msra.mxu0 %v11490_v11  ;;  %11167 = vmatpush1.bf16.msra.mxu1 %v11490_v11 }
 0x371   : > { %2516 = vadd.xlane.f32.xlu0 %v2515_v49  ;;  %v14075_v0 = vsub.f32 %v13677_v43, %v2436_v29  ;;  %v14078_v24 = vsub.f32 %v13683_v63, %v2436_v29  ;;  %v11493_v43 = vld [vmem:[#allocation3] ss:$8 sps:$4 sm:$0xff]   ;;  %2963 = vmatprep.subr.bf16.mxu0 %v11495_v48  ;;  %v11498_v63 = vld [vmem:[#allocation3 + $0xf4] ss:$8 sps:$4 sm:$0xff]  }
 0x372   : > { %11152 = vmatprep.subr.bf16.mxu1 %v11495_v48  ;;  %v11505_v49 = vld [vmem:[#allocation3 + $0xc0] ss:$8 sps:$4 sm:$0xff]   ;;  %v11508_v48 = vld [vmem:[#allocation3 + $0xb0] ss:$8 sps:$4 sm:$0xff]  }
 0x373   : > { %v2485_v31 = vmul.f32 %v14075_v0, %v14075_v0  ;;  %v2486_v40 = vmul.f32 %v14078_v24, %v14078_v24 }
 0x374   : > { %2964 = vmatpush1.bf16.msra.mxu0 %v11493_v43  ;;  %11168 = vmatpush1.bf16.msra.mxu1 %v11493_v43 }
 0x375   : > { %v2518_v39 = vadd.f32 %v2486_v40, %v2485_v31  ;;  %2965 = vmatprep.subr.bf16.mxu0 %v11498_v63  ;;  %11153 = vmatprep.subr.bf16.mxu1 %v11498_v63 }
 0x377   : > { %2519 = vadd.xlane.f32.xlu1 %v2518_v39 }
 0x378   : > { %2966 = vmatpush2.bf16.msra.mxu0 %v11496_v3  ;;  %11169 = vmatpush2.bf16.msra.mxu1 %v11496_v3  ;;  %v11513_v3 = vld [vmem:[#allocation3 + $0xa4] ss:$8 sps:$4 sm:$0xff]  }
 0x379   : > { %2967 = vmatprep.subr.bf16.mxu0 %v11501_v4  ;;  %11154 = vmatprep.subr.bf16.mxu1 %v11501_v4 }
 0x37c   : > { %2968 = vmatpush2.bf16.msra.mxu0 %v11499_v42  ;;  %11170 = vmatpush2.bf16.msra.mxu1 %v11499_v42  ;;  %v11516_v42 = vld [vmem:[#allocation3 + $0x94] ss:$8 sps:$4 sm:$0xff]  }
 0x37d   : > { %2969 = vmatprep.subr.bf16.mxu0 %v11504_v23  ;;  %11155 = vmatprep.subr.bf16.mxu1 %v11504_v23 }
 0x380   : > { %2970 = vmatpush2.bf16.msra.mxu0 %v11502_v52  ;;  %11171 = vmatpush2.bf16.msra.mxu1 %v11502_v52  ;;  %v11517_v52 = vld [vmem:[#allocation3 + $0x80] ss:$8 sps:$4 sm:$0xff]  }
 0x381   : > { %2971 = vmatprep.subr.bf16.mxu0 %v11507_v5  ;;  %11156 = vmatprep.subr.bf16.mxu1 %v11507_v5 }
 0x384   : > { %2972 = vmatpush2.bf16.msra.mxu0 %v11505_v49  ;;  %11172 = vmatpush2.bf16.msra.mxu1 %v11505_v49 }
 0x385   : > { %2973 = vmatprep.subr.bf16.mxu0 %v11510_v7  ;;  %11157 = vmatprep.subr.bf16.mxu1 %v11510_v7 }
 0x388   : > { %2974 = vmatpush2.bf16.msra.mxu0 %v11508_v48  ;;  %11173 = vmatpush2.bf16.msra.mxu1 %v11508_v48 }
 0x389   : > { %v2413_v16 = vpop.xlane.xlu0 %2412  ;;  %2975 = vmatprep.subr.bf16.mxu0 %v11513_v3  ;;  %11158 = vmatprep.subr.bf16.mxu1 %v11513_v3 }
 0x38a   : > { %v2443_v45 = vmul.f32 0.00390625, %v2413_v16 }
 0x38c   : > { %v14085_v56 = vsub.f32 %v13792_v30, %v2443_v45  ;;  %v14088_v14 = vsub.f32 %v13798_v15, %v2443_v45 }
 0x38e   : > { %v2499_v21 = vmul.f32 %v14085_v56, %v14085_v56  ;;  %v2500_v2 = vmul.f32 %v14088_v14, %v14088_v14 }
 0x38f   : > { %v2395_v34 = vpop.xlane.xlu0 %2394 }
 0x390   : > { %v2539_v51 = vadd.f32 %v2500_v2, %v2499_v21  ;;  %v2437_v36 = vmul.f32 0.00390625, %v2395_v34  ;;  %v11511_v2 = vld [vmem:[#allocation3 + $0xa0] ss:$8 sps:$4 sm:$0xff]  }
 0x391   : > { %2976 = vmatpush2.bf16.msra.mxu0 %v11511_v2  ;;  %11174 = vmatpush2.bf16.msra.mxu1 %v11511_v2 }
 0x392   : > { %2540 = vadd.xlane.f32.xlu0 %v2539_v51  ;;  %v14095_v30 = vsub.f32 %v13826_v28, %v2437_v36  ;;  %v14098_v15 = vsub.f32 %v13833_v47, %v2437_v36  ;;  %2977 = vmatprep.subr.bf16.mxu0 %v11516_v42 }
 0x393   : > { %11159 = vmatprep.subr.bf16.mxu1 %v11516_v42 }
 0x394   : > { %v2416_v35 = vpop.xlane.xlu1 %2415  ;;  %v2487_v62 = vmul.f32 %v14095_v30, %v14095_v30  ;;  %v2488_v22 = vmul.f32 %v14098_v15, %v14098_v15 }
 0x395   : > { %v2444_v53 = vmul.f32 0.00390625, %v2416_v35  ;;  %v11519_v35 = vld [vmem:[#allocation3 + $0x84] ss:$8 sps:$4 sm:$0xff]  }
 0x396   : > { %v2521_v19 = vadd.f32 %v2488_v22, %v2487_v62 }
 0x397   : > { %v14105_v28 = vsub.f32 %v13847_v44, %v2444_v53  ;;  %v14108_v47 = vsub.f32 %v13852_v25, %v2444_v53  ;;  %v2419_v50 = vpop.xlane.xlu0 %2418 }
 0x398   : > { %v2445_v29 = vmul.f32 0.00390625, %v2419_v50  ;;  %2522 = vadd.xlane.f32.xlu0 %v2521_v19 }
 0x399   : > { %v2501_v61 = vmul.f32 %v14105_v28, %v14105_v28  ;;  %v2502_v31 = vmul.f32 %v14108_v47, %v14108_v47 }
 0x39a   : > { %v14115_v44 = vsub.f32 %v13857_v12, %v2445_v29  ;;  %v14118_v25 = vsub.f32 %v13860_v33, %v2445_v29  ;;  %v2398_v40 = vpop.xlane.xlu1 %2397 }
 0x39b   : > { %v2438_v11 = vmul.f32 0.00390625, %v2398_v40  ;;  %v2542_v39 = vadd.f32 %v2502_v31, %v2501_v61 }
 0x39c   : > { %v2503_v43 = vmul.f32 %v14115_v44, %v14115_v44  ;;  %v2504_v63 = vmul.f32 %v14118_v25, %v14118_v25 }
 0x39d   : > { %v14125_v12 = vsub.f32 %v13870_v54, %v2438_v11  ;;  %v14128_v33 = vsub.f32 %v13875_v60, %v2438_v11  ;;  %2543 = vadd.xlane.f32.xlu1 %v2542_v39  ;;  %v11514_v60 = vld [vmem:[#allocation3 + $0x90] ss:$8 sps:$4 sm:$0xff]  }
 0x39e   : > { %v2545_v16 = vadd.f32 %v2504_v63, %v2503_v43  ;;  %2978 = vmatpush2.bf16.msra.mxu0 %v11514_v60  ;;  %11175 = vmatpush2.bf16.msra.mxu1 %v11514_v60 }
 0x39f   : > { %v2489_v45 = vmul.f32 %v14125_v12, %v14125_v12  ;;  %v2490_v21 = vmul.f32 %v14128_v33, %v14128_v33  ;;  %2979 = vmatprep.subr.bf16.mxu0 %v11519_v35  ;;  %11160 = vmatprep.subr.bf16.mxu1 %v11519_v35 }
 0x3a0   : > { %2546 = vadd.xlane.f32.xlu0 %v2545_v16 }
 0x3a1   : > { %v2401_v4 = vpop.xlane.xlu0 %2400  ;;  %v2524_v54 = vadd.f32 %v2490_v21, %v2489_v45 }
 0x3a2   : > { %v2439_v34 = vmul.f32 0.00390625, %v2401_v4  ;;  %2980 = vmatpush2.bf16.msra.mxu0 %v11517_v52  ;;  %11176 = vmatpush2.bf16.msra.mxu1 %v11517_v52 }
 0x3a3   : > { %2525 = vadd.xlane.f32.xlu1 %v2524_v54 }
 0x3a4   : > { %v14135_v51 = vsub.f32 %v13909_v41, %v2439_v34  ;;  %v14138_v36 = vsub.f32 %v13917_v32, %v2439_v34 }
 0x3a6   : > { %v2491_v62 = vmul.f32 %v14135_v51, %v14135_v51  ;;  %v2492_v22 = vmul.f32 %v14138_v36, %v14138_v36 }
 0x3a8   : > { %v2527_v23 = vadd.f32 %v2492_v22, %v2491_v62 }
 0x3a9   : > { %v2422_v41 = vpop.xlane.xlu1 %2421 }
 0x3aa   : > { %v2446_v53 = vmul.f32 0.00390625, %v2422_v41  ;;  %2528 = vadd.xlane.f32.xlu0 %v2527_v23 }
 0x3ac   : > { %v14145_v32 = vsub.f32 %v13941_v55, %v2446_v53  ;;  %v14148_v5 = vsub.f32 %v13945_v13, %v2446_v53 }
 0x3ae   : > { %v2425_v19 = vpop.xlane.xlu0 %2424  ;;  %v2505_v50 = vmul.f32 %v14145_v32, %v14145_v32  ;;  %v2506_v49 = vmul.f32 %v14148_v5, %v14148_v5 }
 0x3af   : > { %v2447_v29 = vmul.f32 0.00390625, %v2425_v19 }
 0x3b0   : > { %v2548_v7 = vadd.f32 %v2506_v49, %v2505_v50 }
 0x3b1   : > { %v14155_v61 = vsub.f32 %v13955_v38, %v2447_v29  ;;  %v14158_v31 = vsub.f32 %v13965_v8, %v2447_v29 }
 0x3b2   : > { %2549 = vadd.xlane.f32.xlu1 %v2548_v7 }
 0x3b3   : > { %v2507_v55 = vmul.f32 %v14155_v61, %v14155_v61  ;;  %v2508_v13 = vmul.f32 %v14158_v31, %v14158_v31 }
 0x3b5   : > { %v2551_v40 = vadd.f32 %v2508_v13, %v2507_v55 }
 0x3b7   : > { %2552 = vadd.xlane.f32.xlu0 %v2551_v40 }
 0x3ba   : > { %v2404_v11 = vpop.xlane.xlu1 %2403 }
 0x3bb   : > { %v2440_v39 = vmul.f32 0.00390625, %v2404_v11 }
 0x3bd   : > { %v14165_v48 = vsub.f32 %v14013_v9, %v2440_v39  ;;  %v14168_v38 = vsub.f32 %v14016_v18, %v2440_v39  ;;  %v2407_v43 = vpop.xlane.xlu0 %2406 }
 0x3be   : > { %v2441_v8 = vmul.f32 0.00390625, %v2407_v43 }
 0x3bf   : > { %v2493_v63 = vmul.f32 %v14165_v48, %v14165_v48  ;;  %v2494_v3 = vmul.f32 %v14168_v38, %v14168_v38 }
 0x3c0   : > { %v14175_v16 = vsub.f32 %v14020_v6, %v2441_v8  ;;  %v14178_v45 = vsub.f32 %v14026_v37, %v2441_v8  ;;  %v2428_v21 = vpop.xlane.xlu1 %2427 }
 0x3c1   : > { %v2448_v9 = vmul.f32 0.00390625, %v2428_v21  ;;  %v2530_v2 = vadd.f32 %v2494_v3, %v2493_v63  ;;  %v2385_v3 = vld [vmem:[%s18985_s1] sm:$0x3] }
 0x3c2   : > { %v2495_v18 = vmul.f32 %v14175_v16, %v14175_v16  ;;  %v2496_v42 = vmul.f32 %v14178_v45, %v14178_v45 }
 0x3c3   : > { %v14185_v4 = vsub.f32 %v14030_v57, %v2448_v9  ;;  %v14188_v54 = vsub.f32 %v14036_v1, %v2448_v9  ;;  %2531 = vadd.xlane.f32.xlu1 %v2530_v2  ;;  %v2386_v9 = vld [vmem:[%s18986_s24] sm:$0x3] }
 0x3c4   : > { %v2533_v6 = vadd.f32 %v2496_v42, %v2495_v18  ;;  %v18987_v18 = vld [vmem:[#allocation27_spill] sm:$0xff] }
 0x3c5   : > { %v2509_v37 = vmul.f32 %v14185_v4, %v14185_v4  ;;  %v2510_v34 = vmul.f32 %v14188_v54, %v14188_v54  ;;  %v14233_v42 = vrot.slane %v2385_v3, %v18987_v18 }
 0x3c6   : > { %2534 = vadd.xlane.f32.xlu0 %v2533_v6  ;;  %v18988_v6 = vld [vmem:[#allocation28_spill] sm:$0xff] }
 0x3c7   : > { %v2554_v60 = vadd.f32 %v2510_v34, %v2509_v37  ;;  %v14236_v37 = vrot.slane %v2385_v3, %v18988_v6 }
 0x3c9   : > { %2555 = vadd.xlane.f32.xlu1 %v2554_v60  ;;  %v14239_v60 = vrot.slane %v2386_v9, %v18987_v18 }
 0x3cc   : > { %v2431_v35 = vpop.xlane.xlu0 %2430 }
 0x3cd   : > { %v2449_v62 = vmul.f32 0.00390625, %v2431_v35  ;;  %v14242_v35 = vrot.slane %v2386_v9, %v18988_v6 }
 0x3cf   : > { %v14195_v22 = vsub.f32 %v14041_v26, %v2449_v62  ;;  %v14198_v57 = vsub.f32 %v14044_v10, %v2449_v62 }
 0x3d1   : > { %v2410_v1 = vpop.xlane.xlu1 %2409  ;;  %v2511_v52 = vmul.f32 %v14195_v22, %v14195_v22  ;;  %v2512_v23 = vmul.f32 %v14198_v57, %v14198_v57 }
 0x3d2   : > { %v2442_v41 = vmul.f32 0.00390625, %v2410_v1 }
 0x3d3   : > { %v2557_v53 = vadd.f32 %v2512_v23, %v2511_v52 }
 0x3d4   : > { %v14205_v19 = vsub.f32 %v14049_v46, %v2442_v41  ;;  %v14208_v50 = vsub.f32 %v14052_v17, %v2442_v41 }
 0x3d5   : > { %v2434_v26 = vpop.xlane.xlu1 %2433  ;;  %2558 = vadd.xlane.f32.xlu0 %v2557_v53 }
 0x3d6   : > { %v2450_v49 = vmul.f32 0.00390625, %v2434_v26  ;;  %v2497_v10 = vmul.f32 %v14205_v19, %v14205_v19  ;;  %v2498_v29 = vmul.f32 %v14208_v50, %v14208_v50 }
 0x3d8   : > { %v14215_v7 = vsub.f32 %v14057_v58, %v2450_v49  ;;  %v14218_v55 = vsub.f32 %v14060_v59, %v2450_v49  ;;  %v2536_v46 = vadd.f32 %v2498_v29, %v2497_v10 }
 0x3da   : > { %2537 = vadd.xlane.f32.xlu1 %v2536_v46  ;;  %v2513_v17 = vmul.f32 %v14215_v7, %v14215_v7  ;;  %v2514_v13 = vmul.f32 %v14218_v55, %v14218_v55 }
 0x3dc   : > { %v2560_v40 = vadd.f32 %v2514_v13, %v2513_v17 }
 0x3de   : > { %2561 = vadd.xlane.f32.xlu1 %v2560_v40 }
 0x3fa   : > { %v2517_v11 = vpop.xlane.xlu0 %2516 }
 0x3fb   : > { %v2563_v39 = vmul.f32 0.00390625, %v2517_v11 }
 0x3fd   : > { %v2579_v43 = vadd.f32 1e-05, %v2563_v39 }
 0x3ff   : > { %11616 = vrsqrt.f32 %v2579_v43 }
 0x400   : > { %v2520_v8 = vpop.xlane.xlu1 %2519 }
 0x401   : > { %v2564_v58 = vmul.f32 0.00390625, %v2520_v8 }
 0x403   : > { %v2580_v63 = vadd.f32 1e-05, %v2564_v58 }
 0x405   : > { %11618 = vrsqrt.f32 %v2580_v63 }
 0x40c   : > { %v11617_v59 = vpop.eup %11616 }
 0x40d   : > { %v2611_v21 = vmul.f32 %v11617_v59, %v14065_v27  ;;  %v2612_v2 = vmul.f32 %v11617_v59, %v14068_v20 }
 0x40f   : > { %v2655_v1 = vmul.f32 %v14236_v37, %v2612_v2  ;;  %v2654_v20 = vmul.f32 %v14233_v42, %v2611_v21 }
 0x411   : > { %v2698_v41 = vadd.f32 %v14242_v35, %v2655_v1  ;;  %v2697_v26 = vadd.f32 %v14239_v60, %v2654_v20 }
 0x412   : > { %v11619_v34 = vpop.eup %11618 }
 0x413   : > { %v2613_v27 = vmul.f32 %v11619_v34, %v14075_v0  ;;  %v2614_v62 = vmul.f32 %v11619_v34, %v14078_v24 }
 0x415   : > { %v2657_v52 = vmul.f32 %v14236_v37, %v2614_v62  ;;  %v2656_v23 = vmul.f32 %v14233_v42, %v2613_v27 }
 0x417   : > { %v2700_v53 = vadd.f32 %v14242_v35, %v2657_v52  ;;  %v2699_v49 = vadd.f32 %v14239_v60, %v2656_v23 }
 0x419   : > { %v2730_v10 = vpack.c.bf16 %v2700_v53, %v2698_v41  ;;  %v2729_v29 = vpack.c.bf16 %v2699_v49, %v2697_v26 }
 0x41b   : > { %v2541_v0 = vpop.xlane.xlu0 %2540  ;;  %2981 = vmatprep.mubr.bf16.mxu0 %v2730_v10 }
 0x41c   : > { %v2571_v24 = vmul.f32 0.00390625, %v2541_v0  ;;  %2982 = vmatmul.mubr.bf16.vlgmr.msra.gmra.mxu0 %v2729_v29 }
 0x41e   : > { %v2587_v46 = vadd.f32 1e-05, %v2571_v24 }
 0x420   : > { %11620 = vrsqrt.f32 %v2587_v46 }
 0x421   : > { %v2523_v17 = vpop.xlane.xlu0 %2522 }
 0x422   : > { %v2565_v13 = vmul.f32 0.00390625, %v2523_v17 }
 0x424   : > { %v2581_v40 = vadd.f32 1e-05, %v2565_v13 }
 0x426   : > { %v2544_v11 = vpop.xlane.xlu1 %2543  ;;  %11622 = vrsqrt.f32 %v2581_v40 }
 0x427   : > { %v2572_v39 = vmul.f32 0.00390625, %v2544_v11 }
 0x429   : > { %v2588_v43 = vadd.f32 1e-05, %v2572_v39  ;;  %v2547_v63 = vpop.xlane.xlu0 %2546 }
 0x42a   : > { %v2573_v21 = vmul.f32 0.00390625, %v2547_v63 }
 0x42b   : > { %11624 = vrsqrt.f32 %v2588_v43 }
 0x42c   : > { %v2526_v8 = vpop.xlane.xlu1 %2525  ;;  %v2589_v34 = vadd.f32 1e-05, %v2573_v21 }
 0x42d   : > { %v2566_v58 = vmul.f32 0.00390625, %v2526_v8  ;;  %v11621_v3 = vpop.eup %11620 }
 0x42e   : > { %v2627_v9 = vmul.f32 %v11621_v3, %v14085_v56  ;;  %v2628_v2 = vmul.f32 %v11621_v3, %v14088_v14 }
 0x42f   : > { %v2582_v59 = vadd.f32 1e-05, %v2566_v58 }
 0x430   : > { %v2671_v52 = vmul.f32 %v14236_v37, %v2628_v2  ;;  %v2670_v23 = vmul.f32 %v14233_v42, %v2627_v9 }
 0x431   : > { %11626 = vrsqrt.f32 %v2582_v59 }
 0x432   : > { %11628 = vrsqrt.f32 %v2589_v34  ;;  %v2714_v10 = vadd.f32 %v14242_v35, %v2671_v52 }
 0x433   : > { %v11623_v27 = vpop.eup %11622  ;;  %v2529_v46 = vpop.xlane.xlu0 %2528 }
 0x434   : > { %v2616_v41 = vmul.f32 %v11623_v27, %v14098_v15  ;;  %v2615_v53 = vmul.f32 %v11623_v27, %v14095_v30  ;;  %v2567_v8 = vmul.f32 0.00390625, %v2529_v46 }
 0x436   : > { %v2659_v15 = vmul.f32 %v14236_v37, %v2616_v41  ;;  %v2658_v30 = vmul.f32 %v14233_v42, %v2615_v53 }
 0x438   : > { %v11625_v62 = vpop.eup %11624  ;;  %v2702_v58 = vadd.f32 %v14242_v35, %v2659_v15  ;;  %v2701_v59 = vadd.f32 %v14239_v60, %v2658_v30 }
 0x439   : > { %v2629_v1 = vmul.f32 %v11625_v62, %v14105_v28  ;;  %v2630_v20 = vmul.f32 %v11625_v62, %v14108_v47  ;;  %v2713_v47 = vadd.f32 %v14239_v60, %v2670_v23 }
 0x43b   : > { %v2550_v26 = vpop.xlane.xlu1 %2549  ;;  %v2673_v56 = vmul.f32 %v14236_v37, %v2630_v20  ;;  %v2672_v14 = vmul.f32 %v14233_v42, %v2629_v1 }
 0x43c   : > { %v2574_v49 = vmul.f32 0.00390625, %v2550_v26 }
 0x43d   : > { %v2716_v28 = vadd.f32 %v14242_v35, %v2673_v56  ;;  %v2715_v0 = vadd.f32 %v14239_v60, %v2672_v14 }
 0x43e   : > { %v11627_v29 = vpop.eup %11626  ;;  %v2590_v24 = vadd.f32 1e-05, %v2574_v49 }
 0x43f   : > { %v2738_v17 = vpack.c.bf16 %v2716_v28, %v2714_v10  ;;  %v2737_v13 = vpack.c.bf16 %v2715_v0, %v2713_v47  ;;  %v2618_v40 = vmul.f32 %v11627_v29, %v14128_v33  ;;  %v2617_v11 = vmul.f32 %v11627_v29, %v14125_v12  ;;  %v11629_v2 = vpop.eup %11628 }
 0x440   : > { %11630 = vrsqrt.f32 %v2590_v24  ;;  %v2553_v21 = vpop.xlane.xlu0 %2552  ;;  %v2583_v12 = vadd.f32 1e-05, %v2567_v8  ;;  %v2632_v27 = vmul.f32 %v11629_v2, %v14118_v25  ;;  %v2631_v62 = vmul.f32 %v11629_v2, %v14115_v44 }
 0x441   : > { %3021 = vmatprep.mubr.bf16.mxu1 %v2738_v17  ;;  %v2661_v39 = vmul.f32 %v14236_v37, %v2618_v40  ;;  %v2660_v43 = vmul.f32 %v14233_v42, %v2617_v11  ;;  %v2575_v34 = vmul.f32 0.00390625, %v2553_v21 }
 0x442   : > { %3022 = vmatmul.mubr.bf16.vlgmr.msra.gmra.mxu1 %v2737_v13  ;;  %11632 = vrsqrt.f32 %v2583_v12  ;;  %v2675_v53 = vmul.f32 %v14236_v37, %v2632_v27  ;;  %v2674_v56 = vmul.f32 %v14233_v42, %v2631_v62 }
 0x443   : > { %v2704_v63 = vadd.f32 %v14242_v35, %v2661_v39  ;;  %v2703_v3 = vadd.f32 %v14239_v60, %v2660_v43  ;;  %v2591_v1 = vadd.f32 1e-05, %v2575_v34 }
 0x444   : > { %v2718_v10 = vadd.f32 %v14242_v35, %v2675_v53 }
 0x445   : > { %v2732_v33 = vpack.c.bf16 %v2704_v63, %v2702_v58  ;;  %v2731_v9 = vpack.c.bf16 %v2703_v3, %v2701_v59  ;;  %11634 = vrsqrt.f32 %v2591_v1 }
 0x447   : > { %2991 = vmatprep.mubr.bf16.mxu0 %v2732_v33 }
 0x448   : > { %2992 = vmatmul.mubr.bf16.gmra.mxu0 %v2731_v9 }
 0x44c   : > { %v2532_v20 = vpop.xlane.xlu1 %2531 }
 0x44d   : > { %v11631_v52 = vpop.eup %11630  ;;  %v2568_v23 = vmul.f32 0.00390625, %v2532_v20 }
 0x44e   : > { %v2634_v41 = vmul.f32 %v11631_v52, %v14148_v5  ;;  %v2633_v26 = vmul.f32 %v11631_v52, %v14145_v32  ;;  %v2717_v5 = vadd.f32 %v14239_v60, %v2674_v56 }
 0x44f   : > { %v2584_v14 = vadd.f32 1e-05, %v2568_v23  ;;  %v2535_v15 = vpop.xlane.xlu0 %2534  ;;  %v11633_v30 = vpop.eup %11632 }
 0x450   : > { %v2677_v49 = vmul.f32 %v14236_v37, %v2634_v41  ;;  %v2676_v25 = vmul.f32 %v14233_v42, %v2633_v26  ;;  %v2569_v46 = vmul.f32 0.00390625, %v2535_v15  ;;  %v2620_v17 = vmul.f32 %v11633_v30, %v14138_v36 }
 0x451   : > { %11636 = vrsqrt.f32 %v2584_v14  ;;  %v2619_v13 = vmul.f32 %v11633_v30, %v14135_v51 }
 0x452   : > { %v2556_v44 = vpop.xlane.xlu1 %2555  ;;  %v2720_v28 = vadd.f32 %v14242_v35, %v2677_v49  ;;  %v2719_v47 = vadd.f32 %v14239_v60, %v2676_v25  ;;  %v11635_v40 = vpop.eup %11634  ;;  %v2585_v11 = vadd.f32 1e-05, %v2569_v46  ;;  %v2663_v8 = vmul.f32 %v14236_v37, %v2620_v17 }
 0x453   : > { %v2576_v0 = vmul.f32 0.00390625, %v2556_v44  ;;  %v2662_v3 = vmul.f32 %v14233_v42, %v2619_v13  ;;  %v2636_v21 = vmul.f32 %v11635_v40, %v14158_v31  ;;  %v2635_v33 = vmul.f32 %v11635_v40, %v14155_v61 }
 0x454   : > { %v2740_v32 = vpack.c.bf16 %v2720_v28, %v2718_v10  ;;  %v2739_v29 = vpack.c.bf16 %v2719_v47, %v2717_v5  ;;  %v2706_v2 = vadd.f32 %v14242_v35, %v2663_v8 }
 0x455   : > { %v2592_v24 = vadd.f32 1e-05, %v2576_v0  ;;  %v2679_v61 = vmul.f32 %v14236_v37, %v2636_v21  ;;  %v2678_v62 = vmul.f32 %v14233_v42, %v2635_v33 }
 0x456   : > { %3031 = vmatprep.mubr.bf16.mxu1 %v2740_v32 }
 0x457   : > { %11638 = vrsqrt.f32 %v2592_v24  ;;  %3032 = vmatmul.mubr.bf16.gmra.mxu1 %v2739_v29  ;;  %v2722_v49 = vadd.f32 %v14242_v35, %v2679_v61  ;;  %v2721_v44 = vadd.f32 %v14239_v60, %v2678_v62 }
 0x458   : > { %11640 = vrsqrt.f32 %v2585_v11 }
 0x45e   : > { %v11637_v39 = vpop.eup %11636  ;;  %v2559_v43 = vpop.xlane.xlu0 %2558 }
 0x45f   : > { %v2577_v58 = vmul.f32 0.00390625, %v2559_v43  ;;  %v2622_v63 = vmul.f32 %v11637_v39, %v14168_v38  ;;  %v2621_v59 = vmul.f32 %v11637_v39, %v14165_v48  ;;  %v2705_v38 = vadd.f32 %v14239_v60, %v2662_v3 }
 0x461   : > { %v2593_v36 = vadd.f32 1e-05, %v2577_v58  ;;  %v2665_v51 = vmul.f32 %v14236_v37, %v2622_v63  ;;  %v2664_v9 = vmul.f32 %v14233_v42, %v2621_v59 }
 0x463   : > { %v2538_v12 = vpop.xlane.xlu1 %2537  ;;  %v2708_v34 = vadd.f32 %v14242_v35, %v2665_v51  ;;  %v2707_v48 = vadd.f32 %v14239_v60, %v2664_v9  ;;  %11642 = vrsqrt.f32 %v2593_v36 }
 0x464   : > { %v11639_v27 = vpop.eup %11638  ;;  %v2570_v31 = vmul.f32 0.00390625, %v2538_v12 }
 0x465   : > { %v2734_v1 = vpack.c.bf16 %v2708_v34, %v2706_v2  ;;  %v2733_v20 = vpack.c.bf16 %v2707_v48, %v2705_v38  ;;  %v2638_v52 = vmul.f32 %v11639_v27, %v14188_v54  ;;  %v2637_v23 = vmul.f32 %v11639_v27, %v14185_v4  ;;  %v11641_v5 = vpop.eup %11640 }
 0x466   : > { %v2586_v41 = vadd.f32 1e-05, %v2570_v31  ;;  %v2624_v0 = vmul.f32 %v11641_v5, %v14178_v45  ;;  %v2623_v32 = vmul.f32 %v11641_v5, %v14175_v16 }
 0x467   : > { %v2562_v53 = vpop.xlane.xlu1 %2561  ;;  %3001 = vmatprep.mubr.bf16.mxu0 %v2734_v1  ;;  %v2681_v26 = vmul.f32 %v14236_v37, %v2638_v52  ;;  %v2680_v56 = vmul.f32 %v14233_v42, %v2637_v23 }
 0x468   : > { %11644 = vrsqrt.f32 %v2586_v41  ;;  %v2578_v14 = vmul.f32 0.00390625, %v2562_v53  ;;  %3002 = vmatmul.mubr.bf16.gmra.mxu0 %v2733_v20  ;;  %v2667_v24 = vmul.f32 %v14236_v37, %v2624_v0  ;;  %v2666_v15 = vmul.f32 %v14233_v42, %v2623_v32 }
 0x469   : > { %v2724_v25 = vadd.f32 %v14242_v35, %v2681_v26  ;;  %v2723_v54 = vadd.f32 %v14239_v60, %v2680_v56 }
 0x46a   : > { %v2594_v10 = vadd.f32 1e-05, %v2578_v14  ;;  %v2710_v16 = vadd.f32 %v14242_v35, %v2667_v24  ;;  %v2709_v39 = vadd.f32 %v14239_v60, %v2666_v15 }
 0x46b   : > { %v2742_v4 = vpack.c.bf16 %v2724_v25, %v2722_v49  ;;  %v2741_v28 = vpack.c.bf16 %v2723_v54, %v2721_v44 }
 0x46c   : > { %11646 = vrsqrt.f32 %v2594_v10 }
 0x46d   : > { %3041 = vmatprep.mubr.bf16.mxu1 %v2742_v4 }
 0x46e   : > { %3042 = vmatmul.mubr.bf16.gmra.mxu1 %v2741_v28 }
 0x470   : > { %v11643_v47 = vpop.eup %11642 }
 0x471   : > { %v2640_v30 = vmul.f32 %v11643_v47, %v14198_v57  ;;  %v2639_v46 = vmul.f32 %v11643_v47, %v14195_v22 }
 0x473   : > { %v2683_v43 = vmul.f32 %v14236_v37, %v2640_v30  ;;  %v2682_v8 = vmul.f32 %v14233_v42, %v2639_v46 }
 0x475   : > { %v11645_v29 = vpop.eup %11644  ;;  %v2726_v21 = vadd.f32 %v14242_v35, %v2683_v43  ;;  %v2725_v36 = vadd.f32 %v14239_v60, %v2682_v8 }
 0x476   : > { %v2626_v17 = vmul.f32 %v11645_v29, %v14208_v50  ;;  %v2625_v13 = vmul.f32 %v11645_v29, %v14205_v19 }
 0x478   : > { %v2669_v40 = vmul.f32 %v14236_v37, %v2626_v17  ;;  %v2668_v11 = vmul.f32 %v14233_v42, %v2625_v13 }
 0x479   : > { %v11647_v45 = vpop.eup %11646 }
 0x47a   : > { %v2712_v57 = vadd.f32 %v14242_v35, %v2669_v40  ;;  %v2711_v22 = vadd.f32 %v14239_v60, %v2668_v11  ;;  %v2642_v50 = vmul.f32 %v11647_v45, %v14218_v55  ;;  %v2641_v19 = vmul.f32 %v11647_v45, %v14215_v7  ;;  %v2777_v7 = vld [vmem:[%s18989_s5] sm:$0x3] }
 0x47c   : > { %v2736_v58 = vpack.c.bf16 %v2712_v57, %v2710_v16  ;;  %v2735_v63 = vpack.c.bf16 %v2711_v22, %v2709_v39  ;;  %v2685_v59 = vmul.f32 %v14236_v37, %v2642_v50  ;;  %v2684_v3 = vmul.f32 %v14233_v42, %v2641_v19 }
 0x47d   : > { %v14342_v42 = vrot.slane %v2777_v7, %v18987_v18  ;;  %v14345_v37 = vrot.slane %v2777_v7, %v18988_v6 }
 0x47e   : > { %3011 = vmatprep.mubr.bf16.mxu0 %v2736_v58  ;;  %v2728_v33 = vadd.f32 %v14242_v35, %v2685_v59  ;;  %v2727_v51 = vadd.f32 %v14239_v60, %v2684_v3 }
 0x47f   : > { %3012 = vmatmul.mubr.bf16.gmra.mxu0 %v2735_v63 }
 0x480   : > { %v2744_v9 = vpack.c.bf16 %v2728_v33, %v2726_v21  ;;  %v2743_v55 = vpack.c.bf16 %v2727_v51, %v2725_v36 }
 0x482   : > { %3051 = vmatprep.mubr.bf16.mxu1 %v2744_v9 }
 0x483   : > { %3052 = vmatmul.mubr.bf16.gmra.mxu1 %v2743_v55 }
 0x4dc   : > { %v2983_v35 = vpop.f32.mrf.mxu0 }
 0x4dd   : > { %v2984_v12 = vadd.f32 %v2983_v35, %v14342_v42 }
 0x4de   : > { %v2985_v2 = vpop.f32.mrf.mxu0 }
 0x4df   : > { %3062 = vst [vmem:[#allocation2 + $0xb0] sm:$0xff] %v2984_v12  ;;  %v2986_v60 = vadd.f32 %v2985_v2, %v14345_v37 }
 0x4e0   : > { %v2987_v34 = vpop.f32.mrf.mxu0 }
 0x4e1   : > { %3063 = vst [vmem:[#allocation2] sm:$0xff] %v2986_v60  ;;  %v2988_v38 = vadd.f32 %v2987_v34, %v14342_v42 }
 0x4e2   : > { %v2989_v48 = vpop.f32.mrf.mxu0 }
 0x4e3   : > { %3064 = vst [vmem:[#allocation2 + $0xd8] sm:$0xff] %v2988_v38  ;;  %v2990_v27 = vadd.f32 %v2989_v48, %v14345_v37 }
 0x4e5   : > { %3065 = vst [vmem:[#allocation2 + $0x18] sm:$0xff] %v2990_v27 }
 0x502   : > { %v3023_v18 = vpop.f32.mrf.mxu1 }
 0x503   : > { %v3024_v6 = vadd.f32 %v3023_v18, %v14342_v42 }
 0x504   : > { %v3025_v31 = vpop.f32.mrf.mxu1 }
 0x505   : > { %3078 = vst [vmem:[#allocation2 + $0x38] sm:$0xff] %v3024_v6  ;;  %v3026_v61 = vadd.f32 %v3025_v31, %v14345_v37 }
 0x506   : > { %v3027_v62 = vpop.f32.mrf.mxu1 }
 0x507   : > { %3079 = vst [vmem:[#allocation2 + $0x58] sm:$0xff] %v3026_v61  ;;  %v3028_v1 = vadd.f32 %v3027_v62, %v14342_v42 }
 0x508   : > { %v2993_v20 = vpop.f32.mrf.mxu0  ;;  %v3029_v52 = vpop.f32.mrf.mxu1 }
 0x509   : > { %v2994_v23 = vadd.f32 %v2993_v20, %v14342_v42  ;;  %3080 = vst [vmem:[#allocation2 + $0x40] sm:$0xff] %v3028_v1  ;;  %v3030_v41 = vadd.f32 %v3029_v52, %v14345_v37 }
 0x50a   : > { %v2995_v53 = vpop.f32.mrf.mxu0 }
 0x50b   : > { %3066 = vst [vmem:[#allocation2 + $0x50] sm:$0xff] %v2994_v23  ;;  %v2996_v26 = vadd.f32 %v2995_v53, %v14345_v37  ;;  %3081 = vst [vmem:[#allocation2 + $0xc8] sm:$0xff] %v3030_v41 }
 0x50c   : > { %v2997_v56 = vpop.f32.mrf.mxu0 }
 0x50d   : > { %3067 = vst [vmem:[#allocation2 + $0x68] sm:$0xff] %v2996_v26  ;;  %v2998_v14 = vadd.f32 %v2997_v56, %v14342_v42 }
 0x50e   : > { %v2999_v49 = vpop.f32.mrf.mxu0 }
 0x50f   : > { %3068 = vst [vmem:[#allocation2 + $0x30] sm:$0xff] %v2998_v14  ;;  %v3000_v25 = vadd.f32 %v2999_v49, %v14345_v37 }
 0x511   : > { %3069 = vst [vmem:[#allocation2 + $0x48] sm:$0xff] %v3000_v25 }
 0x517   : > { %v3033_v44 = vpop.f32.mrf.mxu1 }
 0x518   : > { %v3034_v54 = vadd.f32 %v3033_v44, %v14342_v42 }
 0x519   : > { %v3035_v10 = vpop.f32.mrf.mxu1 }
 0x51a   : > { %3082 = vst [vmem:[#allocation2 + $0xe0] sm:$0xff] %v3034_v54  ;;  %v3036_v4 = vadd.f32 %v3035_v10, %v14345_v37 }
 0x51b   : > { %v3037_v28 = vpop.f32.mrf.mxu1 }
 0x51c   : > { %3083 = vst [vmem:[#allocation2 + $0x90] sm:$0xff] %v3036_v4  ;;  %v3038_v5 = vadd.f32 %v3037_v28, %v14342_v42 }
 0x51d   : > { %v3039_v47 = vpop.f32.mrf.mxu1 }
 0x51e   : > { %3084 = vst [vmem:[#allocation2 + $0x70] sm:$0xff] %v3038_v5  ;;  %v3040_v0 = vadd.f32 %v3039_v47, %v14345_v37 }
 0x520   : > { %3085 = vst [vmem:[#allocation2 + $0xc0] sm:$0xff] %v3040_v0 }
 0x528   : > { %v3003_v32 = vpop.f32.mrf.mxu0 }
 0x529   : > { %v3004_v29 = vadd.f32 %v3003_v32, %v14342_v42 }
 0x52a   : > { %v3005_v24 = vpop.f32.mrf.mxu0 }
 0x52b   : > { %3070 = vst [vmem:[#allocation2 + $0x80] sm:$0xff] %v3004_v29  ;;  %v3006_v15 = vadd.f32 %v3005_v24, %v14345_v37 }
 0x52c   : > { %v3007_v30 = vpop.f32.mrf.mxu0 }
 0x52d   : > { %3071 = vst [vmem:[#allocation2 + $0x88] sm:$0xff] %v3006_v15  ;;  %v3008_v46 = vadd.f32 %v3007_v30, %v14342_v42 }
 0x52e   : > { %v3043_v17 = vpop.f32.mrf.mxu1  ;;  %v3009_v13 = vpop.f32.mrf.mxu0 }
 0x52f   : > { %3072 = vst [vmem:[#allocation2 + $0xe8] sm:$0xff] %v3008_v46  ;;  %v3044_v40 = vadd.f32 %v3043_v17, %v14342_v42  ;;  %v3010_v11 = vadd.f32 %v3009_v13, %v14345_v37 }
 0x530   : > { %v3045_v45 = vpop.f32.mrf.mxu1 }
 0x531   : > { %3086 = vst [vmem:[#allocation2 + $0xa8] sm:$0xff] %v3044_v40  ;;  %3073 = vst [vmem:[#allocation2 + $0xb8] sm:$0xff] %v3010_v11  ;;  %v3046_v16 = vadd.f32 %v3045_v45, %v14345_v37 }
 0x532   : > { %v3047_v39 = vpop.f32.mrf.mxu1 }
 0x533   : > { %3087 = vst [vmem:[#allocation2 + $0xd0] sm:$0xff] %v3046_v16  ;;  %v3048_v43 = vadd.f32 %v3047_v39, %v14342_v42 }
 0x534   : > { %v3049_v8 = vpop.f32.mrf.mxu1 }
 0x535   : > { %3088 = vst [vmem:[#allocation2 + $0x10] sm:$0xff] %v3048_v43  ;;  %v3050_v57 = vadd.f32 %v3049_v8, %v14345_v37 }
 0x537   : > { %3089 = vst [vmem:[#allocation2 + $0x28] sm:$0xff] %v3050_v57 }
 0x53f   : > { %v3013_v22 = vpop.f32.mrf.mxu0 }
 0x540   : > { %v3014_v50 = vadd.f32 %v3013_v22, %v14342_v42 }
 0x541   : > { %v3015_v19 = vpop.f32.mrf.mxu0 }
 0x542   : > { %3074 = vst [vmem:[#allocation2 + $0x60] sm:$0xff] %v3014_v50  ;;  %v3016_v58 = vadd.f32 %v3015_v19, %v14345_v37 }
 0x543   : > { %v3017_v63 = vpop.f32.mrf.mxu0  ;;  %v3053_v59 = vpop.f32.mrf.mxu1 }
 0x544   : > { %3075 = vst [vmem:[#allocation2 + $0xf0] sm:$0xff] %v3016_v58  ;;  %v3018_v3 = vadd.f32 %v3017_v63, %v14342_v42  ;;  %v3054_v21 = vadd.f32 %v3053_v59, %v14342_v42 }
 0x545   : > { %v3019_v33 = vpop.f32.mrf.mxu0  ;;  %v3055_v36 = vpop.f32.mrf.mxu1 }
 0x546   : > { %3076 = vst [vmem:[#allocation2 + $0x8] sm:$0xff] %v3018_v3  ;;  %3090 = vst [vmem:[#allocation2 + $0xa0] sm:$0xff] %v3054_v21  ;;  %v3020_v51 = vadd.f32 %v3019_v33, %v14345_v37  ;;  %v3056_v9 = vadd.f32 %v3055_v36, %v14345_v37 }
 0x547   : > { %v3057_v55 = vpop.f32.mrf.mxu1 }
 0x548   : > { %3077 = vst [vmem:[#allocation2 + $0x78] sm:$0xff] %v3020_v51  ;;  %3091 = vst [vmem:[#allocation2 + $0xf8] sm:$0xff] %v3056_v9  ;;  %v3058_v7 = vadd.f32 %v3057_v55, %v14342_v42 }
 0x549   : > { %v3059_v35 = vpop.f32.mrf.mxu1 }
 0x54a   : > { %3092 = vst [vmem:[#allocation2 + $0x20] sm:$0xff] %v3058_v7  ;;  %v3060_v12 = vadd.f32 %v3059_v35, %v14345_v37 }
 0x54c   : > { %3093 = vst [vmem:[#allocation2 + $0x98] sm:$0xff] %v3060_v12 }
 0x54d PF: > { %v14379_v2 = vld [vmem:[#allocation2 + $0xb0] sm:$0xff]  ;;  %v14381_v60 = vld [vmem:[#allocation2] sm:$0xff]  ;;  %v14387_v48 = vld [vmem:[#allocation2 + $0x68] sm:$0xff]  ;;  %s18993_s15 = scalar_lea.vmem %s18780_s8, %s13045_s22  ;;  %s18994_s16 = scalar_lea.vmem %s18781_s9, %s13045_s22 }
 0x54e   : > { %v14383_v34 = vld [vmem:[#allocation2 + $0x50] sm:$0xff]  ;;  %v3128_v38 = vadd.f32 %v14381_v60, %v14379_v2  ;;  %v14389_v27 = vld [vmem:[#allocation2 + $0xd8] sm:$0xff]  ;;  %v14397_v6 = vld [vmem:[#allocation2 + $0x48] sm:$0xff]  ;;  %s19062_s27 = sld [smem:[#allocation102_spill]]  ;;  %p10942_p13 = scmp.ne.s32.totalorder %s12739_s23, 1 }
 0x54f   : > { %v14391_v42 = vld [vmem:[#allocation2 + $0x18] sm:$0xff]  ;;  %v3134_v37 = vadd.f32 %v14387_v48, %v14383_v34  ;;  %v14395_v18 = vld [vmem:[#allocation2 + $0x30] sm:$0xff]  ;;  %v14403_v62 = vld [vmem:[#allocation2 + $0x80] sm:$0xff]  ;;  %s19267_s14 = sld [smem:[#allocation108_spill]] (!%p10942_p13) }
 0x550   : > { %3129 = vadd.xlane.f32.xlu0 %v3128_v38  ;;  %v3131_v31 = vadd.f32 %v14391_v42, %v14389_v27  ;;  %v3137_v61 = vadd.f32 %v14397_v6, %v14395_v18  ;;  %v14405_v1 = vld [vmem:[#allocation2 + $0x88] sm:$0xff]  ;;  %v14409_v52 = vld [vmem:[#allocation2 + $0xb8] sm:$0xff]  ;;  %v14415_v53 = vld [vmem:[#allocation2 + $0x60] sm:$0xff] }
 0x551   : > { %3135 = vadd.xlane.f32.xlu1 %v3134_v37  ;;  %v14407_v20 = vld [vmem:[#allocation2 + $0xe8] sm:$0xff]  ;;  %v3140_v23 = vadd.f32 %v14405_v1, %v14403_v62  ;;  %v14417_v26 = vld [vmem:[#allocation2 + $0xf0] sm:$0xff]  ;;  %v14421_v14 = vld [vmem:[#allocation2 + $0x78] sm:$0xff] }
 0x552   : > { %v3143_v41 = vadd.f32 %v14409_v52, %v14407_v20  ;;  %v14419_v56 = vld [vmem:[#allocation2 + $0x8] sm:$0xff]  ;;  %v14423_v49 = vld [vmem:[#allocation2 + $0x38] sm:$0xff]  ;;  %v3146_v44 = vadd.f32 %v14417_v26, %v14415_v53  ;;  %v14429_v54 = vld [vmem:[#allocation2 + $0x40] sm:$0xff] }
 0x553   : > { %v14425_v25 = vld [vmem:[#allocation2 + $0x58] sm:$0xff]  ;;  %v14431_v10 = vld [vmem:[#allocation2 + $0xc8] sm:$0xff]  ;;  %v3149_v4 = vadd.f32 %v14421_v14, %v14419_v56  ;;  %v14435_v28 = vld [vmem:[#allocation2 + $0xe0] sm:$0xff] }
 0x554   : > { %3132 = vadd.xlane.f32.xlu0 %v3131_v31  ;;  %v14437_v5 = vld [vmem:[#allocation2 + $0x90] sm:$0xff]  ;;  %v3152_v47 = vadd.f32 %v14425_v25, %v14423_v49  ;;  %v14443_v32 = vld [vmem:[#allocation2 + $0xc0] sm:$0xff]  ;;  %v3155_v29 = vadd.f32 %v14431_v10, %v14429_v54  ;;  %v14447_v24 = vld [vmem:[#allocation2 + $0xa8] sm:$0xff]  ;;  %s19063_s24 = scalar_lea.vmem %s19062_s27, %s13045_s22 }
 0x555   : > { %3138 = vadd.xlane.f32.xlu1 %v3137_v61  ;;  %v14441_v0 = vld [vmem:[#allocation2 + $0x70] sm:$0xff]  ;;  %v3158_v30 = vadd.f32 %v14437_v5, %v14435_v28  ;;  %v14455_v17 = vld [vmem:[#allocation2 + $0x28] sm:$0xff]  ;;  %v14459_v40 = vld [vmem:[#allocation2 + $0xa0] sm:$0xff] }
 0x556   : > { %v14449_v15 = vld [vmem:[#allocation2 + $0xd0] sm:$0xff]  ;;  %v3161_v13 = vadd.f32 %v14443_v32, %v14441_v0  ;;  %v14461_v11 = vld [vmem:[#allocation2 + $0xf8] sm:$0xff]  ;;  %v14465_v16 = vld [vmem:[#allocation2 + $0x20] sm:$0xff] }
 0x557   : > { %v14453_v46 = vld [vmem:[#allocation2 + $0x10] sm:$0xff]  ;;  %v3164_v45 = vadd.f32 %v14449_v15, %v14447_v24  ;;  %v14467_v39 = vld [vmem:[#allocation2 + $0x98] sm:$0xff]  ;;  %v3170_v8 = vadd.f32 %v14461_v11, %v14459_v40  ;;  %v11656_v59 = vld [vmem:[%s13066_s0 + $0x12c] ss:$24 sps:$4 sm:$0xff]  }
 0x558   : > { %3141 = vadd.xlane.f32.xlu0 %v3140_v23  ;;  %v3167_v43 = vadd.f32 %v14455_v17, %v14453_v46  ;;  %v3173_v57 = vadd.f32 %v14467_v39, %v14465_v16  ;;  %v11648_v22 = vld [vmem:[%s13066_s0 + $0x154] ss:$24 sps:$4 sm:$0xff]   ;;  %v11652_v19 = vld [vmem:[%s13066_s0 + $0x150] ss:$24 sps:$4 sm:$0xff]   ;;  %v11654_v63 = vld [vmem:[%s13066_s0 + $0x124] ss:$24 sps:$4 sm:$0xff]  }
 0x559   : > { %3144 = vadd.xlane.f32.xlu1 %v3143_v41  ;;  %v11650_v50 = vld [vmem:[%s13066_s0 + $0x15c] ss:$24 sps:$4 sm:$0xff]   ;;  %v11653_v58 = vld [vmem:[%s13066_s0 + $0x158] ss:$24 sps:$4 sm:$0xff]   ;;  %4095 = vmatprep.subr.bf16.mxu0 %v11648_v22  ;;  %v11659_v21 = vld [vmem:[%s13066_s0 + $0x128] ss:$24 sps:$4 sm:$0xff]  }
 0x55a   : > { %4208 = vmatprep.subr.bf16.mxu1 %v11650_v50  ;;  %4096 = vmatpush1.bf16.msra.mxu0 %v11652_v19  ;;  %v11658_v3 = vld [vmem:[%s13066_s0 + $0x120] ss:$24 sps:$4 sm:$0xff]   ;;  %v11660_v33 = vld [vmem:[%s13066_s0 + $0xf4] ss:$24 sps:$4 sm:$0xff]   ;;  %v11664_v51 = vld [vmem:[%s13066_s0 + $0xf0] ss:$24 sps:$4 sm:$0xff]  }
 0x55b   : > { %4209 = vmatpush1.bf16.msra.mxu1 %v11653_v58  ;;  %4097 = vmatprep.subr.bf16.mxu0 %v11654_v63  ;;  %v11662_v36 = vld [vmem:[%s13066_s0 + $0xfc] ss:$24 sps:$4 sm:$0xff]   ;;  %v11665_v9 = vld [vmem:[%s13066_s0 + $0xf8] ss:$24 sps:$4 sm:$0xff]   ;;  %v11668_v7 = vld [vmem:[%s13066_s0 + $0xcc] ss:$24 sps:$4 sm:$0xff]  }
 0x55c   : > { %3147 = vadd.xlane.f32.xlu0 %v3146_v44  ;;  %4210 = vmatprep.subr.bf16.mxu1 %v11656_v59  ;;  %v11666_v55 = vld [vmem:[%s13066_s0 + $0xc4] ss:$24 sps:$4 sm:$0xff]   ;;  %v11670_v35 = vld [vmem:[%s13066_s0 + $0xc0] ss:$24 sps:$4 sm:$0xff]   ;;  %v11672_v38 = vld [vmem:[%s13066_s0 + $0x94] ss:$24 sps:$4 sm:$0xff]  }
 0x55d   : > { %3150 = vadd.xlane.f32.xlu1 %v3149_v4  ;;  %v11671_v12 = vld [vmem:[%s13066_s0 + $0xc8] ss:$24 sps:$4 sm:$0xff]   ;;  %v11674_v37 = vld [vmem:[%s13066_s0 + $0x9c] ss:$24 sps:$4 sm:$0xff]   ;;  %v11677_v61 = vld [vmem:[%s13066_s0 + $0x98] ss:$24 sps:$4 sm:$0xff]  }
 0x55e   : > { %4098 = vmatpush1.bf16.msra.mxu0 %v11658_v3  ;;  %v11676_v31 = vld [vmem:[%s13066_s0 + $0x90] ss:$24 sps:$4 sm:$0xff]   ;;  %v11678_v23 = vld [vmem:[%s13066_s0 + $0x64] ss:$24 sps:$4 sm:$0xff]   ;;  %v11682_v44 = vld [vmem:[%s13066_s0 + $0x60] ss:$24 sps:$4 sm:$0xff]  }
 0x55f   : > { %4211 = vmatpush1.bf16.msra.mxu1 %v11659_v21  ;;  %4099 = vmatprep.subr.bf16.mxu0 %v11660_v33  ;;  %v11680_v41 = vld [vmem:[%s13066_s0 + $0x6c] ss:$24 sps:$4 sm:$0xff]   ;;  %v11683_v4 = vld [vmem:[%s13066_s0 + $0x68] ss:$24 sps:$4 sm:$0xff]   ;;  %v11698_v50 = vld [vmem:[%s13066_s0 + $0x2dc] ss:$24 sps:$4 sm:$0xff]  }
 0x560   : > { %3153 = vadd.xlane.f32.xlu0 %v3152_v47  ;;  %4212 = vmatprep.subr.bf16.mxu1 %v11662_v36  ;;  %v11684_v47 = vld [vmem:[%s13066_s0 + $0x34] ss:$24 sps:$4 sm:$0xff]  }
 0x561   : > { %3156 = vadd.xlane.f32.xlu1 %v3155_v29  ;;  %v11686_v29 = vld [vmem:[%s13066_s0 + $0x3c] ss:$24 sps:$4 sm:$0xff]  }
 0x562   : > { %4100 = vmatpush1.bf16.msra.mxu0 %v11664_v51  ;;  %v11696_v22 = vld [vmem:[%s13066_s0 + $0x2d4] ss:$24 sps:$4 sm:$0xff]  }
 0x563   : > { %4213 = vmatpush1.bf16.msra.mxu1 %v11665_v9  ;;  %4101 = vmatprep.subr.bf16.mxu0 %v11666_v55 }
 0x564   : > { %3159 = vadd.xlane.f32.xlu0 %v3158_v30  ;;  %4214 = vmatprep.subr.bf16.mxu1 %v11668_v7  ;;  %v11688_v30 = vld [vmem:[%s13066_s0 + $0x30] ss:$24 sps:$4 sm:$0xff]  }
 0x565   : > { %3162 = vadd.xlane.f32.xlu1 %v3161_v13  ;;  %v11689_v13 = vld [vmem:[%s13066_s0 + $0x38] ss:$24 sps:$4 sm:$0xff]  }
 0x566   : > { %4102 = vmatpush1.bf16.msra.mxu0 %v11670_v35 }
 0x567   : > { %4215 = vmatpush1.bf16.msra.mxu1 %v11671_v12  ;;  %4103 = vmatprep.subr.bf16.mxu0 %v11672_v38 }
 0x568   : > { %3165 = vadd.xlane.f32.xlu0 %v3164_v45  ;;  %4216 = vmatprep.subr.bf16.mxu1 %v11674_v37  ;;  %v11690_v45 = vld [vmem:[%s13066_s0 + $0x4] ss:$24 sps:$4 sm:$0xff]  }
 0x569   : > { %3168 = vadd.xlane.f32.xlu1 %v3167_v43  ;;  %v11692_v43 = vld [vmem:[%s13066_s0 + $0xc] ss:$24 sps:$4 sm:$0xff]  }
 0x56a   : > { %4104 = vmatpush1.bf16.msra.mxu0 %v11676_v31 }
 0x56b   : > { %4217 = vmatpush1.bf16.msra.mxu1 %v11677_v61  ;;  %4105 = vmatprep.subr.bf16.mxu0 %v11678_v23 }
 0x56c   : > { %3171 = vadd.xlane.f32.xlu0 %v3170_v8  ;;  %4218 = vmatprep.subr.bf16.mxu1 %v11680_v41  ;;  %v11694_v8 = vld [vmem:[%s13066_s0] ss:$24 sps:$4 sm:$0xff]  }
 0x56d   : > { %3174 = vadd.xlane.f32.xlu1 %v3173_v57  ;;  %v11695_v57 = vld [vmem:[%s13066_s0 + $0x8] ss:$24 sps:$4 sm:$0xff]  }
 0x56e   : > { %4106 = vmatpush1.bf16.msra.mxu0 %v11682_v44 }
 0x56f   : > { %4219 = vmatpush1.bf16.msra.mxu1 %v11683_v4  ;;  %4107 = vmatprep.subr.bf16.mxu0 %v11684_v47 }
 0x570   : > { %4220 = vmatprep.subr.bf16.mxu1 %v11686_v29 }
 0x572   : > { %4108 = vmatpush1.bf16.msra.mxu0 %v11688_v30 }
 0x573   : > { %4221 = vmatpush1.bf16.msra.mxu1 %v11689_v13  ;;  %4109 = vmatprep.subr.bf16.mxu0 %v11690_v45 }
 0x574   : > { %4222 = vmatprep.subr.bf16.mxu1 %v11692_v43 }
 0x576   : > { %4110 = vmatpush1.bf16.msra.mxu0 %v11694_v8 }
 0x577   : > { %4223 = vmatpush1.bf16.msra.mxu1 %v11695_v57  ;;  %4111 = vmatprep.subr.bf16.mxu0 %v11696_v22 }
 0x578   : > { %4224 = vmatprep.subr.bf16.mxu1 %v11698_v50 }
 0x5d9   : > { %v3130_v19 = vpop.xlane.xlu0 %3129 }
 0x5da   : > { %v3177_v58 = vmul.f32 0.00390625, %v3130_v19  ;;  %v3136_v63 = vpop.xlane.xlu1 %3135 }
 0x5db   : > { %v3179_v59 = vmul.f32 0.00390625, %v3136_v63 }
 0x5dc   : > { %v14510_v3 = vsub.f32 %v14379_v2, %v3177_v58  ;;  %v14513_v21 = vsub.f32 %v14381_v60, %v3177_v58 }
 0x5dd   : > { %v14516_v33 = vsub.f32 %v14383_v34, %v3179_v59  ;;  %v14519_v36 = vsub.f32 %v14387_v48, %v3179_v59  ;;  %v3133_v51 = vpop.xlane.xlu0 %3132 }
 0x5de   : > { %v3178_v9 = vmul.f32 0.00390625, %v3133_v51  ;;  %v3139_v55 = vpop.xlane.xlu1 %3138  ;;  %v3225_v7 = vmul.f32 %v14510_v3, %v14510_v3  ;;  %v3226_v35 = vmul.f32 %v14513_v21, %v14513_v21 }
 0x5df   : > { %v3180_v2 = vmul.f32 0.00390625, %v3139_v55  ;;  %v3229_v60 = vmul.f32 %v14516_v33, %v14516_v33  ;;  %v3230_v34 = vmul.f32 %v14519_v36, %v14519_v36 }
 0x5e0   : > { %v14530_v12 = vsub.f32 %v14389_v27, %v3178_v9  ;;  %v14533_v48 = vsub.f32 %v14391_v42, %v3178_v9  ;;  %v3257_v38 = vadd.f32 %v3226_v35, %v3225_v7 }
 0x5e1   : > { %v14536_v37 = vsub.f32 %v14395_v18, %v3180_v2  ;;  %v14539_v31 = vsub.f32 %v14397_v6, %v3180_v2  ;;  %v3142_v61 = vpop.xlane.xlu0 %3141  ;;  %v3263_v44 = vadd.f32 %v3230_v34, %v3229_v60  ;;  %v11700_v2 = vld [vmem:[%s13066_s0 + $0x2d0] ss:$24 sps:$4 sm:$0xff]  }
 0x5e2   : > { %v3181_v23 = vmul.f32 0.00390625, %v3142_v61  ;;  %3258 = vadd.xlane.f32.xlu0 %v3257_v38  ;;  %v3145_v41 = vpop.xlane.xlu1 %3144  ;;  %v3227_v4 = vmul.f32 %v14530_v12, %v14530_v12  ;;  %v3228_v27 = vmul.f32 %v14533_v48, %v14533_v48  ;;  %4112 = vmatpush2.bf16.msra.mxu0 %v11700_v2  ;;  %v11713_v2 = vld [vmem:[%s13066_s0 + $0x278] ss:$24 sps:$4 sm:$0xff]  }
 0x5e3   : > { %v3182_v42 = vmul.f32 0.00390625, %v3145_v41  ;;  %v3231_v47 = vmul.f32 %v14536_v37, %v14536_v37  ;;  %v3232_v18 = vmul.f32 %v14539_v31, %v14539_v31 }
 0x5e4   : > { %v14550_v6 = vsub.f32 %v14403_v62, %v3181_v23  ;;  %v14553_v29 = vsub.f32 %v14405_v1, %v3181_v23  ;;  %v3260_v30 = vadd.f32 %v3228_v27, %v3227_v4  ;;  %v11702_v27 = vld [vmem:[%s13066_s0 + $0x2a4] ss:$24 sps:$4 sm:$0xff]  }
 0x5e5   : > { %v14556_v13 = vsub.f32 %v14407_v20, %v3182_v42  ;;  %v14559_v45 = vsub.f32 %v14409_v52, %v3182_v42  ;;  %v3148_v43 = vpop.xlane.xlu0 %3147  ;;  %v3266_v22 = vadd.f32 %v3232_v18, %v3231_v47  ;;  %v11704_v42 = vld [vmem:[%s13066_s0 + $0x2ac] ss:$24 sps:$4 sm:$0xff]   ;;  %4113 = vmatprep.subr.bf16.mxu0 %v11702_v27 }
 0x5e6   : > { %v3183_v8 = vmul.f32 0.00390625, %v3148_v43  ;;  %3264 = vadd.xlane.f32.xlu0 %v3263_v44  ;;  %3261 = vadd.xlane.f32.xlu1 %v3260_v30  ;;  %v3151_v57 = vpop.xlane.xlu1 %3150  ;;  %v3233_v62 = vmul.f32 %v14550_v6, %v14550_v6  ;;  %v3234_v1 = vmul.f32 %v14553_v29, %v14553_v29 }
 0x5e7   : > { %v3184_v50 = vmul.f32 0.00390625, %v3151_v57  ;;  %v3235_v20 = vmul.f32 %v14556_v13, %v14556_v13  ;;  %v3236_v52 = vmul.f32 %v14559_v45, %v14559_v45  ;;  %v11707_v57 = vld [vmem:[%s13066_s0 + $0x2a8] ss:$24 sps:$4 sm:$0xff]  }
 0x5e8   : > { %v14570_v19 = vsub.f32 %v14415_v53, %v3183_v8  ;;  %v14573_v58 = vsub.f32 %v14417_v26, %v3183_v8  ;;  %v3269_v63 = vadd.f32 %v3234_v1, %v3233_v62  ;;  %v11706_v8 = vld [vmem:[%s13066_s0 + $0x2a0] ss:$24 sps:$4 sm:$0xff]  }
 0x5e9   : > { %v14576_v59 = vsub.f32 %v14419_v56, %v3184_v50  ;;  %v14579_v51 = vsub.f32 %v14421_v14, %v3184_v50  ;;  %v3154_v9 = vpop.xlane.xlu0 %3153  ;;  %v3272_v35 = vadd.f32 %v3236_v52, %v3235_v20  ;;  %v11701_v56 = vld [vmem:[%s13066_s0 + $0x2d8] ss:$24 sps:$4 sm:$0xff]   ;;  %4114 = vmatpush2.bf16.msra.mxu0 %v11706_v8 }
 0x5ea   : > { %v3185_v55 = vmul.f32 0.00390625, %v3154_v9  ;;  %3267 = vadd.xlane.f32.xlu1 %v3266_v22  ;;  %3270 = vadd.xlane.f32.xlu0 %v3269_v63  ;;  %v3157_v7 = vpop.xlane.xlu1 %3156  ;;  %v3237_v53 = vmul.f32 %v14570_v19, %v14570_v19  ;;  %v3238_v26 = vmul.f32 %v14573_v58, %v14573_v58 }
 0x5eb   : > { %v3186_v60 = vmul.f32 0.00390625, %v3157_v7  ;;  %v3239_v14 = vmul.f32 %v14576_v59, %v14576_v59  ;;  %v3240_v34 = vmul.f32 %v14579_v51, %v14579_v51  ;;  %4225 = vmatpush2.bf16.msra.mxu1 %v11701_v56  ;;  %v11710_v7 = vld [vmem:[%s13066_s0 + $0x27c] ss:$24 sps:$4 sm:$0xff]  }
 0x5ec   : > { %v14592_v38 = vsub.f32 %v14423_v49, %v3185_v55  ;;  %v14595_v61 = vsub.f32 %v14425_v25, %v3185_v55  ;;  %v3275_v23 = vadd.f32 %v3238_v26, %v3237_v53  ;;  %4226 = vmatprep.subr.bf16.mxu1 %v11704_v42  ;;  %v11708_v55 = vld [vmem:[%s13066_s0 + $0x274] ss:$24 sps:$4 sm:$0xff]   ;;  %v11712_v26 = vld [vmem:[%s13066_s0 + $0x270] ss:$24 sps:$4 sm:$0xff]  }
 0x5ed   : > { %v14598_v41 = vsub.f32 %v14429_v54, %v3186_v60  ;;  %v14601_v44 = vsub.f32 %v14431_v10, %v3186_v60  ;;  %v3160_v4 = vpop.xlane.xlu0 %3159  ;;  %v3278_v25 = vadd.f32 %v3240_v34, %v3239_v14  ;;  %4115 = vmatprep.subr.bf16.mxu0 %v11708_v55 }
 0x5ee   : > { %v3187_v47 = vmul.f32 0.00390625, %v3160_v4  ;;  %3273 = vadd.xlane.f32.xlu1 %v3272_v35  ;;  %3276 = vadd.xlane.f32.xlu0 %v3275_v23  ;;  %v3163_v49 = vpop.xlane.xlu1 %3162  ;;  %v3241_v18 = vmul.f32 %v14592_v38, %v14592_v38  ;;  %v3242_v54 = vmul.f32 %v14595_v61, %v14595_v61 }
 0x5ef   : > { %v3188_v30 = vmul.f32 0.00390625, %v3163_v49  ;;  %v3243_v10 = vmul.f32 %v14598_v41, %v14598_v41  ;;  %v3244_v43 = vmul.f32 %v14601_v44, %v14601_v44  ;;  %4227 = vmatpush2.bf16.msra.mxu1 %v11707_v57  ;;  %4116 = vmatpush2.bf16.msra.mxu0 %v11712_v26  ;;  %v11716_v49 = vld [vmem:[%s13066_s0 + $0x24c] ss:$24 sps:$4 sm:$0xff]  }
 0x5f0   : > { %v14616_v22 = vsub.f32 %v14435_v28, %v3187_v47  ;;  %v14619_v62 = vsub.f32 %v14437_v5, %v3187_v47  ;;  %v3281_v1 = vadd.f32 %v3242_v54, %v3241_v18  ;;  %4228 = vmatprep.subr.bf16.mxu1 %v11710_v7  ;;  %v11714_v47 = vld [vmem:[%s13066_s0 + $0x244] ss:$24 sps:$4 sm:$0xff]   ;;  %v11718_v54 = vld [vmem:[%s13066_s0 + $0x240] ss:$24 sps:$4 sm:$0xff]   ;;  %v11732_v26 = vld [vmem:[%s13066_s0 + $0x1b4] ss:$24 sps:$4 sm:$0xff]  }
 0x5f1   : > { %v14622_v50 = vsub.f32 %v14441_v0, %v3188_v30  ;;  %v14625_v20 = vsub.f32 %v14443_v32, %v3188_v30  ;;  %v3166_v52 = vpop.xlane.xlu0 %3165  ;;  %v3284_v9 = vadd.f32 %v3244_v43, %v3243_v10  ;;  %v11719_v30 = vld [vmem:[%s13066_s0 + $0x248] ss:$24 sps:$4 sm:$0xff]   ;;  %4117 = vmatprep.subr.bf16.mxu0 %v11714_v47  ;;  %v11726_v7 = vld [vmem:[%s13066_s0 + $0x1e4] ss:$24 sps:$4 sm:$0xff]  }
 0x5f2   : > { %v3189_v63 = vmul.f32 0.00390625, %v3166_v52  ;;  %3279 = vadd.xlane.f32.xlu1 %v3278_v25  ;;  %3282 = vadd.xlane.f32.xlu0 %v3281_v1  ;;  %v3169_v28 = vpop.xlane.xlu1 %3168  ;;  %v3245_v5 = vmul.f32 %v14616_v22, %v14616_v22  ;;  %v3246_v0 = vmul.f32 %v14619_v62, %v14619_v62 }
 0x5f3   : > { %v3190_v32 = vmul.f32 0.00390625, %v3169_v28  ;;  %v3247_v35 = vmul.f32 %v14622_v50, %v14622_v50  ;;  %v3248_v53 = vmul.f32 %v14625_v20, %v14625_v20  ;;  %4229 = vmatpush2.bf16.msra.mxu1 %v11713_v2  ;;  %4118 = vmatpush2.bf16.msra.mxu0 %v11718_v54  ;;  %v11734_v2 = vld [vmem:[%s13066_s0 + $0x1bc] ss:$24 sps:$4 sm:$0xff]  }
 0x5f4   : > { %v14640_v56 = vsub.f32 %v14447_v24, %v3189_v63  ;;  %v14643_v60 = vsub.f32 %v14449_v15, %v3189_v63  ;;  %v3287_v14 = vadd.f32 %v3246_v0, %v3245_v5  ;;  %4230 = vmatprep.subr.bf16.mxu1 %v11716_v49  ;;  %v11720_v63 = vld [vmem:[%s13066_s0 + $0x214] ss:$24 sps:$4 sm:$0xff]   ;;  %v11725_v5 = vld [vmem:[%s13066_s0 + $0x218] ss:$24 sps:$4 sm:$0xff]  }
 0x5f5   : > { %v14646_v34 = vsub.f32 %v14453_v46, %v3190_v32  ;;  %v14649_v23 = vsub.f32 %v14455_v17, %v3190_v32  ;;  %v3172_v4 = vpop.xlane.xlu0 %3171  ;;  %v3290_v27 = vadd.f32 %v3248_v53, %v3247_v35  ;;  %4119 = vmatprep.subr.bf16.mxu0 %v11720_v63  ;;  %v11728_v32 = vld [vmem:[%s13066_s0 + $0x1ec] ss:$24 sps:$4 sm:$0xff]   ;;  %v11730_v35 = vld [vmem:[%s13066_s0 + $0x1e0] ss:$24 sps:$4 sm:$0xff]  }
 0x5f6   : > { %v3191_v24 = vmul.f32 0.00390625, %v3172_v4  ;;  %3285 = vadd.xlane.f32.xlu1 %v3284_v9  ;;  %3288 = vadd.xlane.f32.xlu0 %v3287_v14  ;;  %v3175_v15 = vpop.xlane.xlu1 %3174  ;;  %v3249_v42 = vmul.f32 %v14640_v56, %v14640_v56  ;;  %v3250_v46 = vmul.f32 %v14643_v60, %v14643_v60  ;;  %v11724_v9 = vld [vmem:[%s13066_s0 + $0x210] ss:$24 sps:$4 sm:$0xff]  }
 0x5f7   : > { %v3192_v17 = vmul.f32 0.00390625, %v3175_v15  ;;  %v3251_v25 = vmul.f32 %v14646_v34, %v14646_v34  ;;  %v3252_v18 = vmul.f32 %v14649_v23, %v14649_v23  ;;  %4231 = vmatpush2.bf16.msra.mxu1 %v11719_v30  ;;  %4120 = vmatpush2.bf16.msra.mxu0 %v11724_v9  ;;  %v11731_v53 = vld [vmem:[%s13066_s0 + $0x1e8] ss:$24 sps:$4 sm:$0xff]   ;;  %v11737_v4 = vld [vmem:[%s13066_s0 + $0x1b8] ss:$24 sps:$4 sm:$0xff]  }
 0x5f8   : > { %v14664_v10 = vsub.f32 %v14459_v40, %v3191_v24  ;;  %v14667_v43 = vsub.f32 %v14461_v11, %v3191_v24  ;;  %v3293_v8 = vadd.f32 %v3250_v46, %v3249_v42  ;;  %4121 = vmatprep.subr.bf16.mxu0 %v11726_v7  ;;  %v11736_v14 = vld [vmem:[%s13066_s0 + $0x1b0] ss:$24 sps:$4 sm:$0xff]   ;;  %v11738_v24 = vld [vmem:[%s13066_s0 + $0x184] ss:$24 sps:$4 sm:$0xff]  }
 0x5f9   : > { %v14670_v57 = vsub.f32 %v14465_v16, %v3192_v17  ;;  %v14673_v1 = vsub.f32 %v14467_v39, %v3192_v17  ;;  %v3296_v40 = vadd.f32 %v3252_v18, %v3251_v25  ;;  %v11722_v16 = vld [vmem:[%s13066_s0 + $0x21c] ss:$24 sps:$4 sm:$0xff]   ;;  %v11740_v15 = vld [vmem:[%s13066_s0 + $0x18c] ss:$24 sps:$4 sm:$0xff]   ;;  %v11743_v42 = vld [vmem:[%s13066_s0 + $0x188] ss:$24 sps:$4 sm:$0xff]  }
 0x5fa   : > { %3291 = vadd.xlane.f32.xlu1 %v3290_v27  ;;  %3294 = vadd.xlane.f32.xlu0 %v3293_v8  ;;  %v3253_v11 = vmul.f32 %v14664_v10, %v14664_v10  ;;  %v3254_v52 = vmul.f32 %v14667_v43, %v14667_v43  ;;  %v11742_v27 = vld [vmem:[%s13066_s0 + $0x180] ss:$24 sps:$4 sm:$0xff]   ;;  %v11746_v46 = vld [vmem:[%s13066_s0 + $0x164] ss:$24 sps:$4 sm:$0xff]   ;;  %v3386_v8 = vlaneseq }
 0x5fb   : > { %v3255_v39 = vmul.f32 %v14670_v57, %v14670_v57  ;;  %v3256_v28 = vmul.f32 %v14673_v1, %v14673_v1  ;;  %4232 = vmatprep.subr.bf16.mxu1 %v11722_v16  ;;  %4122 = vmatpush2.bf16.msra.mxu0 %v11730_v35 }
 0x5fc   : > { %v3299_v0 = vadd.f32 %v3254_v52, %v3253_v11  ;;  %4233 = vmatpush2.bf16.msra.mxu1 %v11725_v5  ;;  %4123 = vmatprep.subr.bf16.mxu0 %v11732_v26 }
 0x5fd   : > { %v3302_v55 = vadd.f32 %v3256_v28, %v3255_v39  ;;  %4234 = vmatprep.subr.bf16.mxu1 %v11728_v32  ;;  %v14700_v28 = vshrl.u32 %v3386_v8, 7 }
 0x5fe   : > { %3297 = vadd.xlane.f32.xlu1 %v3296_v40  ;;  %3300 = vadd.xlane.f32.xlu0 %v3299_v0 }
 0x5ff   : > { %4124 = vmatpush2.bf16.msra.mxu0 %v11736_v14  ;;  %18990 = vst [vmem:[#allocation29_spill] sm:$0xff] %v14700_v28  ;;  %v14703_v35 = vsub.s32 1, %v14700_v28 }
 0x600   : > { %4235 = vmatpush2.bf16.msra.mxu1 %v11731_v53  ;;  %4125 = vmatprep.subr.bf16.mxu0 %v11738_v24  ;;  %v14706_v53 = vsub.s32 0, %v14700_v28 }
 0x601   : > { %4236 = vmatprep.subr.bf16.mxu1 %v11734_v2  ;;  %18991 = vst [vmem:[#allocation30_spill] sm:$0xff] %v14703_v35  ;;  %v3126_v2 = vld [vmem:[%s18993_s15] sm:$0x3] }
 0x602   : > { %3303 = vadd.xlane.f32.xlu1 %v3302_v55  ;;  %18992 = vst [vmem:[#allocation31_spill] sm:$0xff] %v14706_v53 }
 0x603   : > { %4126 = vmatpush2.bf16.msra.mxu0 %v11742_v27 }
 0x604   : > { %4237 = vmatpush2.bf16.msra.mxu1 %v11737_v4  ;;  %4321 = vmatprep.subr.bf16.mxu0 %v11746_v46  ;;  %v14717_v46 = vrot.slane %v3126_v2, %v14706_v53 }
 0x605   : > { %4238 = vmatprep.subr.bf16.mxu1 %v11740_v15 }
 0x608   : > { %4239 = vmatpush2.bf16.msra.mxu1 %v11743_v42  ;;  %v14714_v42 = vrot.slane %v3126_v2, %v14703_v35 }
 0x66b   : > { %v3259_v47 = vpop.xlane.xlu0 %3258 }
 0x66c   : > { %v3305_v49 = vmul.f32 0.00390625, %v3259_v47 }
 0x66e   : > { %v3321_v17 = vadd.f32 1e-05, %v3305_v49  ;;  %v3127_v49 = vld [vmem:[%s18994_s16] sm:$0x3] }
 0x66f   : > { %v3262_v25 = vpop.xlane.xlu1 %3261  ;;  %v3265_v18 = vpop.xlane.xlu0 %3264 }
 0x670   : > { %12032 = vrsqrt.f32 %v3321_v17  ;;  %v3306_v54 = vmul.f32 0.00390625, %v3262_v25  ;;  %v3307_v30 = vmul.f32 0.00390625, %v3265_v18 }
 0x672   : > { %v3322_v40 = vadd.f32 1e-05, %v3306_v54  ;;  %v3323_v11 = vadd.f32 1e-05, %v3307_v30 }
 0x673   : > { %v3268_v52 = vpop.xlane.xlu1 %3267  ;;  %v3271_v63 = vpop.xlane.xlu0 %3270 }
 0x674   : > { %12034 = vrsqrt.f32 %v3322_v40  ;;  %v3308_v16 = vmul.f32 0.00390625, %v3268_v52  ;;  %v3309_v39 = vmul.f32 0.00390625, %v3271_v63  ;;  %v14732_v63 = vrot.slane %v3127_v49, %v14706_v53 }
 0x675   : > { %12036 = vrsqrt.f32 %v3323_v11  ;;  %v14728_v11 = vrot.slane %v3127_v49, %v14703_v35 }
 0x676   : > { %v3324_v9 = vadd.f32 1e-05, %v3308_v16  ;;  %v3325_v5 = vadd.f32 1e-05, %v3309_v39 }
 0x677   : > { %v3274_v0 = vpop.xlane.xlu1 %3273  ;;  %v3277_v55 = vpop.xlane.xlu0 %3276 }
 0x678   : > { %12038 = vrsqrt.f32 %v3324_v9  ;;  %v3310_v7 = vmul.f32 0.00390625, %v3274_v0  ;;  %v3311_v32 = vmul.f32 0.00390625, %v3277_v55 }
 0x679   : > { %12040 = vrsqrt.f32 %v3325_v5 }
 0x67a   : > { %v3326_v26 = vadd.f32 1e-05, %v3310_v7  ;;  %v3327_v14 = vadd.f32 1e-05, %v3311_v32 }
 0x67b   : > { %v3280_v4 = vpop.xlane.xlu1 %3279  ;;  %v3283_v27 = vpop.xlane.xlu0 %3282 }
 0x67c   : > { %12042 = vrsqrt.f32 %v3326_v26  ;;  %v3312_v24 = vmul.f32 0.00390625, %v3280_v4  ;;  %v3313_v54 = vmul.f32 0.00390625, %v3283_v27 }
 0x67d   : > { %v12033_v15 = vpop.eup %12032  ;;  %12044 = vrsqrt.f32 %v3327_v14 }
 0x67e   : > { %v3328_v47 = vadd.f32 1e-05, %v3312_v24  ;;  %v3354_v17 = vmul.f32 %v12033_v15, %v14513_v21  ;;  %v3353_v25 = vmul.f32 %v12033_v15, %v14510_v3  ;;  %v3329_v0 = vadd.f32 1e-05, %v3313_v54 }
 0x67f   : > { %v3286_v18 = vpop.xlane.xlu1 %3285  ;;  %v3289_v32 = vpop.xlane.xlu0 %3288 }
 0x680   : > { %12046 = vrsqrt.f32 %v3328_v47  ;;  %v3314_v30 = vmul.f32 0.00390625, %v3286_v18  ;;  %v3397_v40 = vmul.f32 %v14714_v42, %v3354_v17  ;;  %v3396_v52 = vmul.f32 %v14717_v46, %v3353_v25  ;;  %v11744_v25 = vld [vmem:[%s13066_s0 + $0x160] ss:$24 sps:$4 sm:$0xff]  }
 0x681   : > { %v12035_v8 = vpop.eup %12034  ;;  %v3315_v49 = vmul.f32 0.00390625, %v3289_v32 }
 0x682   : > { %v12037_v16 = vpop.eup %12036  ;;  %v3330_v21 = vadd.f32 1e-05, %v3314_v30  ;;  %v3356_v3 = vmul.f32 %v12035_v8, %v14533_v48  ;;  %v3355_v9 = vmul.f32 %v12035_v8, %v14530_v12  ;;  %v3440_v26 = vadd.f32 %v14728_v11, %v3397_v40 }
 0x683   : > { %v3292_v39 = vpop.xlane.xlu1 %3291  ;;  %v3358_v5 = vmul.f32 %v12037_v16, %v14519_v36  ;;  %v3439_v14 = vadd.f32 %v14732_v63, %v3396_v52  ;;  %v3357_v27 = vmul.f32 %v12037_v16, %v14516_v33 }
 0x684   : > { %v3399_v55 = vmul.f32 %v14714_v42, %v3356_v3  ;;  %v3398_v2 = vmul.f32 %v14717_v46, %v3355_v9  ;;  %12048 = vrsqrt.f32 %v3330_v21  ;;  %v3316_v48 = vmul.f32 0.00390625, %v3292_v39 }
 0x685   : > { %v12039_v7 = vpop.eup %12038  ;;  %v3401_v15 = vmul.f32 %v14714_v42, %v3358_v5  ;;  %12050 = vrsqrt.f32 %v3329_v0  ;;  %v3400_v3 = vmul.f32 %v14717_v46, %v3357_v27  ;;  %v3331_v9 = vadd.f32 1e-05, %v3315_v49  ;;  %v11747_v5 = vld [vmem:[%s13066_s0 + $0x130] ss:$24 sps:$4 sm:$0xff]   ;;  %v11750_v49 = vld [vmem:[%s13066_s0 + $0x100] ss:$24 sps:$4 sm:$0xff]  }
 0x686   : > { %v3442_v4 = vadd.f32 %v14728_v11, %v3399_v55  ;;  %v3360_v12 = vmul.f32 %v12039_v7, %v14539_v31  ;;  %v12041_v36 = vpop.eup %12040  ;;  %v3441_v24 = vadd.f32 %v14732_v63, %v3398_v2  ;;  %v3359_v47 = vmul.f32 %v12039_v7, %v14536_v37  ;;  %v11749_v31 = vld [vmem:[%s13066_s0 + $0x134] ss:$24 sps:$4 sm:$0xff]   ;;  %v3295_v55 = vpop.xlane.xlu0 %3294 }
 0x687   : > { %v3332_v40 = vadd.f32 1e-05, %v3316_v48  ;;  %v3362_v33 = vmul.f32 %v12041_v36, %v14553_v29  ;;  %v3298_v52 = vpop.xlane.xlu1 %3297  ;;  %v3444_v16 = vadd.f32 %v14728_v11, %v3401_v15  ;;  %v3317_v15 = vmul.f32 0.00390625, %v3295_v55 }
 0x688   : > { %v14747_v17 = vpack.c.bf16 %v3442_v4, %v3440_v26  ;;  %v14750_v54 = vpack.c.bf16 %v3441_v24, %v3439_v14  ;;  %v3403_v30 = vmul.f32 %v14714_v42, %v3360_v12  ;;  %v3402_v8 = vmul.f32 %v14717_v46, %v3359_v47  ;;  %v11752_v26 = vld [vmem:[%s13066_s0 + $0x104] ss:$24 sps:$4 sm:$0xff]  }
 0x689   : > { %v12043_v18 = vpop.eup %12042  ;;  %v3405_v29 = vmul.f32 %v14714_v42, %v3362_v33  ;;  %12052 = vrsqrt.f32 %v3332_v40  ;;  %v3318_v14 = vmul.f32 0.00390625, %v3298_v52  ;;  %v3443_v4 = vadd.f32 %v14732_v63, %v3400_v3  ;;  %v11753_v52 = vld [vmem:[%s13066_s0 + $0xd0] ss:$24 sps:$4 sm:$0xff]  }
 0x68a   : > { %4127 = vmatprep.mubr.bf16.mxu0 %v14747_v17  ;;  %4240 = vmatprep.mubr.bf16.mxu1 %v14747_v17  ;;  %v3364_v37 = vmul.f32 %v12043_v18, %v14559_v45  ;;  %v3446_v21 = vadd.f32 %v14728_v11, %v3403_v30  ;;  %v12045_v39 = vpop.eup %12044  ;;  %v3445_v32 = vadd.f32 %v14732_v63, %v3402_v8  ;;  %12054 = vrsqrt.f32 %v3331_v9  ;;  %v11758_v9 = vld [vmem:[%s13066_s0 + $0xa4] ss:$24 sps:$4 sm:$0xff]  }
 0x68b   : > { %4128 = vmatmul.mubr.bf16.vlgmr.msra.gmra.mxu0 %v14750_v54  ;;  %4241 = vmatmul.mubr.bf16.vlgmr.msra.gmra.mxu1 %v14750_v54  ;;  %v3363_v2 = vmul.f32 %v12043_v18, %v14556_v13  ;;  %v3361_v12 = vmul.f32 %v12041_v36, %v14550_v6  ;;  %v3448_v13 = vadd.f32 %v14728_v11, %v3405_v29  ;;  %v3334_v18 = vadd.f32 1e-05, %v3318_v14  ;;  %v11755_v6 = vld [vmem:[%s13066_s0 + $0xd4] ss:$24 sps:$4 sm:$0xff]  }
 0x68c   : > { %4322 = vmatpush1.bf16.msra.mxu0 %v11744_v25  ;;  %v3407_v45 = vmul.f32 %v14714_v42, %v3364_v37  ;;  %v14767_v7 = vpack.c.bf16 %v3446_v21, %v3444_v16  ;;  %v3366_v27 = vmul.f32 %v12045_v39, %v14573_v58  ;;  %v14780_v47 = vpack.c.bf16 %v3445_v32, %v3443_v4  ;;  %v3301_v37 = vpop.xlane.xlu0 %3300  ;;  %v11761_v4 = vld [vmem:[%s13066_s0 + $0x74] ss:$24 sps:$4 sm:$0xff]  }
 0x68d   : > { %v12047_v0 = vpop.eup %12046  ;;  %4323 = vmatprep.subr.bf16.mxu0 %v11749_v31  ;;  %v3406_v25 = vmul.f32 %v14717_v46, %v3363_v2  ;;  %v3304_v31 = vpop.xlane.xlu1 %3303  ;;  %v3404_v58 = vmul.f32 %v14717_v46, %v3361_v12  ;;  %v3333_v8 = vadd.f32 1e-05, %v3317_v15  ;;  %12056 = vrsqrt.f32 %v3334_v18 }
 0x68e   : > { %v3450_v48 = vadd.f32 %v14728_v11, %v3407_v45  ;;  %4137 = vmatprep.mubr.bf16.mxu0 %v14767_v7  ;;  %4250 = vmatprep.mubr.bf16.mxu1 %v14767_v7  ;;  %v3368_v24 = vmul.f32 %v12047_v0, %v14579_v51  ;;  %v3409_v40 = vmul.f32 %v14714_v42, %v3366_v27  ;;  %v3320_v3 = vmul.f32 0.00390625, %v3304_v31 }
 0x68f   : > { %v3449_v16 = vadd.f32 %v14732_v63, %v3406_v25  ;;  %v3367_v21 = vmul.f32 %v12047_v0, %v14576_v59  ;;  %v3447_v45 = vadd.f32 %v14732_v63, %v3404_v58  ;;  %v3365_v55 = vmul.f32 %v12045_v39, %v14570_v19  ;;  %v11756_v0 = vld [vmem:[%s13066_s0 + $0xa0] ss:$24 sps:$4 sm:$0xff]   ;;  %v11764_v25 = vld [vmem:[%s13066_s0 + $0x44] ss:$24 sps:$4 sm:$0xff]  }
 0x690   : > { %4324 = vmatpush1.bf16.msra.mxu0 %v11747_v5  ;;  %v14784_v30 = vpack.c.bf16 %v3450_v48, %v3448_v13  ;;  %v3411_v51 = vmul.f32 %v14714_v42, %v3368_v24  ;;  %12058 = vrsqrt.f32 %v3333_v8  ;;  %v3319_v32 = vmul.f32 0.00390625, %v3301_v37  ;;  %v11759_v13 = vld [vmem:[%s13066_s0 + $0x70] ss:$24 sps:$4 sm:$0xff]  }
 0x691   : > { %4325 = vmatprep.subr.bf16.mxu0 %v11752_v26  ;;  %v12049_v36 = vpop.eup %12048  ;;  %v3452_v26 = vadd.f32 %v14728_v11, %v3409_v40  ;;  %v14804_v59 = vpack.c.bf16 %v3449_v16, %v3447_v45  ;;  %v3410_v14 = vmul.f32 %v14717_v46, %v3367_v21  ;;  %v3336_v48 = vadd.f32 1e-05, %v3320_v3  ;;  %v11765_v21 = vld [vmem:[%s13066_s0 + $0x10] ss:$24 sps:$4 sm:$0xff]  }
 0x692   : > { %v12051_v33 = vpop.eup %12050  ;;  %v3454_v5 = vadd.f32 %v14728_v11, %v3411_v51  ;;  %v3372_v29 = vmul.f32 %v12049_v36, %v14601_v44  ;;  %v3335_v12 = vadd.f32 1e-05, %v3319_v32 }
 0x693   : > { %4138 = vmatmul.mubr.bf16.gmra.mxu0 %v14780_v47  ;;  %4251 = vmatmul.mubr.bf16.gmra.mxu1 %v14780_v47  ;;  %v3370_v2 = vmul.f32 %v12051_v33, %v14595_v61  ;;  %v3408_v61 = vmul.f32 %v14717_v46, %v3365_v55  ;;  %v3453_v27 = vadd.f32 %v14732_v63, %v3410_v14  ;;  %12060 = vrsqrt.f32 %v3336_v48  ;;  %v11768_v14 = vld [vmem:[%s13066_s0 + $0x2e0] ss:$24 sps:$4 sm:$0xff]  }
 0x694   : > { %4147 = vmatprep.mubr.bf16.mxu0 %v14784_v30  ;;  %4260 = vmatprep.mubr.bf16.mxu1 %v14784_v30  ;;  %v14808_v44 = vpack.c.bf16 %v3454_v5, %v3452_v26  ;;  %v3415_v19 = vmul.f32 %v14714_v42, %v3372_v29  ;;  %v3369_v31 = vmul.f32 %v12051_v33, %v14592_v38  ;;  %12062 = vrsqrt.f32 %v3335_v12  ;;  %v11770_v5 = vld [vmem:[%s13066_s0 + $0x2e4] ss:$24 sps:$4 sm:$0xff]  }
 0x695   : > { %4326 = vmatpush1.bf16.msra.mxu0 %v11750_v49  ;;  %v3413_v24 = vmul.f32 %v14714_v42, %v3370_v2  ;;  %v3371_v49 = vmul.f32 %v12049_v36, %v14598_v41  ;;  %v3451_v51 = vadd.f32 %v14732_v63, %v3408_v61  ;;  %v11762_v41 = vld [vmem:[%s13066_s0 + $0x40] ss:$24 sps:$4 sm:$0xff]   ;;  %v11771_v61 = vld [vmem:[%s13066_s0 + $0x2b0] ss:$24 sps:$4 sm:$0xff]  }
 0x696   : > { %4327 = vmatprep.subr.bf16.mxu0 %v11755_v6  ;;  %v12053_v39 = vpop.eup %12052  ;;  %v3458_v18 = vadd.f32 %v14728_v11, %v3415_v19 }
 0x697   : > { %v12055_v15 = vpop.eup %12054  ;;  %v3376_v6 = vmul.f32 %v12053_v39, %v14625_v20  ;;  %v3456_v58 = vadd.f32 %v14728_v11, %v3413_v24  ;;  %v14828_v40 = vpack.c.bf16 %v3453_v27, %v3451_v51  ;;  %v3414_v36 = vmul.f32 %v14717_v46, %v3371_v49  ;;  %v11767_v20 = vld [vmem:[%s13066_s0 + $0x14] ss:$24 sps:$4 sm:$0xff]  }
 0x698   : > { %v3374_v8 = vmul.f32 %v12055_v15, %v14619_v62  ;;  %v3412_v62 = vmul.f32 %v14717_v46, %v3369_v31  ;;  %v3373_v32 = vmul.f32 %v12055_v15, %v14616_v22  ;;  %v11776_v15 = vld [vmem:[%s13066_s0 + $0x284] ss:$24 sps:$4 sm:$0xff]   ;;  %v11774_v31 = vld [vmem:[%s13066_s0 + $0x280] ss:$24 sps:$4 sm:$0xff]  }
 0x699   : > { %4328 = vmatpush1.bf16.msra.mxu0 %v11753_v52  ;;  %v14832_v37 = vpack.c.bf16 %v3458_v18, %v3456_v58  ;;  %v3419_v52 = vmul.f32 %v14714_v42, %v3376_v6  ;;  %v3457_v3 = vadd.f32 %v14732_v63, %v3414_v36 }
 0x69a   : > { %4329 = vmatprep.subr.bf16.mxu0 %v11758_v9  ;;  %v12057_v38 = vpop.eup %12056  ;;  %v3417_v33 = vmul.f32 %v14714_v42, %v3374_v8  ;;  %v3375_v9 = vmul.f32 %v12053_v39, %v14622_v50  ;;  %v3455_v55 = vadd.f32 %v14732_v63, %v3412_v62  ;;  %v3416_v22 = vmul.f32 %v14717_v46, %v3373_v32  ;;  %v11779_v8 = vld [vmem:[%s13066_s0 + $0x254] ss:$24 sps:$4 sm:$0xff]   ;;  %v11786_v32 = vld [vmem:[%s13066_s0 + $0x1c0] ss:$24 sps:$4 sm:$0xff]  }
 0x69b   : > { %4148 = vmatmul.mubr.bf16.gmra.mxu0 %v14804_v59  ;;  %4261 = vmatmul.mubr.bf16.gmra.mxu1 %v14804_v59  ;;  %v3462_v29 = vadd.f32 %v14728_v11, %v3419_v52  ;;  %v3380_v45 = vmul.f32 %v12057_v38, %v14649_v23  ;;  %v11773_v23 = vld [vmem:[%s13066_s0 + $0x2b4] ss:$24 sps:$4 sm:$0xff]   ;;  %v3379_v24 = vmul.f32 %v12057_v38, %v14646_v34  ;;  %v11782_v52 = vld [vmem:[%s13066_s0 + $0x224] ss:$24 sps:$4 sm:$0xff]  }
 0x69c   : > { %4157 = vmatprep.mubr.bf16.mxu0 %v14808_v44  ;;  %4270 = vmatprep.mubr.bf16.mxu1 %v14808_v44  ;;  %v3460_v26 = vadd.f32 %v14728_v11, %v3417_v33  ;;  %v3418_v50 = vmul.f32 %v14717_v46, %v3375_v9  ;;  %v3459_v49 = vadd.f32 %v14732_v63, %v3416_v22  ;;  %v11785_v9 = vld [vmem:[%s13066_s0 + $0x1f4] ss:$24 sps:$4 sm:$0xff]  }
 0x69d   : > { %4330 = vmatpush1.bf16.msra.mxu0 %v11756_v0  ;;  %v12059_v16 = vpop.eup %12058  ;;  %v14852_v0 = vpack.c.bf16 %v3457_v3, %v3455_v55  ;;  %v3422_v34 = vmul.f32 %v14717_v46, %v3379_v24 }
 0x69e   : > { %4331 = vmatprep.subr.bf16.mxu0 %v11761_v4  ;;  %v3378_v2 = vmul.f32 %v12059_v16, %v14643_v60  ;;  %v14856_v48 = vpack.c.bf16 %v3462_v29, %v3460_v26  ;;  %v3423_v4 = vmul.f32 %v14714_v42, %v3380_v45  ;;  %v3461_v12 = vadd.f32 %v14732_v63, %v3418_v50  ;;  %v11788_v29 = vld [vmem:[%s13066_s0 + $0x1c4] ss:$24 sps:$4 sm:$0xff]   ;;  %v11791_v26 = vld [vmem:[%s13066_s0 + $0x194] ss:$24 sps:$4 sm:$0xff]  }
 0x69f   : > { %v3465_v36 = vadd.f32 %v14732_v63, %v3422_v34 }
 0x6a0   : > { %v12061_v19 = vpop.eup %12060  ;;  %v3421_v60 = vmul.f32 %v14714_v42, %v3378_v2  ;;  %v3481_v51 = vpack.c.bf16 %v3461_v12, %v3459_v49 }
 0x6a1   : > { %4332 = vmatpush1.bf16.msra.mxu0 %v11759_v13  ;;  %v12063_v39 = vpop.eup %12062  ;;  %v3466_v13 = vadd.f32 %v14728_v11, %v3423_v4  ;;  %v3384_v27 = vmul.f32 %v12061_v19, %v14673_v1 }
 0x6a2   : > { %4333 = vmatprep.subr.bf16.mxu0 %v11764_v25  ;;  %v3377_v25 = vmul.f32 %v12059_v16, %v14640_v56  ;;  %v3464_v18 = vadd.f32 %v14728_v11, %v3421_v60  ;;  %v3382_v6 = vmul.f32 %v12063_v39, %v14667_v43  ;;  %v3381_v33 = vmul.f32 %v12063_v39, %v14664_v10  ;;  %v11783_v10 = vld [vmem:[%s13066_s0 + $0x1f0] ss:$24 sps:$4 sm:$0xff]  }
 0x6a3   : > { %4158 = vmatmul.mubr.bf16.gmra.mxu0 %v14828_v40  ;;  %4271 = vmatmul.mubr.bf16.gmra.mxu1 %v14828_v40  ;;  %v3427_v1 = vmul.f32 %v14714_v42, %v3384_v27 }
 0x6a4   : > { %4167 = vmatprep.mubr.bf16.mxu0 %v14832_v37  ;;  %4280 = vmatprep.mubr.bf16.mxu1 %v14832_v37  ;;  %v3484_v58 = vpack.c.bf16 %v3466_v13, %v3464_v18  ;;  %v3420_v56 = vmul.f32 %v14717_v46, %v3377_v25  ;;  %v3425_v43 = vmul.f32 %v14714_v42, %v3382_v6 }
 0x6a5   : > { %4334 = vmatpush1.bf16.msra.mxu0 %v11762_v41  ;;  %v11777_v41 = vld [vmem:[%s13066_s0 + $0x250] ss:$24 sps:$4 sm:$0xff]   ;;  %v3470_v38 = vadd.f32 %v14728_v11, %v3427_v1 }
 0x6a6   : > { %4335 = vmatprep.subr.bf16.mxu0 %v11767_v20  ;;  %v3383_v20 = vmul.f32 %v12061_v19, %v14670_v57  ;;  %v3463_v62 = vadd.f32 %v14732_v63, %v3420_v56  ;;  %v3468_v16 = vadd.f32 %v14728_v11, %v3425_v43 }
 0x6a8   : > { %v3483_v42 = vpack.c.bf16 %v3465_v36, %v3463_v62  ;;  %v3426_v3 = vmul.f32 %v14717_v46, %v3383_v20  ;;  %v3486_v57 = vpack.c.bf16 %v3470_v38, %v3468_v16 }
 0x6a9   : > { %4336 = vmatpush1.bf16.msra.mxu0 %v11765_v21  ;;  %v11780_v21 = vld [vmem:[%s13066_s0 + $0x220] ss:$24 sps:$4 sm:$0xff]  }
 0x6aa   : > { %4337 = vmatprep.subr.bf16.mxu0 %v11770_v5  ;;  %v3424_v5 = vmul.f32 %v14717_v46, %v3381_v33  ;;  %v3469_v11 = vadd.f32 %v14732_v63, %v3426_v3  ;;  %v11789_v46 = vld [vmem:[%s13066_s0 + $0x190] ss:$24 sps:$4 sm:$0xff]  }
 0x6ab   : > { %4168 = vmatmul.mubr.bf16.gmra.mxu0 %v14852_v0  ;;  %4281 = vmatmul.mubr.bf16.gmra.mxu1 %v14852_v0 }
 0x6ac   : > { %4177 = vmatprep.mubr.bf16.mxu0 %v14856_v48  ;;  %4290 = vmatprep.mubr.bf16.mxu1 %v14856_v48  ;;  %v3467_v45 = vadd.f32 %v14732_v63, %v3424_v5  ;;  %v14913_v63 = vld [vmem:[%s13075_s28] sm:$0x3f] }
 0x6ad   : > { %4338 = vmatpush2.bf16.msra.mxu0 %v11768_v14 }
 0x6ae   : > { %4339 = vmatprep.subr.bf16.mxu0 %v11773_v23  ;;  %v3485_v55 = vpack.c.bf16 %v3469_v11, %v3467_v45 }
 0x6b1   : > { %4340 = vmatpush2.bf16.msra.mxu0 %v11771_v61 }
 0x6b2   : > { %4341 = vmatprep.subr.bf16.mxu0 %v11776_v15 }
 0x6b3   : > { %4178 = vmatmul.mubr.bf16.gmra.mxu0 %v3481_v51  ;;  %4291 = vmatmul.mubr.bf16.gmra.mxu1 %v3481_v51 }
 0x6b4   : > { %4187 = vmatprep.mubr.bf16.mxu0 %v3484_v58  ;;  %4300 = vmatprep.mubr.bf16.mxu1 %v3484_v58 }
 0x6b5   : > { %4342 = vmatpush2.bf16.msra.mxu0 %v11774_v31 }
 0x6b6   : > { %4343 = vmatprep.subr.bf16.mxu0 %v11779_v8 }
 0x6b9   : > { %4344 = vmatpush2.bf16.msra.mxu0 %v11777_v41 }
 0x6ba   : > { %4345 = vmatprep.subr.bf16.mxu0 %v11782_v52 }
 0x6bb   : > { %4188 = vmatmul.mubr.bf16.gmra.mxu0 %v3483_v42  ;;  %4301 = vmatmul.mubr.bf16.gmra.mxu1 %v3483_v42 }
 0x6bc   : > { %4197 = vmatprep.mubr.bf16.mxu0 %v3486_v57  ;;  %4310 = vmatprep.mubr.bf16.mxu1 %v3486_v57 }
 0x6bd   : > { %4346 = vmatpush2.bf16.msra.mxu0 %v11780_v21 }
 0x6be   : > { %4347 = vmatprep.subr.bf16.mxu0 %v11785_v9 }
 0x6c1   : > { %4348 = vmatpush2.bf16.msra.mxu0 %v11783_v10 }
 0x6c2   : > { %4349 = vmatprep.subr.bf16.mxu0 %v11788_v29 }
 0x6c3   : > { %4198 = vmatmul.mubr.bf16.gmra.mxu0 %v3485_v55  ;;  %4311 = vmatmul.mubr.bf16.gmra.mxu1 %v3485_v55 }
 0x6c4   : > { %4353 = vmatprep.mubr.bf16.mxu0 %v14747_v17  ;;  %v18820_v17 = vsub.s32 2, %v14700_v28 }
 0x6c5   : > { %4350 = vmatpush2.bf16.msra.mxu0 %v11786_v32 }
 0x6c6   : > { %4351 = vmatprep.subr.bf16.mxu0 %v11791_v26 }
 0x6c9   : > { %4352 = vmatpush2.bf16.msra.mxu0 %v11789_v46 }
 0x6cc   : > { %4354 = vmatmul.mubr.bf16.vlgmr.msra.gmra.mxu0 %v14750_v54  ;;  %v14918_v54 = vrot.slane %v14913_v63, %v14706_v53 }
 0x6cd   : > { %4363 = vmatprep.mubr.bf16.mxu0 %v14767_v7 }
 0x6d4   : > { %4364 = vmatmul.mubr.bf16.gmra.mxu0 %v14780_v47 }
 0x6d5   : > { %4373 = vmatprep.mubr.bf16.mxu0 %v14784_v30  ;;  %v14923_v30 = vrot.slane %v14913_v63, %v18820_v17 }
 0x6dc   : > { %4374 = vmatmul.mubr.bf16.gmra.mxu0 %v14804_v59  ;;  %v14927_v59 = vrot.slane %v14913_v63, %v14703_v35 }
 0x6dd   : > { %4383 = vmatprep.mubr.bf16.mxu0 %v14808_v44 }
 0x6e4   : > { %4384 = vmatmul.mubr.bf16.gmra.mxu0 %v14828_v40 }
 0x6e5   : > { %4393 = vmatprep.mubr.bf16.mxu0 %v14832_v37 }
 0x6ec   : > { %4394 = vmatmul.mubr.bf16.gmra.mxu0 %v14852_v0 }
 0x6ed   : > { %4403 = vmatprep.mubr.bf16.mxu0 %v14856_v48 }
 0x6f4   : > { %4404 = vmatmul.mubr.bf16.gmra.mxu0 %v3481_v51 }
 0x6f5   : > { %4413 = vmatprep.mubr.bf16.mxu0 %v3484_v58 }
 0x6fc   : > { %4414 = vmatmul.mubr.bf16.gmra.mxu0 %v3483_v42 }
 0x6fd   : > { %4423 = vmatprep.mubr.bf16.mxu0 %v3486_v57 }
 0x704   : > { %4424 = vmatmul.mubr.bf16.gmra.mxu0 %v3485_v55 }
 0x74b   : > { %v4129_v7 = vpop.f32.mrf.mxu0  ;;  %v4242_v47 = vpop.f32.mrf.mxu1 }
 0x74c   : > { %v4130_v37 = vadd.f32 %v4129_v7, %v14918_v54  ;;  %v4243_v14 = vadd.f32 %v4242_v47, %v14923_v30 }
 0x74d   : > { %v4131_v44 = vpop.f32.mrf.mxu0  ;;  %v14929_v40 = vpop.f32.mrf.mxu1 }
 0x74e   : > { %v4132_v50 = vadd.f32 %v4131_v44, %v14927_v59  ;;  %v4434_v22 = vmul.f32 0.088388346, %v4130_v37 }
 0x74f   : > { %v4133_v2 = vpop.f32.mrf.mxu0  ;;  %v4246_v0 = vpop.f32.mrf.mxu1 }
 0x750   : > { %v4134_v48 = vadd.f32 %v4133_v2, %v14918_v54  ;;  %v4247_v23 = vadd.f32 %v4246_v0, %v14923_v30  ;;  %v4435_v15 = vmul.f32 0.088388346, %v4132_v50 }
 0x751   : > { %v4135_v4 = vpop.f32.mrf.mxu0  ;;  %v14936_v19 = vpop.f32.mrf.mxu1 }
 0x752   : > { %v4436_v60 = vmul.f32 0.088388346, %v4134_v48  ;;  %v14938_v39 = vpack.c.bf16 %v4247_v23, %v4243_v14  ;;  %v4136_v61 = vadd.f32 %v4135_v4, %v14927_v59 }
 0x753   : > { %v4139_v12 = vpop.f32.mrf.mxu0  ;;  %v4252_v24 = vpop.f32.mrf.mxu1 }
 0x754   : > { %v4466_v13 = vpack.c.bf16 %v4436_v60, %v4434_v22  ;;  %v4437_v27 = vmul.f32 0.088388346, %v4136_v61  ;;  %v4140_v49 = vadd.f32 %v4139_v12, %v14918_v54  ;;  %v4253_v58 = vadd.f32 %v4252_v24, %v14923_v30 }
 0x755   : > { %v4141_v25 = vpop.f32.mrf.mxu0  ;;  %v14942_v18 = vpop.f32.mrf.mxu1 }
 0x756   : > { %v4142_v6 = vadd.f32 %v4141_v25, %v14927_v59  ;;  %11033 = vmatprep.mubr.bf16.mxu1 %v4466_v13  ;;  %v4836_v51 = vpack.c.bf16 %v4437_v27, %v4435_v15  ;;  %v14950_v41 = vmul.f32 0.088388346, %v4140_v49 }
 0x757   : > { %v4143_v31 = vpop.f32.mrf.mxu0  ;;  %v4256_v34 = vpop.f32.mrf.mxu1 }
 0x758   : > { %v4144_v8 = vadd.f32 %v4143_v31, %v14918_v54  ;;  %v4257_v1 = vadd.f32 %v4256_v34, %v14923_v30  ;;  %11097 = vmatprep.mubr.bf16.mxu0 %v4836_v51  ;;  %v14957_v33 = vmul.f32 0.088388346, %v4142_v6 }
 0x759   : > { %v4145_v56 = vpop.f32.mrf.mxu0  ;;  %v14948_v43 = vpop.f32.mrf.mxu1 }
 0x75a   : > { %v14952_v36 = vmul.f32 0.088388346, %v4144_v8  ;;  %v14954_v20 = vpack.c.bf16 %v4257_v1, %v4253_v58  ;;  %v4146_v52 = vadd.f32 %v4145_v56, %v14927_v59 }
 0x75b   : > { %v4149_v38 = vpop.f32.mrf.mxu0  ;;  %v4262_v62 = vpop.f32.mrf.mxu1 }
 0x75c   : > { %v14961_v42 = vmul.f32 0.088388346, %v4146_v52  ;;  %v4150_v21 = vadd.f32 %v4149_v38, %v14918_v54  ;;  %v4263_v29 = vadd.f32 %v4262_v62, %v14923_v30 }
 0x75d   : > { %v4151_v3 = vpop.f32.mrf.mxu0  ;;  %v14964_v57 = vpop.f32.mrf.mxu1 }
 0x75e   : > { %v4152_v5 = vadd.f32 %v4151_v3, %v14927_v59  ;;  %v14974_v46 = vmul.f32 0.088388346, %v4150_v21 }
 0x75f   : > { %v4153_v10 = vpop.f32.mrf.mxu0  ;;  %v4266_v11 = vpop.f32.mrf.mxu1 }
 0x760   : > { %v4154_v45 = vadd.f32 %v4153_v10, %v14918_v54  ;;  %v4267_v55 = vadd.f32 %v4266_v11, %v14923_v30  ;;  %v14983_v0 = vmul.f32 0.088388346, %v4152_v5 }
 0x761   : > { %v4155_v32 = vpop.f32.mrf.mxu0  ;;  %v14972_v26 = vpop.f32.mrf.mxu1 }
 0x762   : > { %v14976_v7 = vmul.f32 0.088388346, %v4154_v45  ;;  %v14978_v47 = vpack.c.bf16 %v4267_v55, %v4263_v29  ;;  %v4156_v44 = vadd.f32 %v4155_v32, %v14927_v59 }
 0x763   : > { %v4159_v37 = vpop.f32.mrf.mxu0  ;;  %v14981_v2 = vpop.f32.mrf.mxu1 }
 0x764   : > { %v14987_v50 = vmul.f32 0.088388346, %v4156_v44  ;;  %v4160_v48 = vadd.f32 %v4159_v37, %v14918_v54 }
 0x765   : > { %v4161_v23 = vpop.f32.mrf.mxu0  ;;  %v14990_v4 = vpop.f32.mrf.mxu1 }
 0x766   : > { %v4162_v22 = vadd.f32 %v4161_v23, %v14927_v59  ;;  %v15000_v27 = vmul.f32 0.088388346, %v4160_v48 }
 0x767   : > { %v4163_v61 = vpop.f32.mrf.mxu0  ;;  %v14995_v12 = vpop.f32.mrf.mxu1 }
 0x768   : > { %v4164_v24 = vadd.f32 %v4163_v61, %v14918_v54  ;;  %v15007_v31 = vmul.f32 0.088388346, %v4162_v22 }
 0x769   : > { %v4165_v15 = vpop.f32.mrf.mxu0  ;;  %v14998_v13 = vpop.f32.mrf.mxu1 }
 0x76a   : > { %v15002_v49 = vmul.f32 0.088388346, %v4164_v24  ;;  %v4166_v25 = vadd.f32 %v4165_v15, %v14927_v59 }
 0x76b   : > { %v4169_v6 = vpop.f32.mrf.mxu0  ;;  %v15005_v51 = vpop.f32.mrf.mxu1 }
 0x76c   : > { %v15011_v58 = vmul.f32 0.088388346, %v4166_v25  ;;  %v4170_v8 = vadd.f32 %v4169_v6, %v14918_v54 }
 0x76d   : > { %v4171_v1 = vpop.f32.mrf.mxu0  ;;  %v15014_v56 = vpop.f32.mrf.mxu1 }
 0x76e   : > { %v4172_v52 = vadd.f32 %v4171_v1, %v14927_v59  ;;  %v15024_v11 = vmul.f32 0.088388346, %v4170_v8 }
 0x76f   : > { %v4173_v62 = vpop.f32.mrf.mxu0  ;;  %v15019_v21 = vpop.f32.mrf.mxu1 }
 0x770   : > { %v4174_v3 = vadd.f32 %v4173_v62, %v14918_v54  ;;  %v15031_v44 = vmul.f32 0.088388346, %v4172_v52 }
 0x771   : > { %v4175_v5 = vpop.f32.mrf.mxu0  ;;  %v15022_v10 = vpop.f32.mrf.mxu1 }
 0x772   : > { %v15026_v29 = vmul.f32 0.088388346, %v4174_v3  ;;  %v4176_v45 = vadd.f32 %v4175_v5, %v14927_v59  ;;  %18995 = vst [vmem:[#allocation32_spill] sm:$0xff] %v15031_v44 }
 0x773   : > { %v4179_v55 = vpop.f32.mrf.mxu0  ;;  %v15029_v32 = vpop.f32.mrf.mxu1 }
 0x774   : > { %v15035_v48 = vmul.f32 0.088388346, %v4176_v45  ;;  %v4180_v23 = vadd.f32 %v4179_v55, %v14918_v54 }
 0x775   : > { %v4181_v22 = vpop.f32.mrf.mxu0  ;;  %v15038_v61 = vpop.f32.mrf.mxu1 }
 0x776   : > { %v4182_v24 = vadd.f32 %v4181_v22, %v14927_v59  ;;  %v15048_v62 = vmul.f32 0.088388346, %v4180_v23 }
 0x777   : > { %v4183_v25 = vpop.f32.mrf.mxu0  ;;  %v15043_v6 = vpop.f32.mrf.mxu1 }
 0x778   : > { %v4184_v8 = vadd.f32 %v4183_v25, %v14918_v54  ;;  %18996 = vst [vmem:[#allocation33_spill] sm:$0xff] %v15048_v62  ;;  %v15053_v22 = vmul.f32 0.088388346, %v4182_v24 }
 0x779   : > { %v4185_v1 = vpop.f32.mrf.mxu0  ;;  %v15046_v52 = vpop.f32.mrf.mxu1 }
 0x77a   : > { %v15050_v3 = vmul.f32 0.088388346, %v4184_v8  ;;  %v4186_v5 = vadd.f32 %v4185_v1, %v14927_v59  ;;  %18998 = vst [vmem:[#allocation35_spill] sm:$0xff] %v15053_v22 }
 0x77b   : > { %v4189_v45 = vpop.f32.mrf.mxu0  ;;  %v4302_v55 = vpop.f32.mrf.mxu1 }
 0x77c   : > { %18997 = vst [vmem:[#allocation34_spill] sm:$0xff] %v15050_v3  ;;  %v15057_v15 = vmul.f32 0.088388346, %v4186_v5  ;;  %v4190_v25 = vadd.f32 %v4189_v45, %v14918_v54  ;;  %v18833_v45 = vsub.s32 3, %v14700_v28 }
 0x77d   : > { %v4191_v38 = vpop.f32.mrf.mxu0  ;;  %v4304_v37 = vpop.f32.mrf.mxu1 }
 0x77e   : > { %18999 = vst [vmem:[#allocation36_spill] sm:$0xff] %v15057_v15  ;;  %v4192_v23 = vadd.f32 %v4191_v38, %v14927_v59  ;;  %v15064_v14 = vmul.f32 0.088388346, %v4190_v25  ;;  %v15083_v15 = vrot.slane %v14913_v63, %v18833_v45 }
 0x77f   : > { %v4193_v34 = vpop.f32.mrf.mxu0  ;;  %v4306_v1 = vpop.f32.mrf.mxu1 }
 0x780   : > { %v4194_v60 = vadd.f32 %v4193_v34, %v14918_v54  ;;  %19000 = vst [vmem:[#allocation37_spill] sm:$0xff] %v15064_v14  ;;  %v15070_v38 = vmul.f32 0.088388346, %v4192_v23  ;;  %v4307_v23 = vadd.f32 %v4306_v1, %v14923_v30 }
 0x781   : > { %v4195_v24 = vpop.f32.mrf.mxu0  ;;  %v4308_v9 = vpop.f32.mrf.mxu1 }
 0x782   : > { %v15066_v17 = vmul.f32 0.088388346, %v4194_v60  ;;  %v4196_v5 = vadd.f32 %v4195_v24, %v14927_v59  ;;  %19002 = vst [vmem:[#allocation39_spill] sm:$0xff] %v15070_v38  ;;  %v4303_v24 = vadd.f32 %v4302_v55, %v14923_v30  ;;  %v4309_v38 = vadd.f32 %v4308_v9, %v15083_v15 }
 0x783   : > { %v4199_v16 = vpop.f32.mrf.mxu0  ;;  %v4312_v35 = vpop.f32.mrf.mxu1  ;;  %v19004_v55 = vsub.s32 5, %v14700_v28 }
 0x784   : > { %19001 = vst [vmem:[#allocation38_spill] sm:$0xff] %v15066_v17  ;;  %v15074_v53 = vmul.f32 0.088388346, %v4196_v5  ;;  %v4200_v34 = vadd.f32 %v4199_v16, %v14918_v54  ;;  %v4313_v16 = vadd.f32 %v4312_v35, %v14923_v30  ;;  %v18837_v17 = vsub.s32 4, %v14700_v28 }
 0x785   : > { %v4201_v22 = vpop.f32.mrf.mxu0  ;;  %v4314_v25 = vpop.f32.mrf.mxu1  ;;  %v15104_v9 = vrot.slane %v14913_v63, %v19004_v55 }
 0x786   : > { %19003 = vst [vmem:[#allocation40_spill] sm:$0xff] %v15074_v53  ;;  %v4202_v60 = vadd.f32 %v4201_v22, %v14927_v59  ;;  %v15093_v45 = vmul.f32 0.088388346, %v4200_v34  ;;  %v4315_v1 = vadd.f32 %v4314_v25, %v15083_v15 }
 0x787   : > { %v4203_v62 = vpop.f32.mrf.mxu0  ;;  %v4316_v8 = vpop.f32.mrf.mxu1 }
 0x788   : > { %v4204_v14 = vadd.f32 %v4203_v62, %v14918_v54  ;;  %v4317_v22 = vadd.f32 %v4316_v8, %v14923_v30  ;;  %v4305_v62 = vadd.f32 %v4304_v37, %v15083_v15  ;;  %v4480_v8 = vpack.c.bf16 %v4307_v23, %v4303_v24 }
 0x789   : > { %v4205_v53 = vpop.f32.mrf.mxu0  ;;  %v4318_v3 = vpop.f32.mrf.mxu1  ;;  %v15106_v34 = vmul.f32 0.088388346, %v4202_v60  ;;  %v4297_v24 = vadd.f32 %v15043_v6, %v14923_v30  ;;  %v4295_v6 = vadd.f32 %v15038_v61, %v15083_v15 }
 0x78a   : > { %v15096_v44 = vmul.f32 0.088388346, %v4204_v14  ;;  %v4481_v5 = vpack.c.bf16 %v4317_v22, %v4313_v16  ;;  %v4206_v35 = vadd.f32 %v4205_v53, %v14927_v59  ;;  %v4319_v54 = vadd.f32 %v4318_v3, %v15083_v15 }
 0x78b   : > { %v15115_v53 = vrot.slane %v14913_v63, %v18837_v17  ;;  %v4850_v59 = vpack.c.bf16 %v4309_v38, %v4305_v62  ;;  %v4293_v38 = vadd.f32 %v15029_v32, %v14923_v30 }
 0x78c   : > { %v4473_v25 = vpack.c.bf16 %v15096_v44, %v15093_v45  ;;  %v15110_v14 = vmul.f32 0.088388346, %v4206_v35  ;;  %v4851_v16 = vpack.c.bf16 %v4319_v54, %v4315_v1  ;;  %v4355_v22 = vpop.f32.mrf.mxu0  ;;  %11017 = vmatprep.subr.bf16.mxu1 %v4481_v5 }
 0x78d   : > { %11018 = vmatpush3.bf16.xpose.msra.mxu1 %v4481_v5  ;;  %v4356_v1 = vadd.f32 %v4355_v22, %v15115_v53  ;;  %v4299_v5 = vadd.f32 %v15046_v52, %v15083_v15  ;;  %v4479_v55 = vpack.c.bf16 %v4297_v24, %v4293_v38  ;;  %v4287_v52 = vadd.f32 %v15019_v21, %v14923_v30 }
 0x78e   : > { %v4357_v37 = vpop.f32.mrf.mxu0  ;;  %11019 = vmatprep.subr.bf16.mxu1 %v4480_v8  ;;  %11081 = vmatprep.subr.bf16.mxu0 %v4851_v16  ;;  %v4843_v3 = vpack.c.bf16 %v15110_v14, %v15106_v34  ;;  %v4285_v21 = vadd.f32 %v15014_v56, %v15083_v15  ;;  %v4273_v56 = vadd.f32 %v14981_v2, %v14923_v30 }
 0x78f   : > { %v4358_v60 = vadd.f32 %v4357_v37, %v15104_v9  ;;  %11082 = vmatpush3.bf16.xpose.msra.mxu0 %v4851_v16  ;;  %v4849_v22 = vpack.c.bf16 %v4299_v5, %v4295_v6 }
 0x790   : > { %v4359_v23 = vpop.f32.mrf.mxu0  ;;  %11083 = vmatprep.subr.bf16.mxu0 %v4850_v59 }
 0x791   : > { %v4360_v63 = vadd.f32 %v4359_v23, %v15115_v53 }
 0x792   : > { %v4361_v35 = vpop.f32.mrf.mxu0 }
 0x793   : > { %v15128_v54 = vpack.c.bf16 %v4360_v63, %v4356_v1  ;;  %v4362_v62 = vadd.f32 %v4361_v35, %v15104_v9 }
 0x794   : > { %v4365_v16 = vpop.f32.mrf.mxu0 }
 0x795   : > { %v15133_v37 = vpack.c.bf16 %v4362_v62, %v4358_v60  ;;  %11020 = vmatpush3.bf16.xpose.msra.mxu1 %v4480_v8  ;;  %v4366_v63 = vadd.f32 %v4365_v16, %v15115_v53  ;;  %v4283_v60 = vadd.f32 %v15005_v51, %v14923_v30  ;;  %v4289_v8 = vadd.f32 %v15022_v10, %v15083_v15 }
 0x796   : > { %v4367_v23 = vpop.f32.mrf.mxu0  ;;  %11021 = vmatprep.subr.bf16.mxu1 %v4479_v55  ;;  %v4277_v10 = vadd.f32 %v14995_v12, %v14923_v30 }
 0x797   : > { %v4368_v32 = vadd.f32 %v4367_v23, %v15104_v9  ;;  %11084 = vmatpush3.bf16.xpose.msra.mxu0 %v4850_v59  ;;  %v4478_v5 = vpack.c.bf16 %v4287_v52, %v4283_v60  ;;  %v4848_v6 = vpack.c.bf16 %v4289_v8, %v4285_v21 }
 0x798   : > { %v4369_v1 = vpop.f32.mrf.mxu0  ;;  %11085 = vmatprep.subr.bf16.mxu0 %v4849_v22 }
 0x799   : > { %v4370_v61 = vadd.f32 %v4369_v1, %v15115_v53  ;;  %v4275_v1 = vadd.f32 %v14990_v4, %v15083_v15 }
 0x79a   : > { %v4371_v24 = vpop.f32.mrf.mxu0 }
 0x79b   : > { %v15144_v38 = vpack.c.bf16 %v4370_v61, %v4366_v63  ;;  %v4372_v59 = vadd.f32 %v4371_v24, %v15104_v9  ;;  %v4477_v63 = vpack.c.bf16 %v4277_v10, %v4273_v56  ;;  %v4265_v24 = vadd.f32 %v14964_v57, %v15083_v15 }
 0x79c   : > { %v15149_v35 = vpop.f32.mrf.mxu0  ;;  %v4255_v56 = vadd.f32 %v14942_v18, %v15083_v15 }
 0x79d   : > { %v15151_v62 = vpack.c.bf16 %v4372_v59, %v4368_v32  ;;  %11022 = vmatpush3.bf16.xpose.msra.mxu1 %v4479_v55  ;;  %v4279_v32 = vadd.f32 %v14998_v13, %v15083_v15  ;;  %v4269_v13 = vadd.f32 %v14972_v26, %v15083_v15  ;;  %v4259_v26 = vadd.f32 %v14948_v43, %v15083_v15 }
 0x79e   : > { %v4377_v16 = vpop.f32.mrf.mxu0  ;;  %11023 = vmatprep.subr.bf16.mxu1 %v4478_v5  ;;  %v4249_v43 = vadd.f32 %v14936_v19, %v15083_v15 }
 0x79f   : > { %v4378_v51 = vadd.f32 %v4377_v16, %v15104_v9  ;;  %11086 = vmatpush3.bf16.xpose.msra.mxu0 %v4849_v22  ;;  %v4847_v12 = vpack.c.bf16 %v4279_v32, %v4275_v1 }
 0x7a0   : > { %v15156_v23 = vpop.f32.mrf.mxu0  ;;  %11087 = vmatprep.subr.bf16.mxu0 %v4848_v6 }
 0x7a2   : > { %v4381_v52 = vpop.f32.mrf.mxu0 }
 0x7a3   : > { %v4382_v55 = vadd.f32 %v4381_v52, %v15104_v9 }
 0x7a4   : > { %v15165_v22 = vpop.f32.mrf.mxu0 }
 0x7a5   : > { %v15167_v61 = vpack.c.bf16 %v4382_v55, %v4378_v51  ;;  %11024 = vmatpush3.bf16.xpose.msra.mxu1 %v4478_v5  ;;  %v4846_v5 = vpack.c.bf16 %v4269_v13, %v4265_v24  ;;  %v4845_v55 = vpack.c.bf16 %v4259_v26, %v4255_v56 }
 0x7a6   : > { %v4387_v60 = vpop.f32.mrf.mxu0  ;;  %11025 = vmatprep.subr.bf16.mxu1 %v4477_v63 }
 0x7a7   : > { %v4388_v30 = vadd.f32 %v4387_v60, %v15104_v9  ;;  %11088 = vmatpush3.bf16.xpose.msra.mxu0 %v4848_v6 }
 0x7a8   : > { %v15170_v2 = vpop.f32.mrf.mxu0  ;;  %11089 = vmatprep.subr.bf16.mxu0 %v4847_v12 }
 0x7aa   : > { %v4391_v8 = vpop.f32.mrf.mxu0 }
 0x7ab   : > { %v4392_v4 = vadd.f32 %v4391_v8, %v15104_v9 }
 0x7ac   : > { %v15177_v59 = vpop.f32.mrf.mxu0 }
 0x7ad   : > { %v15179_v21 = vpack.c.bf16 %v4392_v4, %v4388_v30  ;;  %11026 = vmatpush3.bf16.xpose.msra.mxu1 %v4477_v63  ;;  %v4245_v30 = vadd.f32 %v14929_v40, %v15083_v15 }
 0x7ae   : > { %v4397_v16 = vpop.f32.mrf.mxu0  ;;  %11027 = vmatprep.subr.bf16.mxu1 %v14978_v47 }
 0x7af   : > { %v4398_v6 = vadd.f32 %v4397_v16, %v15104_v9  ;;  %11090 = vmatpush3.bf16.xpose.msra.mxu0 %v4847_v12  ;;  %v4844_v8 = vpack.c.bf16 %v4249_v43, %v4245_v30  ;;  %v19018_v30 = vld [vmem:[#allocation37_spill] sm:$0xff] }
 0x7b0   : > { %v4399_v51 = vpop.f32.mrf.mxu0  ;;  %11091 = vmatprep.subr.bf16.mxu0 %v4846_v5 }
 0x7b2   : > { %v4401_v10 = vpop.f32.mrf.mxu0 }
 0x7b3   : > { %v4402_v57 = vadd.f32 %v4401_v10, %v15104_v9 }
 0x7b4   : > { %v4405_v32 = vpop.f32.mrf.mxu0 }
 0x7b5   : > { %v15188_v52 = vpack.c.bf16 %v4402_v57, %v4398_v6  ;;  %11028 = vmatpush3.bf16.xpose.msra.mxu1 %v14978_v47 }
 0x7b6   : > { %v4407_v1 = vpop.f32.mrf.mxu0  ;;  %11029 = vmatprep.subr.bf16.mxu1 %v14954_v20 }
 0x7b7   : > { %v4408_v63 = vadd.f32 %v4407_v1, %v15104_v9  ;;  %11092 = vmatpush3.bf16.xpose.msra.mxu0 %v4846_v5  ;;  %v19005_v1 = vpack.c.bf16 %v14952_v36, %v14950_v41  ;;  %v19008_v41 = vpack.c.bf16 %v14987_v50, %v14983_v0  ;;  %v4400_v36 = vadd.f32 %v4399_v51, %v15115_v53 }
 0x7b8   : > { %v4409_v12 = vpop.f32.mrf.mxu0  ;;  %11093 = vmatprep.subr.bf16.mxu0 %v4845_v55  ;;  %v19010_v0 = vpack.c.bf16 %v15026_v29, %v15024_v11  ;;  %v19011_v50 = vpack.c.bf16 %v15011_v58, %v15007_v31  ;;  %v4376_v11 = vadd.f32 %v15149_v35, %v15115_v53  ;;  %v19014_v29 = vld [vmem:[#allocation34_spill] sm:$0xff]  ;;  %v19015_v31 = vld [vmem:[#allocation33_spill] sm:$0xff] }
 0x7b9   : > { %v19016_v58 = vpack.c.bf16 %v19014_v29, %v19015_v31 }
 0x7ba   : > { %v4411_v60 = vpop.f32.mrf.mxu0 }
 0x7bb   : > { %v4412_v18 = vadd.f32 %v4411_v60, %v15104_v9  ;;  %v19007_v60 = vpack.c.bf16 %v14961_v42, %v14957_v33  ;;  %v4390_v33 = vadd.f32 %v15170_v2, %v15115_v53  ;;  %v4380_v2 = vadd.f32 %v15156_v23, %v15115_v53  ;;  %v19023_v23 = vld [vmem:[#allocation40_spill] sm:$0xff] }
 0x7bc   : > { %v4415_v13 = vpop.f32.mrf.mxu0 }
 0x7bd   : > { %v15198_v47 = vpack.c.bf16 %v4412_v18, %v4408_v63  ;;  %11030 = vmatpush3.bf16.xpose.msra.mxu1 %v14954_v20  ;;  %v4416_v56 = vadd.f32 %v4415_v13, %v15115_v53  ;;  %v4410_v63 = vadd.f32 %v4409_v12, %v15115_v53  ;;  %v4406_v18 = vadd.f32 %v4405_v32, %v15115_v53 }
 0x7be   : > { %v4417_v4 = vpop.f32.mrf.mxu0  ;;  %11031 = vmatprep.subr.bf16.mxu1 %v14938_v39  ;;  %v4484_v32 = vpack.c.bf16 %v4380_v2, %v4376_v11 }
 0x7bf   : > { %v4418_v24 = vadd.f32 %v4417_v4, %v15104_v9  ;;  %11094 = vmatpush3.bf16.xpose.msra.mxu0 %v4845_v55  ;;  %v4487_v12 = vpack.c.bf16 %v4410_v63, %v4406_v18 }
 0x7c0   : > { %v4419_v5 = vpop.f32.mrf.mxu0  ;;  %11095 = vmatprep.subr.bf16.mxu0 %v4844_v8 }
 0x7c1   : > { %v4420_v15 = vadd.f32 %v4419_v5, %v15115_v53 }
 0x7c2   : > { %v4421_v19 = vpop.f32.mrf.mxu0 }
 0x7c3   : > { %v4422_v16 = vadd.f32 %v4421_v19, %v15104_v9  ;;  %v4488_v43 = vpack.c.bf16 %v4420_v15, %v4416_v56 }
 0x7c4   : > { %v4425_v6 = vpop.f32.mrf.mxu0 }
 0x7c5   : > { %v15204_v26 = vpack.c.bf16 %v4422_v16, %v4418_v24  ;;  %11032 = vmatpush3.bf16.xpose.msra.mxu1 %v14938_v39  ;;  %v4426_v10 = vadd.f32 %v4425_v6, %v15115_v53  ;;  %v19006_v39 = vpack.c.bf16 %v14976_v7, %v14974_v46  ;;  %v4396_v46 = vadd.f32 %v15177_v59, %v15115_v53  ;;  %v19024_v24 = vld [vmem:[#allocation39_spill] sm:$0xff] }
 0x7c6   : > { %v4427_v40 = vpop.f32.mrf.mxu0  ;;  %v19009_v7 = vpack.c.bf16 %v15002_v49, %v15000_v27  ;;  %v4386_v59 = vadd.f32 %v15165_v22, %v15115_v53  ;;  %v19012_v27 = vld [vmem:[#allocation32_spill] sm:$0xff]  ;;  %v19017_v22 = vld [vmem:[#allocation38_spill] sm:$0xff]  ;;  %v19025_v5 = vpack.c.bf16 %v19023_v23, %v19024_v24 }
 0x7c7   : > { %11096 = vmatpush3.bf16.xpose.msra.mxu0 %v4844_v8  ;;  %v4486_v42 = vpack.c.bf16 %v4400_v36, %v4396_v46  ;;  %v19013_v49 = vpack.c.bf16 %v15035_v48, %v19012_v27  ;;  %v19019_v13 = vpack.c.bf16 %v19017_v22, %v19018_v30  ;;  %v19020_v48 = vld [vmem:[#allocation36_spill] sm:$0xff]  ;;  %v19021_v8 = vld [vmem:[#allocation35_spill] sm:$0xff]  ;;  %v4428_v19 = vadd.f32 %v4427_v40, %v15104_v9 }
 0x7c8   : > { %v4429_v20 = vpop.f32.mrf.mxu0  ;;  %v4485_v51 = vpack.c.bf16 %v4390_v33, %v4386_v59  ;;  %v19022_v4 = vpack.c.bf16 %v19020_v48, %v19021_v8 }
 0x7c9   : > { %v4430_v57 = vadd.f32 %v4429_v20, %v15115_v53 }
 0x7ca   : > { %v4431_v53 = vpop.f32.mrf.mxu0 }
 0x7cb   : > { %v4489_v55 = vpack.c.bf16 %v4430_v57, %v4426_v10  ;;  %v4432_v35 = vadd.f32 %v4431_v53, %v15104_v9 }
 0x7cc   : > { %11034 = vmatmul.mubr.bf16.vlgmr.msra.gmra.mxu1 %v19005_v1 }
 0x7cd   : > { %11049 = vmatprep.subr.bf16.mxu1 %v4489_v55  ;;  %11037 = vmatprep.mubr.bf16.mxu1 %v19006_v39  ;;  %v15271_v16 = vpack.c.bf16 %v4432_v35, %v4428_v19 }
 0x7ce   : > { %11050 = vmatpush3.bf16.msra.mxu1 %v4489_v55  ;;  %11098 = vmatmul.mubr.bf16.vlgmr.msra.gmra.mxu0 %v19007_v60 }
 0x7cf   : > { %11051 = vmatprep.subr.bf16.mxu1 %v4488_v43  ;;  %11101 = vmatprep.mubr.bf16.mxu0 %v19008_v41 }
 0x7d2   : > { %11052 = vmatpush3.bf16.msra.mxu1 %v4488_v43 }
 0x7d3   : > { %11053 = vmatprep.subr.bf16.mxu1 %v4487_v12 }
 0x7d4   : > { %11038 = vmatmul.mubr.bf16.gmra.mxu1 %v19009_v7 }
 0x7d5   : > { %11041 = vmatprep.mubr.bf16.mxu1 %v19010_v0 }
 0x7d6   : > { %11054 = vmatpush3.bf16.msra.mxu1 %v4487_v12  ;;  %11102 = vmatmul.mubr.bf16.gmra.mxu0 %v19011_v50 }
 0x7d7   : > { %11055 = vmatprep.subr.bf16.mxu1 %v4486_v42  ;;  %11105 = vmatprep.mubr.bf16.mxu0 %v19013_v49 }
 0x7da   : > { %11056 = vmatpush3.bf16.msra.mxu1 %v4486_v42 }
 0x7db   : > { %11057 = vmatprep.subr.bf16.mxu1 %v4485_v51 }
 0x7dc   : > { %11042 = vmatmul.mubr.bf16.gmra.mxu1 %v19016_v58 }
 0x7dd   : > { %11045 = vmatprep.mubr.bf16.mxu1 %v19019_v13 }
 0x7de   : > { %11058 = vmatpush3.bf16.msra.mxu1 %v4485_v51  ;;  %11106 = vmatmul.mubr.bf16.gmra.mxu0 %v19022_v4 }
 0x7df   : > { %11059 = vmatprep.subr.bf16.mxu1 %v4484_v32  ;;  %11109 = vmatprep.mubr.bf16.mxu0 %v19025_v5 }
 0x7e2   : > { %11060 = vmatpush3.bf16.msra.mxu1 %v4484_v32 }
 0x7e3   : > { %11061 = vmatprep.subr.bf16.mxu1 %v15144_v38 }
 0x7e4   : > { %11046 = vmatmul.mubr.bf16.gmra.mxu1 %v4473_v25 }
 0x7e6   : > { %11062 = vmatpush3.bf16.msra.mxu1 %v15144_v38  ;;  %11110 = vmatmul.mubr.bf16.gmra.mxu0 %v4843_v3 }
 0x7e7   : > { %11063 = vmatprep.subr.bf16.mxu1 %v15128_v54 }
 0x7ea   : > { %11064 = vmatpush3.bf16.msra.mxu1 %v15128_v54 }
 0x7eb   : > { %11113 = vmatprep.subr.bf16.mxu1 %v15271_v16 }
 0x88c   : > { %v15275_v44 = vpop.f32.mrf.mxu1 }
 0x88e   : > { %v15277_v45 = vpop.f32.mrf.mxu1  ;;  %v15279_v25 = vpop.f32.mrf.mxu0 }
 0x88f   : > { %4587 = vmax.xlane.f32.xlu0 %v15277_v45 }
 0x890   : > { %v15282_v34 = vpop.f32.mrf.mxu1  ;;  %v15284_v14 = vpop.f32.mrf.mxu0 }
 0x892   : > { %v15286_v9 = vpop.f32.mrf.mxu1  ;;  %v15292_v54 = vpop.f32.mrf.mxu0 }
 0x893   : > { %4591 = vmax.xlane.f32.xlu0 %v15275_v44  ;;  %4589 = vmax.xlane.f32.xlu1 %v15286_v9 }
 0x894   : > { %v15290_v3 = vpop.f32.mrf.mxu1  ;;  %v15300_v40 = vpop.f32.mrf.mxu0 }
 0x896   : > { %v15294_v38 = vpop.f32.mrf.mxu1  ;;  %v15308_v10 = vpop.f32.mrf.mxu0 }
 0x897   : > { %4593 = vmax.xlane.f32.xlu1 %v15282_v34  ;;  %4595 = vmax.xlane.f32.xlu0 %v15294_v38 }
 0x898   : > { %v15298_v6 = vpop.f32.mrf.mxu1  ;;  %v15316_v55 = vpop.f32.mrf.mxu0 }
 0x89a   : > { %v15302_v20 = vpop.f32.mrf.mxu1  ;;  %v15324_v43 = vpop.f32.mrf.mxu0 }
 0x89b   : > { %4599 = vmax.xlane.f32.xlu0 %v15290_v3  ;;  %4597 = vmax.xlane.f32.xlu1 %v15302_v20 }
 0x89c   : > { %v15306_v15 = vpop.f32.mrf.mxu1  ;;  %v15332_v18 = vpop.f32.mrf.mxu0 }
 0x89e   : > { %v15310_v57 = vpop.f32.mrf.mxu1  ;;  %v15338_v36 = vpop.f32.mrf.mxu0 }
 0x89f   : > { %4601 = vmax.xlane.f32.xlu1 %v15298_v6  ;;  %4603 = vmax.xlane.f32.xlu0 %v15310_v57 }
 0x8a0   : > { %v15314_v56 = vpop.f32.mrf.mxu1  ;;  %v15342_v12 = vpop.f32.mrf.mxu0 }
 0x8a2   : > { %v15318_v1 = vpop.f32.mrf.mxu1  ;;  %v15346_v46 = vpop.f32.mrf.mxu0 }
 0x8a3   : > { %4607 = vmax.xlane.f32.xlu0 %v15306_v15  ;;  %4605 = vmax.xlane.f32.xlu1 %v15318_v1 }
 0x8a4   : > { %v15322_v63 = vpop.f32.mrf.mxu1  ;;  %v15350_v7 = vpop.f32.mrf.mxu0 }
 0x8a6   : > { %v15326_v39 = vpop.f32.mrf.mxu1  ;;  %v15354_v33 = vpop.f32.mrf.mxu0 }
 0x8a7   : > { %4609 = vmax.xlane.f32.xlu1 %v15314_v56  ;;  %4611 = vmax.xlane.f32.xlu0 %v15326_v39 }
 0x8a8   : > { %v15330_v60 = vpop.f32.mrf.mxu1  ;;  %v15358_v42 = vpop.f32.mrf.mxu0 }
 0x8aa   : > { %v15334_v41 = vpop.f32.mrf.mxu1  ;;  %v15362_v0 = vpop.f32.mrf.mxu0 }
 0x8ab   : > { %4615 = vmax.xlane.f32.xlu0 %v15322_v63  ;;  %4613 = vmax.xlane.f32.xlu1 %v15334_v41 }
 0x8ac   : > { %v15366_v50 = vpop.f32.mrf.mxu0 }
 0x8af   : > { %4957 = vmax.xlane.f32.xlu0 %v15284_v14  ;;  %4617 = vmax.xlane.f32.xlu1 %v15330_v60 }
 0x8b3   : > { %4961 = vmax.xlane.f32.xlu0 %v15279_v25  ;;  %4959 = vmax.xlane.f32.xlu1 %v15300_v40 }
 0x8b7   : > { %4965 = vmax.xlane.f32.xlu0 %v15316_v55  ;;  %4963 = vmax.xlane.f32.xlu1 %v15292_v54 }
 0x8bb   : > { %4969 = vmax.xlane.f32.xlu0 %v15308_v10  ;;  %4967 = vmax.xlane.f32.xlu1 %v15332_v18 }
 0x8bf   : > { %4973 = vmax.xlane.f32.xlu0 %v15342_v12  ;;  %4971 = vmax.xlane.f32.xlu1 %v15324_v43 }
 0x8c3   : > { %4977 = vmax.xlane.f32.xlu0 %v15338_v36  ;;  %4975 = vmax.xlane.f32.xlu1 %v15350_v7 }
 0x8c7   : > { %4981 = vmax.xlane.f32.xlu0 %v15358_v42  ;;  %4979 = vmax.xlane.f32.xlu1 %v15346_v46 }
 0x8cb   : > { %4985 = vmax.xlane.f32.xlu0 %v15354_v33  ;;  %4983 = vmax.xlane.f32.xlu1 %v15366_v50 }
 0x8cf   : > { %4987 = vmax.xlane.f32.xlu1 %v15362_v0 }
 0x918   : > { %v4588_v59 = vpop.xlane.xlu0 %4587 }
 0x919   : > { %v4619_v27 = vsub.f32 %v15277_v45, %v4588_v59 }
 0x91b   : > { %v4635_v49 = vmul.f32 1.442695, %v4619_v27 }
 0x91c   : > { %v4592_v2 = vpop.xlane.xlu0 %4591  ;;  %v4590_v51 = vpop.xlane.xlu1 %4589 }
 0x91d   : > { %12064 = vpow2.f32 %v4635_v49  ;;  %v4621_v11 = vsub.f32 %v15275_v44, %v4592_v2  ;;  %v4620_v29 = vsub.f32 %v15286_v9, %v4590_v51 }
 0x91f   : > { %v4639_v31 = vmul.f32 1.442695, %v4621_v11  ;;  %v4637_v58 = vmul.f32 1.442695, %v4620_v29 }
 0x920   : > { %v4594_v32 = vpop.xlane.xlu1 %4593  ;;  %v4596_v22 = vpop.xlane.xlu0 %4595 }
 0x921   : > { %12066 = vpow2.f32 %v4639_v31  ;;  %v4622_v30 = vsub.f32 %v15282_v34, %v4594_v32  ;;  %v4623_v13 = vsub.f32 %v15294_v38, %v4596_v22 }
 0x922   : > { %12068 = vpow2.f32 %v4637_v58 }
 0x923   : > { %v4641_v48 = vmul.f32 1.442695, %v4622_v30  ;;  %v4643_v8 = vmul.f32 1.442695, %v4623_v13 }
 0x924   : > { %v4600_v4 = vpop.xlane.xlu0 %4599  ;;  %v4598_v23 = vpop.xlane.xlu1 %4597 }
 0x925   : > { %12070 = vpow2.f32 %v4641_v48  ;;  %v4625_v24 = vsub.f32 %v15290_v3, %v4600_v4  ;;  %v4624_v5 = vsub.f32 %v15302_v20, %v4598_v23 }
 0x926   : > { %12072 = vpow2.f32 %v4643_v8 }
 0x927   : > { %v4647_v53 = vmul.f32 1.442695, %v4625_v24  ;;  %v4645_v35 = vmul.f32 1.442695, %v4624_v5 }
 0x928   : > { %v4602_v19 = vpop.xlane.xlu1 %4601  ;;  %v4604_v44 = vpop.xlane.xlu0 %4603 }
 0x929   : > { %12074 = vpow2.f32 %v4647_v53  ;;  %v4626_v45 = vsub.f32 %v15298_v6, %v4602_v19  ;;  %v4627_v34 = vsub.f32 %v15310_v57, %v4604_v44 }
 0x92a   : > { %v15380_v9 = vpop.eup %12064  ;;  %12076 = vpow2.f32 %v4645_v35 }
 0x92b   : > { %v4649_v38 = vmul.f32 1.442695, %v4626_v45  ;;  %v4651_v59 = vmul.f32 1.442695, %v4627_v34  ;;  %4667 = vadd.xlane.f32.xlu0 %v15380_v9 }
 0x92c   : > { %v4608_v3 = vpop.xlane.xlu0 %4607  ;;  %v4606_v27 = vpop.xlane.xlu1 %4605 }
 0x92d   : > { %12078 = vpow2.f32 %v4649_v38  ;;  %v4629_v20 = vsub.f32 %v15306_v15, %v4608_v3  ;;  %v4628_v49 = vsub.f32 %v15318_v1, %v4606_v27 }
 0x92e   : > { %v15385_v2 = vpop.eup %12066  ;;  %12080 = vpow2.f32 %v4651_v59 }
 0x92f   : > { %v15387_v6 = vpop.eup %12068  ;;  %v4655_v57 = vmul.f32 1.442695, %v4629_v20  ;;  %v4653_v51 = vmul.f32 1.442695, %v4628_v49  ;;  %4671 = vadd.xlane.f32.xlu0 %v15385_v2 }
 0x930   : > { %4669 = vadd.xlane.f32.xlu1 %v15387_v6  ;;  %v4610_v11 = vpop.xlane.xlu1 %4609  ;;  %v4612_v29 = vpop.xlane.xlu0 %4611 }
 0x931   : > { %12082 = vpow2.f32 %v4655_v57  ;;  %v4630_v31 = vsub.f32 %v15314_v56, %v4610_v11  ;;  %v4631_v15 = vsub.f32 %v15326_v39, %v4612_v29 }
 0x932   : > { %v15393_v58 = vpop.eup %12070  ;;  %12084 = vpow2.f32 %v4653_v51 }
 0x933   : > { %v15395_v1 = vpop.eup %12072  ;;  %v4657_v32 = vmul.f32 1.442695, %v4630_v31  ;;  %v4659_v22 = vmul.f32 1.442695, %v4631_v15 }
 0x934   : > { %4675 = vadd.xlane.f32.xlu0 %v15395_v1  ;;  %4673 = vadd.xlane.f32.xlu1 %v15393_v58  ;;  %v4616_v30 = vpop.xlane.xlu0 %4615  ;;  %v4614_v13 = vpop.xlane.xlu1 %4613 }
 0x935   : > { %12086 = vpow2.f32 %v4657_v32  ;;  %v4633_v48 = vsub.f32 %v15322_v63, %v4616_v30  ;;  %v4632_v56 = vsub.f32 %v15334_v41, %v4614_v13 }
 0x936   : > { %v15401_v8 = vpop.eup %12074  ;;  %12088 = vpow2.f32 %v4659_v22 }
 0x937   : > { %v15403_v39 = vpop.eup %12076  ;;  %v4663_v4 = vmul.f32 1.442695, %v4633_v48  ;;  %v4661_v23 = vmul.f32 1.442695, %v4632_v56 }
 0x938   : > { %4679 = vadd.xlane.f32.xlu0 %v15401_v8  ;;  %4677 = vadd.xlane.f32.xlu1 %v15403_v39  ;;  %v4958_v24 = vpop.xlane.xlu0 %4957  ;;  %v4618_v5 = vpop.xlane.xlu1 %4617 }
 0x939   : > { %12090 = vpow2.f32 %v4663_v4  ;;  %v4989_v53 = vsub.f32 %v15284_v14, %v4958_v24  ;;  %v4634_v63 = vsub.f32 %v15330_v60, %v4618_v5 }
 0x93a   : > { %v15409_v35 = vpop.eup %12078  ;;  %12092 = vpow2.f32 %v4661_v23 }
 0x93b   : > { %v15411_v41 = vpop.eup %12080  ;;  %v5005_v19 = vmul.f32 1.442695, %v4989_v53  ;;  %v4665_v44 = vmul.f32 1.442695, %v4634_v63 }
 0x93c   : > { %4683 = vadd.xlane.f32.xlu0 %v15411_v41  ;;  %4681 = vadd.xlane.f32.xlu1 %v15409_v35  ;;  %v4962_v45 = vpop.xlane.xlu0 %4961  ;;  %v4960_v34 = vpop.xlane.xlu1 %4959 }
 0x93d   : > { %12094 = vpow2.f32 %v5005_v19  ;;  %v4991_v38 = vsub.f32 %v15279_v25, %v4962_v45  ;;  %v4990_v14 = vsub.f32 %v15300_v40, %v4960_v34 }
 0x93e   : > { %v15417_v59 = vpop.eup %12082  ;;  %12096 = vpow2.f32 %v4665_v44 }
 0x93f   : > { %v15419_v60 = vpop.eup %12084  ;;  %v5009_v3 = vmul.f32 1.442695, %v4991_v38  ;;  %v5007_v27 = vmul.f32 1.442695, %v4990_v14 }
 0x940   : > { %4687 = vadd.xlane.f32.xlu0 %v15417_v59  ;;  %4685 = vadd.xlane.f32.xlu1 %v15419_v60  ;;  %v4966_v20 = vpop.xlane.xlu0 %4965  ;;  %v4964_v49 = vpop.xlane.xlu1 %4963 }
 0x941   : > { %12098 = vpow2.f32 %v5009_v3  ;;  %v4993_v57 = vsub.f32 %v15316_v55, %v4966_v20  ;;  %v4992_v25 = vsub.f32 %v15292_v54, %v4964_v49 }
 0x942   : > { %v15425_v51 = vpop.eup %12086  ;;  %12100 = vpow2.f32 %v5007_v27 }
 0x943   : > { %v15427_v40 = vpop.eup %12088  ;;  %v5013_v11 = vmul.f32 1.442695, %v4993_v57  ;;  %v5011_v29 = vmul.f32 1.442695, %v4992_v25 }
 0x944   : > { %4691 = vadd.xlane.f32.xlu0 %v15427_v40  ;;  %4689 = vadd.xlane.f32.xlu1 %v15425_v51  ;;  %v4970_v31 = vpop.xlane.xlu0 %4969  ;;  %v4968_v15 = vpop.xlane.xlu1 %4967 }
 0x945   : > { %12102 = vpow2.f32 %v5013_v11  ;;  %v4995_v32 = vsub.f32 %v15308_v10, %v4970_v31  ;;  %v4994_v55 = vsub.f32 %v15332_v18, %v4968_v15 }
 0x946   : > { %v15433_v22 = vpop.eup %12090  ;;  %12104 = vpow2.f32 %v5011_v29 }
 0x947   : > { %v15435_v54 = vpop.eup %12092  ;;  %v5017_v30 = vmul.f32 1.442695, %v4995_v32  ;;  %v5015_v13 = vmul.f32 1.442695, %v4994_v55 }
 0x948   : > { %4695 = vadd.xlane.f32.xlu0 %v15433_v22  ;;  %4693 = vadd.xlane.f32.xlu1 %v15435_v54  ;;  %v4974_v48 = vpop.xlane.xlu0 %4973  ;;  %v4972_v56 = vpop.xlane.xlu1 %4971 }
 0x949   : > { %12106 = vpow2.f32 %v5017_v30  ;;  %v4997_v4 = vsub.f32 %v15342_v12, %v4974_v48  ;;  %v4996_v10 = vsub.f32 %v15324_v43, %v4972_v56 }
 0x94a   : > { %v15441_v23 = vpop.eup %12094  ;;  %12108 = vpow2.f32 %v5015_v13 }
 0x94b   : > { %v15443_v18 = vpop.eup %12096  ;;  %v5021_v24 = vmul.f32 1.442695, %v4997_v4  ;;  %v5019_v5 = vmul.f32 1.442695, %v4996_v10 }
 0x94c   : > { %5037 = vadd.xlane.f32.xlu0 %v15441_v23  ;;  %4697 = vadd.xlane.f32.xlu1 %v15443_v18  ;;  %v4978_v53 = vpop.xlane.xlu0 %4977  ;;  %v4976_v63 = vpop.xlane.xlu1 %4975 }
 0x94d   : > { %12110 = vpow2.f32 %v5021_v24  ;;  %v4999_v19 = vsub.f32 %v15338_v36, %v4978_v53  ;;  %v4998_v12 = vsub.f32 %v15350_v7, %v4976_v63  ;;  %v11794_v53 = vld [vmem:[%s13027_s25 + $0x74] ss:$8 sps:$4 sm:$0xff]   ;;  %v11797_v63 = vld [vmem:[%s13027_s25 + $0x64] ss:$8 sps:$4 sm:$0xff]  }
 0x94e   : > { %v15449_v44 = vpop.eup %12098  ;;  %12112 = vpow2.f32 %v5019_v5  ;;  %v11792_v5 = vld [vmem:[%s13027_s25 + $0x70] ss:$8 sps:$4 sm:$0xff]   ;;  %5414 = vmatprep.subr.bf16.mxu0 %v11794_v53 }
 0x94f   : > { %v15451_v43 = vpop.eup %12100  ;;  %v5025_v45 = vmul.f32 1.442695, %v4999_v19  ;;  %v5023_v34 = vmul.f32 1.442695, %v4998_v12  ;;  %5415 = vmatpush1.bf16.msra.mxu0 %v11792_v5  ;;  %v11795_v19 = vld [vmem:[%s13027_s25 + $0x60] ss:$8 sps:$4 sm:$0xff]  }
 0x950   : > { %5041 = vadd.xlane.f32.xlu0 %v15449_v44  ;;  %5039 = vadd.xlane.f32.xlu1 %v15451_v43  ;;  %v4982_v38 = vpop.xlane.xlu0 %4981  ;;  %v4980_v14 = vpop.xlane.xlu1 %4979  ;;  %v11800_v12 = vld [vmem:[%s13027_s25 + $0x54] ss:$8 sps:$4 sm:$0xff]  }
 0x951   : > { %12114 = vpow2.f32 %v5025_v45  ;;  %v5001_v3 = vsub.f32 %v15358_v42, %v4982_v38  ;;  %v5000_v36 = vsub.f32 %v15346_v46, %v4980_v14  ;;  %5416 = vmatprep.subr.bf16.mxu0 %v11797_v63  ;;  %v11798_v45 = vld [vmem:[%s13027_s25 + $0x50] ss:$8 sps:$4 sm:$0xff]   ;;  %v11801_v38 = vld [vmem:[%s13027_s25 + $0x40] ss:$8 sps:$4 sm:$0xff]   ;;  %v11806_v14 = vld [vmem:[%s13027_s25 + $0x34] ss:$8 sps:$4 sm:$0xff]  }
 0x952   : > { %v15457_v27 = vpop.eup %12102  ;;  %12116 = vpow2.f32 %v5023_v34  ;;  %v11803_v34 = vld [vmem:[%s13027_s25 + $0x44] ss:$8 sps:$4 sm:$0xff]  }
 0x953   : > { %v15459_v7 = vpop.eup %12104  ;;  %v5029_v20 = vmul.f32 1.442695, %v5001_v3  ;;  %v5027_v49 = vmul.f32 1.442695, %v5000_v36  ;;  %5417 = vmatpush1.bf16.msra.mxu0 %v11795_v19  ;;  %v11804_v3 = vld [vmem:[%s13027_s25 + $0x30] ss:$8 sps:$4 sm:$0xff]  }
 0x954   : > { %5045 = vadd.xlane.f32.xlu0 %v15457_v27  ;;  %5043 = vadd.xlane.f32.xlu1 %v15459_v7  ;;  %v4986_v57 = vpop.xlane.xlu0 %4985  ;;  %v4984_v25 = vpop.xlane.xlu1 %4983  ;;  %v11809_v36 = vld [vmem:[%s13027_s25 + $0x24] ss:$8 sps:$4 sm:$0xff]  }
 0x955   : > { %12118 = vpow2.f32 %v5029_v20  ;;  %v5003_v11 = vsub.f32 %v15354_v33, %v4986_v57  ;;  %v5002_v42 = vsub.f32 %v15366_v50, %v4984_v25  ;;  %5418 = vmatprep.subr.bf16.mxu0 %v11800_v12  ;;  %v11807_v20 = vld [vmem:[%s13027_s25 + $0x20] ss:$8 sps:$4 sm:$0xff]  }
 0x956   : > { %v15465_v29 = vpop.eup %12106  ;;  %12120 = vpow2.f32 %v5027_v49 }
 0x957   : > { %v15467_v46 = vpop.eup %12108  ;;  %v5033_v31 = vmul.f32 1.442695, %v5003_v11  ;;  %v5031_v15 = vmul.f32 1.442695, %v5002_v42  ;;  %5419 = vmatpush1.bf16.msra.mxu0 %v11798_v45 }
 0x958   : > { %5049 = vadd.xlane.f32.xlu0 %v15465_v29  ;;  %5047 = vadd.xlane.f32.xlu1 %v15467_v46  ;;  %v4988_v32 = vpop.xlane.xlu1 %4987 }
 0x959   : > { %12122 = vpow2.f32 %v5033_v31  ;;  %v5004_v55 = vsub.f32 %v15362_v0, %v4988_v32  ;;  %5420 = vmatprep.subr.bf16.mxu0 %v11803_v34 }
 0x95a   : > { %v15472_v30 = vpop.eup %12110  ;;  %12124 = vpow2.f32 %v5031_v15 }
 0x95b   : > { %v15474_v33 = vpop.eup %12112  ;;  %v5035_v50 = vmul.f32 1.442695, %v5004_v55  ;;  %5421 = vmatpush1.bf16.msra.mxu0 %v11801_v38 }
 0x95c   : > { %5053 = vadd.xlane.f32.xlu0 %v15472_v30  ;;  %5051 = vadd.xlane.f32.xlu1 %v15474_v33 }
 0x95d   : > { %12126 = vpow2.f32 %v5035_v50  ;;  %5422 = vmatprep.subr.bf16.mxu0 %v11806_v14 }
 0x95e   : > { %v15478_v13 = vpop.eup %12114 }
 0x95f   : > { %v15480_v48 = vpop.eup %12116  ;;  %5423 = vmatpush1.bf16.msra.mxu0 %v11804_v3 }
 0x960   : > { %5057 = vadd.xlane.f32.xlu0 %v15478_v13  ;;  %5055 = vadd.xlane.f32.xlu1 %v15480_v48 }
 0x961   : > { %5424 = vmatprep.subr.bf16.mxu0 %v11809_v36 }
 0x962   : > { %v15484_v0 = vpop.eup %12118 }
 0x963   : > { %v15486_v56 = vpop.eup %12120  ;;  %5425 = vmatpush1.bf16.msra.mxu0 %v11807_v20 }
 0x964   : > { %5061 = vadd.xlane.f32.xlu0 %v15484_v0  ;;  %5059 = vadd.xlane.f32.xlu1 %v15486_v56 }
 0x966   : > { %v15490_v4 = vpop.eup %12122 }
 0x967   : > { %v15492_v10 = vpop.eup %12124 }
 0x968   : > { %5065 = vadd.xlane.f32.xlu0 %v15490_v4  ;;  %5063 = vadd.xlane.f32.xlu1 %v15492_v10 }
 0x96a   : > { %v15496_v24 = vpop.eup %12126 }
 0x96c   : > { %5067 = vadd.xlane.f32.xlu1 %v15496_v24 }
 0x9b4   : > { %v4668_v49 = vpop.xlane.xlu0 %4667 }
 0x9b5   : > { %12128 = vrcp.f32 %v4668_v49 }
 0x9b8   : > { %v4672_v57 = vpop.xlane.xlu0 %4671 }
 0x9b9   : > { %v4670_v25 = vpop.xlane.xlu1 %4669 }
 0x9ba   : > { %12130 = vrcp.f32 %v4670_v25 }
 0x9bb   : > { %12132 = vrcp.f32 %v4672_v57 }
 0x9bd   : > { %v4676_v11 = vpop.xlane.xlu0 %4675  ;;  %v4674_v42 = vpop.xlane.xlu1 %4673 }
 0x9be   : > { %12134 = vrcp.f32 %v4674_v42 }
 0x9bf   : > { %12136 = vrcp.f32 %v4676_v11 }
 0x9c1   : > { %v4680_v31 = vpop.xlane.xlu0 %4679  ;;  %v4678_v15 = vpop.xlane.xlu1 %4677 }
 0x9c2   : > { %12138 = vrcp.f32 %v4678_v15  ;;  %v12129_v32 = vpop.eup %12128 }
 0x9c3   : > { %12140 = vrcp.f32 %v4680_v31  ;;  %v4715_v53 = vmul.f32 %v12129_v32, %v15380_v9 }
 0x9c5   : > { %v4684_v55 = vpop.xlane.xlu0 %4683  ;;  %v4682_v50 = vpop.xlane.xlu1 %4681 }
 0x9c6   : > { %12142 = vrcp.f32 %v4682_v50 }
 0x9c7   : > { %v12131_v5 = vpop.eup %12130  ;;  %12144 = vrcp.f32 %v4684_v55 }
 0x9c8   : > { %v4716_v63 = vmul.f32 %v12131_v5, %v15387_v6  ;;  %v12133_v45 = vpop.eup %12132 }
 0x9c9   : > { %v4688_v19 = vpop.xlane.xlu0 %4687  ;;  %v4686_v12 = vpop.xlane.xlu1 %4685  ;;  %v4717_v36 = vmul.f32 %v12133_v45, %v15385_v2 }
 0x9ca   : > { %v4731_v34 = vpack.c.bf16 %v4716_v63, %v4715_v53  ;;  %12146 = vrcp.f32 %v4686_v12 }
 0x9cb   : > { %v12135_v38 = vpop.eup %12134  ;;  %12148 = vrcp.f32 %v4688_v19 }
 0x9cc   : > { %11065 = vmatprep.mubr.bf16.mxu1 %v4731_v34  ;;  %v4718_v20 = vmul.f32 %v12135_v38, %v15393_v58  ;;  %v12137_v49 = vpop.eup %12136 }
 0x9cd   : > { %v4692_v14 = vpop.xlane.xlu0 %4691  ;;  %v4690_v3 = vpop.xlane.xlu1 %4689  ;;  %v4719_v11 = vmul.f32 %v12137_v49, %v15395_v1 }
 0x9ce   : > { %12150 = vrcp.f32 %v4690_v3  ;;  %v4732_v9 = vpack.c.bf16 %v4718_v20, %v4717_v36 }
 0x9cf   : > { %v12139_v57 = vpop.eup %12138  ;;  %12152 = vrcp.f32 %v4692_v14 }
 0x9d0   : > { %11066 = vmatmul.mubr.bf16.vlgmr.msra.gmra.mxu1 %v4732_v9  ;;  %v4720_v42 = vmul.f32 %v12139_v57, %v15403_v39  ;;  %v12141_v31 = vpop.eup %12140 }
 0x9d1   : > { %v4696_v6 = vpop.xlane.xlu0 %4695  ;;  %v4694_v25 = vpop.xlane.xlu1 %4693  ;;  %11114 = vmatpush3.bf16.msra.mxu1 %v15271_v16  ;;  %v4721_v55 = vmul.f32 %v12141_v31, %v15401_v8 }
 0x9d2   : > { %11115 = vmatprep.subr.bf16.mxu1 %v15204_v26  ;;  %12154 = vrcp.f32 %v4694_v25  ;;  %v4733_v2 = vpack.c.bf16 %v4720_v42, %v4719_v11 }
 0x9d3   : > { %v12143_v58 = vpop.eup %12142  ;;  %12156 = vrcp.f32 %v4696_v6 }
 0x9d4   : > { %11069 = vmatprep.mubr.bf16.mxu1 %v4733_v2  ;;  %v4722_v50 = vmul.f32 %v12143_v58, %v15409_v35  ;;  %v12145_v5 = vpop.eup %12144 }
 0x9d5   : > { %v5038_v15 = vpop.xlane.xlu0 %5037  ;;  %v4698_v32 = vpop.xlane.xlu1 %4697  ;;  %11116 = vmatpush3.bf16.msra.mxu1 %v15204_v26  ;;  %v4723_v63 = vmul.f32 %v12145_v5, %v15411_v41 }
 0x9d6   : > { %11117 = vmatprep.subr.bf16.mxu1 %v15198_v47  ;;  %12158 = vrcp.f32 %v4698_v32  ;;  %v4734_v16 = vpack.c.bf16 %v4722_v50, %v4721_v55 }
 0x9d7   : > { %v12147_v1 = vpop.eup %12146  ;;  %12160 = vrcp.f32 %v5038_v15 }
 0x9d8   : > { %11070 = vmatmul.mubr.bf16.gmra.mxu1 %v4734_v16  ;;  %v4724_v19 = vmul.f32 %v12147_v1, %v15419_v60  ;;  %v12149_v12 = vpop.eup %12148 }
 0x9d9   : > { %v5042_v39 = vpop.xlane.xlu0 %5041  ;;  %v5040_v53 = vpop.xlane.xlu1 %5039  ;;  %11118 = vmatpush3.bf16.msra.mxu1 %v15198_v47  ;;  %v4725_v34 = vmul.f32 %v12149_v12, %v15417_v59 }
 0x9da   : > { %11119 = vmatprep.subr.bf16.mxu1 %v15188_v52  ;;  %12162 = vrcp.f32 %v5040_v53  ;;  %v4735_v26 = vpack.c.bf16 %v4724_v19, %v4723_v63 }
 0x9db   : > { %v12151_v8 = vpop.eup %12150  ;;  %12164 = vrcp.f32 %v5042_v39 }
 0x9dc   : > { %11073 = vmatprep.mubr.bf16.mxu1 %v4735_v26  ;;  %v4726_v38 = vmul.f32 %v12151_v8, %v15425_v51  ;;  %v12153_v14 = vpop.eup %12152 }
 0x9dd   : > { %v5046_v35 = vpop.xlane.xlu0 %5045  ;;  %v5044_v45 = vpop.xlane.xlu1 %5043  ;;  %11120 = vmatpush3.bf16.msra.mxu1 %v15188_v52  ;;  %v4727_v36 = vmul.f32 %v12153_v14, %v15427_v40 }
 0x9de   : > { %11121 = vmatprep.subr.bf16.mxu1 %v15179_v21  ;;  %12166 = vrcp.f32 %v5044_v45  ;;  %v4736_v47 = vpack.c.bf16 %v4726_v38, %v4725_v34 }
 0x9df   : > { %v12155_v41 = vpop.eup %12154  ;;  %12168 = vrcp.f32 %v5046_v35 }
 0x9e0   : > { %11074 = vmatmul.mubr.bf16.gmra.mxu1 %v4736_v47  ;;  %v4728_v20 = vmul.f32 %v12155_v41, %v15435_v54  ;;  %v12157_v49 = vpop.eup %12156 }
 0x9e1   : > { %v5050_v60 = vpop.xlane.xlu0 %5049  ;;  %v5048_v3 = vpop.xlane.xlu1 %5047  ;;  %11122 = vmatpush3.bf16.msra.mxu1 %v15179_v21  ;;  %v4729_v57 = vmul.f32 %v12157_v49, %v15433_v22  ;;  %v11821_v49 = vld [vmem:[%s13027_s25 + $0xe4] ss:$8 sps:$4 sm:$0xff]  }
 0x9e2   : > { %11123 = vmatprep.subr.bf16.mxu1 %v15167_v61  ;;  %12170 = vrcp.f32 %v5048_v3  ;;  %v4737_v52 = vpack.c.bf16 %v4728_v20, %v4727_v36  ;;  %v11810_v3 = vld [vmem:[%s13027_s25 + $0x10] ss:$8 sps:$4 sm:$0xff]   ;;  %v11812_v36 = vld [vmem:[%s13027_s25 + $0x14] ss:$8 sps:$4 sm:$0xff]   ;;  %v11819_v20 = vld [vmem:[%s13027_s25 + $0xe0] ss:$8 sps:$4 sm:$0xff]  }
 0x9e3   : > { %v12159_v59 = vpop.eup %12158  ;;  %12172 = vrcp.f32 %v5050_v60  ;;  %5426 = vmatprep.subr.bf16.mxu0 %v11812_v36 }
 0x9e4   : > { %11077 = vmatprep.mubr.bf16.mxu1 %v4737_v52  ;;  %v4730_v6 = vmul.f32 %v12159_v59, %v15443_v18  ;;  %v12161_v25 = vpop.eup %12160  ;;  %5427 = vmatpush1.bf16.msra.mxu0 %v11810_v3  ;;  %v11822_v52 = vld [vmem:[%s13027_s25 + $0xd0] ss:$8 sps:$4 sm:$0xff]   ;;  %v11824_v59 = vld [vmem:[%s13027_s25 + $0xd4] ss:$8 sps:$4 sm:$0xff]  }
 0x9e5   : > { %v5054_v51 = vpop.xlane.xlu0 %5053  ;;  %v5052_v9 = vpop.xlane.xlu1 %5051  ;;  %11124 = vmatpush3.bf16.msra.mxu1 %v15167_v61  ;;  %v5085_v42 = vmul.f32 %v12161_v25, %v15441_v23  ;;  %v11831_v25 = vld [vmem:[%s13027_s25 + $0xa0] ss:$8 sps:$4 sm:$0xff]  }
 0x9e6   : > { %11125 = vmatprep.subr.bf16.mxu1 %v15151_v62  ;;  %12174 = vrcp.f32 %v5052_v9  ;;  %v4738_v21 = vpack.c.bf16 %v4730_v6, %v4729_v57  ;;  %v11827_v9 = vld [vmem:[%s13027_s25 + $0xc4] ss:$8 sps:$4 sm:$0xff]   ;;  %v11828_v57 = vld [vmem:[%s13027_s25 + $0xb0] ss:$8 sps:$4 sm:$0xff]   ;;  %v11830_v6 = vld [vmem:[%s13027_s25 + $0xb4] ss:$8 sps:$4 sm:$0xff]  }
 0x9e7   : > { %v12163_v40 = vpop.eup %12162  ;;  %12176 = vrcp.f32 %v5054_v51  ;;  %v11825_v51 = vld [vmem:[%s13027_s25 + $0xc0] ss:$8 sps:$4 sm:$0xff]  }
 0x9e8   : > { %11078 = vmatmul.mubr.bf16.gmra.mxu1 %v4738_v21  ;;  %v5086_v31 = vmul.f32 %v12163_v40, %v15451_v43  ;;  %v12165_v2 = vpop.eup %12164  ;;  %v11833_v21 = vld [vmem:[%s13027_s25 + $0xa4] ss:$8 sps:$4 sm:$0xff]   ;;  %v11834_v40 = vld [vmem:[%s13027_s25 + $0x90] ss:$8 sps:$4 sm:$0xff]  }
 0x9e9   : > { %v5058_v54 = vpop.xlane.xlu0 %5057  ;;  %v5056_v11 = vpop.xlane.xlu1 %5055  ;;  %11126 = vmatpush3.bf16.msra.mxu1 %v15151_v62  ;;  %v5087_v15 = vmul.f32 %v12165_v2, %v15449_v44 }
 0x9ea   : > { %11127 = vmatprep.subr.bf16.mxu1 %v15133_v37  ;;  %12178 = vrcp.f32 %v5056_v11  ;;  %v5101_v61 = vpack.c.bf16 %v5086_v31, %v5085_v42  ;;  %v11837_v11 = vld [vmem:[%s13027_s25 + $0x80] ss:$8 sps:$4 sm:$0xff]   ;;  %v11839_v42 = vld [vmem:[%s13027_s25 + $0x84] ss:$8 sps:$4 sm:$0xff]  }
 0x9eb   : > { %v12167_v22 = vpop.eup %12166  ;;  %12180 = vrcp.f32 %v5058_v54  ;;  %v11836_v54 = vld [vmem:[%s13027_s25 + $0x94] ss:$8 sps:$4 sm:$0xff]  }
 0x9ec   : > { %11129 = vmatprep.mubr.bf16.mxu1 %v5101_v61  ;;  %v5088_v32 = vmul.f32 %v12167_v22, %v15459_v7  ;;  %v12169_v55 = vpop.eup %12168 }
 0x9ed   : > { %v5062_v18 = vpop.xlane.xlu0 %5061  ;;  %v5060_v58 = vpop.xlane.xlu1 %5059  ;;  %11128 = vmatpush3.bf16.msra.mxu1 %v15133_v37  ;;  %v5089_v5 = vmul.f32 %v12169_v55, %v15457_v27 }
 0x9ee   : > { %12182 = vrcp.f32 %v5060_v58  ;;  %v5102_v23 = vpack.c.bf16 %v5088_v32, %v5087_v15 }
 0x9ef   : > { %v12171_v43 = vpop.eup %12170  ;;  %12184 = vrcp.f32 %v5062_v18 }
 0x9f0   : > { %11130 = vmatmul.mubr.bf16.vlgmr.msra.gmra.mxu1 %v5102_v23  ;;  %v5090_v16 = vmul.f32 %v12171_v43, %v15467_v46  ;;  %v12173_v1 = vpop.eup %12172 }
 0x9f1   : > { %v5066_v62 = vpop.xlane.xlu0 %5065  ;;  %v5064_v50 = vpop.xlane.xlu1 %5063  ;;  %v5091_v37 = vmul.f32 %v12173_v1, %v15465_v29 }
 0x9f2   : > { %12186 = vrcp.f32 %v5064_v50  ;;  %v5103_v39 = vpack.c.bf16 %v5090_v16, %v5089_v5 }
 0x9f3   : > { %v12175_v44 = vpop.eup %12174  ;;  %12188 = vrcp.f32 %v5066_v62 }
 0x9f4   : > { %11133 = vmatprep.mubr.bf16.mxu1 %v5103_v39  ;;  %v5092_v53 = vmul.f32 %v12175_v44, %v15474_v33  ;;  %v12177_v63 = vpop.eup %12176 }
 0x9f5   : > { %v5068_v7 = vpop.xlane.xlu1 %5067  ;;  %v5093_v27 = vmul.f32 %v12177_v63, %v15472_v30 }
 0x9f6   : > { %12190 = vrcp.f32 %v5068_v7  ;;  %v5104_v19 = vpack.c.bf16 %v5092_v53, %v5091_v37 }
 0x9f7   : > { %v12179_v12 = vpop.eup %12178 }
 0x9f8   : > { %11134 = vmatmul.mubr.bf16.gmra.mxu1 %v5104_v19  ;;  %v5094_v46 = vmul.f32 %v12179_v12, %v15480_v48  ;;  %v12181_v26 = vpop.eup %12180 }
 0x9f9   : > { %v5095_v45 = vmul.f32 %v12181_v26, %v15478_v13 }
 0x9fa   : > { %v5105_v8 = vpack.c.bf16 %v5094_v46, %v5093_v27 }
 0x9fb   : > { %v12183_v35 = vpop.eup %12182 }
 0x9fc   : > { %11137 = vmatprep.mubr.bf16.mxu1 %v5105_v8  ;;  %v5096_v29 = vmul.f32 %v12183_v35, %v15486_v56  ;;  %v12185_v33 = vpop.eup %12184 }
 0x9fd   : > { %v5097_v30 = vmul.f32 %v12185_v33, %v15484_v0  ;;  %v11813_v0 = vld [vmem:[%s13027_s25] ss:$8 sps:$4 sm:$0xff]  }
 0x9fe   : > { %v5106_v34 = vpack.c.bf16 %v5096_v29, %v5095_v45 }
 0x9ff   : > { %v12187_v38 = vpop.eup %12186 }
 0xa00   : > { %v12189_v14 = vpop.eup %12188  ;;  %11138 = vmatmul.mubr.bf16.gmra.mxu1 %v5106_v34  ;;  %v5098_v48 = vmul.f32 %v12187_v38, %v15492_v10  ;;  %v11815_v10 = vld [vmem:[%s13027_s25 + $0x4] ss:$8 sps:$4 sm:$0xff]  }
 0xa01   : > { %v5099_v13 = vmul.f32 %v12189_v14, %v15490_v4  ;;  %5428 = vmatprep.subr.bf16.mxu0 %v11815_v10  ;;  %v11816_v4 = vld [vmem:[%s13027_s25 + $0xf0] ss:$8 sps:$4 sm:$0xff]  }
 0xa02   : > { %v5107_v41 = vpack.c.bf16 %v5098_v48, %v5097_v30  ;;  %5429 = vmatpush1.bf16.msra.mxu0 %v11813_v0 }
 0xa03   : > { %v12191_v47 = vpop.eup %12190 }
 0xa04   : > { %v5100_v56 = vmul.f32 %v12191_v47, %v15496_v24  ;;  %11141 = vmatprep.mubr.bf16.mxu1 %v5107_v41  ;;  %v11818_v24 = vld [vmem:[%s13027_s25 + $0xf4] ss:$8 sps:$4 sm:$0xff]   ;;  %s19026_s25 = scalar_lea.vmem %s18785_s13, %s13045_s22 }
 0xa05   : > { %5430 = vmatprep.subr.bf16.mxu0 %v11818_v24 }
 0xa06   : > { %v5108_v60 = vpack.c.bf16 %v5100_v56, %v5099_v13  ;;  %5431 = vmatpush2.bf16.msra.mxu0 %v11816_v4 }
 0xa07   : > { %5432 = vmatprep.subr.bf16.mxu0 %v11821_v49 }
 0xa08   : > { %11142 = vmatmul.mubr.bf16.gmra.mxu1 %v5108_v60 }
 0xa0a   : > { %5433 = vmatpush2.bf16.msra.mxu0 %v11819_v20  ;;  %v5559_v20 = vld [vmem:[%s19026_s25] sm:$0x3] }
 0xa0b   : > { %5434 = vmatprep.subr.bf16.mxu0 %v11824_v59 }
 0xa0e   : > { %5435 = vmatpush2.bf16.msra.mxu0 %v11822_v52  ;;  %v12480_v52 = vld [vmem:[#allocation2 + $0xb0] sm:$0xff] }
 0xa0f   : > { %5436 = vmatprep.subr.bf16.mxu0 %v11827_v9 }
 0xa12   : > { %5437 = vmatpush2.bf16.msra.mxu0 %v11825_v51  ;;  %v19027_v51 = vld [vmem:[#allocation31_spill] sm:$0xff] }
 0xa13   : > { %5438 = vmatprep.subr.bf16.mxu0 %v11830_v6  ;;  %v15584_v9 = vrot.slane %v5559_v20, %v19027_v51 }
 0xa16   : > { %5439 = vmatpush2.bf16.msra.mxu0 %v11828_v57  ;;  %v19028_v57 = vld [vmem:[#allocation30_spill] sm:$0xff] }
 0xa17   : > { %5440 = vmatprep.subr.bf16.mxu0 %v11833_v21  ;;  %v15587_v6 = vrot.slane %v5559_v20, %v19028_v57  ;;  %v12481_v21 = vld [vmem:[#allocation2] sm:$0xff]  ;;  %v12493_v20 = vld [vmem:[#allocation2 + $0xf0] sm:$0xff] }
 0xa1a   : > { %5441 = vmatpush2.bf16.msra.mxu0 %v11831_v25 }
 0xa1b   : > { %5442 = vmatprep.subr.bf16.mxu0 %v11836_v54 }
 0xa1e   : > { %5443 = vmatpush2.bf16.msra.mxu0 %v11834_v40 }
 0xa1f   : > { %5444 = vmatprep.subr.bf16.mxu0 %v11839_v42 }
 0xa22   : > { %5445 = vmatpush2.bf16.msra.mxu0 %v11837_v11 }
 0xa90   : > { %v11067_v31 = vpop.f32.mrf.mxu1 }
 0xa92   : > { %v4773_v2 = vpop.f32.mrf.mxu1 }
 0xa94   : > { %v11068_v61 = vpop.f32.mrf.mxu1 }
 0xa95   : > { %v5208_v35 = vpack.c.bf16 %v11068_v61, %v11067_v31  ;;  %v12482_v31 = vld [vmem:[#allocation2 + $0xd8] sm:$0xff] }
 0xa96   : > { %v4776_v22 = vpop.f32.mrf.mxu1 }
 0xa97   : > { %v5206_v19 = vpack.c.bf16 %v4776_v22, %v4773_v2  ;;  %v12483_v22 = vld [vmem:[#allocation2 + $0x18] sm:$0xff] }
 0xa98   : > { %v11071_v18 = vpop.f32.mrf.mxu1 }
 0xa9a   : > { %v4789_v58 = vpop.f32.mrf.mxu1 }
 0xa9c   : > { %v11072_v15 = vpop.f32.mrf.mxu1 }
 0xa9d   : > { %v5212_v48 = vpack.c.bf16 %v11072_v15, %v11071_v18 }
 0xa9e   : > { %v4792_v32 = vpop.f32.mrf.mxu1 }
 0xa9f   : > { %v5210_v34 = vpack.c.bf16 %v4792_v32, %v4789_v58 }
 0xaa0   : > { %v11075_v55 = vpop.f32.mrf.mxu1 }
 0xaa2   : > { %v4805_v23 = vpop.f32.mrf.mxu1 }
 0xaa4   : > { %v11076_v43 = vpop.f32.mrf.mxu1 }
 0xaa5   : > { %v5216_v0 = vpack.c.bf16 %v11076_v43, %v11075_v55 }
 0xaa6   : > { %v4808_v62 = vpop.f32.mrf.mxu1 }
 0xaa7   : > { %v5214_v56 = vpack.c.bf16 %v4808_v62, %v4805_v23  ;;  %v12484_v23 = vld [vmem:[#allocation2 + $0x50] sm:$0xff] }
 0xaa8   : > { %v11079_v50 = vpop.f32.mrf.mxu1 }
 0xaaa   : > { %v4821_v5 = vpop.f32.mrf.mxu1 }
 0xaac   : > { %v11080_v16 = vpop.f32.mrf.mxu1 }
 0xaad   : > { %v5220_v1 = vpack.c.bf16 %v11080_v16, %v11079_v50  ;;  %v12485_v50 = vld [vmem:[#allocation2 + $0x68] sm:$0xff] }
 0xaae   : > { %v4824_v39 = vpop.f32.mrf.mxu1 }
 0xaaf   : > { %v5218_v4 = vpack.c.bf16 %v4824_v39, %v4821_v5 }
 0xab0   : > { %v11131_v44 = vpop.f32.mrf.mxu1 }
 0xab2   : > { %v5143_v7 = vpop.f32.mrf.mxu1 }
 0xab4   : > { %v11132_v37 = vpop.f32.mrf.mxu1 }
 0xab5   : > { %v5209_v27 = vpack.c.bf16 %v11132_v37, %v11131_v44 }
 0xab6   : > { %v5146_v53 = vpop.f32.mrf.mxu1 }
 0xab7   : > { %v5207_v63 = vpack.c.bf16 %v5146_v53, %v5143_v7  ;;  %v12486_v7 = vld [vmem:[#allocation2 + $0x30] sm:$0xff] }
 0xab8   : > { %v11135_v12 = vpop.f32.mrf.mxu1 }
 0xab9   : > { %5446 = vmatprep.mubr.bf16.mxu0 %v5207_v63  ;;  %v12487_v63 = vld [vmem:[#allocation2 + $0x48] sm:$0xff] }
 0xaba   : > { %v5159_v46 = vpop.f32.mrf.mxu1  ;;  %5447 = vmatmul.mubr.bf16.vlgmr.msra.gmra.mxu0 %v5206_v19 }
 0xabb   : > { %5456 = vmatprep.mubr.bf16.mxu0 %v5209_v27 }
 0xabc   : > { %v11136_v26 = vpop.f32.mrf.mxu1 }
 0xabd   : > { %v5213_v38 = vpack.c.bf16 %v11136_v26, %v11135_v12 }
 0xabe   : > { %v5162_v8 = vpop.f32.mrf.mxu1 }
 0xabf   : > { %v5211_v45 = vpack.c.bf16 %v5162_v8, %v5159_v46  ;;  %v12488_v8 = vld [vmem:[#allocation2 + $0x80] sm:$0xff] }
 0xac0   : > { %v11139_v29 = vpop.f32.mrf.mxu1 }
 0xac2   : > { %5457 = vmatmul.mubr.bf16.gmra.mxu0 %v5208_v35  ;;  %v5175_v33 = vpop.f32.mrf.mxu1 }
 0xac3   : > { %5466 = vmatprep.mubr.bf16.mxu0 %v5211_v45 }
 0xac4   : > { %v11140_v14 = vpop.f32.mrf.mxu1 }
 0xac5   : > { %v5217_v60 = vpack.c.bf16 %v11140_v14, %v11139_v29  ;;  %v12489_v29 = vld [vmem:[#allocation2 + $0x88] sm:$0xff] }
 0xac6   : > { %v5178_v30 = vpop.f32.mrf.mxu1 }
 0xac7   : > { %v5215_v47 = vpack.c.bf16 %v5178_v30, %v5175_v33 }
 0xac8   : > { %v11143_v41 = vpop.f32.mrf.mxu1 }
 0xaca   : > { %5467 = vmatmul.mubr.bf16.gmra.mxu0 %v5210_v34  ;;  %v5191_v13 = vpop.f32.mrf.mxu1 }
 0xacb   : > { %5476 = vmatprep.mubr.bf16.mxu0 %v5213_v38 }
 0xacc   : > { %v11144_v3 = vpop.f32.mrf.mxu1 }
 0xacd   : > { %v5221_v24 = vpack.c.bf16 %v11144_v3, %v11143_v41 }
 0xace   : > { %v5194_v36 = vpop.f32.mrf.mxu1 }
 0xacf   : > { %v5219_v10 = vpack.c.bf16 %v5194_v36, %v5191_v13  ;;  %v12491_v13 = vld [vmem:[#allocation2 + $0xb8] sm:$0xff] }
 0xad2   : > { %5477 = vmatmul.mubr.bf16.gmra.mxu0 %v5212_v48  ;;  %v12490_v48 = vld [vmem:[#allocation2 + $0xe8] sm:$0xff] }
 0xad3   : > { %5486 = vmatprep.mubr.bf16.mxu0 %v5215_v47 }
 0xada   : > { %5487 = vmatmul.mubr.bf16.gmra.mxu0 %v5214_v56 }
 0xadb   : > { %5496 = vmatprep.mubr.bf16.mxu0 %v5217_v60 }
 0xae2   : > { %5497 = vmatmul.mubr.bf16.gmra.mxu0 %v5216_v0 }
 0xae3   : > { %5506 = vmatprep.mubr.bf16.mxu0 %v5219_v10  ;;  %v12492_v10 = vld [vmem:[#allocation2 + $0x60] sm:$0xff] }
 0xaea   : > { %5507 = vmatmul.mubr.bf16.gmra.mxu0 %v5218_v4 }
 0xaeb   : > { %5516 = vmatprep.mubr.bf16.mxu0 %v5221_v24 }
 0xaf2   : > { %5517 = vmatmul.mubr.bf16.gmra.mxu0 %v5220_v1 }
 0xb7a   : > { %v5448_v49 = vpop.f32.mrf.mxu0 }
 0xb7b   : > { %v5527_v59 = vadd.f32 %v12480_v52, %v5448_v49 }
 0xb7c   : > { %v5450_v25 = vpop.f32.mrf.mxu0 }
 0xb7d   : > { %v5528_v40 = vadd.f32 %v12481_v21, %v5450_v25  ;;  %v15590_v11 = vadd.f32 %v15584_v9, %v5527_v59 }
 0xb7e   : > { %v5452_v54 = vpop.f32.mrf.mxu0 }
 0xb7f   : > { %19029 = vst [vmem:[#allocation32_spill] sm:$0xff] %v15590_v11  ;;  %v15593_v42 = vadd.f32 %v15587_v6, %v5528_v40  ;;  %v5529_v2 = vadd.f32 %v12482_v31, %v5452_v54  ;;  %v12494_v40 = vld [vmem:[#allocation2 + $0x8] sm:$0xff] }
 0xb80   : > { %v5454_v61 = vpop.f32.mrf.mxu0 }
 0xb81   : > { %19030 = vst [vmem:[#allocation34_spill] sm:$0xff] %v15593_v42  ;;  %v5530_v18 = vadd.f32 %v12483_v22, %v5454_v61  ;;  %v5605_v58 = vadd.f32 %v15593_v42, %v15590_v11  ;;  %v15598_v32 = vadd.f32 %v15584_v9, %v5529_v2  ;;  %v12495_v2 = vld [vmem:[#allocation2 + $0x78] sm:$0xff] }
 0xb82   : > { %v5458_v15 = vpop.f32.mrf.mxu0 }
 0xb83   : > { %19031 = vst [vmem:[#allocation33_spill] sm:$0xff] %v15598_v32  ;;  %v15601_v55 = vadd.f32 %v15587_v6, %v5530_v18  ;;  %v5531_v43 = vadd.f32 %v12484_v23, %v5458_v15  ;;  %5606 = vadd.xlane.f32.xlu0 %v5605_v58  ;;  %v12496_v23 = vld [vmem:[#allocation2 + $0x38] sm:$0xff] }
 0xb84   : > { %v5460_v62 = vpop.f32.mrf.mxu0 }
 0xb85   : > { %19032 = vst [vmem:[#allocation38_spill] sm:$0xff] %v15601_v55  ;;  %v5532_v5 = vadd.f32 %v12485_v50, %v5460_v62  ;;  %v5608_v16 = vadd.f32 %v15601_v55, %v15598_v32  ;;  %v15606_v39 = vadd.f32 %v15584_v9, %v5531_v43  ;;  %v12497_v50 = vld [vmem:[#allocation2 + $0x58] sm:$0xff] }
 0xb86   : > { %v5462_v1 = vpop.f32.mrf.mxu0 }
 0xb87   : > { %19033 = vst [vmem:[#allocation37_spill] sm:$0xff] %v15606_v39  ;;  %v15609_v44 = vadd.f32 %v15587_v6, %v5532_v5  ;;  %v5533_v37 = vadd.f32 %v12486_v7, %v5462_v1  ;;  %5609 = vadd.xlane.f32.xlu1 %v5608_v16 }
 0xb88   : > { %v5464_v53 = vpop.f32.mrf.mxu0 }
 0xb89   : > { %19034 = vst [vmem:[#allocation36_spill] sm:$0xff] %v15609_v44  ;;  %v5534_v19 = vadd.f32 %v12487_v63, %v5464_v53  ;;  %v5611_v12 = vadd.f32 %v15609_v44, %v15606_v39  ;;  %v15614_v46 = vadd.f32 %v15584_v9, %v5533_v37  ;;  %v12498_v53 = vld [vmem:[#allocation2 + $0x40] sm:$0xff] }
 0xb8a   : > { %v5468_v27 = vpop.f32.mrf.mxu0 }
 0xb8b   : > { %19035 = vst [vmem:[#allocation35_spill] sm:$0xff] %v15614_v46  ;;  %v15617_v26 = vadd.f32 %v15587_v6, %v5534_v19  ;;  %v5535_v35 = vadd.f32 %v12488_v8, %v5468_v27  ;;  %5612 = vadd.xlane.f32.xlu0 %v5611_v12  ;;  %v12499_v12 = vld [vmem:[#allocation2 + $0xc8] sm:$0xff] }
 0xb8c   : > { %v5470_v45 = vpop.f32.mrf.mxu0 }
 0xb8d   : > { %19036 = vst [vmem:[#allocation40_spill] sm:$0xff] %v15617_v26  ;;  %v5536_v33 = vadd.f32 %v12489_v29, %v5470_v45  ;;  %v5614_v34 = vadd.f32 %v15617_v26, %v15614_v46  ;;  %v15622_v14 = vadd.f32 %v15584_v9, %v5535_v35 }
 0xb8e   : > { %v5472_v38 = vpop.f32.mrf.mxu0 }
 0xb8f   : > { %19037 = vst [vmem:[#allocation39_spill] sm:$0xff] %v15622_v14  ;;  %v15625_v30 = vadd.f32 %v15587_v6, %v5536_v33  ;;  %v5537_v47 = vadd.f32 %v12490_v48, %v5472_v38  ;;  %5615 = vadd.xlane.f32.xlu1 %v5614_v34  ;;  %v12500_v33 = vld [vmem:[#allocation2 + $0xe0] sm:$0xff]  ;;  %v12501_v48 = vld [vmem:[#allocation2 + $0x90] sm:$0xff] }
 0xb90   : > { %v5474_v41 = vpop.f32.mrf.mxu0 }
 0xb91   : > { %19038 = vst [vmem:[#allocation41_spill] sm:$0xff] %v15625_v30  ;;  %v5538_v56 = vadd.f32 %v12491_v13, %v5474_v41  ;;  %v5617_v60 = vadd.f32 %v15625_v30, %v15622_v14  ;;  %v15630_v36 = vadd.f32 %v15584_v9, %v5537_v47 }
 0xb92   : > { %v5478_v3 = vpop.f32.mrf.mxu0 }
 0xb93   : > { %19039 = vst [vmem:[#allocation42_spill] sm:$0xff] %v15630_v36  ;;  %v15633_v0 = vadd.f32 %v15587_v6, %v5538_v56  ;;  %v5539_v4 = vadd.f32 %v12492_v10, %v5478_v3  ;;  %5618 = vadd.xlane.f32.xlu0 %v5617_v60  ;;  %v12502_v3 = vld [vmem:[#allocation2 + $0x70] sm:$0xff] }
 0xb94   : > { %v5480_v24 = vpop.f32.mrf.mxu0 }
 0xb95   : > { %19040 = vst [vmem:[#allocation43_spill] sm:$0xff] %v15633_v0  ;;  %v5540_v49 = vadd.f32 %v12493_v20, %v5480_v24  ;;  %v5620_v52 = vadd.f32 %v15633_v0, %v15630_v36  ;;  %v15638_v25 = vadd.f32 %v15584_v9, %v5539_v4  ;;  %v12503_v24 = vld [vmem:[#allocation2 + $0xc0] sm:$0xff] }
 0xb96   : > { %v5482_v59 = vpop.f32.mrf.mxu0 }
 0xb97   : > { %19041 = vst [vmem:[#allocation44_spill] sm:$0xff] %v15638_v25  ;;  %v15641_v21 = vadd.f32 %v15587_v6, %v5540_v49  ;;  %v5541_v54 = vadd.f32 %v12494_v40, %v5482_v59  ;;  %5621 = vadd.xlane.f32.xlu1 %v5620_v52 }
 0xb98   : > { %v5484_v31 = vpop.f32.mrf.mxu0 }
 0xb99   : > { %19042 = vst [vmem:[#allocation45_spill] sm:$0xff] %v15641_v21  ;;  %v5542_v61 = vadd.f32 %v12495_v2, %v5484_v31  ;;  %v5623_v22 = vadd.f32 %v15641_v21, %v15638_v25  ;;  %v15646_v58 = vadd.f32 %v15584_v9, %v5541_v54  ;;  %v12504_v54 = vld [vmem:[#allocation2 + $0xa8] sm:$0xff] }
 0xb9a   : > { %v5488_v18 = vpop.f32.mrf.mxu0 }
 0xb9b   : > { %19043 = vst [vmem:[#allocation46_spill] sm:$0xff] %v15646_v58  ;;  %v15649_v15 = vadd.f32 %v15587_v6, %v5542_v61  ;;  %v5543_v43 = vadd.f32 %v12496_v23, %v5488_v18  ;;  %5624 = vadd.xlane.f32.xlu0 %v5623_v22  ;;  %v12505_v61 = vld [vmem:[#allocation2 + $0xd0] sm:$0xff] }
 0xb9c   : > { %v5490_v62 = vpop.f32.mrf.mxu0 }
 0xb9d   : > { %19044 = vst [vmem:[#allocation47_spill] sm:$0xff] %v15649_v15  ;;  %v5544_v5 = vadd.f32 %v12497_v50, %v5490_v62  ;;  %v5626_v16 = vadd.f32 %v15649_v15, %v15646_v58  ;;  %v15654_v7 = vadd.f32 %v15584_v9, %v5543_v43  ;;  %v12506_v50 = vld [vmem:[#allocation2 + $0x10] sm:$0xff] }
 0xb9e   : > { %v5492_v1 = vpop.f32.mrf.mxu0 }
 0xb9f   : > { %19045 = vst [vmem:[#allocation48_spill] sm:$0xff] %v15654_v7  ;;  %v15657_v37 = vadd.f32 %v15587_v6, %v5544_v5  ;;  %v5545_v63 = vadd.f32 %v12498_v53, %v5492_v1  ;;  %5627 = vadd.xlane.f32.xlu1 %v5626_v16  ;;  %v12507_v1 = vld [vmem:[#allocation2 + $0x28] sm:$0xff] }
 0xba0   : > { %v5494_v19 = vpop.f32.mrf.mxu0 }
 0xba1   : > { %19046 = vst [vmem:[#allocation49_spill] sm:$0xff] %v15657_v37  ;;  %v5546_v27 = vadd.f32 %v12499_v12, %v5494_v19  ;;  %v5629_v8 = vadd.f32 %v15657_v37, %v15654_v7  ;;  %v15662_v45 = vadd.f32 %v15584_v9, %v5545_v63 }
 0xba2   : > { %v5498_v35 = vpop.f32.mrf.mxu0 }
 0xba3   : > { %19047 = vst [vmem:[#allocation50_spill] sm:$0xff] %v15662_v45  ;;  %v15665_v29 = vadd.f32 %v15587_v6, %v5546_v27  ;;  %v5547_v34 = vadd.f32 %v12500_v33, %v5498_v35  ;;  %5630 = vadd.xlane.f32.xlu0 %v5629_v8  ;;  %v12508_v8 = vld [vmem:[#allocation2 + $0xa0] sm:$0xff] }
 0xba4   : > { %v5500_v38 = vpop.f32.mrf.mxu0 }
 0xba5   : > { %19048 = vst [vmem:[#allocation51_spill] sm:$0xff] %v15665_v29  ;;  %v5548_v47 = vadd.f32 %v12501_v48, %v5500_v38  ;;  %v5632_v41 = vadd.f32 %v15665_v29, %v15662_v45  ;;  %v15670_v56 = vadd.f32 %v15584_v9, %v5547_v34  ;;  %v12509_v34 = vld [vmem:[#allocation2 + $0xf8] sm:$0xff] }
 0xba6   : > { %v5502_v13 = vpop.f32.mrf.mxu0 }
 0xba7   : > { %19049 = vst [vmem:[#allocation52_spill] sm:$0xff] %v15670_v56  ;;  %v15673_v60 = vadd.f32 %v15587_v6, %v5548_v47  ;;  %v5549_v10 = vadd.f32 %v12502_v3, %v5502_v13  ;;  %5633 = vadd.xlane.f32.xlu1 %v5632_v41  ;;  %v12510_v3 = vld [vmem:[#allocation2 + $0x20] sm:$0xff] }
 0xba8   : > { %v5504_v4 = vpop.f32.mrf.mxu0 }
 0xba9   : > { %19050 = vst [vmem:[#allocation53_spill] sm:$0xff] %v15673_v60  ;;  %v5550_v20 = vadd.f32 %v12503_v24, %v5504_v4  ;;  %v5635_v49 = vadd.f32 %v15673_v60, %v15670_v56  ;;  %v15678_v59 = vadd.f32 %v15584_v9, %v5549_v10  ;;  %v12511_v24 = vld [vmem:[#allocation2 + $0x98] sm:$0xff] }
 0xbaa   : > { %v5508_v52 = vpop.f32.mrf.mxu0 }
 0xbab   : > { %19051 = vst [vmem:[#allocation54_spill] sm:$0xff] %v15678_v59  ;;  %v15681_v40 = vadd.f32 %v15587_v6, %v5550_v20  ;;  %v5551_v31 = vadd.f32 %v12504_v54, %v5508_v52  ;;  %5636 = vadd.xlane.f32.xlu0 %v5635_v49 }
 0xbac   : > { %v5510_v2 = vpop.f32.mrf.mxu0 }
 0xbad   : > { %19052 = vst [vmem:[#allocation55_spill] sm:$0xff] %v15681_v40  ;;  %v5552_v22 = vadd.f32 %v12505_v61, %v5510_v2  ;;  %v5638_v18 = vadd.f32 %v15681_v40, %v15678_v59  ;;  %v15686_v43 = vadd.f32 %v15584_v9, %v5551_v31  ;;  %v6019_v2 = vld [vmem:[%s13080_s12 + $0x1c0] sm:$0xff] }
 0xbae   : > { %v5512_v23 = vpop.f32.mrf.mxu0  ;;  %v6023_v61 = vld [vmem:[%s13080_s12 + $0x1e0] sm:$0xff] }
 0xbaf   : > { %19053 = vst [vmem:[#allocation56_spill] sm:$0xff] %v15686_v43  ;;  %v15689_v62 = vadd.f32 %v15587_v6, %v5552_v22  ;;  %v5553_v5 = vadd.f32 %v12506_v50, %v5512_v23  ;;  %5639 = vadd.xlane.f32.xlu1 %v5638_v18  ;;  %v6020_v22 = vld [vmem:[%s13080_s12 + $0x1c8] sm:$0xff]  ;;  %v10742_v18 = vcombine.low %v6019_v2, %v6023_v61  ;;  %v6011_v50 = vld [vmem:[%s13080_s12 + $0x180] sm:$0xff] }
 0xbb0   : > { %v5514_v16 = vpop.f32.mrf.mxu0  ;;  %v6024_v23 = vld [vmem:[%s13080_s12 + $0x1e8] sm:$0xff] }
 0xbb1   : > { %19054 = vst [vmem:[#allocation57_spill] sm:$0xff] %v15689_v62  ;;  %v5554_v53 = vadd.f32 %v12507_v1, %v5514_v16  ;;  %v5641_v63 = vadd.f32 %v15689_v62, %v15686_v43  ;;  %v15694_v12 = vadd.f32 %v15584_v9, %v5553_v5  ;;  %v6015_v5 = vld [vmem:[%s13080_s12 + $0x1a0] sm:$0xff]  ;;  %v10745_v16 = vcombine.high %v6020_v22, %v6024_v23 }
 0xbb2   : > { %v5518_v19 = vpop.f32.mrf.mxu0  ;;  %v10735_v1 = vcombine.high %v6011_v50, %v6015_v5 }
 0xbb3   : > { %19055 = vst [vmem:[#allocation58_spill] sm:$0xff] %v15694_v12  ;;  %v15697_v27 = vadd.f32 %v15587_v6, %v5554_v53  ;;  %v5555_v35 = vadd.f32 %v12508_v8, %v5518_v19  ;;  %5642 = vadd.xlane.f32.xlu0 %v5641_v63  ;;  %v6012_v53 = vld [vmem:[%s13080_s12 + $0x188] sm:$0xff]  ;;  %v6003_v19 = vld [vmem:[%s13080_s12 + $0x140] sm:$0xff]  ;;  %6886 = vmatprep.subr.bf16.mxu0 %v10745_v16 }
 0xbb4   : > { %v5520_v33 = vpop.f32.mrf.mxu0  ;;  %v6016_v63 = vld [vmem:[%s13080_s12 + $0x1a8] sm:$0xff] }
 0xbb5   : > { %19056 = vst [vmem:[#allocation59_spill] sm:$0xff] %v15697_v27  ;;  %v5556_v38 = vadd.f32 %v12509_v34, %v5520_v33  ;;  %v5644_v48 = vadd.f32 %v15697_v27, %v15694_v12  ;;  %v15702_v41 = vadd.f32 %v15584_v9, %v5555_v35  ;;  %v10737_v8 = vcombine.high %v6012_v53, %v6016_v63  ;;  %v6007_v35 = vld [vmem:[%s13080_s12 + $0x160] sm:$0xff]  ;;  %v6004_v33 = vld [vmem:[%s13080_s12 + $0x148] sm:$0xff] }
 0xbb6   : > { %v5522_v47 = vpop.f32.mrf.mxu0  ;;  %v6008_v34 = vld [vmem:[%s13080_s12 + $0x168] sm:$0xff] }
 0xbb7   : > { %19057 = vst [vmem:[#allocation60_spill] sm:$0xff] %v15702_v41  ;;  %v15705_v13 = vadd.f32 %v15587_v6, %v5556_v38  ;;  %v5557_v10 = vadd.f32 %v12510_v3, %v5522_v47  ;;  %5645 = vadd.xlane.f32.xlu1 %v5644_v48  ;;  %v10734_v38 = vcombine.low %v6011_v50, %v6015_v5 }
 0xbb8   : > { %v5524_v4 = vpop.f32.mrf.mxu0  ;;  %v10736_v48 = vcombine.low %v6012_v53, %v6016_v63  ;;  %v10727_v47 = vcombine.high %v6003_v19, %v6007_v35  ;;  %v10729_v3 = vcombine.high %v6004_v33, %v6008_v34  ;;  %v5983_v53 = vld [vmem:[%s13080_s12 + $0xa0] sm:$0xff]  ;;  %v5980_v63 = vld [vmem:[%s13080_s12 + $0x88] sm:$0xff] }
 0xbb9   : > { %19058 = vst [vmem:[#allocation61_spill] sm:$0xff] %v15705_v13  ;;  %v5558_v20 = vadd.f32 %v12511_v24, %v5524_v4  ;;  %v5647_v49 = vadd.f32 %v15705_v13, %v15702_v41  ;;  %v15710_v52 = vadd.f32 %v15584_v9, %v5557_v10  ;;  %v10743_v9 = vcombine.high %v6019_v2, %v6023_v61  ;;  %v5995_v10 = vld [vmem:[%s13080_s12 + $0x100] sm:$0xff]  ;;  %v5996_v24 = vld [vmem:[%s13080_s12 + $0x108] sm:$0xff] }
 0xbba   : > { %v5999_v4 = vld [vmem:[%s13080_s12 + $0x120] sm:$0xff] }
 0xbbb   : > { %19059 = vst [vmem:[#allocation62_spill] sm:$0xff] %v15710_v52  ;;  %v15713_v54 = vadd.f32 %v15587_v6, %v5558_v20  ;;  %5648 = vadd.xlane.f32.xlu0 %v5647_v49  ;;  %v10744_v6 = vcombine.low %v6020_v22, %v6024_v23  ;;  %6773 = vmatprep.subr.bf16.mxu1 %v10743_v9  ;;  %v6000_v20 = vld [vmem:[%s13080_s12 + $0x128] sm:$0xff]  ;;  %v5987_v22 = vld [vmem:[%s13080_s12 + $0xc0] sm:$0xff] }
 0xbbc   : > { %6774 = vmatpush1.bf16.msra.mxu1 %v10742_v18  ;;  %v10726_v49 = vcombine.low %v6003_v19, %v6007_v35  ;;  %v10719_v2 = vcombine.high %v5995_v10, %v5999_v4  ;;  %v10721_v61 = vcombine.high %v5996_v24, %v6000_v20  ;;  %v5991_v18 = vld [vmem:[%s13080_s12 + $0xe0] sm:$0xff]  ;;  %v5988_v9 = vld [vmem:[%s13080_s12 + $0xc8] sm:$0xff]  ;;  %v10718_v50 = vcombine.low %v5995_v10, %v5999_v4 }
 0xbbd   : > { %19060 = vst [vmem:[#allocation63_spill] sm:$0xff] %v15713_v54  ;;  %v5650_v31 = vadd.f32 %v15713_v54, %v15710_v52  ;;  %6887 = vmatpush1.bf16.msra.mxu0 %v10744_v6  ;;  %6775 = vmatprep.subr.bf16.mxu1 %v10735_v1  ;;  %v5992_v23 = vld [vmem:[%s13080_s12 + $0xe8] sm:$0xff]  ;;  %v10720_v5 = vcombine.low %v5996_v24, %v6000_v20  ;;  %v5979_v1 = vld [vmem:[%s13080_s12 + $0x80] sm:$0xff] }
 0xbbe   : > { %6888 = vmatprep.subr.bf16.mxu0 %v10737_v8  ;;  %v10711_v6 = vcombine.high %v5987_v22, %v5991_v18  ;;  %v10713_v16 = vcombine.high %v5988_v9, %v5992_v23  ;;  %v5984_v19 = vld [vmem:[%s13080_s12 + $0xa8] sm:$0xff]  ;;  %v10710_v8 = vcombine.low %v5987_v22, %v5991_v18  ;;  %v10712_v35 = vcombine.low %v5988_v9, %v5992_v23 }
 0xbbf   : > { %5651 = vadd.xlane.f32.xlu1 %v5650_v31  ;;  %v10728_v31 = vcombine.low %v6004_v33, %v6008_v34  ;;  %v10703_v33 = vcombine.high %v5979_v1, %v5983_v53  ;;  %v10705_v34 = vcombine.high %v5980_v63, %v5984_v19  ;;  %v10702_v10 = vcombine.low %v5979_v1, %v5983_v53 }
 0xbc0   : > { %6776 = vmatpush1.bf16.msra.mxu1 %v10734_v38  ;;  %v5971_v38 = vld [vmem:[%s13080_s12 + $0x40] sm:$0xff]  ;;  %v10704_v4 = vcombine.low %v5980_v63, %v5984_v19 }
 0xbc1   : > { %6889 = vmatpush1.bf16.msra.mxu0 %v10736_v48  ;;  %6777 = vmatprep.subr.bf16.mxu1 %v10727_v47  ;;  %v5975_v48 = vld [vmem:[%s13080_s12 + $0x60] sm:$0xff]  ;;  %v5972_v47 = vld [vmem:[%s13080_s12 + $0x48] sm:$0xff] }
 0xbc2   : > { %6890 = vmatprep.subr.bf16.mxu0 %v10729_v3  ;;  %v5976_v3 = vld [vmem:[%s13080_s12 + $0x68] sm:$0xff]  ;;  %v10695_v24 = vcombine.high %v5971_v38, %v5975_v48  ;;  %v10694_v22 = vcombine.low %v5971_v38, %v5975_v48 }
 0xbc3   : > { %v10697_v20 = vcombine.high %v5972_v47, %v5976_v3  ;;  %v10696_v18 = vcombine.low %v5972_v47, %v5976_v3 }
 0xbc4   : > { %6778 = vmatpush1.bf16.msra.mxu1 %v10726_v49  ;;  %v5963_v49 = vld [vmem:[%s13080_s12] sm:$0xff] }
 0xbc5   : > { %6891 = vmatpush1.bf16.msra.mxu0 %v10728_v31  ;;  %6779 = vmatprep.subr.bf16.mxu1 %v10719_v2  ;;  %v5967_v31 = vld [vmem:[%s13080_s12 + $0x20] sm:$0xff]  ;;  %v5964_v2 = vld [vmem:[%s13080_s12 + $0x8] sm:$0xff] }
 0xbc6   : > { %6892 = vmatprep.subr.bf16.mxu0 %v10721_v61  ;;  %v5968_v61 = vld [vmem:[%s13080_s12 + $0x28] sm:$0xff]  ;;  %v10687_v9 = vcombine.high %v5963_v49, %v5967_v31  ;;  %v10686_v1 = vcombine.low %v5963_v49, %v5967_v31 }
 0xbc7   : > { %v10689_v23 = vcombine.high %v5964_v2, %v5968_v61  ;;  %v10688_v53 = vcombine.low %v5964_v2, %v5968_v61 }
 0xbc8   : > { %6780 = vmatpush1.bf16.msra.mxu1 %v10718_v50  ;;  %v6083_v50 = vld [vmem:[%s13080_s12 + $0x3c0] sm:$0xff] }
 0xbc9   : > { %6893 = vmatpush1.bf16.msra.mxu0 %v10720_v5  ;;  %6781 = vmatprep.subr.bf16.mxu1 %v10711_v6  ;;  %v6087_v5 = vld [vmem:[%s13080_s12 + $0x3e0] sm:$0xff]  ;;  %v6084_v6 = vld [vmem:[%s13080_s12 + $0x3c8] sm:$0xff] }
 0xbca   : > { %6894 = vmatprep.subr.bf16.mxu0 %v10713_v16  ;;  %v6088_v16 = vld [vmem:[%s13080_s12 + $0x3e8] sm:$0xff]  ;;  %v10807_v63 = vcombine.high %v6083_v50, %v6087_v5 }
 0xbcb   : > { %v10809_v19 = vcombine.high %v6084_v6, %v6088_v16 }
 0xbcc   : > { %6782 = vmatpush1.bf16.msra.mxu1 %v10710_v8  ;;  %v10806_v8 = vcombine.low %v6083_v50, %v6087_v5 }
 0xbcd   : > { %6895 = vmatpush1.bf16.msra.mxu0 %v10712_v35  ;;  %6783 = vmatprep.subr.bf16.mxu1 %v10703_v33  ;;  %v10808_v35 = vcombine.low %v6084_v6, %v6088_v16 }
 0xbce   : > { %6896 = vmatprep.subr.bf16.mxu0 %v10705_v34 }
 0xbd0   : > { %6784 = vmatpush1.bf16.msra.mxu1 %v10702_v10 }
 0xbd1   : > { %6897 = vmatpush1.bf16.msra.mxu0 %v10704_v4  ;;  %6785 = vmatprep.subr.bf16.mxu1 %v10695_v24 }
 0xbd2   : > { %6898 = vmatprep.subr.bf16.mxu0 %v10697_v20 }
 0xbd4   : > { %6786 = vmatpush1.bf16.msra.mxu1 %v10694_v22 }
 0xbd5   : > { %6899 = vmatpush1.bf16.msra.mxu0 %v10696_v18  ;;  %6787 = vmatprep.subr.bf16.mxu1 %v10687_v9 }
 0xbd6   : > { %6900 = vmatprep.subr.bf16.mxu0 %v10689_v23 }
 0xbd8   : > { %6788 = vmatpush1.bf16.msra.mxu1 %v10686_v1 }
 0xbd9   : > { %6901 = vmatpush1.bf16.msra.mxu0 %v10688_v53  ;;  %6789 = vmatprep.subr.bf16.mxu1 %v10807_v63 }
 0xbda   : > { %6902 = vmatprep.subr.bf16.mxu0 %v10809_v19 }
 0xbdc   : > { %6790 = vmatpush2.bf16.msra.mxu1 %v10806_v8 }
 0xbdd   : > { %6903 = vmatpush2.bf16.msra.mxu0 %v10808_v35 }
 0xc0c   : > { %v5607_v33 = vpop.xlane.xlu0 %5606 }
 0xc0d   : > { %v5653_v34 = vmul.f32 0.00390625, %v5607_v33 }
 0xc0f   : > { %v15754_v38 = vsub.f32 %v15590_v11, %v5653_v34  ;;  %v15757_v48 = vsub.f32 %v15593_v42, %v5653_v34 }
 0xc10   : > { %v5610_v47 = vpop.xlane.xlu1 %5609 }
 0xc11   : > { %v5701_v3 = vmul.f32 %v15754_v38, %v15754_v38  ;;  %v5702_v10 = vmul.f32 %v15757_v48, %v15757_v48  ;;  %v5654_v4 = vmul.f32 0.00390625, %v5610_v47 }
 0xc13   : > { %v15764_v24 = vsub.f32 %v15598_v32, %v5654_v4  ;;  %v15767_v20 = vsub.f32 %v15601_v55, %v5654_v4  ;;  %v5733_v49 = vadd.f32 %v5702_v10, %v5701_v3 }
 0xc14   : > { %v5613_v31 = vpop.xlane.xlu0 %5612 }
 0xc15   : > { %v5703_v2 = vmul.f32 %v15764_v24, %v15764_v24  ;;  %v5704_v61 = vmul.f32 %v15767_v20, %v15767_v20  ;;  %v5655_v22 = vmul.f32 0.00390625, %v5613_v31  ;;  %5734 = vadd.xlane.f32.xlu0 %v5733_v49 }
 0xc17   : > { %v15774_v18 = vsub.f32 %v15606_v39, %v5655_v22  ;;  %v15777_v9 = vsub.f32 %v15609_v44, %v5655_v22  ;;  %v5736_v23 = vadd.f32 %v5704_v61, %v5703_v2 }
 0xc18   : > { %v5616_v50 = vpop.xlane.xlu1 %5615 }
 0xc19   : > { %v5705_v5 = vmul.f32 %v15774_v18, %v15774_v18  ;;  %v5706_v6 = vmul.f32 %v15777_v9, %v15777_v9  ;;  %v5656_v16 = vmul.f32 0.00390625, %v5616_v50  ;;  %5737 = vadd.xlane.f32.xlu1 %v5736_v23  ;;  %v6075_v50 = vld [vmem:[%s13080_s12 + $0x380] sm:$0xff] }
 0xc1b   : > { %v15784_v1 = vsub.f32 %v15614_v46, %v5656_v16  ;;  %v15787_v53 = vsub.f32 %v15617_v26, %v5656_v16  ;;  %v5739_v63 = vadd.f32 %v5706_v6, %v5705_v5  ;;  %v6079_v5 = vld [vmem:[%s13080_s12 + $0x3a0] sm:$0xff]  ;;  %v6076_v6 = vld [vmem:[%s13080_s12 + $0x388] sm:$0xff] }
 0xc1c   : > { %v5619_v19 = vpop.xlane.xlu0 %5618 }
 0xc1d   : > { %v5707_v8 = vmul.f32 %v15784_v1, %v15784_v1  ;;  %v5708_v35 = vmul.f32 %v15787_v53, %v15787_v53  ;;  %v5657_v33 = vmul.f32 0.00390625, %v5619_v19  ;;  %5740 = vadd.xlane.f32.xlu0 %v5739_v63 }
 0xc1f   : > { %v15794_v34 = vsub.f32 %v15622_v14, %v5657_v33  ;;  %v15797_v47 = vsub.f32 %v15625_v30, %v5657_v33  ;;  %v5742_v3 = vadd.f32 %v5708_v35, %v5707_v8  ;;  %v10799_v8 = vcombine.high %v6075_v50, %v6079_v5  ;;  %v6080_v35 = vld [vmem:[%s13080_s12 + $0x3a8] sm:$0xff] }
 0xc20   : > { %v5622_v10 = vpop.xlane.xlu1 %5621  ;;  %v10798_v33 = vcombine.low %v6075_v50, %v6079_v5  ;;  %v6036_v30 = vld [vmem:[%s13080_s12 + $0x248] sm:$0xff] }
 0xc21   : > { %v5709_v4 = vmul.f32 %v15794_v34, %v15794_v34  ;;  %v5710_v49 = vmul.f32 %v15797_v47, %v15797_v47  ;;  %v5658_v31 = vmul.f32 0.00390625, %v5622_v10  ;;  %5743 = vadd.xlane.f32.xlu1 %v5742_v3  ;;  %v10800_v3 = vcombine.low %v6076_v6, %v6080_v35  ;;  %6791 = vmatprep.subr.bf16.mxu1 %v10799_v8 }
 0xc22   : > { %v10801_v10 = vcombine.high %v6076_v6, %v6080_v35  ;;  %6792 = vmatpush2.bf16.msra.mxu1 %v10798_v33 }
 0xc23   : > { %v15804_v2 = vsub.f32 %v15630_v36, %v5658_v31  ;;  %v15807_v61 = vsub.f32 %v15633_v0, %v5658_v31  ;;  %v5745_v22 = vadd.f32 %v5710_v49, %v5709_v4  ;;  %v6071_v0 = vld [vmem:[%s13080_s12 + $0x360] sm:$0xff] }
 0xc24   : > { %v5625_v23 = vpop.xlane.xlu0 %5624  ;;  %6904 = vmatprep.subr.bf16.mxu0 %v10801_v10  ;;  %v6039_v36 = vld [vmem:[%s13080_s12 + $0x260] sm:$0xff] }
 0xc25   : > { %v5711_v16 = vmul.f32 %v15804_v2, %v15804_v2  ;;  %v5712_v63 = vmul.f32 %v15807_v61, %v15807_v61  ;;  %v5659_v19 = vmul.f32 0.00390625, %v5625_v23  ;;  %5746 = vadd.xlane.f32.xlu0 %v5745_v22  ;;  %v6067_v23 = vld [vmem:[%s13080_s12 + $0x340] sm:$0xff]  ;;  %v6068_v22 = vld [vmem:[%s13080_s12 + $0x348] sm:$0xff]  ;;  %6905 = vmatpush2.bf16.msra.mxu0 %v10800_v3 }
 0xc26   : > { %v6060_v3 = vld [vmem:[%s13080_s12 + $0x308] sm:$0xff] }
 0xc27   : > { %v15818_v4 = vsub.f32 %v15638_v25, %v5659_v19  ;;  %v15821_v49 = vsub.f32 %v15641_v21, %v5659_v19  ;;  %v5748_v31 = vadd.f32 %v5712_v63, %v5711_v16  ;;  %v10791_v16 = vcombine.high %v6067_v23, %v6071_v0  ;;  %v6072_v63 = vld [vmem:[%s13080_s12 + $0x368] sm:$0xff] }
 0xc28   : > { %v5628_v17 = vpop.xlane.xlu1 %5627  ;;  %v10790_v19 = vcombine.low %v6067_v23, %v6071_v0  ;;  %v10792_v8 = vcombine.low %v6068_v22, %v6072_v63  ;;  %v10793_v35 = vcombine.high %v6068_v22, %v6072_v63 }
 0xc29   : > { %v5713_v50 = vmul.f32 %v15818_v4, %v15818_v4  ;;  %v5714_v5 = vmul.f32 %v15821_v49, %v15821_v49  ;;  %v5660_v6 = vmul.f32 0.00390625, %v5628_v17  ;;  %5749 = vadd.xlane.f32.xlu1 %v5748_v31  ;;  %6793 = vmatprep.subr.bf16.mxu1 %v10791_v16  ;;  %v6059_v17 = vld [vmem:[%s13080_s12 + $0x300] sm:$0xff] }
 0xc2a   : > { %6906 = vmatprep.subr.bf16.mxu0 %v10793_v35  ;;  %6794 = vmatpush2.bf16.msra.mxu1 %v10790_v19  ;;  %v6063_v31 = vld [vmem:[%s13080_s12 + $0x320] sm:$0xff] }
 0xc2b   : > { %v15832_v33 = vsub.f32 %v15646_v58, %v5660_v6  ;;  %v15835_v10 = vsub.f32 %v15649_v15, %v5660_v6  ;;  %v5751_v21 = vadd.f32 %v5714_v5, %v5713_v50  ;;  %6907 = vmatpush2.bf16.msra.mxu0 %v10792_v8  ;;  %v10783_v50 = vcombine.high %v6059_v17, %v6063_v31  ;;  %v6064_v5 = vld [vmem:[%s13080_s12 + $0x328] sm:$0xff] }
 0xc2c   : > { %v5631_v25 = vpop.xlane.xlu0 %5630  ;;  %v10782_v6 = vcombine.low %v6059_v17, %v6063_v31  ;;  %v10784_v16 = vcombine.low %v6060_v3, %v6064_v5  ;;  %v10785_v63 = vcombine.high %v6060_v3, %v6064_v5  ;;  %v6052_v8 = vld [vmem:[%s13080_s12 + $0x2c8] sm:$0xff] }
 0xc2d   : > { %v5715_v0 = vmul.f32 %v15832_v33, %v15832_v33  ;;  %v5716_v23 = vmul.f32 %v15835_v10, %v15835_v10  ;;  %v5661_v22 = vmul.f32 0.00390625, %v5631_v25  ;;  %5752 = vadd.xlane.f32.xlu0 %v5751_v21  ;;  %6795 = vmatprep.subr.bf16.mxu1 %v10783_v50  ;;  %v6051_v25 = vld [vmem:[%s13080_s12 + $0x2c0] sm:$0xff] }
 0xc2e   : > { %6908 = vmatprep.subr.bf16.mxu0 %v10785_v63  ;;  %6796 = vmatpush2.bf16.msra.mxu1 %v10782_v6  ;;  %v6055_v21 = vld [vmem:[%s13080_s12 + $0x2e0] sm:$0xff] }
 0xc2f   : > { %v15846_v19 = vsub.f32 %v15654_v7, %v5661_v22  ;;  %v15849_v35 = vsub.f32 %v15657_v37, %v5661_v22  ;;  %v5754_v15 = vadd.f32 %v5716_v23, %v5715_v0  ;;  %6909 = vmatpush2.bf16.msra.mxu0 %v10784_v16  ;;  %v10775_v0 = vcombine.high %v6051_v25, %v6055_v21  ;;  %v6056_v23 = vld [vmem:[%s13080_s12 + $0x2e8] sm:$0xff] }
 0xc30   : > { %v5634_v58 = vpop.xlane.xlu1 %5633  ;;  %v10774_v22 = vcombine.low %v6051_v25, %v6055_v21  ;;  %v10776_v50 = vcombine.low %v6052_v8, %v6056_v23  ;;  %v10777_v5 = vcombine.high %v6052_v8, %v6056_v23  ;;  %v6044_v16 = vld [vmem:[%s13080_s12 + $0x288] sm:$0xff] }
 0xc31   : > { %v5717_v17 = vmul.f32 %v15846_v19, %v15846_v19  ;;  %v5718_v31 = vmul.f32 %v15849_v35, %v15849_v35  ;;  %v5662_v3 = vmul.f32 0.00390625, %v5634_v58  ;;  %5755 = vadd.xlane.f32.xlu1 %v5754_v15  ;;  %6797 = vmatprep.subr.bf16.mxu1 %v10775_v0  ;;  %v6043_v58 = vld [vmem:[%s13080_s12 + $0x280] sm:$0xff] }
 0xc32   : > { %6910 = vmatprep.subr.bf16.mxu0 %v10777_v5  ;;  %6798 = vmatpush2.bf16.msra.mxu1 %v10774_v22  ;;  %v6047_v15 = vld [vmem:[%s13080_s12 + $0x2a0] sm:$0xff] }
 0xc33   : > { %v15860_v6 = vsub.f32 %v15662_v45, %v5662_v3  ;;  %v15863_v63 = vsub.f32 %v15665_v29, %v5662_v3  ;;  %v5757_v37 = vadd.f32 %v5718_v31, %v5717_v17  ;;  %6911 = vmatpush2.bf16.msra.mxu0 %v10776_v50  ;;  %v10766_v17 = vcombine.low %v6043_v58, %v6047_v15  ;;  %v6048_v31 = vld [vmem:[%s13080_s12 + $0x2a8] sm:$0xff]  ;;  %v6035_v45 = vld [vmem:[%s13080_s12 + $0x240] sm:$0xff] }
 0xc34   : > { %v5637_v7 = vpop.xlane.xlu0 %5636  ;;  %v10767_v3 = vcombine.high %v6043_v58, %v6047_v15  ;;  %v10768_v0 = vcombine.low %v6044_v16, %v6048_v31  ;;  %v10769_v23 = vcombine.high %v6044_v16, %v6048_v31  ;;  %v10758_v16 = vcombine.low %v6035_v45, %v6039_v36 }
 0xc35   : > { %v5719_v25 = vmul.f32 %v15860_v6, %v15860_v6  ;;  %v5720_v21 = vmul.f32 %v15863_v63, %v15863_v63  ;;  %v5663_v8 = vmul.f32 0.00390625, %v5637_v7  ;;  %5758 = vadd.xlane.f32.xlu0 %v5757_v37  ;;  %v10759_v7 = vcombine.high %v6035_v45, %v6039_v36  ;;  %v6040_v37 = vld [vmem:[%s13080_s12 + $0x268] sm:$0xff] }
 0xc36   : > { %6799 = vmatprep.subr.bf16.mxu1 %v10767_v3  ;;  %6912 = vmatprep.subr.bf16.mxu0 %v10769_v23  ;;  %v6027_v23 = vld [vmem:[%s13080_s12 + $0x200] sm:$0xff]  ;;  %v6032_v36 = vld [vmem:[%s13080_s12 + $0x228] sm:$0xff] }
 0xc37   : > { %v15874_v22 = vsub.f32 %v15670_v56, %v5663_v8  ;;  %v15877_v5 = vsub.f32 %v15673_v60, %v5663_v8  ;;  %v5760_v29 = vadd.f32 %v5720_v21, %v5719_v25  ;;  %6800 = vmatpush2.bf16.msra.mxu1 %v10766_v17  ;;  %6913 = vmatpush2.bf16.msra.mxu0 %v10768_v0  ;;  %v6031_v60 = vld [vmem:[%s13080_s12 + $0x220] sm:$0xff]  ;;  %v6028_v56 = vld [vmem:[%s13080_s12 + $0x208] sm:$0xff] }
 0xc38   : > { %v5640_v14 = vpop.xlane.xlu1 %5639  ;;  %6801 = vmatprep.subr.bf16.mxu1 %v10759_v7  ;;  %v10760_v25 = vcombine.low %v6036_v30, %v6040_v37  ;;  %v10761_v21 = vcombine.high %v6036_v30, %v6040_v37  ;;  %v10750_v17 = vcombine.low %v6027_v23, %v6031_v60  ;;  %v10752_v0 = vcombine.low %v6028_v56, %v6032_v36 }
 0xc39   : > { %v5721_v50 = vmul.f32 %v15874_v22, %v15874_v22  ;;  %v5722_v58 = vmul.f32 %v15877_v5, %v15877_v5  ;;  %v5664_v15 = vmul.f32 0.00390625, %v5640_v14  ;;  %5761 = vadd.xlane.f32.xlu1 %v5760_v29  ;;  %v10751_v14 = vcombine.high %v6027_v23, %v6031_v60 }
 0xc3a   : > { %6914 = vmatprep.subr.bf16.mxu0 %v10761_v21  ;;  %v10753_v7 = vcombine.high %v6028_v56, %v6032_v36  ;;  %v15911_v21 = vld [vmem:[%s13080_s12 + $0x1f0] sm:$0xff] }
 0xc3b   : > { %v15888_v8 = vsub.f32 %v15678_v59, %v5664_v15  ;;  %v15891_v31 = vsub.f32 %v15681_v40, %v5664_v15  ;;  %v5763_v3 = vadd.f32 %v5722_v58, %v5721_v50  ;;  %6802 = vmatpush2.bf16.msra.mxu1 %v10758_v16  ;;  %6915 = vmatpush2.bf16.msra.mxu0 %v10760_v25  ;;  %v15908_v15 = vld [vmem:[%s13080_s12 + $0x1d0] sm:$0xff]  ;;  %v15921_v25 = vld [vmem:[%s13080_s12 + $0x1f8] sm:$0xff] }
 0xc3c   : > { %v5643_v26 = vpop.xlane.xlu0 %5642  ;;  %6803 = vmatprep.subr.bf16.mxu1 %v10751_v14  ;;  %6916 = vmatprep.subr.bf16.mxu0 %v10753_v7  ;;  %v10747_v56 = vcombine.high %v15908_v15, %v15911_v21 }
 0xc3d   : > { %v5723_v30 = vmul.f32 %v15888_v8, %v15888_v8  ;;  %v5724_v45 = vmul.f32 %v15891_v31, %v15891_v31  ;;  %v5665_v29 = vmul.f32 0.00390625, %v5643_v26  ;;  %5764 = vadd.xlane.f32.xlu0 %v5763_v3  ;;  %v15914_v26 = vld [vmem:[%s13080_s12 + $0x1d8] sm:$0xff] }
 0xc3f   : > { %v15902_v37 = vsub.f32 %v15686_v43, %v5665_v29  ;;  %v15905_v50 = vsub.f32 %v15689_v62, %v5665_v29  ;;  %v5766_v58 = vadd.f32 %v5724_v45, %v5723_v30  ;;  %6804 = vmatpush2.bf16.msra.mxu1 %v10750_v17  ;;  %6917 = vmatpush2.bf16.msra.mxu0 %v10752_v0 }
 0xc40   : > { %v5646_v16 = vpop.xlane.xlu1 %5645  ;;  %6999 = vmatprep.subr.bf16.mxu1 %v10747_v56  ;;  %v10749_v30 = vcombine.high %v15914_v26, %v15921_v25 }
 0xc41   : > { %v5725_v3 = vmul.f32 %v15902_v37, %v15902_v37  ;;  %v5726_v23 = vmul.f32 %v15905_v50, %v15905_v50  ;;  %v5666_v14 = vmul.f32 0.00390625, %v5646_v16  ;;  %5767 = vadd.xlane.f32.xlu1 %v5766_v58 }
 0xc42   : > { %7112 = vmatprep.subr.bf16.mxu0 %v10749_v30 }
 0xc43   : > { %v15932_v45 = vsub.f32 %v15694_v12, %v5666_v14  ;;  %v15935_v29 = vsub.f32 %v15697_v27, %v5666_v14  ;;  %v5769_v7 = vadd.f32 %v5726_v23, %v5725_v3 }
 0xc44   : > { %v5649_v60 = vpop.xlane.xlu0 %5648 }
 0xc45   : > { %v5727_v17 = vmul.f32 %v15932_v45, %v15932_v45  ;;  %v5728_v58 = vmul.f32 %v15935_v29, %v15935_v29  ;;  %v5667_v0 = vmul.f32 0.00390625, %v5649_v60  ;;  %5770 = vadd.xlane.f32.xlu0 %v5769_v7 }
 0xc47   : > { %v15942_v16 = vsub.f32 %v15702_v41, %v5667_v0  ;;  %v15945_v56 = vsub.f32 %v15705_v13, %v5667_v0  ;;  %v5772_v36 = vadd.f32 %v5728_v58, %v5727_v17 }
 0xc48   : > { %v5652_v14 = vpop.xlane.xlu1 %5651 }
 0xc49   : > { %v5729_v3 = vmul.f32 %v15942_v16, %v15942_v16  ;;  %v5730_v23 = vmul.f32 %v15945_v56, %v15945_v56  ;;  %v5668_v30 = vmul.f32 0.00390625, %v5652_v14  ;;  %5773 = vadd.xlane.f32.xlu1 %v5772_v36 }
 0xc4b   : > { %v15952_v27 = vsub.f32 %v15710_v52, %v5668_v30  ;;  %v15955_v60 = vsub.f32 %v15713_v54, %v5668_v30  ;;  %v5775_v7 = vadd.f32 %v5730_v23, %v5729_v3 }
 0xc4d   : > { %v5731_v0 = vmul.f32 %v15952_v27, %v15952_v27  ;;  %v5732_v17 = vmul.f32 %v15955_v60, %v15955_v60  ;;  %5776 = vadd.xlane.f32.xlu0 %v5775_v7  ;;  %v5603_v7 = vld [vmem:[%s922_s11] sm:$0x3] }
 0xc4f   : > { %v5778_v58 = vadd.f32 %v5732_v17, %v5731_v0 }
 0xc51   : > { %5779 = vadd.xlane.f32.xlu1 %v5778_v58 }
 0xc9e   : > { %v5735_v13 = vpop.xlane.xlu0 %5734 }
 0xc9f   : > { %v5781_v14 = vmul.f32 0.00390625, %v5735_v13 }
 0xca1   : > { %v5797_v36 = vadd.f32 1e-05, %v5781_v14 }
 0xca2   : > { %v5738_v41 = vpop.xlane.xlu1 %5737 }
 0xca3   : > { %12192 = vrsqrt.f32 %v5797_v36  ;;  %v5782_v52 = vmul.f32 0.00390625, %v5738_v41  ;;  %v15967_v41 = vrot.slane %v5603_v7, %v19027_v51 }
 0xca5   : > { %v5798_v12 = vadd.f32 1e-05, %v5782_v52 }
 0xca6   : > { %v5741_v30 = vpop.xlane.xlu0 %5740 }
 0xca7   : > { %12194 = vrsqrt.f32 %v5798_v12  ;;  %v5783_v3 = vmul.f32 0.00390625, %v5741_v30  ;;  %v15970_v12 = vrot.slane %v5603_v7, %v19028_v57 }
 0xca9   : > { %v5799_v23 = vadd.f32 1e-05, %v5783_v3 }
 0xcaa   : > { %v5744_v54 = vpop.xlane.xlu1 %5743 }
 0xcab   : > { %12196 = vrsqrt.f32 %v5799_v23  ;;  %v5784_v62 = vmul.f32 0.00390625, %v5744_v54 }
 0xcad   : > { %v5800_v43 = vadd.f32 1e-05, %v5784_v62  ;;  %v5604_v62 = vld [vmem:[%s19063_s24] sm:$0x3] }
 0xcae   : > { %v5747_v13 = vpop.xlane.xlu0 %5746  ;;  %v15981_v3 = vrot.slane %v5604_v62, %v19027_v51 }
 0xcaf   : > { %12198 = vrsqrt.f32 %v5800_v43  ;;  %v5785_v0 = vmul.f32 0.00390625, %v5747_v13 }
 0xcb0   : > { %v12193_v17 = vpop.eup %12192 }
 0xcb1   : > { %v5829_v52 = vmul.f32 %v12193_v17, %v15754_v38  ;;  %v5801_v58 = vadd.f32 1e-05, %v5785_v0  ;;  %v5830_v54 = vmul.f32 %v12193_v17, %v15757_v48  ;;  %v15984_v38 = vrot.slane %v5604_v62, %v19028_v57 }
 0xcb2   : > { %v5750_v14 = vpop.xlane.xlu1 %5749 }
 0xcb3   : > { %12200 = vrsqrt.f32 %v5801_v58  ;;  %v5786_v43 = vmul.f32 0.00390625, %v5750_v14  ;;  %v5873_v30 = vmul.f32 %v15970_v12, %v5830_v54  ;;  %v5872_v23 = vmul.f32 %v15967_v41, %v5829_v52 }
 0xcb4   : > { %v12195_v36 = vpop.eup %12194 }
 0xcb5   : > { %v5831_v7 = vmul.f32 %v12195_v36, %v15764_v24  ;;  %v5802_v48 = vadd.f32 1e-05, %v5786_v43  ;;  %v5832_v13 = vmul.f32 %v12195_v36, %v15767_v20  ;;  %v5916_v62 = vadd.f32 %v15984_v38, %v5873_v30  ;;  %v6013_v24 = vld [vmem:[%s13080_s12 + $0x190] sm:$0xff] }
 0xcb6   : > { %v5753_v0 = vpop.xlane.xlu0 %5752  ;;  %v5915_v52 = vadd.f32 %v15981_v3, %v5872_v23  ;;  %v6017_v36 = vld [vmem:[%s13080_s12 + $0x1b0] sm:$0xff] }
 0xcb7   : > { %12202 = vrsqrt.f32 %v5802_v48  ;;  %v5787_v17 = vmul.f32 0.00390625, %v5753_v0  ;;  %v5875_v58 = vmul.f32 %v15970_v12, %v5832_v13  ;;  %v5874_v54 = vmul.f32 %v15967_v41, %v5831_v7  ;;  %v6014_v48 = vld [vmem:[%s13080_s12 + $0x198] sm:$0xff] }
 0xcb8   : > { %v12197_v14 = vpop.eup %12196  ;;  %v6018_v0 = vld [vmem:[%s13080_s12 + $0x1b8] sm:$0xff]  ;;  %v10739_v44 = vcombine.high %v6013_v24, %v6017_v36 }
 0xcb9   : > { %v5803_v40 = vadd.f32 1e-05, %v5787_v17  ;;  %v5918_v43 = vadd.f32 %v15984_v38, %v5875_v58  ;;  %v5917_v20 = vadd.f32 %v15981_v3, %v5874_v54  ;;  %v5834_v13 = vmul.f32 %v12197_v14, %v15777_v9  ;;  %v16006_v17 = vld [vmem:[%s13080_s12 + $0x150] sm:$0xff] }
 0xcba   : > { %v5756_v59 = vpop.xlane.xlu1 %5755  ;;  %v5833_v7 = vmul.f32 %v12197_v14, %v15774_v18  ;;  %v16009_v58 = vld [vmem:[%s13080_s12 + $0x170] sm:$0xff]  ;;  %v10741_v39 = vcombine.high %v6014_v48, %v6018_v0  ;;  %v16018_v14 = vld [vmem:[%s13080_s12 + $0x158] sm:$0xff] }
 0xcbb   : > { %12204 = vrsqrt.f32 %v5803_v40  ;;  %v5788_v30 = vmul.f32 0.00390625, %v5756_v59  ;;  %v16001_v23 = vpack.c.bf16 %v5918_v43, %v5916_v62  ;;  %v16003_v46 = vpack.c.bf16 %v5917_v20, %v5915_v52  ;;  %v6010_v62 = vld [vmem:[%s13080_s12 + $0x178] sm:$0xff] }
 0xcbc   : > { %v12199_v54 = vpop.eup %12198  ;;  %v5877_v9 = vmul.f32 %v15970_v12, %v5834_v13  ;;  %v5876_v55 = vmul.f32 %v15967_v41, %v5833_v7  ;;  %v10738_v43 = vcombine.low %v6013_v24, %v6017_v36  ;;  %v10740_v20 = vcombine.low %v6014_v48, %v6018_v0  ;;  %v16034_v36 = vld [vmem:[%s13080_s12 + $0x110] sm:$0xff] }
 0xcbd   : > { %v5804_v18 = vadd.f32 1e-05, %v5788_v30  ;;  %6805 = vmatprep.mubr.bf16.mxu1 %v16001_v23  ;;  %6918 = vmatprep.mubr.bf16.mxu0 %v16001_v23  ;;  %v5836_v59 = vmul.f32 %v12199_v54, %v15787_v53  ;;  %v5835_v40 = vmul.f32 %v12199_v54, %v15784_v1  ;;  %v10731_v13 = vcombine.high %v16006_v17, %v16009_v58  ;;  %v16037_v48 = vld [vmem:[%s13080_s12 + $0x130] sm:$0xff] }
 0xcbe   : > { %v5759_v52 = vpop.xlane.xlu0 %5758  ;;  %6806 = vmatmul.mubr.bf16.vlgmr.msra.gmra.mxu1 %v16003_v46  ;;  %6919 = vmatmul.mubr.bf16.vlgmr.msra.gmra.mxu0 %v16003_v46  ;;  %v19064_v53 = vcombine.low %v15908_v15, %v15911_v21  ;;  %v19065_v1 = vcombine.low %v15914_v26, %v15921_v25  ;;  %v5920_v15 = vadd.f32 %v15984_v38, %v5877_v9 }
 0xcbf   : > { %12206 = vrsqrt.f32 %v5804_v18  ;;  %v5789_v7 = vmul.f32 0.00390625, %v5759_v52  ;;  %v5879_v30 = vmul.f32 %v15970_v12, %v5836_v59  ;;  %v5878_v24 = vmul.f32 %v15967_v41, %v5835_v40  ;;  %v16045_v59 = vld [vmem:[%s13080_s12 + $0x118] sm:$0xff] }
 0xcc0   : > { %7000 = vmatpush1.bf16.msra.mxu1 %v19064_v53  ;;  %7113 = vmatpush1.bf16.msra.mxu0 %v19065_v1  ;;  %v12201_v0 = vpop.eup %12200  ;;  %v5919_v21 = vadd.f32 %v15981_v3, %v5876_v55  ;;  %v10733_v54 = vcombine.high %v16018_v14, %v6010_v62  ;;  %v6002_v40 = vld [vmem:[%s13080_s12 + $0x138] sm:$0xff]  ;;  %v10732_v55 = vcombine.low %v16018_v14, %v6010_v62 }
 0xcc1   : > { %7001 = vmatprep.subr.bf16.mxu1 %v10739_v44  ;;  %7114 = vmatprep.subr.bf16.mxu0 %v10741_v39  ;;  %v5805_v26 = vadd.f32 1e-05, %v5789_v7  ;;  %v5922_v25 = vadd.f32 %v15984_v38, %v5879_v30  ;;  %v5921_v18 = vadd.f32 %v15981_v3, %v5878_v24  ;;  %v5838_v52 = vmul.f32 %v12201_v0, %v15797_v47  ;;  %v16060_v30 = vld [vmem:[%s13080_s12 + $0xd0] sm:$0xff] }
 0xcc2   : > { %v5762_v44 = vpop.xlane.xlu1 %5761  ;;  %v10730_v39 = vcombine.low %v16006_v17, %v16009_v58  ;;  %v10723_v9 = vcombine.high %v16034_v36, %v16037_v48  ;;  %v5837_v7 = vmul.f32 %v12201_v0, %v15794_v34  ;;  %v16063_v17 = vld [vmem:[%s13080_s12 + $0xf0] sm:$0xff]  ;;  %v10725_v14 = vcombine.high %v16045_v59, %v6002_v40  ;;  %v16073_v0 = vld [vmem:[%s13080_s12 + $0xd8] sm:$0xff] }
 0xcc3   : > { %12208 = vrsqrt.f32 %v5805_v26  ;;  %v5790_v53 = vmul.f32 0.00390625, %v5762_v44  ;;  %v16055_v1 = vpack.c.bf16 %v5922_v25, %v5920_v15  ;;  %v16057_v47 = vpack.c.bf16 %v5921_v18, %v5919_v21  ;;  %v16086_v18 = vld [vmem:[%s13080_s12 + $0x90] sm:$0xff] }
 0xcc4   : > { %7002 = vmatpush1.bf16.msra.mxu1 %v10738_v43  ;;  %7115 = vmatpush1.bf16.msra.mxu0 %v10740_v20  ;;  %v12203_v58 = vpop.eup %12202  ;;  %v5881_v34 = vmul.f32 %v15970_v12, %v5838_v52  ;;  %v5880_v62 = vmul.f32 %v15967_v41, %v5837_v7  ;;  %v10722_v21 = vcombine.low %v16034_v36, %v16037_v48  ;;  %v16089_v52 = vld [vmem:[%s13080_s12 + $0xb0] sm:$0xff]  ;;  %v16097_v7 = vld [vmem:[%s13080_s12 + $0x98] sm:$0xff] }
 0xcc5   : > { %7003 = vmatprep.subr.bf16.mxu1 %v10731_v13  ;;  %7116 = vmatprep.subr.bf16.mxu0 %v10733_v54  ;;  %v5806_v43 = vadd.f32 1e-05, %v5790_v53  ;;  %v5840_v20 = vmul.f32 %v12203_v58, %v15807_v61  ;;  %v5839_v24 = vmul.f32 %v12203_v58, %v15804_v2  ;;  %v5994_v13 = vld [vmem:[%s13080_s12 + $0xf8] sm:$0xff]  ;;  %v10724_v54 = vcombine.low %v16045_v59, %v6002_v40 }
 0xcc6   : > { %6815 = vmatprep.mubr.bf16.mxu1 %v16055_v1  ;;  %6928 = vmatprep.mubr.bf16.mxu0 %v16055_v1  ;;  %v5765_v15 = vpop.xlane.xlu0 %5764  ;;  %v10715_v61 = vcombine.high %v16060_v30, %v16063_v17  ;;  %v5924_v48 = vadd.f32 %v15984_v38, %v5881_v34  ;;  %v5923_v59 = vadd.f32 %v15981_v3, %v5880_v62  ;;  %v5986_v53 = vld [vmem:[%s13080_s12 + $0xb8] sm:$0xff] }
 0xcc7   : > { %6816 = vmatmul.mubr.bf16.gmra.mxu1 %v16057_v47  ;;  %6929 = vmatmul.mubr.bf16.gmra.mxu0 %v16057_v47  ;;  %12210 = vrsqrt.f32 %v5806_v43  ;;  %v5791_v26 = vmul.f32 0.00390625, %v5765_v15  ;;  %v5883_v2 = vmul.f32 %v15970_v12, %v5840_v20  ;;  %v5882_v25 = vmul.f32 %v15967_v41, %v5839_v24  ;;  %v16112_v15 = vld [vmem:[%s13080_s12 + $0x50] sm:$0xff] }
 0xcc8   : > { %7004 = vmatpush1.bf16.msra.mxu1 %v10730_v39  ;;  %7117 = vmatpush1.bf16.msra.mxu0 %v10732_v55  ;;  %v12205_v36 = vpop.eup %12204  ;;  %v10717_v40 = vcombine.high %v16073_v0, %v5994_v13  ;;  %v10716_v34 = vcombine.low %v16073_v0, %v5994_v13  ;;  %v10707_v62 = vcombine.high %v16086_v18, %v16089_v52 }
 0xcc9   : > { %7005 = vmatprep.subr.bf16.mxu1 %v10723_v9  ;;  %7118 = vmatprep.subr.bf16.mxu0 %v10725_v14  ;;  %v5807_v44 = vadd.f32 1e-05, %v5791_v26  ;;  %v5926_v39 = vadd.f32 %v15984_v38, %v5883_v2  ;;  %v5925_v55 = vadd.f32 %v15981_v3, %v5882_v25  ;;  %v5842_v58 = vmul.f32 %v12205_v36, %v15821_v49  ;;  %v16125_v2 = vld [vmem:[%s13080_s12 + $0x58] sm:$0xff] }
 0xcca   : > { %v5768_v9 = vpop.xlane.xlu1 %5767  ;;  %v10714_v14 = vcombine.low %v16060_v30, %v16063_v17  ;;  %v5841_v43 = vmul.f32 %v12205_v36, %v15818_v4  ;;  %v16115_v30 = vld [vmem:[%s13080_s12 + $0x70] sm:$0xff]  ;;  %v10709_v0 = vcombine.high %v16097_v7, %v5986_v53  ;;  %v10706_v36 = vcombine.low %v16086_v18, %v16089_v52 }
 0xccb   : > { %12212 = vrsqrt.f32 %v5807_v44  ;;  %v5792_v20 = vmul.f32 0.00390625, %v5768_v9  ;;  %v16107_v24 = vpack.c.bf16 %v5926_v39, %v5924_v48  ;;  %v16109_v49 = vpack.c.bf16 %v5925_v55, %v5923_v59  ;;  %v16138_v44 = vld [vmem:[%s13080_s12 + $0x10] sm:$0xff] }
 0xccc   : > { %7006 = vmatpush1.bf16.msra.mxu1 %v10722_v21  ;;  %7119 = vmatpush1.bf16.msra.mxu0 %v10724_v54  ;;  %v12207_v17 = vpop.eup %12206  ;;  %v5885_v4 = vmul.f32 %v15970_v12, %v5842_v58  ;;  %v5884_v13 = vmul.f32 %v15967_v41, %v5841_v43  ;;  %v10708_v48 = vcombine.low %v16097_v7, %v5986_v53  ;;  %v16141_v39 = vld [vmem:[%s13080_s12 + $0x30] sm:$0xff] }
 0xccd   : > { %7007 = vmatprep.subr.bf16.mxu1 %v10715_v61  ;;  %7120 = vmatprep.subr.bf16.mxu0 %v10717_v40  ;;  %v5808_v21 = vadd.f32 1e-05, %v5792_v20  ;;  %v5844_v54 = vmul.f32 %v12207_v17, %v15835_v10  ;;  %v5843_v26 = vmul.f32 %v12207_v17, %v15832_v33  ;;  %v5978_v61 = vld [vmem:[%s13080_s12 + $0x78] sm:$0xff]  ;;  %v10699_v10 = vcombine.high %v16112_v15, %v16115_v30 }
 0xcce   : > { %6825 = vmatprep.mubr.bf16.mxu1 %v16107_v24  ;;  %6938 = vmatprep.mubr.bf16.mxu0 %v16107_v24  ;;  %v5771_v25 = vpop.xlane.xlu0 %5770  ;;  %v5928_v52 = vadd.f32 %v15984_v38, %v5885_v4  ;;  %v5927_v55 = vadd.f32 %v15981_v3, %v5884_v13  ;;  %v10701_v7 = vcombine.high %v16125_v2, %v5978_v61 }
 0xccf   : > { %6826 = vmatmul.mubr.bf16.gmra.mxu1 %v16109_v49  ;;  %6939 = vmatmul.mubr.bf16.gmra.mxu0 %v16109_v49  ;;  %12214 = vrsqrt.f32 %v5808_v21  ;;  %v5793_v59 = vmul.f32 0.00390625, %v5771_v25  ;;  %v5887_v33 = vmul.f32 %v15970_v12, %v5844_v54  ;;  %v5886_v40 = vmul.f32 %v15967_v41, %v5843_v26  ;;  %v16164_v54 = vld [vmem:[%s13080_s12 + $0x3d0] sm:$0xff] }
 0xcd0   : > { %7008 = vmatpush1.bf16.msra.mxu1 %v10714_v14  ;;  %7121 = vmatpush1.bf16.msra.mxu0 %v10716_v34  ;;  %v12209_v18 = vpop.eup %12208  ;;  %v16149_v14 = vld [vmem:[%s13080_s12 + $0x18] sm:$0xff]  ;;  %v10698_v20 = vcombine.low %v16112_v15, %v16115_v30  ;;  %v10700_v17 = vcombine.low %v16125_v2, %v5978_v61  ;;  %v16167_v15 = vld [vmem:[%s13080_s12 + $0x3f0] sm:$0xff] }
 0xcd1   : > { %7009 = vmatprep.subr.bf16.mxu1 %v10707_v62  ;;  %7122 = vmatprep.subr.bf16.mxu0 %v10709_v0  ;;  %v5809_v53 = vadd.f32 1e-05, %v5793_v59  ;;  %v5930_v58 = vadd.f32 %v15984_v38, %v5887_v33  ;;  %v5929_v9 = vadd.f32 %v15981_v3, %v5886_v40  ;;  %v5970_v34 = vld [vmem:[%s13080_s12 + $0x38] sm:$0xff]  ;;  %v5846_v43 = vmul.f32 %v12209_v18, %v15849_v35 }
 0xcd2   : > { %v5774_v62 = vpop.xlane.xlu1 %5773  ;;  %v10691_v0 = vcombine.high %v16138_v44, %v16141_v39  ;;  %v5845_v4 = vmul.f32 %v12209_v18, %v15846_v19  ;;  %v10693_v26 = vcombine.high %v16149_v14, %v5970_v34  ;;  %v10690_v33 = vcombine.low %v16138_v44, %v16141_v39 }
 0xcd3   : > { %12216 = vrsqrt.f32 %v5809_v53  ;;  %v5794_v13 = vmul.f32 0.00390625, %v5774_v62  ;;  %v16159_v21 = vpack.c.bf16 %v5930_v58, %v5928_v52  ;;  %v16161_v35 = vpack.c.bf16 %v5929_v9, %v5927_v55  ;;  %v16188_v55 = vld [vmem:[%s13080_s12 + $0x390] sm:$0xff]  ;;  %v6082_v62 = vld [vmem:[%s13080_s12 + $0x3b8] sm:$0xff] }
 0xcd4   : > { %7010 = vmatpush1.bf16.msra.mxu1 %v10706_v36  ;;  %7123 = vmatpush1.bf16.msra.mxu0 %v10708_v48  ;;  %v12211_v30 = vpop.eup %12210  ;;  %v5889_v19 = vmul.f32 %v15970_v12, %v5846_v43  ;;  %v5888_v2 = vmul.f32 %v15967_v41, %v5845_v4  ;;  %v6086_v48 = vld [vmem:[%s13080_s12 + $0x3d8] sm:$0xff]  ;;  %v10692_v40 = vcombine.low %v16149_v14, %v5970_v34 }
 0xcd5   : > { %7011 = vmatprep.subr.bf16.mxu1 %v10699_v10  ;;  %7124 = vmatprep.subr.bf16.mxu0 %v10701_v7  ;;  %v5810_v61 = vadd.f32 1e-05, %v5794_v13  ;;  %v5848_v25 = vmul.f32 %v12211_v30, %v15863_v63  ;;  %v5847_v36 = vmul.f32 %v12211_v30, %v15860_v6  ;;  %v6090_v10 = vld [vmem:[%s13080_s12 + $0x3f8] sm:$0xff]  ;;  %v10811_v18 = vcombine.high %v16164_v54, %v16167_v15  ;;  %v16191_v7 = vld [vmem:[%s13080_s12 + $0x3b0] sm:$0xff] }
 0xcd6   : > { %6835 = vmatprep.mubr.bf16.mxu1 %v16159_v21  ;;  %6948 = vmatprep.mubr.bf16.mxu0 %v16159_v21  ;;  %v5777_v59 = vpop.xlane.xlu0 %5776  ;;  %v5932_v39 = vadd.f32 %v15984_v38, %v5889_v19  ;;  %v5931_v53 = vadd.f32 %v15981_v3, %v5888_v2  ;;  %v10813_v58 = vcombine.high %v6086_v48, %v6090_v10  ;;  %v6078_v43 = vld [vmem:[%s13080_s12 + $0x398] sm:$0xff] }
 0xcd7   : > { %6836 = vmatmul.mubr.bf16.gmra.mxu1 %v16161_v35  ;;  %6949 = vmatmul.mubr.bf16.gmra.mxu0 %v16161_v35  ;;  %12218 = vrsqrt.f32 %v5810_v61  ;;  %v5795_v63 = vmul.f32 0.00390625, %v5777_v59  ;;  %v5891_v6 = vmul.f32 %v15970_v12, %v5848_v25  ;;  %v5890_v52 = vmul.f32 %v15967_v41, %v5847_v36  ;;  %v6069_v25 = vld [vmem:[%s13080_s12 + $0x350] sm:$0xff]  ;;  %v6070_v59 = vld [vmem:[%s13080_s12 + $0x358] sm:$0xff] }
 0xcd8   : > { %7012 = vmatpush1.bf16.msra.mxu1 %v10698_v20  ;;  %7125 = vmatpush1.bf16.msra.mxu0 %v10700_v17  ;;  %v12213_v44 = vpop.eup %12212  ;;  %v10810_v4 = vcombine.low %v16164_v54, %v16167_v15  ;;  %v10803_v13 = vcombine.high %v16188_v55, %v16191_v7  ;;  %v10805_v54 = vcombine.high %v6078_v43, %v6082_v62 }
 0xcd9   : > { %7013 = vmatprep.subr.bf16.mxu1 %v10691_v0  ;;  %7126 = vmatprep.subr.bf16.mxu0 %v10693_v26  ;;  %v5811_v9 = vadd.f32 1e-05, %v5795_v63  ;;  %v5934_v14 = vadd.f32 %v15984_v38, %v5891_v6  ;;  %v5933_v34 = vadd.f32 %v15981_v3, %v5890_v52  ;;  %v5850_v20 = vmul.f32 %v12213_v44, %v15877_v5 }
 0xcda   : > { %v5780_v17 = vpop.xlane.xlu1 %5779  ;;  %v10812_v0 = vcombine.low %v6086_v48, %v6090_v10  ;;  %v5849_v30 = vmul.f32 %v12213_v44, %v15874_v22  ;;  %v6073_v22 = vld [vmem:[%s13080_s12 + $0x370] sm:$0xff] }
 0xcdb   : > { %12220 = vrsqrt.f32 %v5811_v9  ;;  %v5796_v26 = vmul.f32 0.00390625, %v5780_v17  ;;  %v16205_v19 = vpack.c.bf16 %v5934_v14, %v5932_v39  ;;  %v16207_v5 = vpack.c.bf16 %v5933_v34, %v5931_v53  ;;  %v6062_v9 = vld [vmem:[%s13080_s12 + $0x318] sm:$0xff] }
 0xcdc   : > { %7014 = vmatpush1.bf16.msra.mxu1 %v10690_v33  ;;  %7127 = vmatpush1.bf16.msra.mxu0 %v10692_v40  ;;  %v12215_v2 = vpop.eup %12214  ;;  %v5893_v15 = vmul.f32 %v15970_v12, %v5850_v20  ;;  %v5892_v61 = vmul.f32 %v15967_v41, %v5849_v30  ;;  %v6074_v33 = vld [vmem:[%s13080_s12 + $0x378] sm:$0xff]  ;;  %v10802_v40 = vcombine.low %v16188_v55, %v16191_v7  ;;  %v6061_v55 = vld [vmem:[%s13080_s12 + $0x310] sm:$0xff] }
 0xcdd   : > { %7015 = vmatprep.subr.bf16.mxu1 %v10811_v18  ;;  %7128 = vmatprep.subr.bf16.mxu0 %v10813_v58  ;;  %v5812_v36 = vadd.f32 1e-05, %v5796_v26  ;;  %v5852_v48 = vmul.f32 %v12215_v2, %v15891_v31  ;;  %v5851_v10 = vmul.f32 %v12215_v2, %v15888_v8  ;;  %v10804_v18 = vcombine.low %v6078_v43, %v6082_v62  ;;  %v6065_v7 = vld [vmem:[%s13080_s12 + $0x330] sm:$0xff]  ;;  %v6066_v14 = vld [vmem:[%s13080_s12 + $0x338] sm:$0xff] }
 0xcde   : > { %6845 = vmatprep.mubr.bf16.mxu1 %v16205_v19  ;;  %6958 = vmatprep.mubr.bf16.mxu0 %v16205_v19  ;;  %v10795_v63 = vcombine.high %v6069_v25, %v6073_v22  ;;  %v5936_v52 = vadd.f32 %v15984_v38, %v5893_v15  ;;  %v5935_v44 = vadd.f32 %v15981_v3, %v5892_v61  ;;  %v6057_v2 = vld [vmem:[%s13080_s12 + $0x2f0] sm:$0xff]  ;;  %v6054_v61 = vld [vmem:[%s13080_s12 + $0x2d8] sm:$0xff] }
 0xcdf   : > { %6846 = vmatmul.mubr.bf16.gmra.mxu1 %v16207_v5  ;;  %6959 = vmatmul.mubr.bf16.gmra.mxu0 %v16207_v5  ;;  %12222 = vrsqrt.f32 %v5812_v36  ;;  %v5895_v31 = vmul.f32 %v15970_v12, %v5852_v48  ;;  %v5894_v8 = vmul.f32 %v15967_v41, %v5851_v10  ;;  %v10797_v39 = vcombine.high %v6070_v59, %v6074_v33 }
 0xce0   : > { %7016 = vmatpush2.bf16.msra.mxu1 %v10810_v4  ;;  %7129 = vmatpush2.bf16.msra.mxu0 %v10812_v0  ;;  %v12217_v6 = vpop.eup %12216  ;;  %v10794_v62 = vcombine.low %v6069_v25, %v6073_v22  ;;  %v10796_v20 = vcombine.low %v6070_v59, %v6074_v33  ;;  %v10787_v0 = vcombine.high %v6061_v55, %v6065_v7  ;;  %v6058_v25 = vld [vmem:[%s13080_s12 + $0x2f8] sm:$0xff] }
 0xce1   : > { %7017 = vmatprep.subr.bf16.mxu1 %v10803_v13  ;;  %7130 = vmatprep.subr.bf16.mxu0 %v10805_v54  ;;  %v5938_v53 = vadd.f32 %v15984_v38, %v5895_v31  ;;  %v5937_v58 = vadd.f32 %v15981_v3, %v5894_v8  ;;  %v5854_v34 = vmul.f32 %v12217_v6, %v15905_v50 }
 0xce2   : > { %v5853_v43 = vmul.f32 %v12217_v6, %v15902_v37  ;;  %v10789_v30 = vcombine.high %v6062_v9, %v6066_v14  ;;  %v6053_v37 = vld [vmem:[%s13080_s12 + $0x2d0] sm:$0xff]  ;;  %v10786_v22 = vcombine.low %v6061_v55, %v6065_v7  ;;  %v10788_v36 = vcombine.low %v6062_v9, %v6066_v14  ;;  %v6046_v6 = vld [vmem:[%s13080_s12 + $0x298] sm:$0xff] }
 0xce3   : > { %v16235_v17 = vpack.c.bf16 %v5938_v53, %v5936_v52  ;;  %v16237_v4 = vpack.c.bf16 %v5937_v58, %v5935_v44  ;;  %v5897_v50 = vmul.f32 %v15970_v12, %v5854_v34  ;;  %v10779_v10 = vcombine.high %v6053_v37, %v6057_v2  ;;  %v6050_v52 = vld [vmem:[%s13080_s12 + $0x2b8] sm:$0xff] }
 0xce4   : > { %7018 = vmatpush2.bf16.msra.mxu1 %v10802_v40  ;;  %7131 = vmatpush2.bf16.msra.mxu0 %v10804_v18  ;;  %v12219_v13 = vpop.eup %12218  ;;  %v5896_v26 = vmul.f32 %v15967_v41, %v5853_v43  ;;  %v10781_v40 = vcombine.high %v6054_v61, %v6058_v25  ;;  %v6045_v18 = vld [vmem:[%s13080_s12 + $0x290] sm:$0xff]  ;;  %v10778_v55 = vcombine.low %v6053_v37, %v6057_v2 }
 0xce5   : > { %7019 = vmatprep.subr.bf16.mxu1 %v10795_v63  ;;  %7132 = vmatprep.subr.bf16.mxu0 %v10797_v39  ;;  %v5856_v54 = vmul.f32 %v12219_v13, %v15935_v29  ;;  %v5855_v15 = vmul.f32 %v12219_v13, %v15932_v45  ;;  %v5940_v59 = vadd.f32 %v15984_v38, %v5897_v50  ;;  %v6049_v63 = vld [vmem:[%s13080_s12 + $0x2b0] sm:$0xff]  ;;  %v6038_v13 = vld [vmem:[%s13080_s12 + $0x258] sm:$0xff] }
 0xce6   : > { %6855 = vmatprep.mubr.bf16.mxu1 %v16235_v17  ;;  %6968 = vmatprep.mubr.bf16.mxu0 %v16235_v17  ;;  %v5939_v33 = vadd.f32 %v15981_v3, %v5896_v26  ;;  %v10780_v58 = vcombine.low %v6054_v61, %v6058_v25  ;;  %v10771_v14 = vcombine.high %v6045_v18, %v6049_v63  ;;  %v6037_v43 = vld [vmem:[%s13080_s12 + $0x250] sm:$0xff] }
 0xce7   : > { %6856 = vmatmul.mubr.bf16.gmra.mxu1 %v16237_v4  ;;  %6969 = vmatmul.mubr.bf16.gmra.mxu0 %v16237_v4  ;;  %v5899_v48 = vmul.f32 %v15970_v12, %v5856_v54  ;;  %v5898_v29 = vmul.f32 %v15967_v41, %v5855_v15  ;;  %v10773_v34 = vcombine.high %v6046_v6, %v6050_v52 }
 0xce8   : > { %7020 = vmatpush2.bf16.msra.mxu1 %v10794_v62  ;;  %7133 = vmatpush2.bf16.msra.mxu0 %v10796_v20  ;;  %v12221_v45 = vpop.eup %12220  ;;  %v10770_v50 = vcombine.low %v6045_v18, %v6049_v63  ;;  %v10772_v26 = vcombine.low %v6046_v6, %v6050_v52  ;;  %v11845_v18 = vld [vmem:[%s13090_s26 + $0x174] ss:$8 sps:$4 sm:$0xff]   ;;  %v11848_v63 = vld [vmem:[%s13090_s26 + $0x64] ss:$8 sps:$4 sm:$0xff]   ;;  %v11846_v6 = vld [vmem:[%s13090_s26 + $0x60] ss:$8 sps:$4 sm:$0xff]  }
 0xce9   : > { %7021 = vmatprep.subr.bf16.mxu1 %v10787_v0  ;;  %7134 = vmatprep.subr.bf16.mxu0 %v10789_v30  ;;  %v5942_v31 = vadd.f32 %v15984_v38, %v5899_v48  ;;  %v5941_v8 = vadd.f32 %v15981_v3, %v5898_v29  ;;  %v5858_v44 = vmul.f32 %v12221_v45, %v15945_v56  ;;  %v6041_v0 = vld [vmem:[%s13080_s12 + $0x270] sm:$0xff]  ;;  %v6042_v30 = vld [vmem:[%s13080_s12 + $0x278] sm:$0xff]  ;;  %v11849_v52 = vld [vmem:[%s13090_s26 + $0x160] ss:$8 sps:$4 sm:$0xff]  }
 0xcea   : > { %v5857_v39 = vmul.f32 %v12221_v45, %v15942_v16  ;;  %v10763_v37 = vcombine.high %v6037_v43, %v6041_v0  ;;  %v10765_v2 = vcombine.high %v6038_v13, %v6042_v30  ;;  %v6030_v48 = vld [vmem:[%s13080_s12 + $0x218] sm:$0xff]  ;;  %v10764_v45 = vcombine.low %v6038_v13, %v6042_v30 }
 0xceb   : > { %v16263_v7 = vpack.c.bf16 %v5942_v31, %v5940_v59  ;;  %v16265_v53 = vpack.c.bf16 %v5941_v8, %v5939_v33  ;;  %v5901_v56 = vmul.f32 %v15970_v12, %v5858_v44  ;;  %v6034_v29 = vld [vmem:[%s13080_s12 + $0x238] sm:$0xff] }
 0xcec   : > { %7022 = vmatpush2.bf16.msra.mxu1 %v10786_v22  ;;  %7135 = vmatpush2.bf16.msra.mxu0 %v10788_v36  ;;  %v12223_v9 = vpop.eup %12222  ;;  %v5900_v20 = vmul.f32 %v15967_v41, %v5857_v39  ;;  %v6029_v22 = vld [vmem:[%s13080_s12 + $0x210] sm:$0xff]  ;;  %v10756_v33 = vcombine.low %v6030_v48, %v6034_v29 }
 0xced   : > { %7023 = vmatprep.subr.bf16.mxu1 %v10779_v10  ;;  %7136 = vmatprep.subr.bf16.mxu0 %v10781_v40  ;;  %v5860_v16 = vmul.f32 %v12223_v9, %v15955_v60  ;;  %v5859_v62 = vmul.f32 %v12223_v9, %v15952_v27  ;;  %v5944_v54 = vadd.f32 %v15984_v38, %v5901_v56  ;;  %v6033_v36 = vld [vmem:[%s13080_s12 + $0x230] sm:$0xff]  ;;  %v11858_v9 = vld [vmem:[%s13090_s26 + $0x40] ss:$8 sps:$4 sm:$0xff]  }
 0xcee   : > { %6865 = vmatprep.mubr.bf16.mxu1 %v16263_v7  ;;  %6978 = vmatprep.mubr.bf16.mxu0 %v16263_v7  ;;  %v5943_v61 = vadd.f32 %v15981_v3, %v5900_v20  ;;  %v10762_v10 = vcombine.low %v6037_v43, %v6041_v0  ;;  %v10754_v59 = vcombine.low %v6029_v22, %v6033_v36  ;;  %v11842_v40 = vld [vmem:[%s13090_s26 + $0x74] ss:$8 sps:$4 sm:$0xff]   ;;  %v11840_v31 = vld [vmem:[%s13090_s26 + $0x70] ss:$8 sps:$4 sm:$0xff]   ;;  %v11873_v20 = vld [vmem:[%s13090_s26 + $0x120] ss:$8 sps:$4 sm:$0xff]  }
 0xcef   : > { %6866 = vmatmul.mubr.bf16.gmra.mxu1 %v16265_v53  ;;  %6979 = vmatmul.mubr.bf16.gmra.mxu0 %v16265_v53  ;;  %v5903_v60 = vmul.f32 %v15970_v12, %v5860_v16  ;;  %v5902_v27 = vmul.f32 %v15967_v41, %v5859_v62  ;;  %v11843_v8 = vld [vmem:[%s13090_s26 + $0x170] ss:$8 sps:$4 sm:$0xff]   ;;  %v11854_v44 = vld [vmem:[%s13090_s26 + $0x54] ss:$8 sps:$4 sm:$0xff]   ;;  %v11872_v16 = vld [vmem:[%s13090_s26 + $0x24] ss:$8 sps:$4 sm:$0xff]  }
 0xcf0   : > { %7024 = vmatpush2.bf16.msra.mxu1 %v10778_v55  ;;  %7137 = vmatpush2.bf16.msra.mxu0 %v10780_v58  ;;  %v11857_v39 = vld [vmem:[%s13090_s26 + $0x154] ss:$8 sps:$4 sm:$0xff]   ;;  %v11852_v55 = vld [vmem:[%s13090_s26 + $0x50] ss:$8 sps:$4 sm:$0xff]   ;;  %v11860_v58 = vld [vmem:[%s13090_s26 + $0x44] ss:$8 sps:$4 sm:$0xff]  }
 0xcf1   : > { %7025 = vmatprep.subr.bf16.mxu1 %v10771_v14  ;;  %7138 = vmatprep.subr.bf16.mxu0 %v10773_v34  ;;  %v5946_v15 = vadd.f32 %v15984_v38, %v5903_v60  ;;  %v5945_v25 = vadd.f32 %v15981_v3, %v5902_v27  ;;  %v10755_v3 = vcombine.high %v6029_v22, %v6033_v36  ;;  %v11861_v14 = vld [vmem:[%s13090_s26 + $0x140] ss:$8 sps:$4 sm:$0xff]   ;;  %v11866_v34 = vld [vmem:[%s13090_s26 + $0x34] ss:$8 sps:$4 sm:$0xff]   ;;  %v11864_v43 = vld [vmem:[%s13090_s26 + $0x30] ss:$8 sps:$4 sm:$0xff]  }
 0xcf2   : > { %v10757_v38 = vcombine.high %v6030_v48, %v6034_v29  ;;  %v11869_v56 = vld [vmem:[%s13090_s26 + $0x134] ss:$8 sps:$4 sm:$0xff]   ;;  %v11870_v62 = vld [vmem:[%s13090_s26 + $0x20] ss:$8 sps:$4 sm:$0xff]   ;;  %v11876_v30 = vld [vmem:[%s13090_s26 + $0x10] ss:$8 sps:$4 sm:$0xff]  }
 0xcf3   : > { %v16289_v12 = vpack.c.bf16 %v5946_v15, %v5944_v54  ;;  %v16291_v41 = vpack.c.bf16 %v5945_v25, %v5943_v61  ;;  %v11878_v0 = vld [vmem:[%s13090_s26 + $0x14] ss:$8 sps:$4 sm:$0xff]   ;;  %v11885_v60 = vld [vmem:[%s13090_s26 + $0x100] ss:$8 sps:$4 sm:$0xff]   ;;  %v11896_v54 = vld [vmem:[%s13090_s26 + $0xe4] ss:$8 sps:$4 sm:$0xff]  }
 0xcf4   : > { %7026 = vmatpush2.bf16.msra.mxu1 %v10770_v50  ;;  %7139 = vmatpush2.bf16.msra.mxu0 %v10772_v26  ;;  %v11881_v13 = vld [vmem:[%s13090_s26 + $0x114] ss:$8 sps:$4 sm:$0xff]   ;;  %v11884_v50 = vld [vmem:[%s13090_s26 + $0x4] ss:$8 sps:$4 sm:$0xff]   ;;  %v11882_v26 = vld [vmem:[%s13090_s26] ss:$8 sps:$4 sm:$0xff]  }
 0xcf5   : > { %7027 = vmatprep.subr.bf16.mxu1 %v10763_v37  ;;  %7140 = vmatprep.subr.bf16.mxu0 %v10765_v2  ;;  %v11890_v27 = vld [vmem:[%s13090_s26 + $0xf4] ss:$8 sps:$4 sm:$0xff]   ;;  %v11888_v2 = vld [vmem:[%s13090_s26 + $0xf0] ss:$8 sps:$4 sm:$0xff]   ;;  %v11894_v15 = vld [vmem:[%s13090_s26 + $0xe0] ss:$8 sps:$4 sm:$0xff]  }
 0xcf6   : > { %6875 = vmatprep.mubr.bf16.mxu1 %v16289_v12  ;;  %6988 = vmatprep.mubr.bf16.mxu0 %v16289_v12  ;;  %v11893_v37 = vld [vmem:[%s13090_s26 + $0x1f4] ss:$8 sps:$4 sm:$0xff]   ;;  %v11897_v61 = vld [vmem:[%s13090_s26 + $0x1e0] ss:$8 sps:$4 sm:$0xff]   ;;  %v11900_v36 = vld [vmem:[%s13090_s26 + $0xd0] ss:$8 sps:$4 sm:$0xff]  }
 0xcf7   : > { %6876 = vmatmul.mubr.bf16.gmra.mxu1 %v16291_v41  ;;  %6989 = vmatmul.mubr.bf16.gmra.mxu0 %v16291_v41  ;;  %v11902_v25 = vld [vmem:[%s13090_s26 + $0xd4] ss:$8 sps:$4 sm:$0xff]   ;;  %v11911_v48 = vld [vmem:[%s13090_s26 + $0x1c4] ss:$8 sps:$4 sm:$0xff]   ;;  %v11906_v29 = vld [vmem:[%s13090_s26 + $0xc0] ss:$8 sps:$4 sm:$0xff]  }
 0xcf8   : > { %7028 = vmatpush2.bf16.msra.mxu1 %v10762_v10  ;;  %7031 = vmatprep.mubr.bf16.mxu1 %v16001_v23  ;;  %v11905_v22 = vld [vmem:[%s13090_s26 + $0x1d4] ss:$8 sps:$4 sm:$0xff]   ;;  %v11909_v10 = vld [vmem:[%s13090_s26 + $0x1c0] ss:$8 sps:$4 sm:$0xff]  }
 0xcf9   : > { %7141 = vmatpush2.bf16.msra.mxu0 %v10764_v45  ;;  %7144 = vmatprep.mubr.bf16.mxu0 %v16001_v23  ;;  %v11851_v23 = vld [vmem:[%s13090_s26 + $0x164] ss:$8 sps:$4 sm:$0xff]   ;;  %v11912_v45 = vld [vmem:[%s13090_s26 + $0xb0] ss:$8 sps:$4 sm:$0xff]  }
 0xcfa   : > { %7029 = vmatprep.subr.bf16.mxu1 %v10755_v3  ;;  %7142 = vmatprep.subr.bf16.mxu0 %v10757_v38  ;;  %v11915_v3 = vld [vmem:[%s13090_s26 + $0x1b0] ss:$8 sps:$4 sm:$0xff]   ;;  %v11923_v38 = vld [vmem:[%s13090_s26 + $0x1a4] ss:$8 sps:$4 sm:$0xff]  }
 0xcfc   : > { %7030 = vmatpush2.bf16.msra.mxu1 %v10754_v59  ;;  %v11921_v59 = vld [vmem:[%s13090_s26 + $0x1a0] ss:$8 sps:$4 sm:$0xff]  }
 0xcfd   : > { %7143 = vmatpush2.bf16.msra.mxu0 %v10756_v33  ;;  %9209 = vmatprep.subr.bf16.mxu1 %v11842_v40  ;;  %v11926_v33 = vld [vmem:[%s13090_s26 + $0x94] ss:$8 sps:$4 sm:$0xff]  }
 0xcfe   : > { %9322 = vmatprep.subr.bf16.mxu0 %v11845_v18  ;;  %v11929_v40 = vld [vmem:[%s13090_s26 + $0x194] ss:$8 sps:$4 sm:$0xff]   ;;  %v11924_v18 = vld [vmem:[%s13090_s26 + $0x90] ss:$8 sps:$4 sm:$0xff]  }
 0xcff   : > { %7032 = vmatmul.mubr.bf16.vlgmr.msra.gmra.mxu1 %v16003_v46 }
 0xd00   : > { %7145 = vmatmul.mubr.bf16.vlgmr.msra.gmra.mxu0 %v16003_v46  ;;  %7041 = vmatprep.mubr.bf16.mxu1 %v16055_v1  ;;  %v11855_v46 = vld [vmem:[%s13090_s26 + $0x150] ss:$8 sps:$4 sm:$0xff]  }
 0xd01   : > { %7154 = vmatprep.mubr.bf16.mxu0 %v16055_v1  ;;  %9210 = vmatpush1.bf16.msra.mxu1 %v11840_v31  ;;  %v11863_v1 = vld [vmem:[%s13090_s26 + $0x144] ss:$8 sps:$4 sm:$0xff]   ;;  %v11927_v31 = vld [vmem:[%s13090_s26 + $0x190] ss:$8 sps:$4 sm:$0xff]  }
 0xd02   : > { %9323 = vmatpush1.bf16.msra.mxu0 %v11843_v8  ;;  %9211 = vmatprep.subr.bf16.mxu1 %v11848_v63  ;;  %v11935_v8 = vld [vmem:[%s13090_s26 + $0x184] ss:$8 sps:$4 sm:$0xff]   ;;  %v11930_v63 = vld [vmem:[%s13090_s26 + $0x80] ss:$8 sps:$4 sm:$0xff]  }
 0xd03   : > { %9324 = vmatprep.subr.bf16.mxu0 %v11851_v23  ;;  %v11933_v23 = vld [vmem:[%s13090_s26 + $0x180] ss:$8 sps:$4 sm:$0xff]  }
 0xd05   : > { %9212 = vmatpush1.bf16.msra.mxu1 %v11846_v6  ;;  %v11938_v6 = vld [vmem:[%s13090_s26 + $0x274] ss:$8 sps:$4 sm:$0xff]  }
 0xd06   : > { %9325 = vmatpush1.bf16.msra.mxu0 %v11849_v52  ;;  %9213 = vmatprep.subr.bf16.mxu1 %v11854_v44  ;;  %v11941_v52 = vld [vmem:[%s13090_s26 + $0x374] ss:$8 sps:$4 sm:$0xff]   ;;  %v6091_v44 = vld [vmem:[%s13085_s6] sm:$0xff] }
 0xd07   : > { %7042 = vmatmul.mubr.bf16.gmra.mxu1 %v16057_v47  ;;  %9326 = vmatprep.subr.bf16.mxu0 %v11857_v39 }
 0xd08   : > { %7155 = vmatmul.mubr.bf16.gmra.mxu0 %v16057_v47  ;;  %7051 = vmatprep.mubr.bf16.mxu1 %v16107_v24  ;;  %v11867_v47 = vld [vmem:[%s13090_s26 + $0x130] ss:$8 sps:$4 sm:$0xff]  }
 0xd09   : > { %7164 = vmatprep.mubr.bf16.mxu0 %v16107_v24  ;;  %9214 = vmatpush1.bf16.msra.mxu1 %v11852_v55  ;;  %v11875_v24 = vld [vmem:[%s13090_s26 + $0x124] ss:$8 sps:$4 sm:$0xff]   ;;  %v16397_v55 = vrot.slane %v6091_v44, %v19027_v51 }
 0xd0a   : > { %9327 = vmatpush1.bf16.msra.mxu0 %v11855_v46  ;;  %9215 = vmatprep.subr.bf16.mxu1 %v11860_v58  ;;  %v19066_v46 = vsub.s32 2, %v14700_v28 }
 0xd0b   : > { %9328 = vmatprep.subr.bf16.mxu0 %v11863_v1 }
 0xd0c   : > { %v16401_v58 = vrot.slane %v6091_v44, %v19066_v46 }
 0xd0d   : > { %9216 = vmatpush1.bf16.msra.mxu1 %v11858_v9 }
 0xd0e   : > { %9329 = vmatpush1.bf16.msra.mxu0 %v11861_v14  ;;  %9217 = vmatprep.subr.bf16.mxu1 %v11866_v34 }
 0xd0f   : > { %7052 = vmatmul.mubr.bf16.gmra.mxu1 %v16109_v49  ;;  %9330 = vmatprep.subr.bf16.mxu0 %v11869_v56 }
 0xd10   : > { %7165 = vmatmul.mubr.bf16.gmra.mxu0 %v16109_v49  ;;  %7061 = vmatprep.mubr.bf16.mxu1 %v16159_v21  ;;  %v11879_v49 = vld [vmem:[%s13090_s26 + $0x110] ss:$8 sps:$4 sm:$0xff]  }
 0xd11   : > { %7174 = vmatprep.mubr.bf16.mxu0 %v16159_v21  ;;  %9218 = vmatpush1.bf16.msra.mxu1 %v11864_v43  ;;  %v11887_v21 = vld [vmem:[%s13090_s26 + $0x104] ss:$8 sps:$4 sm:$0xff]  }
 0xd12   : > { %9331 = vmatpush1.bf16.msra.mxu0 %v11867_v47  ;;  %9219 = vmatprep.subr.bf16.mxu1 %v11872_v16 }
 0xd13   : > { %9332 = vmatprep.subr.bf16.mxu0 %v11875_v24 }
 0xd15   : > { %9220 = vmatpush1.bf16.msra.mxu1 %v11870_v62 }
 0xd16   : > { %9333 = vmatpush1.bf16.msra.mxu0 %v11873_v20  ;;  %9221 = vmatprep.subr.bf16.mxu1 %v11878_v0 }
 0xd17   : > { %7062 = vmatmul.mubr.bf16.gmra.mxu1 %v16161_v35  ;;  %9334 = vmatprep.subr.bf16.mxu0 %v11881_v13 }
 0xd18   : > { %7175 = vmatmul.mubr.bf16.gmra.mxu0 %v16161_v35  ;;  %7071 = vmatprep.mubr.bf16.mxu1 %v16205_v19  ;;  %v11891_v35 = vld [vmem:[%s13090_s26 + $0x1f0] ss:$8 sps:$4 sm:$0xff]  }
 0xd19   : > { %7184 = vmatprep.mubr.bf16.mxu0 %v16205_v19  ;;  %9222 = vmatpush1.bf16.msra.mxu1 %v11876_v30  ;;  %v11899_v19 = vld [vmem:[%s13090_s26 + $0x1e4] ss:$8 sps:$4 sm:$0xff]  }
 0xd1a   : > { %9335 = vmatpush1.bf16.msra.mxu0 %v11879_v49  ;;  %9223 = vmatprep.subr.bf16.mxu1 %v11884_v50  ;;  %v16422_v50 = vrot.slane %v6091_v44, %v19028_v57 }
 0xd1b   : > { %9336 = vmatprep.subr.bf16.mxu0 %v11887_v21  ;;  %v19067_v21 = vsub.s32 3, %v14700_v28 }
 0xd1d   : > { %9224 = vmatpush1.bf16.msra.mxu1 %v11882_v26  ;;  %v16426_v26 = vrot.slane %v6091_v44, %v19067_v21 }
 0xd1e   : > { %9337 = vmatpush1.bf16.msra.mxu0 %v11885_v60  ;;  %9225 = vmatprep.subr.bf16.mxu1 %v11890_v27 }
 0xd1f   : > { %7072 = vmatmul.mubr.bf16.gmra.mxu1 %v16207_v5  ;;  %9338 = vmatprep.subr.bf16.mxu0 %v11893_v37 }
 0xd20   : > { %7185 = vmatmul.mubr.bf16.gmra.mxu0 %v16207_v5  ;;  %7081 = vmatprep.mubr.bf16.mxu1 %v16235_v17  ;;  %v11903_v5 = vld [vmem:[%s13090_s26 + $0x1d0] ss:$8 sps:$4 sm:$0xff]  }
 0xd21   : > { %7194 = vmatprep.mubr.bf16.mxu0 %v16235_v17  ;;  %9226 = vmatpush2.bf16.msra.mxu1 %v11888_v2  ;;  %v11908_v17 = vld [vmem:[%s13090_s26 + $0xc4] ss:$8 sps:$4 sm:$0xff]  }
 0xd22   : > { %9339 = vmatpush2.bf16.msra.mxu0 %v11891_v35  ;;  %9227 = vmatprep.subr.bf16.mxu1 %v11896_v54 }
 0xd23   : > { %9340 = vmatprep.subr.bf16.mxu0 %v11899_v19 }
 0xd25   : > { %9228 = vmatpush2.bf16.msra.mxu1 %v11894_v15 }
 0xd26   : > { %9341 = vmatpush2.bf16.msra.mxu0 %v11897_v61  ;;  %9229 = vmatprep.subr.bf16.mxu1 %v11902_v25 }
 0xd27   : > { %7082 = vmatmul.mubr.bf16.gmra.mxu1 %v16237_v4  ;;  %9342 = vmatprep.subr.bf16.mxu0 %v11905_v22 }
 0xd28   : > { %7195 = vmatmul.mubr.bf16.gmra.mxu0 %v16237_v4  ;;  %7091 = vmatprep.mubr.bf16.mxu1 %v16263_v7  ;;  %v11914_v4 = vld [vmem:[%s13090_s26 + $0xb4] ss:$8 sps:$4 sm:$0xff]  }
 0xd29   : > { %7204 = vmatprep.mubr.bf16.mxu0 %v16263_v7  ;;  %9230 = vmatpush2.bf16.msra.mxu1 %v11900_v36  ;;  %v11917_v7 = vld [vmem:[%s13090_s26 + $0x1b4] ss:$8 sps:$4 sm:$0xff]  }
 0xd2a   : > { %9343 = vmatpush2.bf16.msra.mxu0 %v11903_v5  ;;  %9231 = vmatprep.subr.bf16.mxu1 %v11908_v17 }
 0xd2b   : > { %9344 = vmatprep.subr.bf16.mxu0 %v11911_v48 }
 0xd2d   : > { %9232 = vmatpush2.bf16.msra.mxu1 %v11906_v29 }
 0xd2e   : > { %9345 = vmatpush2.bf16.msra.mxu0 %v11909_v10  ;;  %9233 = vmatprep.subr.bf16.mxu1 %v11914_v4 }
 0xd2f   : > { %7092 = vmatmul.mubr.bf16.gmra.mxu1 %v16265_v53  ;;  %9346 = vmatprep.subr.bf16.mxu0 %v11917_v7 }
 0xd30   : > { %7205 = vmatmul.mubr.bf16.gmra.mxu0 %v16265_v53  ;;  %7101 = vmatprep.mubr.bf16.mxu1 %v16289_v12  ;;  %v11920_v53 = vld [vmem:[%s13090_s26 + $0xa4] ss:$8 sps:$4 sm:$0xff]  }
 0xd31   : > { %7214 = vmatprep.mubr.bf16.mxu0 %v16289_v12  ;;  %9234 = vmatpush2.bf16.msra.mxu1 %v11912_v45  ;;  %v11918_v12 = vld [vmem:[%s13090_s26 + $0xa0] ss:$8 sps:$4 sm:$0xff]  }
 0xd32   : > { %9347 = vmatpush2.bf16.msra.mxu0 %v11915_v3  ;;  %9235 = vmatprep.subr.bf16.mxu1 %v11920_v53 }
 0xd33   : > { %9348 = vmatprep.subr.bf16.mxu0 %v11923_v38 }
 0xd35   : > { %9236 = vmatpush2.bf16.msra.mxu1 %v11918_v12 }
 0xd36   : > { %9349 = vmatpush2.bf16.msra.mxu0 %v11921_v59  ;;  %9237 = vmatprep.subr.bf16.mxu1 %v11926_v33 }
 0xd37   : > { %7102 = vmatmul.mubr.bf16.gmra.mxu1 %v16291_v41  ;;  %9350 = vmatprep.subr.bf16.mxu0 %v11929_v40 }
 0xd38   : > { %7215 = vmatmul.mubr.bf16.gmra.mxu0 %v16291_v41  ;;  %v11932_v41 = vld [vmem:[%s13090_s26 + $0x84] ss:$8 sps:$4 sm:$0xff]  }
 0xd39   : > { %9238 = vmatpush2.bf16.msra.mxu1 %v11924_v18 }
 0xd3a   : > { %9351 = vmatpush2.bf16.msra.mxu0 %v11927_v31  ;;  %9239 = vmatprep.subr.bf16.mxu1 %v11932_v41 }
 0xd3b   : > { %9352 = vmatprep.subr.bf16.mxu0 %v11935_v8 }
 0xd3d   : > { %9240 = vmatpush2.bf16.msra.mxu1 %v11930_v63 }
 0xd3e   : > { %9353 = vmatpush2.bf16.msra.mxu0 %v11933_v23  ;;  %9435 = vmatprep.subr.bf16.mxu1 %v11938_v6 }
 0xd3f   : > { %9548 = vmatprep.subr.bf16.mxu0 %v11941_v52 }
 0xd7e   : > { %v6807_v39 = vpop.f32.mrf.mxu1  ;;  %v6920_v1 = vpop.f32.mrf.mxu0 }
 0xd7f   : > { %v16404_v14 = vadd.f32 %v6807_v39, %v16397_v55  ;;  %v16407_v34 = vadd.f32 %v6920_v1, %v16401_v58 }
 0xd80   : > { %v6809_v9 = vpop.f32.mrf.mxu1  ;;  %v6922_v56 = vpop.f32.mrf.mxu0 }
 0xd81   : > { %v7225_v47 = vmul.f32 %v16404_v14, %v16404_v14  ;;  %v7227_v16 = vmul.f32 %v16407_v34, %v16407_v34  ;;  %v16433_v19 = vadd.f32 %v6809_v9, %v16422_v50  ;;  %v16436_v15 = vadd.f32 %v6922_v56, %v16426_v26 }
 0xd82   : > { %v6811_v43 = vpop.f32.mrf.mxu1  ;;  %v6924_v24 = vpop.f32.mrf.mxu0 }
 0xd83   : > { %v7353_v20 = vmul.f32 %v7225_v47, %v16404_v14  ;;  %v16415_v0 = vadd.f32 %v6811_v43, %v16397_v55  ;;  %v16418_v13 = vadd.f32 %v6924_v24, %v16401_v58  ;;  %v7355_v30 = vmul.f32 %v7227_v16, %v16407_v34 }
 0xd84   : > { %v6813_v62 = vpop.f32.mrf.mxu1  ;;  %v6926_v49 = vpop.f32.mrf.mxu0  ;;  %v7226_v10 = vmul.f32 %v16433_v19, %v16433_v19  ;;  %v7228_v4 = vmul.f32 %v16436_v15, %v16436_v15 }
 0xd85   : > { %v7481_v27 = vmul.f32 0.044715, %v7353_v20  ;;  %v7233_v37 = vmul.f32 %v16415_v0, %v16415_v0  ;;  %v7235_v2 = vmul.f32 %v16418_v13, %v16418_v13  ;;  %v7483_v35 = vmul.f32 0.044715, %v7355_v30 }
 0xd86   : > { %v16453_v7 = vadd.f32 %v6813_v62, %v16422_v50  ;;  %v16456_v38 = vadd.f32 %v6926_v49, %v16426_v26  ;;  %v7354_v31 = vmul.f32 %v7226_v10, %v16433_v19  ;;  %v7356_v41 = vmul.f32 %v7228_v4, %v16436_v15 }
 0xd87   : > { %v6817_v60 = vpop.f32.mrf.mxu1  ;;  %v6930_v54 = vpop.f32.mrf.mxu0  ;;  %v7609_v25 = vadd.f32 %v7481_v27, %v16404_v14  ;;  %v7361_v22 = vmul.f32 %v7233_v37, %v16415_v0  ;;  %v7363_v36 = vmul.f32 %v7235_v2, %v16418_v13  ;;  %v7611_v17 = vadd.f32 %v7483_v35, %v16407_v34 }
 0xd88   : > { %v16442_v5 = vadd.f32 %v6817_v60, %v16397_v55  ;;  %v16446_v48 = vadd.f32 %v6930_v54, %v16401_v58  ;;  %v7234_v8 = vmul.f32 %v16453_v7, %v16453_v7  ;;  %v7236_v52 = vmul.f32 %v16456_v38, %v16456_v38 }
 0xd89   : > { %v6819_v61 = vpop.f32.mrf.mxu1  ;;  %v6932_v29 = vpop.f32.mrf.mxu0  ;;  %v7737_v3 = vmul.f32 0.7978846, %v7609_v25  ;;  %v7489_v53 = vmul.f32 0.044715, %v7361_v22  ;;  %v7491_v12 = vmul.f32 0.044715, %v7363_v36 }
 0xd8a   : > { %v7241_v59 = vmul.f32 %v16442_v5, %v16442_v5  ;;  %v7739_v33 = vmul.f32 0.7978846, %v7611_v17  ;;  %v7243_v40 = vmul.f32 %v16446_v48, %v16446_v48  ;;  %v16467_v63 = vadd.f32 %v6819_v61, %v16422_v50 }
 0xd8b   : > { %v6821_v45 = vpop.f32.mrf.mxu1  ;;  %v6934_v18 = vpop.f32.mrf.mxu0  ;;  %12224 = vtanh.f32 %v7737_v3  ;;  %v7617_v6 = vadd.f32 %v7489_v53, %v16415_v0  ;;  %v7619_v39 = vadd.f32 %v7491_v12, %v16418_v13  ;;  %v16478_v1 = vadd.f32 %v6932_v29, %v16426_v26 }
 0xd8c   : > { %v16473_v44 = vadd.f32 %v6821_v45, %v16397_v55  ;;  %v7369_v46 = vmul.f32 %v7241_v59, %v16442_v5  ;;  %v16481_v9 = vadd.f32 %v6934_v18, %v16401_v58  ;;  %12226 = vtanh.f32 %v7739_v33 }
 0xd8d   : > { %v6823_v23 = vpop.f32.mrf.mxu1  ;;  %v7371_v56 = vmul.f32 %v7243_v40, %v16446_v48  ;;  %v7482_v43 = vmul.f32 0.044715, %v7354_v31  ;;  %v7484_v47 = vmul.f32 0.044715, %v7356_v41  ;;  %v7362_v16 = vmul.f32 %v7234_v8, %v16453_v7  ;;  %v6936_v62 = vpop.f32.mrf.mxu0 }
 0xd8e   : > { %v7242_v24 = vmul.f32 %v16467_v63, %v16467_v63  ;;  %v7745_v30 = vmul.f32 0.7978846, %v7617_v6  ;;  %v7364_v49 = vmul.f32 %v7236_v52, %v16456_v38  ;;  %v7249_v21 = vmul.f32 %v16473_v44, %v16473_v44 }
 0xd8f   : > { %v6827_v20 = vpop.f32.mrf.mxu1  ;;  %v7747_v60 = vmul.f32 0.7978846, %v7619_v39  ;;  %v7497_v27 = vmul.f32 0.044715, %v7369_v46  ;;  %v7244_v37 = vmul.f32 %v16478_v1, %v16478_v1  ;;  %v7251_v2 = vmul.f32 %v16481_v9, %v16481_v9  ;;  %v6940_v17 = vpop.f32.mrf.mxu0 }
 0xd90   : > { %v7499_v35 = vmul.f32 0.044715, %v7371_v56  ;;  %v16495_v54 = vadd.f32 %v6827_v20, %v16397_v55  ;;  %v7610_v61 = vadd.f32 %v7482_v43, %v16433_v19  ;;  %v7612_v25 = vadd.f32 %v7484_v47, %v16436_v15 }
 0xd91   : > { %v7490_v22 = vmul.f32 0.044715, %v7362_v16  ;;  %v7370_v36 = vmul.f32 %v7242_v24, %v16467_v63  ;;  %12228 = vtanh.f32 %v7745_v30  ;;  %v7492_v29 = vmul.f32 0.044715, %v7364_v49  ;;  %v6829_v8 = vpop.f32.mrf.mxu1  ;;  %v6942_v16 = vpop.f32.mrf.mxu0 }
 0xd92   : > { %v7377_v10 = vmul.f32 %v7249_v21, %v16473_v44  ;;  %v16502_v4 = vadd.f32 %v6823_v23, %v16422_v50  ;;  %12230 = vtanh.f32 %v7747_v60  ;;  %v7625_v45 = vadd.f32 %v7497_v27, %v16442_v5 }
 0xd93   : > { %v7372_v3 = vmul.f32 %v7244_v37, %v16478_v1  ;;  %v7379_v53 = vmul.f32 %v7251_v2, %v16481_v9  ;;  %v7627_v12 = vadd.f32 %v7499_v35, %v16446_v48  ;;  %v7257_v59 = vmul.f32 %v16495_v54, %v16495_v54  ;;  %v6831_v27 = vpop.f32.mrf.mxu1 }
 0xd94   : > { %v16511_v33 = vadd.f32 %v6940_v17, %v16401_v58  ;;  %v7738_v40 = vmul.f32 0.7978846, %v7610_v61  ;;  %v7618_v18 = vadd.f32 %v7490_v22, %v16453_v7  ;;  %v7498_v31 = vmul.f32 0.044715, %v7370_v36  ;;  %v6944_v36 = vpop.f32.mrf.mxu0 }
 0xd95   : > { %v16515_v41 = vadd.f32 %v6936_v62, %v16426_v26  ;;  %v7740_v23 = vmul.f32 0.7978846, %v7612_v25  ;;  %v7620_v6 = vadd.f32 %v7492_v29, %v16456_v38  ;;  %v7505_v52 = vmul.f32 0.044715, %v7377_v10 }
 0xd96   : > { %v7250_v39 = vmul.f32 %v16502_v4, %v16502_v4  ;;  %v7753_v56 = vmul.f32 0.7978846, %v7625_v45  ;;  %v7500_v43 = vmul.f32 0.044715, %v7372_v3  ;;  %v7507_v47 = vmul.f32 0.044715, %v7379_v53 }
 0xd97   : > { %19068 = vst [vmem:[#allocation64_spill] sm:$0xff] %v16515_v41  ;;  %v7755_v24 = vmul.f32 0.7978846, %v7627_v12  ;;  %v7385_v20 = vmul.f32 %v7257_v59, %v16495_v54  ;;  %v7259_v62 = vmul.f32 %v16511_v33, %v16511_v33  ;;  %12232 = vtanh.f32 %v7738_v40  ;;  %v6833_v12 = vpop.f32.mrf.mxu1 }
 0xd98   : > { %v12225_v46 = vpop.eup %12224  ;;  %v7746_v49 = vmul.f32 0.7978846, %v7618_v18  ;;  %v7626_v21 = vadd.f32 %v7498_v31, %v16467_v63  ;;  %v7252_v60 = vmul.f32 %v16515_v41, %v16515_v41  ;;  %12234 = vtanh.f32 %v7740_v23 }
 0xd99   : > { %v12227_v30 = vpop.eup %12226  ;;  %v7748_v37 = vmul.f32 0.7978846, %v7620_v6  ;;  %v7633_v2 = vadd.f32 %v7505_v52, %v16473_v44  ;;  %v7378_v35 = vmul.f32 %v7250_v39, %v16502_v4  ;;  %v7993_v61 = vadd.f32 1.0, %v12225_v46  ;;  %v6946_v46 = vpop.f32.mrf.mxu0 }
 0xd9a   : > { %12236 = vtanh.f32 %v7753_v56  ;;  %v7628_v25 = vadd.f32 %v7500_v43, %v16478_v1  ;;  %v7635_v22 = vadd.f32 %v7507_v47, %v16481_v9  ;;  %v7995_v17 = vadd.f32 1.0, %v12227_v30 }
 0xd9b   : > { %12238 = vtanh.f32 %v7755_v24  ;;  %v7513_v29 = vmul.f32 0.044715, %v7385_v20  ;;  %v7387_v10 = vmul.f32 %v7259_v62, %v16511_v33  ;;  %v7754_v45 = vmul.f32 0.7978846, %v7626_v21 }
 0xd9c   : > { %12240 = vtanh.f32 %v7746_v49  ;;  %v7380_v3 = vmul.f32 %v7252_v60, %v16515_v41  ;;  %v16533_v53 = vadd.f32 %v6829_v8, %v16422_v50  ;;  %v7761_v59 = vmul.f32 0.7978846, %v7633_v2  ;;  %v6837_v49 = vpop.f32.mrf.mxu1 }
 0xd9d   : > { %12242 = vtanh.f32 %v7748_v37  ;;  %v7506_v40 = vmul.f32 0.044715, %v7378_v35  ;;  %v16536_v18 = vadd.f32 %v6831_v27, %v16397_v55  ;;  %v8121_v23 = vmul.f32 0.5, %v7993_v61  ;;  %v6950_v35 = vpop.f32.mrf.mxu0 }
 0xd9e   : > { %19069 = vst [vmem:[#allocation65_spill] sm:$0xff] %v16533_v53  ;;  %v12229_v31 = vpop.eup %12228  ;;  %v7756_v6 = vmul.f32 0.7978846, %v7628_v25  ;;  %v7763_v52 = vmul.f32 0.7978846, %v7635_v22  ;;  %v16539_v39 = vadd.f32 %v6942_v16, %v16426_v26  ;;  %v8123_v43 = vmul.f32 0.5, %v7995_v17 }
 0xd9f   : > { %v12231_v56 = vpop.eup %12230  ;;  %v7641_v8 = vadd.f32 %v7513_v29, %v16495_v54  ;;  %v7515_v47 = vmul.f32 0.044715, %v7387_v10  ;;  %v16543_v24 = vadd.f32 %v6944_v36, %v16401_v58  ;;  %12244 = vtanh.f32 %v7754_v45 }
 0xda0   : > { %19070 = vst [vmem:[#allocation66_spill] sm:$0xff] %v16539_v39  ;;  %v7508_v20 = vmul.f32 0.044715, %v7380_v3  ;;  %v7258_v62 = vmul.f32 %v16533_v53, %v16533_v53  ;;  %v16548_v30 = vadd.f32 %v6833_v12, %v16422_v50  ;;  %v8001_v16 = vadd.f32 1.0, %v12229_v31 }
 0xda1   : > { %12246 = vtanh.f32 %v7761_v59  ;;  %v7634_v21 = vadd.f32 %v7506_v40, %v16502_v4  ;;  %v7265_v60 = vmul.f32 %v16536_v18, %v16536_v18  ;;  %v8003_v27 = vadd.f32 1.0, %v12231_v56 }
 0xda2   : > { %19071 = vst [vmem:[#allocation67_spill] sm:$0xff] %v16548_v30  ;;  %12248 = vtanh.f32 %v7763_v52  ;;  %v7260_v37 = vmul.f32 %v16539_v39, %v16539_v39  ;;  %v16556_v2 = vadd.f32 %v6946_v46, %v16426_v26  ;;  %v7769_v61 = vmul.f32 0.7978846, %v7641_v8  ;;  %v6839_v52 = vpop.f32.mrf.mxu1 }
 0xda3   : > { %v7643_v25 = vadd.f32 %v7515_v47, %v16511_v33  ;;  %v7267_v22 = vmul.f32 %v16543_v24, %v16543_v24  ;;  %v16562_v36 = vadd.f32 %v6837_v49, %v16397_v55  ;;  %v16565_v17 = vmul.f32 %v8121_v23, %v16404_v14 }
 0xda4   : > { %19072 = vst [vmem:[#allocation68_spill] sm:$0xff] %v16556_v2  ;;  %v7636_v29 = vadd.f32 %v7508_v20, %v16515_v41  ;;  %v7386_v10 = vmul.f32 %v7258_v62, %v16533_v53  ;;  %v7266_v45 = vmul.f32 %v16548_v30, %v16548_v30  ;;  %v16571_v3 = vpop.eup %12232  ;;  %v8129_v12 = vmul.f32 0.5, %v8001_v16 }
 0xda5   : > { %v7762_v59 = vmul.f32 0.7978846, %v7634_v21  ;;  %v7393_v40 = vmul.f32 %v7265_v60, %v16536_v18  ;;  %v16575_v31 = vadd.f32 %v6950_v35, %v16401_v58  ;;  %v16577_v46 = vpop.eup %12234  ;;  %v8131_v14 = vmul.f32 0.5, %v8003_v27  ;;  %v6952_v27 = vpop.f32.mrf.mxu0 }
 0xda6   : > { %12250 = vtanh.f32 %v7756_v6  ;;  %v7388_v23 = vmul.f32 %v7260_v37, %v16539_v39  ;;  %v7268_v56 = vmul.f32 %v16556_v2, %v16556_v2  ;;  %v7771_v47 = vmul.f32 0.7978846, %v7643_v25 }
 0xda7   : > { %v12237_v8 = vpop.eup %12236  ;;  %12252 = vtanh.f32 %v7769_v61  ;;  %v7395_v20 = vmul.f32 %v7267_v22, %v16543_v24  ;;  %v7273_v62 = vmul.f32 %v16562_v36, %v16562_v36  ;;  %v16586_v16 = vmul.f32 %v8123_v43, %v16407_v34  ;;  %v6841_v22 = vpop.f32.mrf.mxu1 }
 0xda8   : > { %v12239_v49 = vpop.eup %12238  ;;  %v7764_v21 = vmul.f32 0.7978846, %v7636_v29  ;;  %v7514_v60 = vmul.f32 0.044715, %v7386_v10  ;;  %v7394_v6 = vmul.f32 %v7266_v45, %v16548_v30  ;;  %v16592_v35 = vmul.f32 %v8129_v12, %v16415_v0  ;;  %v6954_v57 = vpop.f32.mrf.mxu0 }
 0xda9   : > { %v16589_v37 = vpop.eup %12240  ;;  %12254 = vtanh.f32 %v7762_v59  ;;  %v7521_v61 = vmul.f32 0.044715, %v7393_v40  ;;  %v7275_v25 = vmul.f32 %v16575_v31, %v16575_v31  ;;  %v16599_v34 = vmul.f32 %v8131_v14, %v16418_v13 }
 0xdaa   : > { %v16596_v32 = vpop.eup %12242  ;;  %v8009_v43 = vadd.f32 1.0, %v12237_v8  ;;  %v7516_v29 = vmul.f32 0.044715, %v7388_v23  ;;  %v7396_v10 = vmul.f32 %v7268_v56, %v16556_v2  ;;  %v8011_v45 = vadd.f32 1.0, %v12239_v49 }
 0xdab   : > { %12256 = vtanh.f32 %v7771_v47  ;;  %v7523_v42 = vmul.f32 0.044715, %v7395_v20  ;;  %v7401_v0 = vmul.f32 %v7273_v62, %v16562_v36  ;;  %v7642_v12 = vadd.f32 %v7514_v60, %v16533_v53 }
 0xdac   : > { %12258 = vtanh.f32 %v7764_v21  ;;  %v7522_v59 = vmul.f32 0.044715, %v7394_v6  ;;  %v16605_v40 = vadd.f32 %v6841_v22, %v16397_v55  ;;  %v16607_v11 = vpop.eup %12244  ;;  %v7649_v13 = vadd.f32 %v7521_v61, %v16536_v18 }
 0xdad   : > { %v7403_v14 = vmul.f32 %v7275_v25, %v16575_v31  ;;  %v16612_v23 = vadd.f32 %v6839_v52, %v16422_v50  ;;  %v16615_v56 = vadd.f32 %v6952_v27, %v16426_v26  ;;  %v8137_v20 = vmul.f32 0.5, %v8009_v43  ;;  %v6843_v25 = vpop.f32.mrf.mxu1 }
 0xdae   : > { %19073 = vst [vmem:[#allocation69_spill] sm:$0xff] %v16605_v40  ;;  %v12247_v8 = vpop.eup %12246  ;;  %v7644_v62 = vadd.f32 %v7516_v29, %v16539_v39  ;;  %v7524_v49 = vmul.f32 0.044715, %v7396_v10  ;;  %v8139_v6 = vmul.f32 0.5, %v8011_v45  ;;  %v7651_v61 = vadd.f32 %v7523_v42, %v16543_v24  ;;  %v6956_v29 = vpop.f32.mrf.mxu0 }
 0xdaf   : > { %19074 = vst [vmem:[#allocation70_spill] sm:$0xff] %v16612_v23  ;;  %19075 = vst [vmem:[#allocation71_spill] sm:$0xff] %v16615_v56  ;;  %v12249_v21 = vpop.eup %12248  ;;  %v7529_v52 = vmul.f32 0.044715, %v7401_v0  ;;  %v7770_v22 = vmul.f32 0.7978846, %v7642_v12  ;;  %v7650_v27 = vadd.f32 %v7522_v59, %v16548_v30  ;;  %v7281_v51 = vmul.f32 %v16605_v40, %v16605_v40  ;;  %v6847_v30 = vpop.f32.mrf.mxu1 }
 0xdb0   : > { %v16627_v43 = vadd.f32 %v6954_v57, %v16401_v58  ;;  %v7777_v10 = vmul.f32 0.7978846, %v7649_v13  ;;  %v7531_v47 = vmul.f32 0.044715, %v7403_v14  ;;  %v7274_v60 = vmul.f32 %v16612_v23, %v16612_v23 }
 0xdb1   : > { %v7276_v42 = vmul.f32 %v16615_v56, %v16615_v56  ;;  %v16634_v45 = vmul.f32 %v8137_v20, %v16442_v5  ;;  %v8017_v0 = vadd.f32 1.0, %v12247_v8  ;;  %v7772_v12 = vmul.f32 0.7978846, %v7644_v62  ;;  %v6960_v20 = vpop.f32.mrf.mxu0 }
 0xdb2   : > { %19076 = vst [vmem:[#allocation72_spill] sm:$0xff] %v16627_v43  ;;  %v7652_v59 = vadd.f32 %v7524_v49, %v16556_v2  ;;  %v16640_v57 = vmul.f32 %v8139_v6, %v16446_v48  ;;  %v8019_v13 = vadd.f32 1.0, %v12249_v21  ;;  %v7779_v14 = vmul.f32 0.7978846, %v7651_v61 }
 0xdb3   : > { %19077 = vst [vmem:[#allocation73_spill] sm:$0xff] %v16634_v45  ;;  %v16637_v28 = vpop.eup %12250  ;;  %v7657_v39 = vadd.f32 %v7529_v52, %v16562_v36  ;;  %12260 = vtanh.f32 %v7770_v22  ;;  %v7778_v41 = vmul.f32 0.7978846, %v7650_v27  ;;  %v7409_v5 = vmul.f32 %v7281_v51, %v16605_v40 }
 0xdb4   : > { %19078 = vst [vmem:[#allocation74_spill] sm:$0xff] %v16640_v57  ;;  %v12253_v53 = vpop.eup %12252  ;;  %v7283_v8 = vmul.f32 %v16627_v43, %v16627_v43  ;;  %12262 = vtanh.f32 %v7777_v10  ;;  %v7659_v62 = vadd.f32 %v7531_v47, %v16575_v31  ;;  %v7402_v48 = vmul.f32 %v7274_v60, %v16612_v23  ;;  %v6849_v10 = vpop.f32.mrf.mxu1 }
 0xdb5   : > { %v7404_v49 = vmul.f32 %v7276_v42, %v16615_v56  ;;  %v8145_v6 = vmul.f32 0.5, %v8017_v0  ;;  %12264 = vtanh.f32 %v7772_v12  ;;  %v7780_v61 = vmul.f32 0.7978846, %v7652_v59 }
 0xdb6   : > { %v16649_v21 = vpop.eup %12254  ;;  %v16652_v52 = vadd.f32 %v6847_v30, %v16397_v55  ;;  %v8025_v51 = vadd.f32 1.0, %v12253_v53  ;;  %12266 = vtanh.f32 %v7779_v14  ;;  %v7785_v22 = vmul.f32 0.7978846, %v7657_v39 }
 0xdb7   : > { %v16655_v27 = vadd.f32 %v6960_v20, %v16401_v58  ;;  %12268 = vtanh.f32 %v7778_v41  ;;  %v7537_v60 = vmul.f32 0.044715, %v7409_v5  ;;  %v7411_v42 = vmul.f32 %v7283_v8, %v16627_v43  ;;  %v6851_v20 = vpop.f32.mrf.mxu1 }
 0xdb8   : > { %v12257_v47 = vpop.eup %12256  ;;  %v16659_v2 = vadd.f32 %v6843_v25, %v16422_v50  ;;  %v7787_v12 = vmul.f32 0.7978846, %v7659_v62  ;;  %v7530_v30 = vmul.f32 0.044715, %v7402_v48  ;;  %v7532_v59 = vmul.f32 0.044715, %v7404_v49 }
 0xdb9   : > { %v16661_v0 = vpop.eup %12258  ;;  %v16664_v53 = vadd.f32 %v6956_v29, %v16426_v26  ;;  %v16667_v39 = vmul.f32 %v8145_v6, %v16473_v44  ;;  %v16669_v14 = vmul.f32 0.5, %v8019_v13  ;;  %12270 = vtanh.f32 %v7780_v61 }
 0xdba   : > { %v7289_v41 = vmul.f32 %v16652_v52, %v16652_v52  ;;  %v16673_v5 = vmul.f32 0.5, %v8025_v51  ;;  %v8027_v25 = vadd.f32 1.0, %v12257_v47  ;;  %12272 = vtanh.f32 %v7785_v22  ;;  %v6962_v51 = vpop.f32.mrf.mxu0 }
 0xdbb   : > { %19079 = vst [vmem:[#allocation75_spill] sm:$0xff] %v16667_v39  ;;  %v7291_v8 = vmul.f32 %v16655_v27, %v16655_v27  ;;  %v7665_v29 = vadd.f32 %v7537_v60, %v16605_v40  ;;  %v7539_v62 = vmul.f32 0.044715, %v7411_v42  ;;  %v7282_v44 = vmul.f32 %v16659_v2, %v16659_v2 }
 0xdbc   : > { %v7994_v13 = vadd.f32 1.0, %v16571_v3  ;;  %12274 = vtanh.f32 %v7787_v12  ;;  %v7658_v48 = vadd.f32 %v7530_v30, %v16612_v23  ;;  %v7660_v49 = vadd.f32 %v7532_v59, %v16615_v56 }
 0xdbd   : > { %v7284_v6 = vmul.f32 %v16664_v53, %v16664_v53  ;;  %v7417_v61 = vmul.f32 %v7289_v41, %v16652_v52  ;;  %v16687_v22 = vadd.f32 %v6851_v20, %v16397_v55  ;;  %v8002_v47 = vadd.f32 1.0, %v16589_v37 }
 0xdbe   : > { %v8122_v60 = vmul.f32 0.5, %v7994_v13  ;;  %v7419_v42 = vmul.f32 %v7291_v8, %v16655_v27  ;;  %v16692_v3 = vadd.f32 %v6849_v10, %v16422_v50  ;;  %v7996_v12 = vadd.f32 1.0, %v16577_v46 }
 0xdbf   : > { %v8004_v30 = vadd.f32 1.0, %v16596_v32  ;;  %v7793_v59 = vmul.f32 0.7978846, %v7665_v29  ;;  %v7667_v56 = vadd.f32 %v7539_v62, %v16627_v43  ;;  %v7410_v41 = vmul.f32 %v7282_v44, %v16659_v2  ;;  %v6964_v29 = vpop.f32.mrf.mxu0 }
 0xdc0   : > { %19080 = vst [vmem:[#allocation76_spill] sm:$0xff] %v16692_v3  ;;  %v8130_v23 = vmul.f32 0.5, %v8002_v47  ;;  %v16698_v20 = vpop.eup %12260  ;;  %v7412_v37 = vmul.f32 %v7284_v6, %v16664_v53  ;;  %v16702_v8 = vadd.f32 %v6962_v51, %v16426_v26  ;;  %v8124_v10 = vmul.f32 0.5, %v7996_v12 }
 0xdc1   : > { %19081 = vst [vmem:[#allocation77_spill] sm:$0xff] %v16698_v20  ;;  %v8132_v13 = vmul.f32 0.5, %v8004_v30  ;;  %v12263_v40 = vpop.eup %12262  ;;  %v7545_v46 = vmul.f32 0.044715, %v7417_v61  ;;  %v7297_v32 = vmul.f32 %v16687_v22, %v16687_v22  ;;  %v8250_v62 = vmul.f32 %v8122_v60, %v16433_v19  ;;  %v11936_v61 = vld [vmem:[%s13090_s26 + $0x270] ss:$8 sps:$4 sm:$0xff]  }
 0xdc2   : > { %19082 = vst [vmem:[#allocation78_spill] sm:$0xff] %v16702_v8  ;;  %v8258_v44 = vmul.f32 %v8130_v23, %v16453_v7  ;;  %v16708_v47 = vpop.eup %12264  ;;  %v7547_v20 = vmul.f32 0.044715, %v7419_v42  ;;  %v7290_v6 = vmul.f32 %v16692_v3, %v16692_v3  ;;  %v8252_v51 = vmul.f32 %v8124_v10, %v16436_v15  ;;  %v11939_v15 = vld [vmem:[%s13090_s26 + $0x370] ss:$8 sps:$4 sm:$0xff]  }
 0xdc3   : > { %19083 = vst [vmem:[#allocation79_spill] sm:$0xff] %v16708_v47  ;;  %v8260_v12 = vmul.f32 %v8132_v13, %v16456_v38  ;;  %v12267_v30 = vpop.eup %12266  ;;  %v8155_v43 = vmul.f32 0.5, %v8027_v25  ;;  %v7786_v57 = vmul.f32 0.7978846, %v7658_v48  ;;  %v7538_v39 = vmul.f32 0.044715, %v7410_v41  ;;  %v6853_v47 = vpop.f32.mrf.mxu1 }
 0xdc4   : > { %v8378_v19 = vpack.c.bf16 %v8258_v44, %v8250_v62  ;;  %v16715_v7 = vpop.eup %12268  ;;  %v8033_v23 = vadd.f32 1.0, %v12263_v40  ;;  %v7788_v60 = vmul.f32 0.7978846, %v7660_v49  ;;  %v7292_v42 = vmul.f32 %v16702_v8, %v16702_v8  ;;  %v6966_v48 = vpop.f32.mrf.mxu0  ;;  %v11944_v41 = vld [vmem:[%s13090_s26 + $0x264] ss:$8 sps:$4 sm:$0xff]  }
 0xdc5   : > { %v8380_v45 = vpack.c.bf16 %v8260_v12, %v8252_v51  ;;  %12276 = vtanh.f32 %v7793_v59  ;;  %v7540_v38 = vmul.f32 0.044715, %v7412_v37  ;;  %v7673_v10 = vadd.f32 %v7545_v46, %v16652_v52  ;;  %v11947_v13 = vld [vmem:[%s13090_s26 + $0x364] ss:$8 sps:$4 sm:$0xff]  }
 0xdc6   : > { %v7425_v25 = vmul.f32 %v7297_v32, %v16687_v22  ;;  %9241 = vmatprep.mubr.bf16.mxu1 %v8378_v19  ;;  %v16724_v40 = vpop.eup %12270  ;;  %v7795_v49 = vmul.f32 0.7978846, %v7667_v56  ;;  %v7675_v62 = vadd.f32 %v7547_v20, %v16655_v27  ;;  %v7418_v44 = vmul.f32 %v7290_v6, %v16692_v3  ;;  %v6970_v12 = vpop.f32.mrf.mxu0 }
 0xdc7   : > { %v16729_v59 = vadd.f32 %v6964_v29, %v16401_v58  ;;  %9354 = vmatprep.mubr.bf16.mxu0 %v8380_v45  ;;  %v19084_v37 = vpack.c.bf16 %v16592_v35, %v16565_v17  ;;  %v12273_v46 = vpop.eup %12272  ;;  %v16736_v32 = vmul.f32 %v16669_v14, %v16481_v9  ;;  %v16740_v56 = vmul.f32 %v16673_v5, %v16495_v54  ;;  %v11942_v17 = vld [vmem:[%s13090_s26 + $0x260] ss:$8 sps:$4 sm:$0xff]   ;;  %v6857_v14 = vpop.f32.mrf.mxu1  ;;  %v11950_v54 = vld [vmem:[%s13090_s26 + $0x254] ss:$8 sps:$4 sm:$0xff]  }
 0xdc8   : > { %12278 = vtanh.f32 %v7786_v57  ;;  %v7666_v20 = vadd.f32 %v7538_v39, %v16659_v2  ;;  %v19085_v45 = vpack.c.bf16 %v16599_v34, %v16586_v16  ;;  %v11945_v35 = vld [vmem:[%s13090_s26 + $0x360] ss:$8 sps:$4 sm:$0xff]   ;;  %v16749_v29 = vmul.f32 %v8155_v43, %v16511_v33  ;;  %v11953_v57 = vld [vmem:[%s13090_s26 + $0x354] ss:$8 sps:$4 sm:$0xff]  }
 0xdc9   : > { %9242 = vmatmul.mubr.bf16.vlgmr.msra.gmra.mxu1 %v19084_v37  ;;  %v8035_v6 = vadd.f32 1.0, %v12267_v30  ;;  %12280 = vtanh.f32 %v7788_v60  ;;  %v7420_v9 = vmul.f32 %v7292_v42, %v16702_v8  ;;  %v12275_v39 = vpop.eup %12274  ;;  %v8161_v5 = vmul.f32 0.5, %v8033_v23  ;;  %v11948_v30 = vld [vmem:[%s13090_s26 + $0x250] ss:$8 sps:$4 sm:$0xff]   ;;  %v11959_v37 = vld [vmem:[%s13090_s26 + $0x344] ss:$8 sps:$4 sm:$0xff]  }
 0xdca   : > { %9355 = vmatmul.mubr.bf16.vlgmr.msra.gmra.mxu0 %v19085_v45  ;;  %9436 = vmatpush1.bf16.msra.mxu1 %v11936_v61  ;;  %v7668_v16 = vadd.f32 %v7540_v38, %v16664_v53  ;;  %v7801_v34 = vmul.f32 0.7978846, %v7673_v10  ;;  %v7553_v51 = vmul.f32 0.044715, %v7425_v25  ;;  %12282 = vtanh.f32 %v7795_v49  ;;  %v11956_v49 = vld [vmem:[%s13090_s26 + $0x244] ss:$8 sps:$4 sm:$0xff]  }
 0xdcb   : > { %9549 = vmatpush1.bf16.msra.mxu0 %v11939_v15  ;;  %9437 = vmatprep.subr.bf16.mxu1 %v11944_v41  ;;  %v7803_v33 = vmul.f32 0.7978846, %v7675_v62  ;;  %v7546_v43 = vmul.f32 0.044715, %v7418_v44  ;;  %v7299_v61 = vmul.f32 %v16729_v59, %v16729_v59  ;;  %v8041_v19 = vadd.f32 1.0, %v12273_v46 }
 0xdcc   : > { %9550 = vmatprep.subr.bf16.mxu0 %v11947_v13  ;;  %v7794_v60 = vmul.f32 0.7978846, %v7666_v20  ;;  %v16759_v23 = vadd.f32 %v6853_v47, %v16422_v50  ;;  %v16762_v42 = vadd.f32 %v6857_v14, %v16397_v55  ;;  %v11951_v15 = vld [vmem:[%s13090_s26 + $0x350] ss:$8 sps:$4 sm:$0xff]   ;;  %v8163_v38 = vmul.f32 0.5, %v8035_v6  ;;  %v16768_v13 = vpop.f32.mrf.mxu1 }
 0xdcd   : > { %v8043_v10 = vadd.f32 1.0, %v12275_v39  ;;  %v7548_v25 = vmul.f32 0.044715, %v7420_v9  ;;  %v16766_v41 = vadd.f32 %v6970_v12, %v16401_v58  ;;  %v7796_v62 = vmul.f32 0.7978846, %v7668_v16 }
 0xdce   : > { %19086 = vst [vmem:[#allocation80_spill] sm:$0xff] %v16759_v23  ;;  %9438 = vmatpush1.bf16.msra.mxu1 %v11942_v17  ;;  %12284 = vtanh.f32 %v7801_v34  ;;  %v7681_v47 = vadd.f32 %v7553_v51, %v16687_v22  ;;  %v16773_v44 = vadd.f32 %v6966_v48, %v16426_v26  ;;  %v16777_v46 = vmul.f32 %v8161_v5, %v16536_v18  ;;  %v16781_v17 = vpop.f32.mrf.mxu0  ;;  %v11954_v18 = vld [vmem:[%s13090_s26 + $0x240] ss:$8 sps:$4 sm:$0xff]   ;;  %v11962_v16 = vld [vmem:[%s13090_s26 + $0x234] ss:$8 sps:$4 sm:$0xff]  }
 0xdcf   : > { %9551 = vmatpush1.bf16.msra.mxu0 %v11945_v35  ;;  %9439 = vmatprep.subr.bf16.mxu1 %v11950_v54  ;;  %12286 = vtanh.f32 %v7803_v33  ;;  %v7674_v20 = vadd.f32 %v7546_v43, %v16692_v3  ;;  %v7427_v45 = vmul.f32 %v7299_v61, %v16729_v59  ;;  %v8169_v35 = vmul.f32 0.5, %v8041_v19  ;;  %v11957_v5 = vld [vmem:[%s13090_s26 + $0x340] ss:$8 sps:$4 sm:$0xff]   ;;  %v11965_v33 = vld [vmem:[%s13090_s26 + $0x334] ss:$8 sps:$4 sm:$0xff]  }
 0xdd0   : > { %19087 = vst [vmem:[#allocation81_spill] sm:$0xff] %v16773_v44  ;;  %9552 = vmatprep.subr.bf16.mxu0 %v11953_v57  ;;  %12288 = vtanh.f32 %v7794_v60  ;;  %v7298_v48 = vmul.f32 %v16759_v23, %v16759_v23  ;;  %v7305_v6 = vmul.f32 %v16762_v42, %v16762_v42  ;;  %v8171_v9 = vmul.f32 0.5, %v8043_v10  ;;  %v6861_v57 = vpop.f32.mrf.mxu1 }
 0xdd1   : > { %v7676_v14 = vadd.f32 %v7548_v25, %v16702_v8  ;;  %v7307_v54 = vmul.f32 %v16766_v41, %v16766_v41  ;;  %v8010_v39 = vadd.f32 1.0, %v16607_v11  ;;  %v16795_v34 = vmul.f32 %v8163_v38, %v16543_v24  ;;  %v6974_v11 = vpop.f32.mrf.mxu0  ;;  %v11960_v25 = vld [vmem:[%s13090_s26 + $0x230] ss:$8 sps:$4 sm:$0xff]  }
 0xdd2   : > { %9440 = vmatpush1.bf16.msra.mxu1 %v11948_v30  ;;  %12290 = vtanh.f32 %v7796_v62  ;;  %v7809_v51 = vmul.f32 0.7978846, %v7681_v47  ;;  %v7300_v12 = vmul.f32 %v16773_v44, %v16773_v44  ;;  %v12277_v43 = vpop.eup %12276  ;;  %v7802_v61 = vmul.f32 0.7978846, %v7674_v20  ;;  %v11968_v20 = vld [vmem:[%s13090_s26 + $0x224] ss:$8 sps:$4 sm:$0xff]  }
 0xdd3   : > { %9553 = vmatpush1.bf16.msra.mxu0 %v11951_v15  ;;  %9441 = vmatprep.subr.bf16.mxu1 %v11956_v49  ;;  %v7555_v30 = vmul.f32 0.044715, %v7427_v45  ;;  %v8018_v19 = vadd.f32 1.0, %v16649_v21  ;;  %v8138_v60 = vmul.f32 0.5, %v8010_v39  ;;  %v16802_v24 = vmul.f32 %v8169_v35, %v16562_v36  ;;  %v11963_v49 = vld [vmem:[%s13090_s26 + $0x330] ss:$8 sps:$4 sm:$0xff]  }
 0xdd4   : > { %9554 = vmatprep.subr.bf16.mxu0 %v11959_v37  ;;  %v7426_v15 = vmul.f32 %v7298_v48, %v16759_v23  ;;  %v7433_v38 = vmul.f32 %v7305_v6, %v16762_v42  ;;  %v16807_v10 = vadd.f32 %v6861_v57, %v16397_v55  ;;  %v16814_v21 = vmul.f32 %v8171_v9, %v16575_v31  ;;  %v11971_v31 = vld [vmem:[%s13090_s26 + $0x324] ss:$8 sps:$4 sm:$0xff]  }
 0xdd5   : > { %v16811_v62 = vpop.eup %12278  ;;  %v7804_v47 = vmul.f32 0.7978846, %v7676_v14  ;;  %v7435_v36 = vmul.f32 %v7307_v54, %v16766_v41  ;;  %v8146_v37 = vmul.f32 0.5, %v8018_v19  ;;  %v8049_v35 = vadd.f32 1.0, %v12277_v43  ;;  %v16841_v19 = vpop.f32.mrf.mxu0 }
 0xdd6   : > { %9442 = vmatpush1.bf16.msra.mxu1 %v11954_v18  ;;  %v16818_v45 = vpop.eup %12280  ;;  %12292 = vtanh.f32 %v7809_v51  ;;  %v7428_v48 = vmul.f32 %v7300_v12, %v16773_v44  ;;  %v16822_v6 = vadd.f32 %v6974_v11, %v16401_v58  ;;  %v8266_v18 = vmul.f32 %v8138_v60, %v16467_v63  ;;  %v11966_v63 = vld [vmem:[%s13090_s26 + $0x220] ss:$8 sps:$4 sm:$0xff]  }
 0xdd7   : > { %9555 = vmatpush1.bf16.msra.mxu0 %v11957_v5  ;;  %9443 = vmatprep.subr.bf16.mxu1 %v11962_v16  ;;  %v8274_v9 = vmul.f32 %v8146_v37, %v16502_v4  ;;  %v8012_v14 = vadd.f32 1.0, %v16637_v28  ;;  %v8020_v54 = vadd.f32 1.0, %v16661_v0  ;;  %v12283_v57 = vpop.eup %12282  ;;  %v7554_v39 = vmul.f32 0.044715, %v7426_v15  ;;  %v6863_v4 = vpop.f32.mrf.mxu1  ;;  %v11969_v60 = vld [vmem:[%s13090_s26 + $0x320] ss:$8 sps:$4 sm:$0xff]  }
 0xdd8   : > { %9556 = vmatprep.subr.bf16.mxu0 %v11965_v33  ;;  %v7561_v5 = vmul.f32 0.044715, %v7433_v38  ;;  %v16831_v16 = vadd.f32 %v16768_v13, %v16422_v50  ;;  %v7313_v51 = vmul.f32 %v16807_v10, %v16807_v10  ;;  %v7563_v12 = vmul.f32 0.044715, %v7435_v36  ;;  %v11974_v15 = vld [vmem:[%s13090_s26 + $0x214] ss:$8 sps:$4 sm:$0xff]  }
 0xdd9   : > { %v8386_v33 = vpack.c.bf16 %v8274_v9, %v8266_v18  ;;  %v8140_v28 = vmul.f32 0.5, %v8012_v14  ;;  %v8148_v43 = vmul.f32 0.5, %v8020_v54  ;;  %12294 = vtanh.f32 %v7802_v61  ;;  %v19090_v61 = vld [vmem:[#allocation64_spill] sm:$0xff]  ;;  %v19091_v36 = vld [vmem:[#allocation73_spill] sm:$0xff]  ;;  %v19092_v37 = vld [vmem:[#allocation75_spill] sm:$0xff] }
 0xdda   : > { %19088 = vst [vmem:[#allocation82_spill] sm:$0xff] %v16831_v16  ;;  %9444 = vmatpush1.bf16.msra.mxu1 %v11960_v25  ;;  %v7683_v0 = vadd.f32 %v7555_v30, %v16729_v59  ;;  %v7556_v11 = vmul.f32 0.044715, %v7428_v48  ;;  %v16839_v13 = vadd.f32 %v16781_v17, %v16426_v26  ;;  %v7315_v25 = vmul.f32 %v16822_v6, %v16822_v6 }
 0xddb   : > { %9557 = vmatpush1.bf16.msra.mxu0 %v11963_v49  ;;  %9445 = vmatprep.subr.bf16.mxu1 %v11968_v20  ;;  %v12285_v38 = vpop.eup %12284  ;;  %v8268_v49 = vmul.f32 %v8140_v28, %v16478_v1  ;;  %v8276_v30 = vmul.f32 %v8148_v43, %v19090_v61  ;;  %v8385_v17 = vpack.c.bf16 %v19092_v37, %v19091_v36  ;;  %v8051_v48 = vadd.f32 1.0, %v12283_v57  ;;  %v11972_v57 = vld [vmem:[%s13090_s26 + $0x210] ss:$8 sps:$4 sm:$0xff]   ;;  %v19093_v36 = vld [vmem:[#allocation74_spill] sm:$0xff] }
 0xddc   : > { %19089 = vst [vmem:[#allocation83_spill] sm:$0xff] %v16839_v13  ;;  %9558 = vmatprep.subr.bf16.mxu0 %v11971_v31  ;;  %9251 = vmatprep.mubr.bf16.mxu1 %v8386_v33  ;;  %v12287_v20 = vpop.eup %12286  ;;  %v7689_v18 = vadd.f32 %v7561_v5, %v16762_v42  ;;  %v7306_v31 = vmul.f32 %v16831_v16, %v16831_v16  ;;  %12296 = vtanh.f32 %v7804_v47  ;;  %v6867_v33 = vpop.f32.mrf.mxu1  ;;  %v11977_v5 = vld [vmem:[%s13090_s26 + $0x314] ss:$8 sps:$4 sm:$0xff]   ;;  %v7811_v43 = vmul.f32 0.7978846, %v7683_v0 }
 0xddd   : > { %v7441_v9 = vmul.f32 %v7313_v51, %v16807_v10  ;;  %v16855_v14 = vpop.eup %12288  ;;  %v7682_v1 = vadd.f32 %v7554_v39, %v16759_v23  ;;  %v7691_v54 = vadd.f32 %v7563_v12, %v16766_v41  ;;  %v8388_v28 = vpack.c.bf16 %v8276_v30, %v8268_v49  ;;  %9252 = vmatmul.mubr.bf16.gmra.mxu1 %v8385_v17  ;;  %v11975_v39 = vld [vmem:[%s13090_s26 + $0x310] ss:$8 sps:$4 sm:$0xff]   ;;  %v11980_v12 = vld [vmem:[%s13090_s26 + $0x204] ss:$8 sps:$4 sm:$0xff]  }
 0xdde   : > { %9446 = vmatpush1.bf16.msra.mxu1 %v11966_v63  ;;  %v7684_v61 = vadd.f32 %v7556_v11, %v16773_v44  ;;  %v7308_v51 = vmul.f32 %v16839_v13, %v16839_v13  ;;  %v6980_v63 = vpop.f32.mrf.mxu0  ;;  %v8387_v47 = vpack.c.bf16 %v16736_v32, %v19093_v36  ;;  %v8177_v30 = vmul.f32 0.5, %v8049_v35  ;;  %v11983_v11 = vld [vmem:[%s13090_s26 + $0x304] ss:$8 sps:$4 sm:$0xff]  }
 0xddf   : > { %9559 = vmatpush1.bf16.msra.mxu0 %v11969_v60  ;;  %9447 = vmatprep.subr.bf16.mxu1 %v11974_v15  ;;  %v16868_v49 = vpop.eup %12290  ;;  %v8057_v37 = vadd.f32 1.0, %v12285_v38  ;;  %v8059_v17 = vadd.f32 1.0, %v12287_v20  ;;  %v7443_v0 = vmul.f32 %v7315_v25, %v16822_v6  ;;  %v7817_v44 = vmul.f32 0.7978846, %v7689_v18  ;;  %v11978_v60 = vld [vmem:[%s13090_s26 + $0x200] ss:$8 sps:$4 sm:$0xff]  }
 0xde0   : > { %9364 = vmatprep.mubr.bf16.mxu0 %v8388_v28  ;;  %v7434_v8 = vmul.f32 %v7306_v31, %v16831_v16  ;;  %v7569_v23 = vmul.f32 0.044715, %v7441_v9  ;;  %v16874_v32 = vadd.f32 %v6867_v33, %v16397_v55  ;;  %v8179_v15 = vmul.f32 0.5, %v8051_v48  ;;  %9560 = vmatprep.subr.bf16.mxu0 %v11977_v5  ;;  %v11981_v25 = vld [vmem:[%s13090_s26 + $0x300] ss:$8 sps:$4 sm:$0xff]  }
 0xde1   : > { %9365 = vmatmul.mubr.bf16.gmra.mxu0 %v8387_v47  ;;  %v7819_v36 = vmul.f32 0.7978846, %v7691_v54  ;;  %v16878_v35 = vadd.f32 %v6863_v4, %v16422_v50  ;;  %v16881_v38 = vadd.f32 %v6980_v63, %v16401_v58  ;;  %12298 = vtanh.f32 %v7811_v43  ;;  %v11986_v9 = vld [vmem:[%s13090_s26 + $0x2f4] ss:$8 sps:$4 sm:$0xff]  }
 0xde2   : > { %9448 = vmatpush1.bf16.msra.mxu1 %v11972_v57  ;;  %v7810_v20 = vmul.f32 0.7978846, %v7682_v1  ;;  %v7812_v18 = vmul.f32 0.7978846, %v7684_v61  ;;  %v7436_v31 = vmul.f32 %v7308_v51, %v16839_v13  ;;  %v8185_v54 = vmul.f32 0.5, %v8057_v37  ;;  %v6869_v57 = vpop.f32.mrf.mxu1  ;;  %v19095_v51 = vld [vmem:[#allocation69_spill] sm:$0xff] }
 0xde3   : > { %9561 = vmatpush1.bf16.msra.mxu0 %v11975_v39  ;;  %9449 = vmatprep.subr.bf16.mxu1 %v11980_v12  ;;  %v12293_v48 = vpop.eup %12292  ;;  %v8187_v33 = vmul.f32 0.5, %v8059_v17  ;;  %v7571_v4 = vmul.f32 0.044715, %v7443_v0  ;;  %v16888_v28 = vadd.f32 %v16841_v19, %v16426_v26  ;;  %v11989_v5 = vld [vmem:[%s13090_s26 + $0x3f4] ss:$8 sps:$4 sm:$0xff]   ;;  %12300 = vtanh.f32 %v7817_v44  ;;  %v16901_v39 = vpop.f32.mrf.mxu0 }
 0xde4   : > { %9562 = vmatprep.subr.bf16.mxu0 %v11983_v11  ;;  %v7562_v1 = vmul.f32 0.044715, %v7434_v8  ;;  %v7697_v43 = vadd.f32 %v7569_v23, %v16807_v10  ;;  %v7321_v61 = vmul.f32 %v16874_v32, %v16874_v32  ;;  %v16895_v63 = vmul.f32 %v8177_v30, %v19095_v51  ;;  %v11984_v8 = vld [vmem:[%s13090_s26 + $0x2f0] ss:$8 sps:$4 sm:$0xff]   ;;  %v11992_v17 = vld [vmem:[%s13090_s26 + $0x2e4] ss:$8 sps:$4 sm:$0xff]  }
 0xde5   : > { %19094 = vst [vmem:[#allocation64_spill] sm:$0xff] %v16888_v28  ;;  %12302 = vtanh.f32 %v7819_v36  ;;  %v7314_v47 = vmul.f32 %v16878_v35, %v16878_v35  ;;  %v7323_v19 = vmul.f32 %v16881_v38, %v16881_v38  ;;  %v11987_v23 = vld [vmem:[%s13090_s26 + $0x3f0] ss:$8 sps:$4 sm:$0xff]   ;;  %v8065_v37 = vadd.f32 1.0, %v12293_v48  ;;  %v11995_v48 = vld [vmem:[%s13090_s26 + $0x3e4] ss:$8 sps:$4 sm:$0xff]  }
 0xde6   : > { %9450 = vmatpush1.bf16.msra.mxu1 %v11978_v60  ;;  %v19096_v44 = vld [vmem:[#allocation72_spill] sm:$0xff]  ;;  %12304 = vtanh.f32 %v7810_v20  ;;  %v7564_v30 = vmul.f32 0.044715, %v7436_v31  ;;  %v16909_v0 = vpop.eup %12294  ;;  %v16912_v11 = vmul.f32 %v8185_v54, %v16652_v52  ;;  %v7699_v60 = vadd.f32 %v7571_v4, %v16822_v6  ;;  %v6984_v54 = vpop.f32.mrf.mxu0  ;;  %v19100_v4 = vld [vmem:[#allocation77_spill] sm:$0xff] }
 0xde7   : > { %v16906_v12 = vmul.f32 %v8179_v15, %v19096_v44  ;;  %9563 = vmatpush1.bf16.msra.mxu0 %v11981_v25  ;;  %9451 = vmatprep.subr.bf16.mxu1 %v11986_v9  ;;  %19097 = vst [vmem:[#allocation73_spill] sm:$0xff] %v16909_v0  ;;  %12306 = vtanh.f32 %v7812_v18  ;;  %v7316_v36 = vmul.f32 %v16888_v28, %v16888_v28  ;;  %v6871_v15 = vpop.f32.mrf.mxu1  ;;  %v7825_v31 = vmul.f32 0.7978846, %v7697_v43  ;;  %v11998_v44 = vld [vmem:[%s13090_s26 + $0x2d4] ss:$8 sps:$4 sm:$0xff]  }
 0xde8   : > { %19098 = vst [vmem:[#allocation75_spill] sm:$0xff] %v16912_v11  ;;  %9564 = vmatprep.subr.bf16.mxu0 %v11989_v5  ;;  %v16919_v20 = vmul.f32 %v8187_v33, %v16655_v27  ;;  %v7690_v25 = vadd.f32 %v7562_v1, %v16831_v16  ;;  %v7449_v52 = vmul.f32 %v7321_v61, %v16874_v32  ;;  %v8026_v51 = vadd.f32 1.0, %v19100_v4  ;;  %v11990_v27 = vld [vmem:[%s13090_s26 + $0x2e0] ss:$8 sps:$4 sm:$0xff]   ;;  %v19105_v11 = vld [vmem:[#allocation67_spill] sm:$0xff]  ;;  %v6986_v0 = vpop.f32.mrf.mxu0 }
 0xde9   : > { %v7442_v18 = vmul.f32 %v7314_v47, %v16878_v35  ;;  %v7451_v9 = vmul.f32 %v7323_v19, %v16881_v38  ;;  %v8034_v5 = vadd.f32 1.0, %v16715_v7  ;;  %v16928_v33 = vpop.eup %12296  ;;  %v16930_v1 = vmul.f32 0.5, %v8065_v37  ;;  %v11993_v19 = vld [vmem:[%s13090_s26 + $0x3e0] ss:$8 sps:$4 sm:$0xff]   ;;  %v12001_v37 = vld [vmem:[%s13090_s26 + $0x3d4] ss:$8 sps:$4 sm:$0xff]  }
 0xdea   : > { %19099 = vst [vmem:[#allocation74_spill] sm:$0xff] %v16919_v20  ;;  %9452 = vmatpush2.bf16.msra.mxu1 %v11984_v8  ;;  %19101 = vst [vmem:[#allocation69_spill] sm:$0xff] %v16928_v33  ;;  %v7692_v43 = vadd.f32 %v7564_v30, %v16839_v13  ;;  %v16934_v61 = vadd.f32 %v6869_v57, %v16422_v50  ;;  %v16937_v47 = vadd.f32 %v6871_v15, %v16397_v55  ;;  %v19103_v13 = vld [vmem:[#allocation79_spill] sm:$0xff] }
 0xdeb   : > { %9565 = vmatpush2.bf16.msra.mxu0 %v11987_v23  ;;  %9453 = vmatprep.subr.bf16.mxu1 %v11992_v17  ;;  %v7827_v7 = vmul.f32 0.7978846, %v7699_v60  ;;  %v7444_v8 = vmul.f32 %v7316_v36, %v16888_v28  ;;  %v8154_v4 = vmul.f32 0.5, %v8026_v51  ;;  %v8162_v16 = vmul.f32 0.5, %v8034_v5  ;;  %v19104_v23 = vld [vmem:[#allocation65_spill] sm:$0xff] }
 0xdec   : > { %19102 = vst [vmem:[#allocation72_spill] sm:$0xff] %v16934_v61  ;;  %9566 = vmatprep.subr.bf16.mxu0 %v11995_v48  ;;  %12308 = vtanh.f32 %v7825_v31  ;;  %v7577_v30 = vmul.f32 0.044715, %v7449_v52  ;;  %v16944_v57 = vadd.f32 %v6984_v54, %v16401_v58  ;;  %v8028_v15 = vadd.f32 1.0, %v19103_v13  ;;  %v11996_v36 = vld [vmem:[%s13090_s26 + $0x2d0] ss:$8 sps:$4 sm:$0xff]  }
 0xded   : > { %v7579_v20 = vmul.f32 0.044715, %v7451_v9  ;;  %v8282_v17 = vmul.f32 %v8154_v4, %v19104_v23  ;;  %v8290_v3 = vmul.f32 %v8162_v16, %v19105_v11  ;;  %v8036_v60 = vadd.f32 1.0, %v16724_v40  ;;  %v6873_v11 = vpop.f32.mrf.mxu1  ;;  %v11999_v54 = vld [vmem:[%s13090_s26 + $0x3d0] ss:$8 sps:$4 sm:$0xff]  }
 0xdee   : > { %9454 = vmatpush2.bf16.msra.mxu1 %v11990_v27  ;;  %v7570_v51 = vmul.f32 0.044715, %v7442_v18  ;;  %v7322_v48 = vmul.f32 %v16934_v61, %v16934_v61  ;;  %v7329_v31 = vmul.f32 %v16937_v47, %v16937_v47  ;;  %v8156_v52 = vmul.f32 0.5, %v8028_v15  ;;  %v12299_v13 = vpop.eup %12298  ;;  %v19108_v15 = vld [vmem:[#allocation68_spill] sm:$0xff] }
 0xdef   : > { %9567 = vmatpush2.bf16.msra.mxu0 %v11993_v19  ;;  %9455 = vmatprep.subr.bf16.mxu1 %v11998_v44  ;;  %12310 = vtanh.f32 %v7827_v7  ;;  %v7572_v16 = vmul.f32 0.044715, %v7444_v8  ;;  %v8394_v9 = vpack.c.bf16 %v8290_v3, %v8282_v17  ;;  %v8164_v40 = vmul.f32 0.5, %v8036_v60  ;;  %v12004_v44 = vld [vmem:[%s13090_s26 + $0x2c4] ss:$8 sps:$4 sm:$0xff]  }
 0xdf0   : > { %9568 = vmatprep.subr.bf16.mxu0 %v12001_v37  ;;  %v7705_v18 = vadd.f32 %v7577_v30, %v16874_v32  ;;  %v16959_v5 = vadd.f32 %v16901_v39, %v16426_v26  ;;  %v7331_v27 = vmul.f32 %v16944_v57, %v16944_v57  ;;  %v8393_v19 = vpack.c.bf16 %v16777_v46, %v16740_v56  ;;  %v12007_v7 = vld [vmem:[%s13090_s26 + $0x3c4] ss:$8 sps:$4 sm:$0xff]   ;;  %v12301_v3 = vpop.eup %12300  ;;  %v12002_v39 = vld [vmem:[%s13090_s26 + $0x2c0] ss:$8 sps:$4 sm:$0xff]  }
 0xdf1   : > { %v7818_v8 = vmul.f32 0.7978846, %v7690_v25  ;;  %v7707_v4 = vadd.f32 %v7579_v20, %v16881_v38  ;;  %9261 = vmatprep.mubr.bf16.mxu1 %v8394_v9  ;;  %v19107_v37 = vld [vmem:[#allocation66_spill] sm:$0xff]  ;;  %v8292_v23 = vmul.f32 %v8164_v40, %v19108_v15  ;;  %v8067_v60 = vadd.f32 1.0, %v12299_v13  ;;  %v12010_v25 = vld [vmem:[%s13090_s26 + $0x2b4] ss:$8 sps:$4 sm:$0xff]   ;;  %v6877_v40 = vpop.f32.mrf.mxu1 }
 0xdf2   : > { %19106 = vst [vmem:[#allocation77_spill] sm:$0xff] %v16959_v5  ;;  %v8284_v30 = vmul.f32 %v8156_v52, %v19107_v37  ;;  %9456 = vmatpush2.bf16.msra.mxu1 %v11996_v36  ;;  %v12303_v17 = vpop.eup %12302  ;;  %v7820_v33 = vmul.f32 0.7978846, %v7692_v43  ;;  %v7450_v56 = vmul.f32 %v7322_v48, %v16934_v61  ;;  %v7457_v46 = vmul.f32 %v7329_v31, %v16937_v47  ;;  %v12005_v43 = vld [vmem:[%s13090_s26 + $0x3c0] ss:$8 sps:$4 sm:$0xff]  }
 0xdf3   : > { %9262 = vmatmul.mubr.bf16.gmra.mxu1 %v8393_v19  ;;  %v16974_v20 = vpop.eup %12304  ;;  %v7698_v52 = vadd.f32 %v7570_v51, %v16878_v35  ;;  %v7700_v9 = vadd.f32 %v7572_v16, %v16888_v28  ;;  %v16979_v36 = vadd.f32 %v6873_v11, %v16422_v50  ;;  %9569 = vmatpush2.bf16.msra.mxu0 %v11999_v54  ;;  %v7833_v31 = vmul.f32 0.7978846, %v7705_v18  ;;  %v12013_v16 = vld [vmem:[%s13090_s26 + $0x3b4] ss:$8 sps:$4 sm:$0xff]   ;;  %v12008_v18 = vld [vmem:[%s13090_s26 + $0x2b0] ss:$8 sps:$4 sm:$0xff]  }
 0xdf4   : > { %v8396_v13 = vpack.c.bf16 %v8292_v23, %v8284_v30  ;;  %v16982_v48 = vpop.eup %12306  ;;  %v7324_v19 = vmul.f32 %v16959_v5, %v16959_v5  ;;  %v7459_v37 = vmul.f32 %v7331_v27, %v16944_v57  ;;  %v8395_v51 = vpack.c.bf16 %v16795_v34, %v16749_v29  ;;  %9457 = vmatprep.subr.bf16.mxu1 %v12004_v44  ;;  %v6990_v29 = vpop.f32.mrf.mxu0  ;;  %v12016_v34 = vld [vmem:[%s13090_s26 + $0x2a4] ss:$8 sps:$4 sm:$0xff]  }
 0xdf5   : > { %19109 = vst [vmem:[#allocation79_spill] sm:$0xff] %v16979_v36  ;;  %9570 = vmatprep.subr.bf16.mxu0 %v12007_v7  ;;  %v8073_v11 = vadd.f32 1.0, %v12301_v3  ;;  %v8075_v30 = vadd.f32 1.0, %v12303_v17  ;;  %12312 = vtanh.f32 %v7818_v8  ;;  %v7835_v54 = vmul.f32 0.7978846, %v7707_v4  ;;  %v17002_v17 = vpop.f32.mrf.mxu1 }
 0xdf6   : > { %9374 = vmatprep.mubr.bf16.mxu0 %v8396_v13  ;;  %9458 = vmatpush2.bf16.msra.mxu1 %v12002_v39  ;;  %v7578_v15 = vmul.f32 0.044715, %v7450_v56  ;;  %v7585_v23 = vmul.f32 0.044715, %v7457_v46  ;;  %v16992_v28 = vadd.f32 %v6986_v0, %v16426_v26  ;;  %v16995_v27 = vadd.f32 %v6877_v40, %v16397_v55  ;;  %v12011_v8 = vld [vmem:[%s13090_s26 + $0x3b0] ss:$8 sps:$4 sm:$0xff]  }
 0xdf7   : > { %9375 = vmatmul.mubr.bf16.gmra.mxu0 %v8395_v51  ;;  %9459 = vmatprep.subr.bf16.mxu1 %v12010_v25  ;;  %v8195_v44 = vmul.f32 0.5, %v8067_v60  ;;  %12314 = vtanh.f32 %v7820_v33  ;;  %v7826_v7 = vmul.f32 0.7978846, %v7698_v52  ;;  %v7330_v3 = vmul.f32 %v16979_v36, %v16979_v36  ;;  %v12019_v56 = vld [vmem:[%s13090_s26 + $0x3a4] ss:$8 sps:$4 sm:$0xff]  }
 0xdf8   : > { %19110 = vst [vmem:[#allocation65_spill] sm:$0xff] %v16992_v28  ;;  %9571 = vmatpush2.bf16.msra.mxu0 %v12005_v43  ;;  %v7828_v4 = vmul.f32 0.7978846, %v7700_v9  ;;  %12316 = vtanh.f32 %v7833_v31  ;;  %v7452_v0 = vmul.f32 %v7324_v19, %v16959_v5  ;;  %v7587_v39 = vmul.f32 0.044715, %v7459_v37  ;;  %v17015_v31 = vpop.f32.mrf.mxu0 }
 0xdf9   : > { %9572 = vmatprep.subr.bf16.mxu0 %v12013_v16  ;;  %v12309_v46 = vpop.eup %12308  ;;  %v8201_v60 = vmul.f32 0.5, %v8073_v11  ;;  %v8203_v33 = vmul.f32 0.5, %v8075_v30  ;;  %12318 = vtanh.f32 %v7835_v54  ;;  %v17006_v25 = vadd.f32 %v6990_v29, %v16401_v58  ;;  %v12014_v52 = vld [vmem:[%s13090_s26 + $0x2a0] ss:$8 sps:$4 sm:$0xff]   ;;  %v12022_v19 = vld [vmem:[%s13090_s26 + $0x294] ss:$8 sps:$4 sm:$0xff]  }
 0xdfa   : > { %9460 = vmatpush2.bf16.msra.mxu1 %v12008_v18  ;;  %v7706_v9 = vadd.f32 %v7578_v15, %v16934_v61  ;;  %v7713_v40 = vadd.f32 %v7585_v23, %v16937_v47  ;;  %v7332_v13 = vmul.f32 %v16992_v28, %v16992_v28  ;;  %v7337_v43 = vmul.f32 %v16995_v27, %v16995_v27  ;;  %v12017_v11 = vld [vmem:[%s13090_s26 + $0x3a0] ss:$8 sps:$4 sm:$0xff]   ;;  %v6881_v23 = vpop.f32.mrf.mxu1 }
 0xdfb   : > { %9461 = vmatprep.subr.bf16.mxu1 %v12016_v34  ;;  %v17020_v37 = vmul.f32 %v16930_v1, %v16687_v22  ;;  %v17023_v51 = vmul.f32 %v8195_v44, %v16729_v59  ;;  %12320 = vtanh.f32 %v7826_v7  ;;  %v7458_v16 = vmul.f32 %v7330_v3, %v16979_v36  ;;  %v12025_v22 = vld [vmem:[%s13090_s26 + $0x394] ss:$8 sps:$4 sm:$0xff]   ;;  %v12020_v44 = vld [vmem:[%s13090_s26 + $0x290] ss:$8 sps:$4 sm:$0xff]  }
 0xdfc   : > { %9573 = vmatpush2.bf16.msra.mxu0 %v12011_v8  ;;  %v12311_v30 = vpop.eup %12310  ;;  %v8081_v54 = vadd.f32 1.0, %v12309_v46  ;;  %12322 = vtanh.f32 %v7828_v4  ;;  %v7580_v18 = vmul.f32 0.044715, %v7452_v0  ;;  %v7715_v15 = vadd.f32 %v7587_v39, %v16944_v57  ;;  %v6994_v4 = vpop.f32.mrf.mxu0  ;;  %v12023_v46 = vld [vmem:[%s13090_s26 + $0x390] ss:$8 sps:$4 sm:$0xff]  }
 0xdfd   : > { %9574 = vmatprep.subr.bf16.mxu0 %v12019_v56  ;;  %v17030_v1 = vmul.f32 %v8201_v60, %v16762_v42  ;;  %v17033_v59 = vmul.f32 %v8203_v33, %v16766_v41  ;;  %v7339_v29 = vmul.f32 %v17006_v25, %v17006_v25  ;;  %v8042_v34 = vadd.f32 1.0, %v16811_v62  ;;  %v12028_v41 = vld [vmem:[%s13090_s26 + $0x284] ss:$8 sps:$4 sm:$0xff]  }
 0xdfe   : > { %9462 = vmatpush2.bf16.msra.mxu1 %v12014_v52  ;;  %v17039_v7 = vmul.f32 0.7978846, %v7706_v9  ;;  %v7841_v3 = vmul.f32 0.7978846, %v7713_v40  ;;  %v7460_v8 = vmul.f32 %v7332_v13, %v16992_v28  ;;  %v7465_v42 = vmul.f32 %v7337_v43, %v16995_v27  ;;  %v12031_v40 = vld [vmem:[%s13090_s26 + $0x384] ss:$8 sps:$4 sm:$0xff]  }
 0xdff   : > { %9463 = vmatprep.subr.bf16.mxu1 %v12022_v19  ;;  %v17044_v0 = vadd.f32 1.0, %v12311_v30  ;;  %v7586_v39 = vmul.f32 0.044715, %v7458_v16  ;;  %v17047_v56 = vadd.f32 %v6881_v23, %v16397_v55  ;;  %v8050_v62 = vadd.f32 1.0, %v16855_v14  ;;  %v12026_v14 = vld [vmem:[%s13090_s26 + $0x280] ss:$8 sps:$4 sm:$0xff]  }
 0xe00   : > { %9575 = vmatpush2.bf16.msra.mxu0 %v12017_v11  ;;  %v17051_v60 = vmul.f32 0.5, %v8081_v54  ;;  %v7708_v33 = vadd.f32 %v7580_v18, %v16959_v5  ;;  %v7843_v52 = vmul.f32 0.7978846, %v7715_v15  ;;  %v8170_v9 = vmul.f32 0.5, %v8042_v34  ;;  %v6883_v15 = vpop.f32.mrf.mxu1  ;;  %v19111_v23 = vld [vmem:[#allocation70_spill] sm:$0xff] }
 0xe01   : > { %9576 = vmatprep.subr.bf16.mxu0 %v12025_v22  ;;  %v7467_v13 = vmul.f32 %v7339_v29, %v17006_v25  ;;  %v17057_v43 = vadd.f32 %v6994_v4, %v16401_v58  ;;  %v8178_v19 = vmul.f32 0.5, %v8050_v62  ;;  %v8044_v55 = vadd.f32 1.0, %v16818_v45  ;;  %v19114_v62 = vld [vmem:[#allocation29_spill] sm:$0xff] }
 0xe02   : > { %9464 = vmatpush2.bf16.msra.mxu1 %v12020_v44  ;;  %v17061_v16 = vpop.eup %12312  ;;  %12324 = vtanh.f32 %v7841_v3  ;;  %v7588_v11 = vmul.f32 0.044715, %v7460_v8  ;;  %v7593_v30 = vmul.f32 0.044715, %v7465_v42  ;;  %v8052_v54 = vadd.f32 1.0, %v16868_v49 }
 0xe03   : > { %9465 = vmatprep.subr.bf16.mxu1 %v12028_v41  ;;  %v7345_v18 = vmul.f32 %v17047_v56, %v17047_v56  ;;  %v8298_v58 = vmul.f32 %v8170_v9, %v19111_v23  ;;  %v8306_v22 = vmul.f32 %v8178_v19, %v16659_v2  ;;  %v8172_v45 = vmul.f32 0.5, %v8044_v55  ;;  %v12029_v41 = vld [vmem:[%s13090_s26 + $0x380] ss:$8 sps:$4 sm:$0xff]   ;;  %v12512_v19 = vld [vmem:[%s13090_s26 + $0x374] ss:$8 sps:$4 sm:$0xff]  }
 0xe04   : > { %9577 = vmatpush2.bf16.msra.mxu0 %v12023_v46  ;;  %v17068_v29 = vpop.eup %12314  ;;  %12326 = vtanh.f32 %v7843_v52  ;;  %v17072_v34 = vadd.f32 %v17002_v17, %v16422_v50  ;;  %v17076_v49 = vadd.f32 %v17015_v31, %v16426_v26  ;;  %v8180_v44 = vmul.f32 0.5, %v8052_v54  ;;  %v19115_v52 = vld [vmem:[#allocation71_spill] sm:$0xff]  ;;  %v6996_v54 = vpop.f32.mrf.mxu0  ;;  %v17091_v23 = vld [vmem:[%s13085_s6] sm:$0xff] }
 0xe05   : > { %9578 = vmatprep.subr.bf16.mxu0 %v12031_v40  ;;  %v12317_v3 = vpop.eup %12316  ;;  %v7714_v8 = vadd.f32 %v7586_v39, %v16979_v36  ;;  %v7595_v2 = vmul.f32 0.044715, %v7467_v13  ;;  %v7347_v42 = vmul.f32 %v17057_v43, %v17057_v43  ;;  %v8402_v4 = vpack.c.bf16 %v8306_v22, %v8298_v58  ;;  %v7033_v22 = vpop.f32.mrf.mxu1 }
 0xe06   : > { %19112 = vst [vmem:[#allocation67_spill] sm:$0xff] %v17072_v34  ;;  %19113 = vst [vmem:[#allocation66_spill] sm:$0xff] %v17076_v49  ;;  %9466 = vmatpush2.bf16.msra.mxu1 %v12026_v14  ;;  %v12319_v17 = vpop.eup %12318  ;;  %v6119_v46 = vsub.s32 6, %v19114_v62  ;;  %v8300_v9 = vmul.f32 %v8172_v45, %v19115_v52  ;;  %v8308_v31 = vmul.f32 %v8180_v44, %v16664_v53  ;;  %v7836_v39 = vmul.f32 0.7978846, %v7708_v33 }
 0xe07   : > { %v8401_v40 = vpack.c.bf16 %v16895_v63, %v16802_v24  ;;  %11177 = vmatprep.subr.bf16.mxu1 %v12512_v19  ;;  %v7716_v13 = vadd.f32 %v7588_v11, %v16992_v28  ;;  %v7473_v55 = vmul.f32 %v7345_v18, %v17047_v56  ;;  %v19116_v14 = vsub.s32 4, %v19114_v62  ;;  %9271 = vmatprep.mubr.bf16.mxu1 %v8402_v4 }
 0xe08   : > { %v17098_v53 = vpop.eup %12320  ;;  %v7721_v24 = vadd.f32 %v7593_v30, %v16995_v27  ;;  %v7338_v63 = vmul.f32 %v17072_v34, %v17072_v34  ;;  %v7340_v33 = vmul.f32 %v17076_v49, %v17076_v49  ;;  %v8404_v11 = vpack.c.bf16 %v8308_v31, %v8300_v9  ;;  %9579 = vmatpush2.bf16.msra.mxu0 %v12029_v41  ;;  %v7035_v31 = vpop.f32.mrf.mxu1 }
 0xe09   : > { %v17096_v58 = vrot.slane %v17091_v23, %v19116_v14  ;;  %9272 = vmatmul.mubr.bf16.gmra.mxu1 %v8401_v40  ;;  %v17105_v18 = vpop.eup %12322  ;;  %v8089_v45 = vadd.f32 1.0, %v12317_v3  ;;  %v7723_v44 = vadd.f32 %v7595_v2, %v17006_v25  ;;  %v7475_v52 = vmul.f32 %v7347_v42, %v17057_v43  ;;  %v7146_v42 = vpop.f32.mrf.mxu0 }
 0xe0a   : > { %v8403_v4 = vpack.c.bf16 %v16906_v12, %v16814_v21  ;;  %v8211_v30 = vmul.f32 0.5, %v17044_v0  ;;  %v8091_v19 = vadd.f32 1.0, %v12319_v17  ;;  %v7842_v14 = vmul.f32 0.7978846, %v7714_v8  ;;  %9384 = vmatprep.mubr.bf16.mxu0 %v8404_v11 }
 0xe0b   : > { %v17113_v28 = vrot.slane %v17091_v23, %v6119_v46  ;;  %12328 = vtanh.f32 %v17039_v7  ;;  %v7844_v9 = vmul.f32 0.7978846, %v7716_v13  ;;  %v7601_v3 = vmul.f32 0.044715, %v7473_v55 }
 0xe0c   : > { %v17117_v2 = vadd.f32 %v7033_v22, %v17096_v58  ;;  %9385 = vmatmul.mubr.bf16.gmra.mxu0 %v8403_v4  ;;  %v7849_v21 = vmul.f32 0.7978846, %v7721_v24  ;;  %v7466_v12 = vmul.f32 %v7338_v63, %v17072_v34  ;;  %v7468_v0 = vmul.f32 %v7340_v33, %v17076_v49  ;;  %v7037_v24 = vpop.f32.mrf.mxu1 }
 0xe0d   : > { %v17122_v8 = vadd.f32 %v6883_v15, %v16422_v50  ;;  %v8217_v41 = vmul.f32 0.5, %v8089_v45  ;;  %12330 = vtanh.f32 %v7836_v39  ;;  %v7851_v17 = vmul.f32 0.7978846, %v7723_v44  ;;  %v17137_v39 = vpop.f32.mrf.mxu0 }
 0xe0e   : > { %v7603_v7 = vmul.f32 0.044715, %v7475_v52  ;;  %v8219_v46 = vmul.f32 0.5, %v8091_v19  ;;  %12332 = vtanh.f32 %v7842_v14  ;;  %v17125_v40 = vadd.f32 %v6996_v54, %v16426_v26  ;;  %v19119_v14 = vld [vmem:[#allocation73_spill] sm:$0xff] }
 0xe0f   : > { %v17128_v13 = vadd.f32 %v7146_v42, %v17113_v28  ;;  %v12325_v55 = vpop.eup %12324  ;;  %v17132_v22 = vmul.f32 %v17051_v60, %v16807_v10  ;;  %12334 = vtanh.f32 %v7844_v9  ;;  %v7729_v50 = vadd.f32 %v7601_v3, %v17047_v56  ;;  %v7150_v19 = vpop.f32.mrf.mxu0 }
 0xe10   : > { %v7229_v15 = vmul.f32 %v17117_v2, %v17117_v2  ;;  %12336 = vtanh.f32 %v7849_v21  ;;  %v7594_v26 = vmul.f32 0.044715, %v7466_v12  ;;  %v7596_v54 = vmul.f32 0.044715, %v7468_v0 }
 0xe11   : > { %v7346_v63 = vmul.f32 %v17122_v8, %v17122_v8  ;;  %v12327_v33 = vpop.eup %12326  ;;  %v17142_v11 = vmul.f32 %v8211_v30, %v16822_v6  ;;  %v17145_v10 = vmul.f32 %v8217_v41, %v16874_v32  ;;  %12338 = vtanh.f32 %v7851_v17 }
 0xe12   : > { %v7731_v60 = vadd.f32 %v7603_v7, %v17057_v43  ;;  %v17149_v45 = vmul.f32 %v8219_v46, %v16881_v38  ;;  %v7348_v44 = vmul.f32 %v17125_v40, %v17125_v40  ;;  %v7231_v52 = vmul.f32 %v17128_v13, %v17128_v13 }
 0xe13   : > { %19117 = vst [vmem:[#allocation68_spill] sm:$0xff] %v17145_v10  ;;  %v17156_v4 = vadd.f32 %v7037_v24, %v17096_v58  ;;  %v8097_v6 = vadd.f32 1.0, %v12325_v55  ;;  %v7857_v30 = vmul.f32 0.7978846, %v7729_v50  ;;  %v7357_v32 = vmul.f32 %v7229_v15, %v17117_v2  ;;  %v19121_v15 = vld [vmem:[#allocation69_spill] sm:$0xff]  ;;  %v19127_v10 = vld [vmem:[#allocation75_spill] sm:$0xff] }
 0xe14   : > { %19118 = vst [vmem:[#allocation70_spill] sm:$0xff] %v17149_v45  ;;  %v8058_v9 = vadd.f32 1.0, %v19119_v14  ;;  %v8099_v3 = vadd.f32 1.0, %v12327_v33  ;;  %v7722_v38 = vadd.f32 %v7594_v26, %v17072_v34  ;;  %v7724_v42 = vadd.f32 %v7596_v54, %v17076_v49 }
 0xe15   : > { %v7474_v21 = vmul.f32 %v7346_v63, %v17122_v8  ;;  %v7859_v12 = vmul.f32 0.7978846, %v7731_v60  ;;  %v19120_v0 = vsub.s32 5, %v19114_v62  ;;  %v8066_v17 = vadd.f32 1.0, %v16974_v20 }
 0xe16   : > { %v8186_v7 = vmul.f32 0.5, %v8058_v9  ;;  %v7359_v46 = vmul.f32 %v7231_v52, %v17128_v13  ;;  %v7237_v55 = vmul.f32 %v17156_v4, %v17156_v4  ;;  %v17173_v50 = vadd.f32 %v7150_v19, %v17113_v28  ;;  %v7039_v19 = vpop.f32.mrf.mxu1 }
 0xe17   : > { %v17166_v41 = vrot.slane %v17091_v23, %v19120_v0  ;;  %v8060_v24 = vadd.f32 1.0, %v19121_v15  ;;  %12340 = vtanh.f32 %v7857_v30  ;;  %v7485_v26 = vmul.f32 0.044715, %v7357_v32  ;;  %v19123_v0 = vld [vmem:[#allocation76_spill] sm:$0xff] }
 0xe18   : > { %v6123_v54 = vsub.s32 7, %v19114_v62  ;;  %v8194_v63 = vmul.f32 0.5, %v8066_v17  ;;  %v17177_v33 = vpop.eup %12328  ;;  %v8225_v60 = vmul.f32 0.5, %v8097_v6  ;;  %v7476_v20 = vmul.f32 %v7348_v44, %v17125_v40  ;;  %v19124_v30 = vld [vmem:[#allocation80_spill] sm:$0xff] }
 0xe19   : > { %v8068_v52 = vadd.f32 1.0, %v16982_v48  ;;  %v8188_v14 = vmul.f32 0.5, %v8060_v24  ;;  %12342 = vtanh.f32 %v7859_v12  ;;  %v17182_v9 = vadd.f32 %v7035_v31, %v17166_v41 }
 0xe1a   : > { %v8314_v15 = vmul.f32 %v8186_v7, %v19123_v0  ;;  %v8322_v32 = vmul.f32 %v8194_v63, %v19124_v30  ;;  %v17186_v49 = vpop.eup %12330  ;;  %v7487_v62 = vmul.f32 0.044715, %v7359_v46  ;;  %v7365_v17 = vmul.f32 %v7237_v55, %v17156_v4  ;;  %v7152_v7 = vpop.f32.mrf.mxu0  ;;  %v19125_v46 = vld [vmem:[#allocation78_spill] sm:$0xff]  ;;  %v19126_v55 = vld [vmem:[#allocation81_spill] sm:$0xff] }
 0xe1b   : > { %19122 = vst [vmem:[#allocation29_spill] sm:$0xff] %v17182_v9  ;;  %v7239_v44 = vmul.f32 %v17173_v50, %v17173_v50  ;;  %v8196_v6 = vmul.f32 0.5, %v8068_v52  ;;  %v17191_v48 = vpop.eup %12332  ;;  %v7602_v12 = vmul.f32 0.044715, %v7474_v21  ;;  %v7613_v31 = vadd.f32 %v7485_v26, %v17117_v2  ;;  %v7043_v26 = vpop.f32.mrf.mxu1 }
 0xe1c   : > { %v17195_v24 = vrot.slane %v17091_v23, %v6123_v54  ;;  %v8410_v0 = vpack.c.bf16 %v8322_v32, %v8314_v15  ;;  %v17197_v63 = vpop.eup %12334  ;;  %v7604_v30 = vmul.f32 0.044715, %v7476_v20  ;;  %v8316_v34 = vmul.f32 %v8188_v14, %v19125_v46 }
 0xe1d   : > { %v8324_v45 = vmul.f32 %v8196_v6, %v19126_v55  ;;  %v8409_v52 = vpack.c.bf16 %v17020_v37, %v19127_v10  ;;  %v12337_v5 = vpop.eup %12336  ;;  %v8227_v36 = vmul.f32 0.5, %v8099_v3  ;;  %v7850_v21 = vmul.f32 0.7978846, %v7722_v38  ;;  %v7156_v3 = vpop.f32.mrf.mxu0  ;;  %v19128_v38 = vld [vmem:[#allocation74_spill] sm:$0xff] }
 0xe1e   : > { %v7852_v61 = vmul.f32 0.7978846, %v7724_v42  ;;  %v7230_v23 = vmul.f32 %v17182_v9, %v17182_v9  ;;  %9281 = vmatprep.mubr.bf16.mxu1 %v8410_v0  ;;  %v12339_v54 = vpop.eup %12338  ;;  %v7615_v15 = vadd.f32 %v7487_v62, %v17128_v13  ;;  %v7493_v20 = vmul.f32 0.044715, %v7365_v17 }
 0xe1f   : > { %v7367_v14 = vmul.f32 %v7239_v44, %v17173_v50  ;;  %v8412_v32 = vpack.c.bf16 %v8324_v45, %v8316_v34  ;;  %9282 = vmatmul.mubr.bf16.gmra.mxu1 %v8409_v52  ;;  %v7730_v6 = vadd.f32 %v7602_v12, %v17122_v8  ;;  %v7741_v37 = vmul.f32 0.7978846, %v7613_v31 }
 0xe20   : > { %v17210_v10 = vadd.f32 %v17137_v39, %v17195_v24  ;;  %v8411_v42 = vpack.c.bf16 %v17023_v51, %v19128_v38  ;;  %v17215_v0 = vmul.f32 %v8225_v60, %v16937_v47  ;;  %v8105_v62 = vadd.f32 1.0, %v12337_v5 }
 0xe21   : > { %v7732_v17 = vadd.f32 %v7604_v30, %v17125_v40  ;;  %v17219_v34 = vadd.f32 %v7043_v26, %v17096_v58  ;;  %9394 = vmatprep.mubr.bf16.mxu0 %v8412_v32  ;;  %v8107_v45 = vadd.f32 1.0, %v12339_v54  ;;  %12344 = vtanh.f32 %v7850_v21 }
 0xe22   : > { %v7358_v44 = vmul.f32 %v7230_v23, %v17182_v9  ;;  %v17223_v39 = vadd.f32 %v7039_v19, %v17166_v41  ;;  %9395 = vmatmul.mubr.bf16.gmra.mxu0 %v8411_v42  ;;  %v7743_v12 = vmul.f32 0.7978846, %v7615_v15  ;;  %v7621_v51 = vadd.f32 %v7493_v20, %v17156_v4  ;;  %v7045_v15 = vpop.f32.mrf.mxu1 }
 0xe23   : > { %v7495_v47 = vmul.f32 0.044715, %v7367_v14  ;;  %v17227_v5 = vadd.f32 %v7156_v3, %v17113_v28  ;;  %v7858_v60 = vmul.f32 0.7978846, %v7730_v6  ;;  %12346 = vtanh.f32 %v7741_v37  ;;  %v7158_v6 = vpop.f32.mrf.mxu0 }
 0xe24   : > { %v7232_v31 = vmul.f32 %v17210_v10, %v17210_v10  ;;  %v17232_v30 = vadd.f32 %v7152_v7, %v17195_v24  ;;  %v12341_v46 = vpop.eup %12340  ;;  %v17235_v19 = vmul.f32 %v8227_v36, %v16944_v57  ;;  %v8233_v55 = vmul.f32 0.5, %v8105_v62 }
 0xe25   : > { %v7860_v52 = vmul.f32 0.7978846, %v7732_v17  ;;  %v7245_v21 = vmul.f32 %v17219_v34, %v17219_v34  ;;  %v8235_v23 = vmul.f32 0.5, %v8107_v45  ;;  %12348 = vtanh.f32 %v7852_v61 }
 0xe26   : > { %19129 = vst [vmem:[#allocation71_spill] sm:$0xff] %v17232_v30  ;;  %v7486_v26 = vmul.f32 0.044715, %v7358_v44  ;;  %v7238_v54 = vmul.f32 %v17223_v39, %v17223_v39  ;;  %v12343_v20 = vpop.eup %12342  ;;  %12350 = vtanh.f32 %v7743_v12  ;;  %v7749_v7 = vmul.f32 0.7978846, %v7621_v51 }
 0xe27   : > { %v7623_v14 = vadd.f32 %v7495_v47, %v17173_v50  ;;  %v7247_v57 = vmul.f32 %v17227_v5, %v17227_v5  ;;  %v8113_v36 = vadd.f32 1.0, %v12341_v46  ;;  %12352 = vtanh.f32 %v7858_v60  ;;  %v7160_v46 = vpop.f32.mrf.mxu0 }
 0xe28   : > { %v7360_v32 = vmul.f32 %v7232_v31, %v17210_v10  ;;  %v7240_v61 = vmul.f32 %v17232_v30, %v17232_v30  ;;  %v17248_v37 = vmul.f32 %v8233_v55, %v16995_v27  ;;  %12354 = vtanh.f32 %v7860_v52  ;;  %v7047_v27 = vpop.f32.mrf.mxu1 }
 0xe29   : > { %v7373_v3 = vmul.f32 %v7245_v21, %v17219_v34  ;;  %v17252_v38 = vadd.f32 %v7045_v15, %v17166_v41  ;;  %v17255_v42 = vmul.f32 %v8235_v23, %v17006_v25  ;;  %v8115_v62 = vadd.f32 1.0, %v12343_v20 }
 0xe2a   : > { %v7614_v17 = vadd.f32 %v7486_v26, %v17182_v9  ;;  %v7366_v45 = vmul.f32 %v7238_v54, %v17223_v39  ;;  %12356 = vtanh.f32 %v7749_v7  ;;  %v7751_v44 = vmul.f32 0.7978846, %v7623_v14 }
 0xe2b   : > { %19130 = vst [vmem:[#allocation73_spill] sm:$0xff] %v17252_v38  ;;  %v7375_v12 = vmul.f32 %v7247_v57, %v17227_v5  ;;  %v8074_v51 = vadd.f32 1.0, %v17061_v16  ;;  %v8241_v47 = vmul.f32 0.5, %v8113_v36  ;;  %v7488_v60 = vmul.f32 0.044715, %v7360_v32  ;;  %v7049_v57 = vpop.f32.mrf.mxu1  ;;  %v19132_v36 = vld [vmem:[#allocation82_spill] sm:$0xff] }
 0xe2c   : > { %v7368_v31 = vmul.f32 %v7240_v61, %v17232_v30  ;;  %v8082_v25 = vadd.f32 1.0, %v17098_v53  ;;  %v7501_v55 = vmul.f32 0.044715, %v7373_v3  ;;  %v7246_v52 = vmul.f32 %v17252_v38, %v17252_v38 }
 0xe2d   : > { %v17266_v21 = vadd.f32 %v7158_v6, %v17195_v24  ;;  %v8202_v23 = vmul.f32 0.5, %v8074_v51  ;;  %v17269_v26 = vadd.f32 %v7047_v27, %v17096_v58  ;;  %v8076_v16 = vadd.f32 1.0, %v17068_v29 }
 0xe2e   : > { %v8210_v54 = vmul.f32 0.5, %v8082_v25  ;;  %v8084_v15 = vadd.f32 1.0, %v17105_v18  ;;  %v17273_v20 = vpop.eup %12344  ;;  %12358 = vtanh.f32 %v7751_v44  ;;  %v7494_v53 = vmul.f32 0.044715, %v7366_v45 }
 0xe2f   : > { %19131 = vst [vmem:[#allocation69_spill] sm:$0xff] %v17266_v21  ;;  %v7503_v7 = vmul.f32 0.044715, %v7375_v12  ;;  %v17276_v14 = vadd.f32 %v7160_v46, %v17113_v28  ;;  %v8330_v32 = vmul.f32 %v8202_v23, %v19132_v36  ;;  %v8204_v6 = vmul.f32 0.5, %v8076_v16  ;;  %v19133_v46 = vld [vmem:[#allocation83_spill] sm:$0xff]  ;;  %v19134_v23 = vld [vmem:[#allocation64_spill] sm:$0xff] }
 0xe30   : > { %v8338_v61 = vmul.f32 %v8210_v54, %v16878_v35  ;;  %v8212_v3 = vmul.f32 0.5, %v8084_v15  ;;  %v12347_v27 = vpop.eup %12346  ;;  %v7496_v51 = vmul.f32 0.044715, %v7368_v31  ;;  %v7629_v29 = vadd.f32 %v7501_v55, %v17219_v34 }
 0xe31   : > { %v7374_v18 = vmul.f32 %v7246_v52, %v17252_v38  ;;  %v7248_v45 = vmul.f32 %v17266_v21, %v17266_v21  ;;  %v7253_v44 = vmul.f32 %v17269_v26, %v17269_v26  ;;  %v8332_v25 = vmul.f32 %v8204_v6, %v19133_v46  ;;  %v7053_v6 = vpop.f32.mrf.mxu1 }
 0xe32   : > { %v8418_v12 = vpack.c.bf16 %v8338_v61, %v8330_v32  ;;  %v8340_v36 = vmul.f32 %v8212_v3, %v19134_v23  ;;  %v17288_v35 = vpop.eup %12348  ;;  %v7742_v54 = vmul.f32 0.7978846, %v7614_v17  ;;  %v7616_v31 = vadd.f32 %v7488_v60, %v17210_v10  ;;  %v7162_v61 = vpop.f32.mrf.mxu0 }
 0xe33   : > { %v7622_v55 = vadd.f32 %v7494_v53, %v17223_v39  ;;  %v8417_v52 = vpack.c.bf16 %v17132_v22, %v17030_v1  ;;  %v12351_v16 = vpop.eup %12350  ;;  %v7997_v15 = vadd.f32 1.0, %v12347_v27  ;;  %v7631_v9 = vadd.f32 %v7503_v7, %v17227_v5 }
 0xe34   : > { %v7255_v32 = vmul.f32 %v17276_v14, %v17276_v14  ;;  %9291 = vmatprep.mubr.bf16.mxu1 %v8418_v12  ;;  %v8420_v3 = vpack.c.bf16 %v8340_v36, %v8332_v25  ;;  %v17297_v46 = vpop.eup %12352  ;;  %v7502_v17 = vmul.f32 0.044715, %v7374_v18  ;;  %v7376_v60 = vmul.f32 %v7248_v45, %v17266_v21 }
 0xe35   : > { %v17301_v53 = vadd.f32 %v7049_v57, %v17166_v41  ;;  %9292 = vmatmul.mubr.bf16.gmra.mxu1 %v8417_v52  ;;  %v8419_v1 = vpack.c.bf16 %v17142_v11, %v17033_v59  ;;  %v17305_v22 = vpop.eup %12354  ;;  %v8243_v7 = vmul.f32 0.5, %v8115_v62  ;;  %v7624_v27 = vadd.f32 %v7496_v51, %v17232_v30  ;;  %v7166_v51 = vpop.f32.mrf.mxu0 }
 0xe36   : > { %v7757_v23 = vmul.f32 0.7978846, %v7629_v29  ;;  %v7381_v12 = vmul.f32 %v7253_v44, %v17269_v26  ;;  %9404 = vmatprep.mubr.bf16.mxu0 %v8420_v3  ;;  %v17310_v18 = vmul.f32 %v8241_v47, %v17047_v56  ;;  %v7999_v45 = vadd.f32 1.0, %v12351_v16  ;;  %v7055_v47 = vpop.f32.mrf.mxu1 }
 0xe37   : > { %19135 = vst [vmem:[#allocation76_spill] sm:$0xff] %v17301_v53  ;;  %v7744_v25 = vmul.f32 0.7978846, %v7616_v31  ;;  %v17313_v57 = vadd.f32 %v7053_v6, %v17096_v58  ;;  %9405 = vmatmul.mubr.bf16.gmra.mxu0 %v8419_v1  ;;  %v12357_v36 = vpop.eup %12356  ;;  %12360 = vtanh.f32 %v7742_v54  ;;  %v7750_v59 = vmul.f32 0.7978846, %v7622_v55 }
 0xe38   : > { %v7759_v11 = vmul.f32 0.7978846, %v7631_v9  ;;  %v7383_v62 = vmul.f32 %v7255_v32, %v17276_v14  ;;  %v8125_v29 = vmul.f32 0.5, %v7997_v15  ;;  %v7630_v44 = vadd.f32 %v7502_v17, %v17252_v38 }
 0xe39   : > { %v7504_v52 = vmul.f32 0.044715, %v7376_v60  ;;  %v7254_v56 = vmul.f32 %v17301_v53, %v17301_v53  ;;  %v7752_v31 = vmul.f32 0.7978846, %v7624_v27  ;;  %12362 = vtanh.f32 %v7757_v23  ;;  %v7168_v60 = vpop.f32.mrf.mxu0  ;;  %v7057_v23 = vpop.f32.mrf.mxu1 }
 0xe3a   : > { %v7509_v16 = vmul.f32 0.044715, %v7381_v12  ;;  %v17320_v6 = vadd.f32 %v7162_v61, %v17195_v24  ;;  %v8127_v54 = vmul.f32 0.5, %v7999_v45  ;;  %12364 = vtanh.f32 %v7744_v25 }
 0xe3b   : > { %v8005_v9 = vadd.f32 1.0, %v12357_v36  ;;  %v7261_v55 = vmul.f32 %v17313_v57, %v17313_v57  ;;  %v12359_v15 = vpop.eup %12358  ;;  %v17325_v32 = vmul.f32 %v8243_v7, %v17057_v43  ;;  %12366 = vtanh.f32 %v7759_v11 }
 0xe3c   : > { %19136 = vst [vmem:[#allocation80_spill] sm:$0xff] %v17320_v6  ;;  %v7511_v3 = vmul.f32 0.044715, %v7383_v62  ;;  %v17328_v17 = vadd.f32 %v7166_v51, %v17113_v28  ;;  %12368 = vtanh.f32 %v7750_v59  ;;  %v7758_v1 = vmul.f32 0.7978846, %v7630_v44  ;;  %v7170_v51 = vpop.f32.mrf.mxu0 }
 0xe3d   : > { %v7632_v61 = vadd.f32 %v7504_v52, %v17266_v21  ;;  %v7382_v27 = vmul.f32 %v7254_v56, %v17301_v53  ;;  %v17333_v12 = vmul.f32 %v8125_v29, %v17117_v2  ;;  %12370 = vtanh.f32 %v7752_v31  ;;  %v17347_v56 = vpop.f32.mrf.mxu1 }
 0xe3e   : > { %v7637_v43 = vadd.f32 %v7509_v16, %v17269_v26  ;;  %v7256_v7 = vmul.f32 %v17320_v6, %v17320_v6  ;;  %v17339_v45 = vmul.f32 %v8127_v54, %v17128_v13  ;;  %v8133_v25 = vmul.f32 0.5, %v8005_v9 }
 0xe3f   : > { %v7389_v36 = vmul.f32 %v7261_v55, %v17313_v57  ;;  %v8090_v59 = vadd.f32 1.0, %v17177_v33  ;;  %v8007_v11 = vadd.f32 1.0, %v12359_v15  ;;  %v7639_v62 = vadd.f32 %v7511_v3, %v17276_v14 }
 0xe40   : > { %19137 = vst [vmem:[#allocation78_spill] sm:$0xff] %v17339_v45  ;;  %v7263_v2 = vmul.f32 %v17328_v17, %v17328_v17  ;;  %v8098_v29 = vadd.f32 1.0, %v17191_v48  ;;  %12372 = vtanh.f32 %v7758_v1  ;;  %v7760_v44 = vmul.f32 0.7978846, %v7632_v61  ;;  %v7172_v61 = vpop.f32.mrf.mxu0 }
 0xe41   : > { %v7510_v52 = vmul.f32 0.044715, %v7382_v27  ;;  %v8218_v13 = vmul.f32 0.5, %v8090_v59  ;;  %v7765_v31 = vmul.f32 0.7978846, %v7637_v43  ;;  %v7384_v16 = vmul.f32 %v7256_v7, %v17320_v6  ;;  %v19140_v27 = vld [vmem:[#allocation72_spill] sm:$0xff] }
 0xe42   : > { %v17351_v33 = vadd.f32 %v7057_v23, %v17096_v58  ;;  %v8226_v54 = vmul.f32 0.5, %v8098_v29  ;;  %v7517_v9 = vmul.f32 0.044715, %v7389_v36  ;;  %v17354_v55 = vadd.f32 %v7170_v51, %v17113_v28  ;;  %v19141_v59 = vld [vmem:[#allocation79_spill] sm:$0xff]  ;;  %v7063_v51 = vpop.f32.mrf.mxu1 }
 0xe43   : > { %v8092_v15 = vadd.f32 1.0, %v17186_v49  ;;  %v8100_v48 = vadd.f32 1.0, %v17197_v63  ;;  %v7767_v3 = vmul.f32 0.7978846, %v7639_v62  ;;  %v7391_v1 = vmul.f32 %v7263_v2, %v17328_v17 }
 0xe44   : > { %19138 = vst [vmem:[#allocation81_spill] sm:$0xff] %v17351_v33  ;;  %19139 = vst [vmem:[#allocation75_spill] sm:$0xff] %v17354_v55  ;;  %v8346_v43 = vmul.f32 %v8218_v13, %v19140_v27  ;;  %v8354_v7 = vmul.f32 %v8226_v54, %v19141_v59  ;;  %v17361_v21 = vpop.eup %12360  ;;  %v8135_v23 = vmul.f32 0.5, %v8007_v11  ;;  %v17364_v36 = vadd.f32 %v7055_v47, %v17166_v41  ;;  %v19143_v27 = vld [vmem:[#allocation77_spill] sm:$0xff] }
 0xe45   : > { %v8220_v29 = vmul.f32 0.5, %v8092_v15  ;;  %v8228_v38 = vmul.f32 0.5, %v8100_v48  ;;  %12374 = vtanh.f32 %v7765_v31  ;;  %v7512_v49 = vmul.f32 0.044715, %v7384_v16  ;;  %v19144_v59 = vld [vmem:[#allocation65_spill] sm:$0xff]  ;;  %v7176_v16 = vpop.f32.mrf.mxu0  ;;  %v19145_v48 = vld [vmem:[#allocation68_spill] sm:$0xff] }
 0xe46   : > { %19142 = vst [vmem:[#allocation74_spill] sm:$0xff] %v17364_v36  ;;  %v7269_v63 = vmul.f32 %v17351_v33, %v17351_v33  ;;  %v8426_v62 = vpack.c.bf16 %v8354_v7, %v8346_v43  ;;  %v12363_v2 = vpop.eup %12362  ;;  %v7645_v13 = vadd.f32 %v7517_v9, %v17313_v57  ;;  %v7271_v54 = vmul.f32 %v17354_v55, %v17354_v55 }
 0xe47   : > { %v8348_v11 = vmul.f32 %v8220_v29, %v19143_v27  ;;  %v8356_v47 = vmul.f32 %v8228_v38, %v19144_v59  ;;  %v17373_v30 = vpop.eup %12364  ;;  %v17376_v15 = vmul.f32 %v8133_v25, %v17156_v4  ;;  %12376 = vtanh.f32 %v7767_v3  ;;  %v17386_v59 = vpop.f32.mrf.mxu1 }
 0xe48   : > { %v7519_v31 = vmul.f32 0.044715, %v7391_v1  ;;  %9301 = vmatprep.mubr.bf16.mxu1 %v8426_v62  ;;  %v8425_v43 = vpack.c.bf16 %v17215_v0, %v19145_v48  ;;  %v12367_v9 = vpop.eup %12366  ;;  %v7638_v7 = vadd.f32 %v7510_v52, %v17301_v53  ;;  %v7262_v29 = vmul.f32 %v17364_v36, %v17364_v36  ;;  %v19147_v0 = vld [vmem:[#allocation70_spill] sm:$0xff] }
 0xe49   : > { %v17384_v38 = vadd.f32 %v7168_v60, %v17195_v24  ;;  %v8428_v27 = vpack.c.bf16 %v8356_v47, %v8348_v11  ;;  %v17388_v4 = vpop.eup %12368  ;;  %v8013_v25 = vadd.f32 1.0, %v12363_v2  ;;  %v7640_v3 = vadd.f32 %v7512_v49, %v17320_v6 }
 0xe4a   : > { %v7397_v1 = vmul.f32 %v7269_v63, %v17351_v33  ;;  %9302 = vmatmul.mubr.bf16.gmra.mxu1 %v8425_v43  ;;  %v8427_v52 = vpack.c.bf16 %v17235_v19, %v19147_v0  ;;  %v17394_v62 = vpop.eup %12370  ;;  %v17397_v48 = vmul.f32 %v8135_v23, %v17173_v50  ;;  %12378 = vtanh.f32 %v7760_v44  ;;  %v17407_v19 = vpop.f32.mrf.mxu0 }
 0xe4b   : > { %19146 = vst [vmem:[#allocation82_spill] sm:$0xff] %v17384_v38  ;;  %v7773_v60 = vmul.f32 0.7978846, %v7645_v13  ;;  %v7399_v11 = vmul.f32 %v7271_v54, %v17354_v55  ;;  %9414 = vmatprep.mubr.bf16.mxu0 %v8428_v27  ;;  %v8015_v47 = vadd.f32 1.0, %v12367_v9  ;;  %v7647_v2 = vadd.f32 %v7519_v31, %v17328_v17  ;;  %v7067_v54 = vpop.f32.mrf.mxu1 }
 0xe4c   : > { %19148 = vst [vmem:[#allocation83_spill] sm:$0xff] %v17397_v48  ;;  %v17402_v49 = vadd.f32 %v7063_v51, %v17096_v58  ;;  %v17405_v63 = vadd.f32 %v7176_v16, %v17113_v28  ;;  %9415 = vmatmul.mubr.bf16.gmra.mxu0 %v8427_v52  ;;  %v7766_v44 = vmul.f32 0.7978846, %v7638_v7  ;;  %v7390_v23 = vmul.f32 %v7262_v29, %v17364_v36 }
 0xe4d   : > { %v7264_v13 = vmul.f32 %v17384_v38, %v17384_v38  ;;  %v17414_v31 = vpop.eup %12372  ;;  %v8141_v51 = vmul.f32 0.5, %v8013_v25  ;;  %v7768_v43 = vmul.f32 0.7978846, %v7640_v3  ;;  %v7525_v9 = vmul.f32 0.044715, %v7397_v1  ;;  %v7180_v3 = vpop.f32.mrf.mxu0 }
 0xe4e   : > { %19149 = vst [vmem:[#allocation64_spill] sm:$0xff] %v17414_v31  ;;  %v17418_v16 = vadd.f32 %v17347_v56, %v17166_v41  ;;  %12380 = vtanh.f32 %v7773_v60  ;;  %v7527_v7 = vmul.f32 0.044715, %v7399_v11  ;;  %v17423_v29 = vadd.f32 %v7172_v61, %v17195_v24  ;;  %v17433_v60 = vpop.f32.mrf.mxu1 }
 0xe4f   : > { %v8143_v0 = vmul.f32 0.5, %v8015_v47  ;;  %v7775_v52 = vmul.f32 0.7978846, %v7647_v2  ;;  %v7277_v50 = vmul.f32 %v17402_v49, %v17402_v49  ;;  %v7279_v25 = vmul.f32 %v17405_v63, %v17405_v63  ;;  %v17456_v53 = vpop.f32.mrf.mxu0 }
 0xe50   : > { %19150 = vst [vmem:[#allocation72_spill] sm:$0xff] %v17423_v29  ;;  %12382 = vtanh.f32 %v7766_v44  ;;  %v7518_v56 = vmul.f32 0.044715, %v7390_v23  ;;  %v7392_v1 = vmul.f32 %v7264_v13, %v17384_v38  ;;  %v17431_v27 = vadd.f32 %v7067_v54, %v17096_v58 }
 0xe51   : > { %v17436_v61 = vmul.f32 %v8141_v51, %v17219_v34  ;;  %12384 = vtanh.f32 %v7768_v43  ;;  %v7653_v11 = vadd.f32 %v7525_v9, %v17351_v33  ;;  %v7270_v47 = vmul.f32 %v17418_v16, %v17418_v16 }
 0xe52   : > { %v12375_v2 = vpop.eup %12374  ;;  %v7655_v44 = vadd.f32 %v7527_v7, %v17354_v55  ;;  %v7272_v23 = vmul.f32 %v17423_v29, %v17423_v29  ;;  %v17445_v13 = vadd.f32 %v7180_v3, %v17113_v28  ;;  %v8106_v54 = vadd.f32 1.0, %v17273_v20  ;;  %v7073_v3 = vpop.f32.mrf.mxu1 }
 0xe53   : > { %19151 = vst [vmem:[#allocation79_spill] sm:$0xff] %v17436_v61  ;;  %v17449_v34 = vmul.f32 %v8143_v0, %v17227_v5  ;;  %12386 = vtanh.f32 %v7775_v52  ;;  %v7405_v51 = vmul.f32 %v7277_v50, %v17402_v49  ;;  %v7407_v43 = vmul.f32 %v7279_v25, %v17405_v63 }
 0xe54   : > { %v12377_v9 = vpop.eup %12376  ;;  %v7646_v61 = vadd.f32 %v7518_v56, %v17364_v36  ;;  %v7520_v7 = vmul.f32 0.044715, %v7392_v1  ;;  %v7285_v6 = vmul.f32 %v17431_v27, %v17431_v27  ;;  %v8114_v20 = vadd.f32 1.0, %v17297_v46 }
 0xe55   : > { %19152 = vst [vmem:[#allocation77_spill] sm:$0xff] %v17449_v34  ;;  %v8021_v31 = vadd.f32 1.0, %v12375_v2  ;;  %v7781_v5 = vmul.f32 0.7978846, %v7653_v11  ;;  %v7398_v0 = vmul.f32 %v7270_v47, %v17418_v16  ;;  %v8234_v52 = vmul.f32 0.5, %v8106_v54  ;;  %v17467_v11 = vpop.f32.mrf.mxu0  ;;  %v19154_v47 = vld [vmem:[#allocation67_spill] sm:$0xff]  ;;  %v17472_v54 = vpop.f32.mrf.mxu1 }
 0xe56   : > { %v7783_v50 = vmul.f32 0.7978846, %v7655_v44  ;;  %v7400_v25 = vmul.f32 %v7272_v23, %v17423_v29  ;;  %v7287_v56 = vmul.f32 %v17445_v13, %v17445_v13  ;;  %v8242_v1 = vmul.f32 0.5, %v8114_v20 }
 0xe57   : > { %v17463_v36 = vpop.eup %12378  ;;  %v8023_v34 = vadd.f32 1.0, %v12377_v9  ;;  %v7533_v55 = vmul.f32 0.044715, %v7405_v51  ;;  %v7535_v45 = vmul.f32 0.044715, %v7407_v43  ;;  %v8108_v48 = vadd.f32 1.0, %v17288_v35 }
 0xe58   : > { %19153 = vst [vmem:[#allocation65_spill] sm:$0xff] %v17463_v36  ;;  %v7413_v46 = vmul.f32 %v7285_v6, %v17431_v27  ;;  %v8362_v2 = vmul.f32 %v8234_v52, %v19154_v47  ;;  %v8370_v44 = vmul.f32 %v8242_v1, %v17122_v8  ;;  %v8116_v23 = vadd.f32 1.0, %v17305_v22 }
 0xe59   : > { %12388 = vtanh.f32 %v7781_v5  ;;  %v7526_v20 = vmul.f32 0.044715, %v7398_v0  ;;  %v17476_v51 = vadd.f32 %v17386_v59, %v17166_v41  ;;  %v8236_v43 = vmul.f32 0.5, %v8108_v48  ;;  %v19157_v48 = vld [vmem:[#allocation66_spill] sm:$0xff] }
 0xe5a   : > { %v7528_v35 = vmul.f32 0.044715, %v7400_v25  ;;  %v7415_v6 = vmul.f32 %v7287_v56, %v17445_v13  ;;  %v8434_v9 = vpack.c.bf16 %v8370_v44, %v8362_v2  ;;  %v8244_v36 = vmul.f32 0.5, %v8116_v23  ;;  %v17489_v56 = vpop.f32.mrf.mxu0 }
 0xe5b   : > { %19155 = vst [vmem:[#allocation68_spill] sm:$0xff] %v17476_v51  ;;  %v12381_v33 = vpop.eup %12380  ;;  %12390 = vtanh.f32 %v7783_v50  ;;  %v7661_v8 = vadd.f32 %v7533_v55, %v17402_v49  ;;  %v17482_v22 = vadd.f32 %v17407_v19, %v17195_v24  ;;  %v8433_v5 = vpack.c.bf16 %v17310_v18, %v17248_v37  ;;  %v17491_v50 = vpop.f32.mrf.mxu1 }
 0xe5c   : > { %v7663_v59 = vadd.f32 %v7535_v45, %v17405_v63  ;;  %v7541_v0 = vmul.f32 0.044715, %v7413_v46  ;;  %9311 = vmatprep.mubr.bf16.mxu1 %v8434_v9  ;;  %v8364_v52 = vmul.f32 %v8236_v43, %v19157_v48  ;;  %v8372_v25 = vmul.f32 %v8244_v36, %v17125_v40 }
 0xe5d   : > { %19156 = vst [vmem:[#allocation70_spill] sm:$0xff] %v17482_v22  ;;  %v17493_v55 = vpop.eup %12382  ;;  %v7774_v1 = vmul.f32 0.7978846, %v7646_v61  ;;  %v7648_v19 = vadd.f32 %v7520_v7, %v17384_v38  ;;  %v7654_v47 = vadd.f32 %v7526_v20, %v17418_v16  ;;  %v7278_v37 = vmul.f32 %v17476_v51, %v17476_v51  ;;  %9312 = vmatmul.mubr.bf16.gmra.mxu1 %v8433_v5 }
 0xe5e   : > { %v17499_v18 = vpop.eup %12384  ;;  %v8029_v45 = vadd.f32 1.0, %v12381_v33  ;;  %v7656_v40 = vadd.f32 %v7528_v35, %v17423_v29  ;;  %v7543_v36 = vmul.f32 0.044715, %v7415_v6  ;;  %v8436_v46 = vpack.c.bf16 %v8372_v25, %v8364_v52  ;;  %v17510_v33 = vpop.f32.mrf.mxu0 }
 0xe5f   : > { %v8149_v2 = vmul.f32 0.5, %v8021_v31  ;;  %v7789_v44 = vmul.f32 0.7978846, %v7661_v8  ;;  %v7280_v61 = vmul.f32 %v17482_v22, %v17482_v22  ;;  %v8435_v7 = vpack.c.bf16 %v17325_v32, %v17255_v42  ;;  %v17512_v35 = vpop.f32.mrf.mxu1 }
 0xe60   : > { %v12387_v23 = vpop.eup %12386  ;;  %v8151_v20 = vmul.f32 0.5, %v8023_v34  ;;  %v7791_v43 = vmul.f32 0.7978846, %v7663_v59  ;;  %v7669_v9 = vadd.f32 %v7541_v0, %v17431_v27  ;;  %v17508_v5 = vadd.f32 %v7073_v3, %v17096_v58  ;;  %9424 = vmatprep.mubr.bf16.mxu0 %v8436_v46 }
 0xe61   : > { %12392 = vtanh.f32 %v7774_v1  ;;  %v7776_v31 = vmul.f32 0.7978846, %v7648_v19  ;;  %v7782_v6 = vmul.f32 0.7978846, %v7654_v47  ;;  %v7406_v8 = vmul.f32 %v7278_v37, %v17476_v51  ;;  %9425 = vmatmul.mubr.bf16.gmra.mxu0 %v8435_v7  ;;  %v17531_v19 = vpop.f32.mrf.mxu0 }
 0xe62   : > { %v8157_v42 = vmul.f32 0.5, %v8029_v45  ;;  %v7784_v32 = vmul.f32 0.7978846, %v7656_v40  ;;  %v7671_v34 = vadd.f32 %v7543_v36, %v17445_v13  ;;  %v17518_v59 = vadd.f32 %v17433_v60, %v17166_v41  ;;  %v17533_v60 = vpop.f32.mrf.mxu1 }
 0xe63   : > { %v8031_v3 = vadd.f32 1.0, %v12387_v23  ;;  %12394 = vtanh.f32 %v7789_v44  ;;  %v7408_v0 = vmul.f32 %v7280_v61, %v17482_v22  ;;  %v17523_v48 = vadd.f32 %v17456_v53, %v17195_v24 }
 0xe64   : > { %12396 = vtanh.f32 %v7791_v43  ;;  %v7797_v52 = vmul.f32 0.7978846, %v7669_v9  ;;  %v7293_v25 = vmul.f32 %v17508_v5, %v17508_v5  ;;  %v17529_v1 = vadd.f32 %v17467_v11, %v17113_v28  ;;  %v17554_v23 = vpop.f32.mrf.mxu1 }
 0xe65   : > { %19158 = vst [vmem:[#allocation67_spill] sm:$0xff] %v17523_v48  ;;  %v17536_v47 = vmul.f32 %v8149_v2, %v17269_v26  ;;  %v17539_v37 = vmul.f32 %v8151_v20, %v17276_v14  ;;  %12398 = vtanh.f32 %v7776_v31  ;;  %v7534_v53 = vmul.f32 0.044715, %v7406_v8 }
 0xe66   : > { %19159 = vst [vmem:[#allocation66_spill] sm:$0xff] %v17529_v1  ;;  %v12389_v45 = vpop.eup %12388  ;;  %v17542_v40 = vmul.f32 %v8157_v42, %v17313_v57  ;;  %12400 = vtanh.f32 %v7782_v6  ;;  %v7799_v36 = vmul.f32 0.7978846, %v7671_v34  ;;  %v7286_v11 = vmul.f32 %v17518_v59, %v17518_v59  ;;  %v17551_v57 = vpop.f32.mrf.mxu0 }
 0xe67   : > { %v8159_v46 = vmul.f32 0.5, %v8031_v3  ;;  %12402 = vtanh.f32 %v7784_v32  ;;  %v7536_v44 = vmul.f32 0.044715, %v7408_v0  ;;  %v7288_v26 = vmul.f32 %v17523_v48, %v17523_v48 }
 0xe68   : > { %v12391_v2 = vpop.eup %12390  ;;  %12404 = vtanh.f32 %v7797_v52  ;;  %v7421_v14 = vmul.f32 %v7293_v25, %v17508_v5  ;;  %v7295_v61 = vmul.f32 %v17529_v1, %v17529_v1  ;;  %v7998_v7 = vadd.f32 1.0, %v17361_v21  ;;  %v17575_v25 = vpop.f32.mrf.mxu0 }
 0xe69   : > { %v8037_v20 = vadd.f32 1.0, %v12389_v45  ;;  %v7662_v43 = vadd.f32 %v7534_v53, %v17476_v51  ;;  %v17559_v9 = vadd.f32 %v17472_v54, %v17166_v41  ;;  %v8006_v31 = vadd.f32 1.0, %v17388_v4  ;;  %v19162_v53 = vld [vmem:[#allocation29_spill] sm:$0xff] }
 0xe6a   : > { %12406 = vtanh.f32 %v7799_v36  ;;  %v7414_v6 = vmul.f32 %v7286_v11, %v17518_v59  ;;  %v17565_v8 = vadd.f32 %v17489_v56, %v17195_v24  ;;  %v17569_v21 = vadd.f32 %v17491_v50, %v17096_v58  ;;  %v17577_v56 = vpop.f32.mrf.mxu1 }
 0xe6b   : > { %19160 = vst [vmem:[#allocation84_spill] sm:$0xff] %v17559_v9  ;;  %v7664_v42 = vadd.f32 %v7536_v44, %v17482_v22  ;;  %v7416_v32 = vmul.f32 %v7288_v26, %v17523_v48  ;;  %v8126_v34 = vmul.f32 0.5, %v7998_v7  ;;  %v8134_v54 = vmul.f32 0.5, %v8006_v31 }
 0xe6c   : > { %19161 = vst [vmem:[#allocation85_spill] sm:$0xff] %v17565_v8  ;;  %v8039_v3 = vadd.f32 1.0, %v12391_v2  ;;  %v7549_v0 = vmul.f32 0.044715, %v7421_v14  ;;  %v7423_v4 = vmul.f32 %v7295_v61, %v17529_v1  ;;  %v8000_v52 = vadd.f32 1.0, %v17373_v30 }
 0xe6d   : > { %v7294_v50 = vmul.f32 %v17559_v9, %v17559_v9  ;;  %v8254_v45 = vmul.f32 %v8126_v34, %v19162_v53  ;;  %v8262_v36 = vmul.f32 %v8134_v54, %v17223_v39  ;;  %v8008_v11 = vadd.f32 1.0, %v17394_v62  ;;  %v17593_v53 = vpop.f32.mrf.mxu0 }
 0xe6e   : > { %v17584_v44 = vpop.eup %12392  ;;  %v7542_v26 = vmul.f32 0.044715, %v7414_v6  ;;  %v7296_v2 = vmul.f32 %v17565_v8, %v17565_v8  ;;  %v7301_v30 = vmul.f32 %v17569_v21, %v17569_v21  ;;  %v8128_v14 = vmul.f32 0.5, %v8000_v52  ;;  %v17595_v6 = vpop.f32.mrf.mxu1  ;;  %v19163_v52 = vld [vmem:[#allocation71_spill] sm:$0xff] }
 0xe6f   : > { %v7790_v61 = vmul.f32 0.7978846, %v7662_v43  ;;  %v7544_v7 = vmul.f32 0.044715, %v7416_v32  ;;  %v8382_v31 = vpack.c.bf16 %v8262_v36, %v8254_v45  ;;  %v8136_v22 = vmul.f32 0.5, %v8008_v11 }
 0xe70   : > { %v12395_v51 = vpop.eup %12394  ;;  %v17591_v34 = vmul.f32 %v8159_v46, %v17328_v17  ;;  %v8165_v39 = vmul.f32 0.5, %v8037_v20  ;;  %v7792_v62 = vmul.f32 0.7978846, %v7664_v42  ;;  %v7551_v54 = vmul.f32 0.044715, %v7423_v4 }
 0xe71   : > { %v12397_v29 = vpop.eup %12396  ;;  %v7677_v38 = vadd.f32 %v7549_v0, %v17508_v5  ;;  %v7422_v43 = vmul.f32 %v7294_v50, %v17559_v9  ;;  %9467 = vmatprep.mubr.bf16.mxu1 %v8382_v31  ;;  %v8256_v32 = vmul.f32 %v8128_v14, %v17210_v10  ;;  %v8264_v45 = vmul.f32 %v8136_v22, %v19163_v52  ;;  %v12514_v11 = vld [vmem:[%s13090_s26 + $0x370] ss:$8 sps:$4 sm:$0xff]   ;;  %v17627_v14 = vpop.f32.mrf.mxu1 }
 0xe72   : > { %v17601_v17 = vpop.eup %12398  ;;  %v8167_v46 = vmul.f32 0.5, %v8039_v3  ;;  %v7670_v20 = vadd.f32 %v7542_v26, %v17518_v59  ;;  %v7424_v42 = vmul.f32 %v7296_v2, %v17565_v8  ;;  %v7429_v4 = vmul.f32 %v7301_v30, %v17569_v21 }
 0xe73   : > { %v19164_v0 = vpack.c.bf16 %v17376_v15, %v17333_v12  ;;  %v17609_v50 = vpop.eup %12400  ;;  %v8045_v36 = vadd.f32 1.0, %v12395_v51  ;;  %v7672_v10 = vadd.f32 %v7544_v7, %v17523_v48  ;;  %v17614_v22 = vadd.f32 %v17510_v33, %v17113_v28  ;;  %v17624_v15 = vpop.f32.mrf.mxu0  ;;  %v12515_v51 = vld [vmem:[%s13090_s26 + $0x364] ss:$8 sps:$4 sm:$0xff]  }
 0xe74   : > { %v8384_v3 = vpack.c.bf16 %v8264_v45, %v8256_v32  ;;  %v17617_v26 = vpop.eup %12402  ;;  %v8047_v2 = vadd.f32 1.0, %v12397_v29  ;;  %12408 = vtanh.f32 %v7790_v61  ;;  %v7679_v30 = vadd.f32 %v7551_v54, %v17529_v1  ;;  %v12516_v1 = vld [vmem:[%s13090_s26 + $0x360] ss:$8 sps:$4 sm:$0xff]  }
 0xe75   : > { %9468 = vmatmul.mubr.bf16.vlgmr.msra.gmra.mxu1 %v19164_v0  ;;  %19165 = vst [vmem:[#allocation29_spill] sm:$0xff] %v17614_v22  ;;  %v17622_v12 = vadd.f32 %v17512_v35, %v17166_v41  ;;  %v12405_v33 = vpop.eup %12404  ;;  %v7805_v7 = vmul.f32 0.7978846, %v7677_v38  ;;  %v7550_v31 = vmul.f32 0.044715, %v7422_v43  ;;  %v17631_v29 = vadd.f32 %v17531_v19, %v17195_v24  ;;  %v19169_v35 = vld [vmem:[#allocation81_spill] sm:$0xff] }
 0xe76   : > { %11193 = vmatpush1.bf16.msra.mxu1 %v12514_v11  ;;  %v17635_v61 = vadd.f32 %v17533_v60, %v17096_v58  ;;  %9580 = vmatprep.mubr.bf16.mxu0 %v8384_v3  ;;  %v17638_v54 = vmul.f32 %v8165_v39, %v19169_v35  ;;  %v7798_v32 = vmul.f32 0.7978846, %v7670_v20  ;;  %v7552_v52 = vmul.f32 0.044715, %v7424_v42  ;;  %v19170_v0 = vld [vmem:[#allocation83_spill] sm:$0xff]  ;;  %v19171_v11 = vld [vmem:[#allocation78_spill] sm:$0xff]  ;;  %v17648_v42 = vpop.f32.mrf.mxu0 }
 0xe77   : > { %19166 = vst [vmem:[#allocation71_spill] sm:$0xff] %v17622_v12  ;;  %11178 = vmatprep.subr.bf16.mxu1 %v12515_v51  ;;  %19167 = vst [vmem:[#allocation86_spill] sm:$0xff] %v17631_v29  ;;  %v7557_v45 = vmul.f32 0.044715, %v7429_v4  ;;  %v19172_v38 = vpack.c.bf16 %v19170_v0, %v19171_v11  ;;  %v12407_v43 = vpop.eup %12406  ;;  %v8173_v51 = vmul.f32 0.5, %v8045_v36  ;;  %12410 = vtanh.f32 %v7792_v62  ;;  %v17650_v4 = vpop.f32.mrf.mxu1 }
 0xe78   : > { %19168 = vst [vmem:[#allocation87_spill] sm:$0xff] %v17635_v61  ;;  %v7800_v19 = vmul.f32 0.7978846, %v7672_v10  ;;  %v7303_v60 = vmul.f32 %v17614_v22, %v17614_v22  ;;  %v8175_v3 = vmul.f32 0.5, %v8047_v2  ;;  %v8053_v39 = vadd.f32 1.0, %v12405_v33  ;;  %v19173_v33 = vld [vmem:[#allocation75_spill] sm:$0xff] }
 0xe79   : > { %9581 = vmatmul.mubr.bf16.vlgmr.msra.gmra.mxu0 %v19172_v38  ;;  %v7807_v35 = vmul.f32 0.7978846, %v7679_v30  ;;  %v7302_v20 = vmul.f32 %v17622_v12, %v17622_v12  ;;  %v12517_v0 = vld [vmem:[%s13090_s26 + $0x354] ss:$8 sps:$4 sm:$0xff]   ;;  %12412 = vtanh.f32 %v7805_v7  ;;  %v7678_v62 = vadd.f32 %v7550_v31, %v17559_v9  ;;  %v12518_v38 = vld [vmem:[%s13090_s26 + $0x350] ss:$8 sps:$4 sm:$0xff]  }
 0xe7a   : > { %11194 = vmatpush1.bf16.msra.mxu1 %v12516_v1  ;;  %v7304_v36 = vmul.f32 %v17631_v29, %v17631_v29  ;;  %v7309_v1 = vmul.f32 %v17635_v61, %v17635_v61  ;;  %v8055_v10 = vadd.f32 1.0, %v12407_v43  ;;  %12414 = vtanh.f32 %v7798_v32 }
 0xe7b   : > { %11179 = vmatprep.subr.bf16.mxu1 %v12517_v0  ;;  %v7680_v2 = vadd.f32 %v7552_v52, %v17565_v8  ;;  %v7685_v30 = vadd.f32 %v7557_v45, %v17569_v21  ;;  %v17661_v11 = vmul.f32 %v8167_v46, %v19173_v33  ;;  %v17664_v7 = vmul.f32 %v8173_v51, %v17402_v49  ;;  %v17672_v52 = vpop.f32.mrf.mxu0  ;;  %v17674_v46 = vpop.f32.mrf.mxu1  ;;  %v12519_v45 = vld [vmem:[%s13090_s26 + $0x344] ss:$8 sps:$4 sm:$0xff]  }
 0xe7c   : > { %12416 = vtanh.f32 %v7800_v19  ;;  %v7431_v31 = vmul.f32 %v7303_v60, %v17614_v22  ;;  %v17669_v0 = vmul.f32 %v8175_v3, %v17405_v63  ;;  %v8181_v43 = vmul.f32 0.5, %v8053_v39  ;;  %v19175_v60 = vld [vmem:[#allocation64_spill] sm:$0xff] }
 0xe7d   : > { %12418 = vtanh.f32 %v7807_v35  ;;  %v7430_v32 = vmul.f32 %v7302_v20, %v17622_v12  ;;  %v7806_v49 = vmul.f32 0.7978846, %v7678_v62  ;;  %v7432_v51 = vmul.f32 %v7304_v36, %v17631_v29 }
 0xe7e   : > { %11195 = vmatpush1.bf16.msra.mxu1 %v12518_v38  ;;  %19174 = vst [vmem:[#allocation81_spill] sm:$0xff] %v17669_v0  ;;  %v7437_v19 = vmul.f32 %v7309_v1, %v17635_v61  ;;  %v8014_v33 = vadd.f32 1.0, %v19175_v60  ;;  %v8183_v63 = vmul.f32 0.5, %v8055_v10  ;;  %v17680_v3 = vmul.f32 0.7978846, %v7680_v2  ;;  %v7099_v60 = vpop.f32.mrf.mxu1  ;;  %v19181_v0 = vld [vmem:[#allocation76_spill] sm:$0xff] }
 0xe7f   : > { %11180 = vmatprep.subr.bf16.mxu1 %v12519_v45  ;;  %v7813_v39 = vmul.f32 0.7978846, %v7685_v30  ;;  %v17684_v35 = vadd.f32 %v17551_v57, %v17113_v28  ;;  %v7559_v20 = vmul.f32 0.044715, %v7431_v31  ;;  %v17688_v38 = vadd.f32 %v17554_v23, %v17166_v41  ;;  %v12520_v1 = vld [vmem:[%s13090_s26 + $0x340] ss:$8 sps:$4 sm:$0xff]   ;;  %v17700_v31 = vpop.f32.mrf.mxu0 }
 0xe80   : > { %v8022_v62 = vadd.f32 1.0, %v17493_v55  ;;  %v8142_v36 = vmul.f32 0.5, %v8014_v33  ;;  %v17693_v10 = vmul.f32 %v8181_v43, %v17431_v27  ;;  %v7558_v2 = vmul.f32 0.044715, %v7430_v32  ;;  %v19178_v57 = vld [vmem:[#allocation65_spill] sm:$0xff] }
 0xe81   : > { %19176 = vst [vmem:[#allocation83_spill] sm:$0xff] %v17684_v35  ;;  %v17697_v30 = vadd.f32 %v17577_v56, %v17096_v58  ;;  %v8016_v45 = vadd.f32 1.0, %v19178_v57  ;;  %v12521_v23 = vld [vmem:[%s13090_s26 + $0x334] ss:$8 sps:$4 sm:$0xff]   ;;  %v17703_v55 = vpop.eup %12408  ;;  %v7560_v33 = vmul.f32 0.044715, %v7432_v51  ;;  %v17707_v43 = vmul.f32 %v8183_v63, %v17445_v13 }
 0xe82   : > { %11196 = vmatpush1.bf16.msra.mxu1 %v12520_v1  ;;  %v7565_v1 = vmul.f32 0.044715, %v7437_v19  ;;  %v8150_v8 = vmul.f32 0.5, %v8022_v62  ;;  %v8024_v27 = vadd.f32 1.0, %v17499_v18  ;;  %12420 = vtanh.f32 %v7813_v39  ;;  %v12522_v62 = vld [vmem:[%s13090_s26 + $0x330] ss:$8 sps:$4 sm:$0xff]  }
 0xe83   : > { %19177 = vst [vmem:[#allocation78_spill] sm:$0xff] %v17697_v30  ;;  %11181 = vmatprep.subr.bf16.mxu1 %v12521_v23  ;;  %19179 = vst [vmem:[#allocation75_spill] sm:$0xff] %v17707_v43  ;;  %v7311_v56 = vmul.f32 %v17684_v35, %v17684_v35  ;;  %v8144_v32 = vmul.f32 0.5, %v8016_v45  ;;  %v7310_v57 = vmul.f32 %v17688_v38, %v17688_v38  ;;  %v19180_v23 = vld [vmem:[#allocation73_spill] sm:$0xff]  ;;  %v17726_v43 = vpop.f32.mrf.mxu0  ;;  %12422 = vtanh.f32 %v7806_v49 }
 0xe84   : > { %v8270_v9 = vmul.f32 %v8142_v36, %v19180_v23  ;;  %v8278_v51 = vmul.f32 %v8150_v8, %v19181_v0  ;;  %v8152_v19 = vmul.f32 0.5, %v8024_v27  ;;  %v17716_v18 = vpop.eup %12410  ;;  %v7687_v13 = vadd.f32 %v7559_v20, %v17614_v22  ;;  %v17728_v36 = vpop.f32.mrf.mxu1  ;;  %v12523_v8 = vld [vmem:[%s13090_s26 + $0x324] ss:$8 sps:$4 sm:$0xff]   ;;  %v19183_v20 = vld [vmem:[#allocation80_spill] sm:$0xff] }
 0xe85   : > { %v7686_v63 = vadd.f32 %v7558_v2, %v17622_v12  ;;  %v7317_v39 = vmul.f32 %v17697_v30, %v17697_v30  ;;  %v17724_v45 = vadd.f32 %v17595_v6, %v17166_v41  ;;  %v19182_v27 = vld [vmem:[#allocation69_spill] sm:$0xff]  ;;  %v17735_v2 = vadd.f32 %v17650_v4, %v17166_v41 }
 0xe86   : > { %11197 = vmatpush1.bf16.msra.mxu1 %v12522_v62  ;;  %v8390_v0 = vpack.c.bf16 %v8278_v51, %v8270_v9  ;;  %v8272_v23 = vmul.f32 %v8144_v32, %v19182_v27  ;;  %v8280_v62 = vmul.f32 %v8152_v19, %v19183_v20  ;;  %v12413_v22 = vpop.eup %12412  ;;  %v7688_v6 = vadd.f32 %v7560_v33, %v17631_v29  ;;  %v12524_v19 = vld [vmem:[%s13090_s26 + $0x320] ss:$8 sps:$4 sm:$0xff]  }
 0xe87   : > { %11182 = vmatprep.subr.bf16.mxu1 %v12523_v8  ;;  %v7439_v12 = vmul.f32 %v7311_v56, %v17684_v35  ;;  %v17741_v48 = vadd.f32 %v17575_v25, %v17195_v24  ;;  %v19184_v8 = vld [vmem:[#allocation79_spill] sm:$0xff]  ;;  %v17745_v51 = vpop.eup %12414  ;;  %v7438_v32 = vmul.f32 %v7310_v57, %v17688_v38  ;;  %v17750_v4 = vadd.f32 %v17593_v53, %v17113_v28  ;;  %v19185_v49 = vld [vmem:[#allocation77_spill] sm:$0xff]  ;;  %v17763_v53 = vpop.f32.mrf.mxu0 }
 0xe88   : > { %v8389_v9 = vpack.c.bf16 %v17536_v47, %v19184_v8  ;;  %9477 = vmatprep.mubr.bf16.mxu1 %v8390_v0  ;;  %v8392_v33 = vpack.c.bf16 %v8280_v62, %v8272_v23  ;;  %v7445_v25 = vmul.f32 %v7317_v39, %v17697_v30  ;;  %v7318_v47 = vmul.f32 %v17724_v45, %v17724_v45  ;;  %v17765_v0 = vpop.f32.mrf.mxu1  ;;  %v12525_v8 = vld [vmem:[%s13090_s26 + $0x314] ss:$8 sps:$4 sm:$0xff]  }
 0xe89   : > { %v17753_v56 = vpop.eup %12416  ;;  %v8391_v57 = vpack.c.bf16 %v17539_v37, %v19185_v49  ;;  %v17761_v27 = vadd.f32 %v7099_v60, %v17166_v41  ;;  %19186 = vst [vmem:[#allocation64_spill] sm:$0xff] %v17763_v53  ;;  %v8061_v20 = vadd.f32 1.0, %v12413_v22  ;;  %12424 = vtanh.f32 %v17680_v3 }
 0xe8a   : > { %11198 = vmatpush1.bf16.msra.mxu1 %v12524_v19  ;;  %v17767_v23 = vpop.eup %12418  ;;  %v7815_v39 = vmul.f32 0.7978846, %v7687_v13  ;;  %9590 = vmatprep.mubr.bf16.mxu0 %v8392_v33  ;;  %v7326_v62 = vmul.f32 %v17735_v2, %v17735_v2  ;;  %v7814_v37 = vmul.f32 0.7978846, %v7686_v63  ;;  %v7693_v60 = vadd.f32 %v7565_v1, %v17635_v61  ;;  %v12526_v33 = vld [vmem:[%s13090_s26 + $0x310] ss:$8 sps:$4 sm:$0xff]  }
 0xe8b   : > { %9478 = vmatmul.mubr.bf16.gmra.mxu1 %v8389_v9  ;;  %19187 = vst [vmem:[#allocation65_spill] sm:$0xff] %v17767_v23  ;;  %11183 = vmatprep.subr.bf16.mxu1 %v12525_v8  ;;  %v7567_v9 = vmul.f32 0.044715, %v7439_v12  ;;  %v7334_v19 = vmul.f32 %v17761_v27, %v17761_v27  ;;  %v7816_v22 = vmul.f32 0.7978846, %v7688_v6  ;;  %v7312_v3 = vmul.f32 %v17741_v48, %v17741_v48  ;;  %v17790_v6 = vpop.f32.mrf.mxu0 }
 0xe8c   : > { %9591 = vmatmul.mubr.bf16.gmra.mxu0 %v8391_v57  ;;  %v7566_v49 = vmul.f32 0.044715, %v7438_v32  ;;  %v7319_v13 = vmul.f32 %v17750_v4, %v17750_v4  ;;  %v7573_v8 = vmul.f32 0.044715, %v7445_v25  ;;  %v7446_v63 = vmul.f32 %v7318_v47, %v17724_v45  ;;  %19188 = vst [vmem:[#allocation73_spill] sm:$0xff] %v17790_v6  ;;  %v17792_v32 = vpop.f32.mrf.mxu1 }
 0xe8d   : > { %v17784_v12 = vadd.f32 %v17624_v15, %v17195_v24  ;;  %v17788_v1 = vadd.f32 %v17674_v46, %v17096_v58  ;;  %v12527_v57 = vld [vmem:[%s13090_s26 + $0x304] ss:$8 sps:$4 sm:$0xff]   ;;  %v8189_v23 = vmul.f32 0.5, %v8061_v20  ;;  %12426 = vtanh.f32 %v7815_v39 }
 0xe8e   : > { %11199 = vmatpush1.bf16.msra.mxu1 %v12526_v33  ;;  %v17797_v25 = vadd.f32 %v17627_v14, %v17096_v58  ;;  %v7454_v15 = vmul.f32 %v7326_v62, %v17735_v2  ;;  %12428 = vtanh.f32 %v7814_v37  ;;  %v7821_v47 = vmul.f32 0.7978846, %v7693_v60 }
 0xe8f   : > { %11184 = vmatprep.subr.bf16.mxu1 %v12527_v57  ;;  %v7695_v46 = vadd.f32 %v7567_v9, %v17684_v35  ;;  %v7462_v33 = vmul.f32 %v7334_v19, %v17761_v27  ;;  %v12421_v29 = vpop.eup %12420  ;;  %12430 = vtanh.f32 %v7816_v22  ;;  %v7694_v61 = vadd.f32 %v7566_v49, %v17688_v38  ;;  %v12528_v57 = vld [vmem:[%s13090_s26 + $0x300] ss:$8 sps:$4 sm:$0xff]   ;;  %v17811_v9 = vpop.f32.mrf.mxu0  ;;  %v12529_v22 = vld [vmem:[%s13090_s26 + $0x3f4] ss:$8 sps:$4 sm:$0xff]  }
 0xe90   : > { %v7440_v20 = vmul.f32 %v7312_v3, %v17741_v48  ;;  %v7447_v39 = vmul.f32 %v7319_v13, %v17750_v4  ;;  %v7701_v14 = vadd.f32 %v7573_v8, %v17697_v30  ;;  %v7574_v62 = vmul.f32 0.044715, %v7446_v63  ;;  %19189 = vst [vmem:[#allocation76_spill] sm:$0xff] %v17811_v9  ;;  %v17813_v19 = vpop.f32.mrf.mxu1 }
 0xe91   : > { %v7320_v37 = vmul.f32 %v17784_v12, %v17784_v12  ;;  %v7333_v60 = vmul.f32 %v17788_v1, %v17788_v1  ;;  %v7325_v49 = vmul.f32 %v17797_v25, %v17797_v25  ;;  %v7582_v3 = vmul.f32 0.044715, %v7454_v15  ;;  %v12530_v15 = vld [vmem:[%s13090_s26 + $0x3f0] ss:$8 sps:$4 sm:$0xff]  }
 0xe92   : > { %11200 = vmatpush1.bf16.msra.mxu1 %v12528_v57  ;;  %v8030_v13 = vadd.f32 1.0, %v17584_v44  ;;  %v8038_v8 = vadd.f32 1.0, %v17609_v50  ;;  %v17821_v63 = vmul.f32 %v8189_v23, %v17508_v5  ;;  %12432 = vtanh.f32 %v7821_v47  ;;  %v17825_v30 = vpop.f32.mrf.mxu1  ;;  %v17830_v44 = vpop.eup %12422 }
 0xe93   : > { %11185 = vmatprep.subr.bf16.mxu1 %v12529_v22  ;;  %v17823_v57 = vmul.f32 0.7978846, %v7695_v46  ;;  %v7590_v35 = vmul.f32 0.044715, %v7462_v33  ;;  %19190 = vst [vmem:[#allocation69_spill] sm:$0xff] %v17825_v30  ;;  %v17827_v53 = vadd.f32 1.0, %v12421_v29  ;;  %v7702_v5 = vadd.f32 %v7574_v62, %v17724_v45  ;;  %v17834_v46 = vpop.f32.mrf.mxu0 }
 0xe94   : > { %v7822_v22 = vmul.f32 0.7978846, %v7694_v61  ;;  %v7568_v9 = vmul.f32 0.044715, %v7440_v20  ;;  %v8158_v6 = vmul.f32 0.5, %v8030_v13  ;;  %v7461_v23 = vmul.f32 %v7333_v60, %v17788_v1  ;;  %v19191_v62 = vld [vmem:[#allocation74_spill] sm:$0xff] }
 0xe95   : > { %v7575_v50 = vmul.f32 0.044715, %v7447_v39  ;;  %v8166_v47 = vmul.f32 0.5, %v8038_v8  ;;  %v12531_v33 = vld [vmem:[%s13090_s26 + $0x3e4] ss:$8 sps:$4 sm:$0xff]   ;;  %v17838_v61 = vmul.f32 %v7320_v37, %v17784_v12  ;;  %v7453_v20 = vmul.f32 %v7325_v49, %v17797_v25  ;;  %v17848_v30 = vpop.f32.mrf.mxu0 }
 0xe96   : > { %11201 = vmatpush2.bf16.msra.mxu1 %v12530_v15  ;;  %v7829_v29 = vmul.f32 0.7978846, %v7701_v14  ;;  %v7710_v13 = vadd.f32 %v7582_v3, %v17735_v2  ;;  %v17842_v15 = vpop.eup %12424  ;;  %v7718_v39 = vadd.f32 %v7590_v35, %v17761_v27  ;;  %v8286_v60 = vmul.f32 %v8158_v6, %v19191_v62  ;;  %19192 = vst [vmem:[#allocation80_spill] sm:$0xff] %v17848_v30  ;;  %v17850_v14 = vpop.f32.mrf.mxu1  ;;  %v12532_v3 = vld [vmem:[%s13090_s26 + $0x3e0] ss:$8 sps:$4 sm:$0xff]  }
 0xe97   : > { %11186 = vmatprep.subr.bf16.mxu1 %v12531_v33  ;;  %v8294_v8 = vmul.f32 %v8166_v47, %v17418_v16  ;;  %v8032_v33 = vadd.f32 1.0, %v17601_v17  ;;  %19193 = vst [vmem:[#allocation79_spill] sm:$0xff] %v17850_v14  ;;  %12434 = vtanh.f32 %v7822_v22  ;;  %v17853_v37 = vadd.f32 %v7568_v9, %v17741_v48  ;;  %v12533_v62 = vld [vmem:[%s13090_s26 + $0x3d4] ss:$8 sps:$4 sm:$0xff]  }
 0xe98   : > { %v8040_v49 = vadd.f32 1.0, %v17617_v26  ;;  %v17858_v35 = vadd.f32 %v17765_v0, %v17166_v41  ;;  %v7830_v6 = vmul.f32 0.7978846, %v7702_v5  ;;  %v7589_v16 = vmul.f32 0.044715, %v7461_v23 }
 0xe99   : > { %v8398_v47 = vpack.c.bf16 %v8294_v8, %v8286_v60  ;;  %v8160_v17 = vmul.f32 0.5, %v8032_v33  ;;  %12436 = vtanh.f32 %v7829_v29  ;;  %v17864_v22 = vadd.f32 %v17728_v36, %v17096_v58  ;;  %v17872_v60 = vpop.f32.mrf.mxu0  ;;  %v17874_v29 = vpop.f32.mrf.mxu1  ;;  %v19196_v8 = vld [vmem:[#allocation82_spill] sm:$0xff] }
 0xe9a   : > { %11202 = vmatpush2.bf16.msra.mxu1 %v12532_v3  ;;  %v8168_v9 = vmul.f32 0.5, %v8040_v49  ;;  %v7342_v26 = vmul.f32 %v17858_v35, %v17858_v35  ;;  %v17868_v0 = vpop.eup %12426  ;;  %v7581_v14 = vmul.f32 0.044715, %v7453_v20  ;;  %v7838_v3 = vmul.f32 0.7978846, %v7710_v13  ;;  %19194 = vst [vmem:[#allocation77_spill] sm:$0xff] %v17872_v60 }
 0xe9b   : > { %11187 = vmatprep.subr.bf16.mxu1 %v12533_v62  ;;  %v7846_v5 = vmul.f32 0.7978846, %v7718_v39  ;;  %9487 = vmatprep.mubr.bf16.mxu1 %v8398_v47  ;;  %v8397_v23 = vpack.c.bf16 %v17638_v54, %v17542_v40  ;;  %19195 = vst [vmem:[#allocation74_spill] sm:$0xff] %v17874_v29  ;;  %v17876_v36 = vpop.eup %12428  ;;  %v8288_v33 = vmul.f32 %v8160_v17, %v19196_v8  ;;  %v19197_v49 = vld [vmem:[#allocation72_spill] sm:$0xff]  ;;  %12438 = vtanh.f32 %v7830_v6  ;;  %v19213_v60 = vld [vmem:[#allocation87_spill] sm:$0xff] }
 0xe9c   : > { %v8296_v62 = vmul.f32 %v8168_v9, %v19197_v49  ;;  %v7470_v30 = vmul.f32 %v7342_v26, %v17858_v35  ;;  %v17883_v20 = vadd.f32 %v17792_v32, %v17096_v58  ;;  %v12534_v13 = vld [vmem:[%s13090_s26 + $0x3d0] ss:$8 sps:$4 sm:$0xff]   ;;  %v17886_v40 = vpop.eup %12430  ;;  %v7703_v54 = vadd.f32 %v7575_v50, %v17750_v4  ;;  %v12535_v26 = vld [vmem:[%s13090_s26 + $0x3c4] ss:$8 sps:$4 sm:$0xff]  }
 0xe9d   : > { %v7717_v39 = vadd.f32 %v7589_v16, %v17788_v1  ;;  %9488 = vmatmul.mubr.bf16.gmra.mxu1 %v8397_v23  ;;  %v17892_v47 = vadd.f32 %v17813_v19, %v17166_v41  ;;  %v7341_v17 = vmul.f32 %v17864_v22, %v17864_v22  ;;  %12440 = vtanh.f32 %v7838_v3  ;;  %v17904_v19 = vpop.f32.mrf.mxu0  ;;  %v17906_v16 = vpop.f32.mrf.mxu1 }
 0xe9e   : > { %11203 = vmatpush2.bf16.msra.mxu1 %v12534_v13  ;;  %v8400_v9 = vpack.c.bf16 %v8296_v62, %v8288_v33  ;;  %v7598_v58 = vmul.f32 0.044715, %v7470_v30  ;;  %v7349_v32 = vmul.f32 %v17883_v20, %v17883_v20  ;;  %v8399_v50 = vpack.c.bf16 %v17661_v11, %v17591_v34  ;;  %19198 = vst [vmem:[#allocation82_spill] sm:$0xff] %v17904_v19  ;;  %v12536_v34 = vld [vmem:[%s13090_s26 + $0x3c0] ss:$8 sps:$4 sm:$0xff]  }
 0xe9f   : > { %11188 = vmatprep.subr.bf16.mxu1 %v12535_v26  ;;  %v7350_v6 = vmul.f32 %v17892_v47, %v17892_v47  ;;  %v8046_v41 = vadd.f32 1.0, %v17703_v55  ;;  %19199 = vst [vmem:[#allocation72_spill] sm:$0xff] %v17906_v16  ;;  %v12433_v30 = vpop.eup %12432  ;;  %v7709_v23 = vadd.f32 %v7581_v14, %v17797_v25  ;;  %12442 = vtanh.f32 %v7846_v5  ;;  %v12537_v14 = vld [vmem:[%s13090_s26 + $0x3b4] ss:$8 sps:$4 sm:$0xff]   ;;  %v12538_v26 = vld [vmem:[%s13090_s26 + $0x3b0] ss:$8 sps:$4 sm:$0xff]  }
 0xea0   : > { %9600 = vmatprep.mubr.bf16.mxu0 %v8400_v9  ;;  %v7477_v3 = vmul.f32 %v7349_v32, %v17883_v20  ;;  %v8054_v8 = vadd.f32 1.0, %v17745_v51  ;;  %v8197_v11 = vmul.f32 0.5, %v17827_v53  ;;  %v17915_v55 = vadd.f32 %v17672_v52, %v17195_v24  ;;  %v17931_v32 = vpop.f32.mrf.mxu1  ;;  %v12543_v16 = vld [vmem:[%s13090_s26 + $0x384] ss:$8 sps:$4 sm:$0xff]  }
 0xea1   : > { %v7726_v33 = vadd.f32 %v7598_v58, %v17858_v35  ;;  %9601 = vmatmul.mubr.bf16.gmra.mxu0 %v8399_v50  ;;  %v7478_v49 = vmul.f32 %v7350_v6, %v17892_v47  ;;  %12444 = vtanh.f32 %v17823_v57  ;;  %v7845_v5 = vmul.f32 0.7978846, %v7717_v39  ;;  %v17929_v58 = vpop.f32.mrf.mxu0 }
 0xea2   : > { %11204 = vmatpush2.bf16.msra.mxu1 %v12536_v34  ;;  %19200 = vst [vmem:[#allocation88_spill] sm:$0xff] %v17915_v55  ;;  %v7469_v51 = vmul.f32 %v7341_v17, %v17864_v22  ;;  %v7605_v62 = vmul.f32 0.044715, %v7477_v3  ;;  %v17923_v53 = vmul.f32 0.7978846, %v17853_v37  ;;  %v17927_v52 = vadd.f32 %v17648_v42, %v17113_v28  ;;  %19201 = vst [vmem:[#allocation89_spill] sm:$0xff] %v17929_v58 }
 0xea3   : > { %11189 = vmatprep.subr.bf16.mxu1 %v12537_v14  ;;  %v8174_v13 = vmul.f32 0.5, %v8046_v41  ;;  %v8182_v9 = vmul.f32 0.5, %v8054_v8  ;;  %v7576_v57 = vmul.f32 0.044715, %v17838_v61  ;;  %v7837_v39 = vmul.f32 0.7978846, %v7709_v23  ;;  %v17956_v14 = vpop.f32.mrf.mxu0 }
 0xea4   : > { %v17936_v17 = vadd.f32 %v17726_v43, %v17195_v24  ;;  %v7606_v37 = vmul.f32 0.044715, %v7478_v49  ;;  %v12435_v50 = vpop.eup %12434  ;;  %v17940_v42 = vmul.f32 %v8197_v11, %v17569_v21  ;;  %v17942_v6 = vmul.f32 0.7978846, %v7703_v54  ;;  %v12539_v8 = vld [vmem:[%s13090_s26 + $0x3a4] ss:$8 sps:$4 sm:$0xff]  }
 0xea5   : > { %v7328_v41 = vmul.f32 %v17915_v55, %v17915_v55  ;;  %v7854_v3 = vmul.f32 0.7978846, %v7726_v33  ;;  %12446 = vtanh.f32 %v7845_v5  ;;  %v7597_v61 = vmul.f32 0.044715, %v7469_v51  ;;  %v19202_v54 = vld [vmem:[#allocation68_spill] sm:$0xff]  ;;  %v17958_v5 = vpop.f32.mrf.mxu1 }
 0xea6   : > { %11205 = vmatpush2.bf16.msra.mxu1 %v12538_v26  ;;  %v7733_v43 = vadd.f32 %v7605_v62, %v17883_v20  ;;  %v7734_v23 = vadd.f32 %v7606_v37, %v17892_v47  ;;  %v12437_v34 = vpop.eup %12436  ;;  %v17951_v21 = vadd.f32 %v17700_v31, %v17113_v28  ;;  %v8302_v11 = vmul.f32 %v8174_v13, %v19202_v54  ;;  %v12540_v31 = vld [vmem:[%s13090_s26 + $0x3a0] ss:$8 sps:$4 sm:$0xff]  }
 0xea7   : > { %11190 = vmatprep.subr.bf16.mxu1 %v12539_v8  ;;  %v8310_v49 = vmul.f32 %v8182_v9, %v17518_v59  ;;  %v8048_v33 = vadd.f32 1.0, %v17716_v18  ;;  %12448 = vtanh.f32 %v7837_v39  ;;  %v7336_v51 = vmul.f32 %v17936_v17, %v17936_v17  ;;  %v12541_v9 = vld [vmem:[%s13090_s26 + $0x394] ss:$8 sps:$4 sm:$0xff]  }
 0xea8   : > { %v7862_v62 = vmul.f32 0.7978846, %v7734_v23  ;;  %v8056_v37 = vadd.f32 1.0, %v17753_v56  ;;  %v17964_v26 = vadd.f32 1.0, %v12433_v30  ;;  %12450 = vtanh.f32 %v7854_v3  ;;  %v12439_v18 = vpop.eup %12438 }
 0xea9   : > { %v8406_v13 = vpack.c.bf16 %v8310_v49, %v8302_v11  ;;  %v8176_v59 = vmul.f32 0.5, %v8048_v33  ;;  %v7725_v8 = vadd.f32 %v7597_v61, %v17864_v22  ;;  %v7861_v39 = vmul.f32 0.7978846, %v7733_v43  ;;  %v17974_v11 = vpop.f32.mrf.mxu0  ;;  %v17976_v49 = vpop.f32.mrf.mxu1  ;;  %v19203_v33 = vld [vmem:[#allocation70_spill] sm:$0xff] }
 0xeaa   : > { %11206 = vmatpush2.bf16.msra.mxu1 %v12540_v31  ;;  %12452 = vtanh.f32 %v7862_v62  ;;  %v8184_v54 = vmul.f32 0.5, %v8056_v37  ;;  %v7704_v23 = vadd.f32 %v7576_v57, %v17784_v12  ;;  %v7456_v56 = vmul.f32 %v7328_v41, %v17915_v55  ;;  %v12441_v61 = vpop.eup %12440  ;;  %v19204_v57 = vld [vmem:[#allocation67_spill] sm:$0xff] }
 0xeab   : > { %11191 = vmatprep.subr.bf16.mxu1 %v12541_v9  ;;  %v7335_v30 = vmul.f32 %v17951_v21, %v17951_v21  ;;  %9497 = vmatprep.mubr.bf16.mxu1 %v8406_v13  ;;  %v8405_v3 = vpack.c.bf16 %v17693_v10, %v17664_v7  ;;  %v7464_v43 = vmul.f32 %v7336_v51, %v17936_v17  ;;  %v8062_v41 = vadd.f32 1.0, %v17830_v44  ;;  %v12542_v31 = vld [vmem:[%s13090_s26 + $0x390] ss:$8 sps:$4 sm:$0xff]  }
 0xeac   : > { %v8304_v62 = vmul.f32 %v8176_v59, %v19203_v33  ;;  %v8312_v37 = vmul.f32 %v8184_v54, %v19204_v57  ;;  %v12443_v13 = vpop.eup %12442  ;;  %v8085_v9 = vadd.f32 1.0, %v12437_v34  ;;  %v8070_v7 = vadd.f32 1.0, %v17876_v36  ;;  %v19205_v54 = vld [vmem:[#allocation81_spill] sm:$0xff]  ;;  %v19206_v44 = vld [vmem:[#allocation75_spill] sm:$0xff]  ;;  %v17991_v36 = vpop.f32.mrf.mxu1 }
 0xead   : > { %9498 = vmatmul.mubr.bf16.gmra.mxu1 %v8405_v3  ;;  %v8078_v10 = vadd.f32 1.0, %v12435_v50  ;;  %v8086_v58 = vadd.f32 1.0, %v12439_v18  ;;  %v7853_v19 = vmul.f32 0.7978846, %v7725_v8  ;;  %12454 = vtanh.f32 %v7861_v39  ;;  %v17989_v3 = vpop.f32.mrf.mxu0  ;;  %v12544_v39 = vld [vmem:[%s13090_s26 + $0x380] ss:$8 sps:$4 sm:$0xff]  }
 0xeae   : > { %11207 = vmatpush2.bf16.msra.mxu1 %v12542_v31  ;;  %v8408_v51 = vpack.c.bf16 %v8312_v37, %v8304_v62  ;;  %v8190_v59 = vmul.f32 0.5, %v8062_v41  ;;  %v17985_v33 = vpop.eup %12444  ;;  %v8407_v57 = vpack.c.bf16 %v19206_v44, %v19205_v54  ;;  %v8198_v31 = vmul.f32 0.5, %v8070_v7  ;;  %v19207_v62 = vld [vmem:[#allocation84_spill] sm:$0xff]  ;;  %v19208_v41 = vld [vmem:[#allocation71_spill] sm:$0xff]  ;;  %s19266_s26 = sld [smem:[#allocation107_spill]] (!%p10942_p13) }
 0xeaf   : > { %11192 = vmatprep.subr.bf16.mxu1 %v12543_v16  ;;  %v8206_v29 = vmul.f32 0.5, %v8078_v10  ;;  %v8214_v34 = vmul.f32 0.5, %v8086_v58  ;;  %v7592_v50 = vmul.f32 0.044715, %v7464_v43  ;;  %v17995_v16 = vadd.f32 %v17834_v46, %v17195_v24  ;;  %v19209_v46 = vld [vmem:[#allocation73_spill] sm:$0xff] }
 0xeb0   : > { %9610 = vmatprep.mubr.bf16.mxu0 %v8408_v51  ;;  %v8094_v18 = vadd.f32 1.0, %v12441_v61  ;;  %v8102_v8 = vadd.f32 1.0, %v12443_v13  ;;  %v8318_v37 = vmul.f32 %v8190_v59, %v19207_v62  ;;  %v8326_v7 = vmul.f32 %v8198_v31, %v19208_v41 }
 0xeb1   : > { %9611 = vmatmul.mubr.bf16.gmra.mxu0 %v8407_v57  ;;  %v8334_v58 = vmul.f32 %v8206_v29, %v17688_v38  ;;  %v8342_v10 = vmul.f32 %v8214_v34, %v17724_v45  ;;  %v7832_v54 = vmul.f32 0.7978846, %v7704_v23  ;;  %v7327_v43 = vmul.f32 %v17927_v52, %v17927_v52 }
 0xeb2   : > { %11208 = vmatpush2.bf16.msra.mxu1 %v12544_v39  ;;  %12456 = vtanh.f32 %v7853_v19  ;;  %v18006_v61 = vadd.f32 %v19209_v46, %v17195_v24  ;;  %v12447_v13 = vpop.eup %12446  ;;  %v7584_v51 = vmul.f32 0.044715, %v7456_v56  ;;  %v8414_v44 = vpack.c.bf16 %v8326_v7, %v8318_v37  ;;  %v18008_v39 = vpop.f32.mrf.mxu0  ;;  %v19211_v37 = vld [vmem:[#allocation64_spill] sm:$0xff] }
 0xeb3   : > { %v8422_v57 = vpack.c.bf16 %v8342_v10, %v8334_v58  ;;  %v8230_v59 = vmul.f32 0.5, %v8102_v8  ;;  %v18010_v31 = vpop.f32.mrf.mxu1  ;;  %12458 = vtanh.f32 %v17923_v53  ;;  %v8213_v38 = vmul.f32 0.5, %v8085_v9  ;;  %v19210_v9 = vld [vmem:[#allocation76_spill] sm:$0xff]  ;;  %v19212_v58 = vld [vmem:[#allocation78_spill] sm:$0xff] }
 0xeb4   : > { %v7463_v45 = vmul.f32 %v7335_v30, %v17951_v21  ;;  %v8413_v29 = vpack.c.bf16 %v17940_v42, %v17821_v63  ;;  %v12449_v19 = vpop.eup %12448  ;;  %v8205_v24 = vmul.f32 0.5, %v17964_v26  ;;  %v7720_v23 = vadd.f32 %v7592_v50, %v17936_v17  ;;  %9507 = vmatprep.mubr.bf16.mxu1 %v8414_v44 }
 0xeb5   : > { %v7352_v56 = vmul.f32 %v17995_v16, %v17995_v16  ;;  %v8222_v34 = vmul.f32 0.5, %v8094_v18  ;;  %v12451_v8 = vpop.eup %12450  ;;  %v7455_v62 = vmul.f32 %v7327_v43, %v17927_v52  ;;  %v8101_v53 = vadd.f32 1.0, %v12447_v13  ;;  %v9265_v42 = vpop.f32.mrf.mxu1 }
 0xeb6   : > { %v7344_v30 = vmul.f32 %v18006_v61, %v18006_v61  ;;  %v18025_v63 = vadd.f32 %v19210_v9, %v17113_v28  ;;  %9508 = vmatmul.mubr.bf16.gmra.mxu1 %v8413_v29  ;;  %12460 = vtanh.f32 %v7832_v54  ;;  %v7712_v50 = vadd.f32 %v7584_v51, %v17915_v55 }
 0xeb7   : > { %v12453_v26 = vpop.eup %12452  ;;  %v18030_v18 = vadd.f32 %v19211_v37, %v17113_v28  ;;  %9517 = vmatprep.mubr.bf16.mxu1 %v8422_v57  ;;  %v8358_v41 = vmul.f32 %v8230_v59, %v17761_v27  ;;  %v9376_v7 = vpop.f32.mrf.mxu0  ;;  %v8341_v10 = vmul.f32 %v8213_v38, %v19212_v58  ;;  %v8093_v43 = vadd.f32 1.0, %v12449_v19 }
 0xeb8   : > { %v7591_v46 = vmul.f32 0.044715, %v7463_v45  ;;  %v8118_v13 = vadd.f32 1.0, %v12453_v26  ;;  %v7848_v44 = vmul.f32 0.7978846, %v7720_v23  ;;  %v7480_v29 = vmul.f32 %v7352_v56, %v17995_v16  ;;  %v9267_v59 = vpop.f32.mrf.mxu1 }
 0xeb9   : > { %v8350_v54 = vmul.f32 %v8222_v34, %v17735_v2  ;;  %v8110_v9 = vadd.f32 1.0, %v12451_v8  ;;  %v9378_v51 = vpop.f32.mrf.mxu0  ;;  %v8333_v55 = vmul.f32 %v8205_v24, %v19213_v60  ;;  %v8229_v28 = vmul.f32 0.5, %v8101_v53 }
 0xeba   : > { %v7472_v57 = vmul.f32 %v7344_v30, %v18006_v61  ;;  %v7351_v27 = vmul.f32 %v18025_v63, %v18025_v63  ;;  %v12455_v38 = vpop.eup %12454  ;;  %12462 = vtanh.f32 %v17942_v6  ;;  %v7583_v45 = vmul.f32 0.044715, %v7455_v62  ;;  %v9269_v62 = vpop.f32.mrf.mxu1 }
 0xebb   : > { %v8430_v19 = vpack.c.bf16 %v8358_v41, %v8350_v54  ;;  %v8246_v23 = vmul.f32 0.5, %v8118_v13  ;;  %v9380_v56 = vpop.f32.mrf.mxu0  ;;  %v7840_v26 = vmul.f32 0.7978846, %v7712_v50  ;;  %v7719_v2 = vadd.f32 %v7591_v46, %v17951_v21 }
 0xebc   : > { %v7343_v60 = vmul.f32 %v18030_v18, %v18030_v18  ;;  %v8421_v24 = vpack.c.bf16 %v8341_v10, %v8333_v55  ;;  %v8221_v34 = vmul.f32 0.5, %v8093_v43  ;;  %12464 = vtanh.f32 %v7848_v44 }
 0xebd   : > { %v7608_v8 = vmul.f32 0.044715, %v7480_v29  ;;  %v8238_v53 = vmul.f32 0.5, %v8110_v9  ;;  %v8357_v30 = vmul.f32 %v8229_v28, %v17788_v1  ;;  %v7600_v37 = vmul.f32 0.044715, %v7472_v57  ;;  %v9382_v41 = vpop.f32.mrf.mxu0 }
 0xebe   : > { %v8117_v58 = vadd.f32 1.0, %v12455_v38  ;;  %v7479_v6 = vmul.f32 %v7351_v27, %v18025_v63  ;;  %9518 = vmatmul.mubr.bf16.gmra.mxu1 %v8421_v24  ;;  %v8374_v46 = vmul.f32 %v8246_v23, %v17892_v47  ;;  %v18049_v55 = vadd.f32 %v17956_v14, %v17931_v32 }
 0xebf   : > { %v12457_v50 = vpop.eup %12456  ;;  %9527 = vmatprep.mubr.bf16.mxu1 %v8430_v19  ;;  %v18053_v10 = vadd.f32 %v17974_v11, %v17958_v5  ;;  %v18057_v1 = vadd.f32 %v17989_v3, %v17976_v49  ;;  %v18061_v43 = vadd.f32 %v18008_v39, %v17991_v36  ;;  %v18064_v13 = vadd.f32 %v9376_v7, %v18010_v31 }
 0xec0   : > { %v18066_v47 = vadd.f32 %v9378_v51, %v9265_v42  ;;  %v18068_v44 = vadd.f32 %v9380_v56, %v9267_v59  ;;  %v12459_v32 = vpop.eup %12458  ;;  %v7736_v14 = vadd.f32 %v7608_v8, %v17995_v16  ;;  %v8366_v5 = vmul.f32 %v8238_v53, %v17858_v35  ;;  %v19215_v8 = vld [vmem:[#allocation65_spill] sm:$0xff] }
 0xec1   : > { %v8072_v11 = vadd.f32 1.0, %v17886_v40  ;;  %v18073_v49 = vadd.f32 %v9382_v41, %v9269_v62  ;;  %v8349_v3 = vmul.f32 %v8221_v34, %v17797_v25  ;;  %v7711_v36 = vadd.f32 %v7583_v45, %v17927_v52 }
 0xec2   : > { %v8109_v39 = vadd.f32 1.0, %v12457_v50  ;;  %v7471_v31 = vmul.f32 %v7343_v60, %v18030_v18  ;;  %12466 = vtanh.f32 %v7840_v26  ;;  %v7728_v42 = vadd.f32 %v7600_v37, %v18006_v61  ;;  %v19214_v26 = vld [vmem:[#allocation86_spill] sm:$0xff] }
 0xec3   : > { %v8438_v7 = vpack.c.bf16 %v8374_v46, %v8366_v5  ;;  %v8064_v29 = vadd.f32 1.0, %v17842_v15  ;;  %v12461_v54 = vpop.eup %12460  ;;  %v7847_v9 = vmul.f32 0.7978846, %v7719_v2  ;;  %v8245_v35 = vmul.f32 0.5, %v8117_v58 }
 0xec4   : > { %v7607_v51 = vmul.f32 0.044715, %v7479_v6  ;;  %v8429_v40 = vpack.c.bf16 %v8357_v30, %v8349_v3  ;;  %v7864_v28 = vmul.f32 0.7978846, %v7736_v14  ;;  %v8200_v57 = vmul.f32 0.5, %v8072_v11 }
 0xec5   : > { %v7839_v27 = vmul.f32 0.7978846, %v7711_v36  ;;  %v8237_v25 = vmul.f32 0.5, %v8109_v39  ;;  %v7599_v59 = vmul.f32 0.044715, %v7471_v31  ;;  %v8192_v45 = vmul.f32 0.5, %v8064_v29 }
 0xec6   : > { %9528 = vmatmul.mubr.bf16.gmra.mxu1 %v8429_v40  ;;  %v7856_v38 = vmul.f32 0.7978846, %v7728_v42  ;;  %v8071_v23 = vadd.f32 1.0, %v17868_v0  ;;  %12468 = vtanh.f32 %v7847_v9  ;;  %v8373_v15 = vmul.f32 %v8245_v35, %v17883_v20  ;;  %v19216_v0 = vld [vmem:[#allocation85_spill] sm:$0xff] }
 0xec7   : > { %9537 = vmatprep.mubr.bf16.mxu1 %v8438_v7  ;;  %v12463_v19 = vpop.eup %12462  ;;  %v7735_v56 = vadd.f32 %v7607_v51, %v18025_v63  ;;  %12470 = vtanh.f32 %v7864_v28  ;;  %v8328_v2 = vmul.f32 %v8200_v57, %v19214_v26  ;;  %v8088_v60 = vadd.f32 1.0, %v12461_v54  ;;  %v19218_v57 = vld [vmem:[#allocation66_spill] sm:$0xff] }
 0xec8   : > { %v8063_v53 = vadd.f32 1.0, %v19215_v8  ;;  %12472 = vtanh.f32 %v7839_v27  ;;  %v8365_v30 = vmul.f32 %v8237_v25, %v17864_v22  ;;  %v7727_v37 = vadd.f32 %v7599_v59, %v18030_v18 }
 0xec9   : > { %v9273_v24 = vpop.f32.mrf.mxu1  ;;  %v12465_v34 = vpop.eup %12464  ;;  %12474 = vtanh.f32 %v7856_v38  ;;  %v8320_v58 = vmul.f32 %v8192_v45, %v19216_v0  ;;  %v8080_v6 = vadd.f32 1.0, %v12459_v32  ;;  %v8199_v62 = vmul.f32 0.5, %v8071_v23  ;;  %v19217_v32 = vld [vmem:[#allocation29_spill] sm:$0xff] }
 0xeca   : > { %v7863_v41 = vmul.f32 0.7978846, %v7735_v56  ;;  %v8437_v50 = vpack.c.bf16 %v8373_v15, %v8365_v30  ;;  %v8216_v5 = vmul.f32 0.5, %v8088_v60  ;;  %v8191_v36 = vmul.f32 0.5, %v8063_v53 }
 0xecb   : > { %v9275_v20 = vpop.f32.mrf.mxu1  ;;  %v8416_v14 = vpack.c.bf16 %v8328_v2, %v8320_v58  ;;  %v7855_v39 = vmul.f32 0.7978846, %v7727_v37  ;;  %v8208_v31 = vmul.f32 0.5, %v8080_v6  ;;  %v8327_v29 = vmul.f32 %v8199_v62, %v19217_v32  ;;  %v19219_v37 = vld [vmem:[#allocation83_spill] sm:$0xff]  ;;  %v19220_v6 = vld [vmem:[#allocation88_spill] sm:$0xff] }
 0xecc   : > { %v9386_v46 = vpop.f32.mrf.mxu0  ;;  %v8087_v54 = vadd.f32 1.0, %v12463_v19  ;;  %12476 = vtanh.f32 %v7863_v41  ;;  %v8344_v51 = vmul.f32 %v8216_v5, %v17784_v12  ;;  %v8104_v40 = vadd.f32 1.0, %v12465_v34 }
 0xecd   : > { %v18088_v11 = vadd.f32 %v9386_v46, %v9273_v24  ;;  %v9277_v3 = vpop.f32.mrf.mxu1  ;;  %v8319_v27 = vmul.f32 %v8191_v36, %v19218_v57  ;;  %v8079_v25 = vadd.f32 1.0, %v17985_v33  ;;  %12478 = vtanh.f32 %v7855_v39 }
 0xece   : > { %9538 = vmatmul.mubr.bf16.gmra.mxu1 %v8437_v50  ;;  %v9388_v22 = vpop.f32.mrf.mxu0  ;;  %v8336_v38 = vmul.f32 %v8208_v31, %v17741_v48  ;;  %v8215_v15 = vmul.f32 0.5, %v8087_v54  ;;  %v8232_v2 = vmul.f32 0.5, %v8104_v40 }
 0xecf   : > { %9620 = vmatprep.mubr.bf16.mxu1 %v8416_v14  ;;  %v18090_v42 = vadd.f32 %v9388_v22, %v9275_v20  ;;  %v12467_v7 = vpop.eup %12466  ;;  %v9279_v35 = vpop.f32.mrf.mxu1  ;;  %v8415_v19 = vpack.c.bf16 %v8327_v29, %v8319_v27  ;;  %v8207_v60 = vmul.f32 0.5, %v8079_v25 }
 0xed0   : > { %v9390_v9 = vpop.f32.mrf.mxu0  ;;  %v8096_v45 = vadd.f32 1.0, %v12467_v7  ;;  %v8424_v26 = vpack.c.bf16 %v8344_v51, %v8336_v38  ;;  %v8343_v33 = vmul.f32 %v8215_v15, %v17750_v4  ;;  %v8360_v48 = vmul.f32 %v8232_v2, %v17936_v17 }
 0xed1   : > { %v18094_v28 = vadd.f32 %v9390_v9, %v9277_v3  ;;  %v8335_v0 = vmul.f32 %v8207_v60, %v19219_v37 }
 0xed2   : > { %v9392_v59 = vpop.f32.mrf.mxu0  ;;  %v8224_v34 = vmul.f32 0.5, %v8096_v45 }
 0xed3   : > { %v18099_v23 = vadd.f32 %v9392_v59, %v9279_v35  ;;  %v12469_v56 = vpop.eup %12468  ;;  %v8423_v50 = vpack.c.bf16 %v8343_v33, %v8335_v0 }
 0xed4   : > { %v12471_v12 = vpop.eup %12470  ;;  %v8103_v53 = vadd.f32 1.0, %v12469_v56  ;;  %v8352_v20 = vmul.f32 %v8224_v34, %v19220_v6 }
 0xed5   : > { %v12473_v24 = vpop.eup %12472  ;;  %v8120_v30 = vadd.f32 1.0, %v12471_v12 }
 0xed6   : > { %9621 = vmatmul.mubr.bf16.vlgmr.msra.gmra.mxu1 %v8415_v19  ;;  %v12475_v8 = vpop.eup %12474  ;;  %v8095_v58 = vadd.f32 1.0, %v12473_v24  ;;  %v8231_v41 = vmul.f32 0.5, %v8103_v53  ;;  %v8432_v14 = vpack.c.bf16 %v8360_v48, %v8352_v20 }
 0xed7   : > { %9630 = vmatprep.mubr.bf16.mxu1 %v8424_v26  ;;  %v8112_v62 = vadd.f32 1.0, %v12475_v8  ;;  %v8248_v5 = vmul.f32 0.5, %v8120_v30 }
 0xed8   : > { %v8223_v3 = vmul.f32 0.5, %v8095_v58  ;;  %v8359_v17 = vmul.f32 %v8231_v41, %v17951_v21 }
 0xed9   : > { %v12477_v46 = vpop.eup %12476  ;;  %v8240_v4 = vmul.f32 0.5, %v8112_v62  ;;  %v8376_v31 = vmul.f32 %v8248_v5, %v17995_v16 }
 0xeda   : > { %v12479_v36 = vpop.eup %12478  ;;  %v8119_v22 = vadd.f32 1.0, %v12477_v46  ;;  %v8351_v32 = vmul.f32 %v8223_v3, %v17927_v52 }
 0xedb   : > { %v8111_v29 = vadd.f32 1.0, %v12479_v36  ;;  %v8368_v9 = vmul.f32 %v8240_v4, %v18006_v61 }
 0xedc   : > { %v8247_v40 = vmul.f32 0.5, %v8119_v22  ;;  %v8431_v57 = vpack.c.bf16 %v8359_v17, %v8351_v32 }
 0xedd   : > { %v8440_v25 = vpack.c.bf16 %v8376_v31, %v8368_v9  ;;  %v8239_v21 = vmul.f32 0.5, %v8111_v29 }
 0xede   : > { %9631 = vmatmul.mubr.bf16.gmra.mxu1 %v8423_v50  ;;  %v8375_v52 = vmul.f32 %v8247_v40, %v18025_v63  ;;  %v19222_v40 = vld [vmem:[#allocation80_spill] sm:$0xff] }
 0xedf   : > { %9640 = vmatprep.mubr.bf16.mxu1 %v8432_v14  ;;  %v9283_v39 = vpop.f32.mrf.mxu1  ;;  %v8367_v15 = vmul.f32 %v8239_v21, %v18030_v18  ;;  %v19224_v21 = vld [vmem:[#allocation77_spill] sm:$0xff] }
 0xee1   : > { %v9285_v7 = vpop.f32.mrf.mxu1  ;;  %v8439_v56 = vpack.c.bf16 %v8375_v52, %v8367_v15  ;;  %v9693_v52 = vld [vmem:[%s944_s20] sm:$0x3]  ;;  %v19226_v15 = vld [vmem:[#allocation74_spill] sm:$0xff] }
 0xee2   : > { %v9396_v54 = vpop.f32.mrf.mxu0 }
 0xee3   : > { %v18109_v35 = vadd.f32 %v9396_v54, %v9283_v39  ;;  %v9287_v51 = vpop.f32.mrf.mxu1 }
 0xee4   : > { %v9398_v27 = vpop.f32.mrf.mxu0 }
 0xee5   : > { %v18111_v59 = vadd.f32 %v9398_v27, %v9285_v7  ;;  %v9289_v16 = vpop.f32.mrf.mxu1 }
 0xee6   : > { %9641 = vmatmul.mubr.bf16.gmra.mxu1 %v8431_v57  ;;  %v9400_v38 = vpop.f32.mrf.mxu0 }
 0xee7   : > { %9650 = vmatprep.mubr.bf16.mxu1 %v8440_v25  ;;  %v18113_v45 = vadd.f32 %v9400_v38, %v9287_v51  ;;  %v19221_v51 = vld [vmem:[#allocation69_spill] sm:$0xff]  ;;  %v19223_v25 = vld [vmem:[#allocation79_spill] sm:$0xff] }
 0xee8   : > { %v9402_v19 = vpop.f32.mrf.mxu0  ;;  %v9357_v57 = vadd.f32 %v19222_v40, %v19221_v51  ;;  %v9359_v38 = vadd.f32 %v19224_v21, %v19223_v25 }
 0xee9   : > { %v18116_v61 = vadd.f32 %v9402_v19, %v9289_v16 }
 0xeee   : > { %9651 = vmatmul.mubr.bf16.gmra.mxu1 %v8439_v56  ;;  %v19227_v56 = vld [vmem:[#allocation82_spill] sm:$0xff] }
 0xef5   : > { %v9293_v26 = vpop.f32.mrf.mxu1 }
 0xef7   : > { %v9406_v2 = vpop.f32.mrf.mxu0  ;;  %v9295_v12 = vpop.f32.mrf.mxu1 }
 0xef8   : > { %v18119_v60 = vadd.f32 %v9406_v2, %v9293_v26  ;;  %v9361_v26 = vadd.f32 %v19227_v56, %v19226_v15 }
 0xef9   : > { %v9408_v24 = vpop.f32.mrf.mxu0  ;;  %v9297_v34 = vpop.f32.mrf.mxu1 }
 0xefa   : > { %v18121_v8 = vadd.f32 %v9408_v24, %v9295_v12 }
 0xefb   : > { %v9410_v33 = vpop.f32.mrf.mxu0  ;;  %v9299_v53 = vpop.f32.mrf.mxu1 }
 0xefc   : > { %v18123_v48 = vadd.f32 %v9410_v33, %v9297_v34  ;;  %v19228_v34 = vld [vmem:[#allocation72_spill] sm:$0xff]  ;;  %v19229_v33 = vld [vmem:[#allocation89_spill] sm:$0xff] }
 0xefd   : > { %v9412_v63 = vpop.f32.mrf.mxu0 }
 0xefe   : > { %v18125_v30 = vadd.f32 %v9412_v63, %v9299_v53  ;;  %v9363_v53 = vadd.f32 %v19229_v33, %v19228_v34  ;;  %v19236_v33 = vld [vmem:[#allocation37_spill] sm:$0xff] }
 0xf0a   : > { %v9303_v37 = vpop.f32.mrf.mxu1 }
 0xf0c   : > { %v9416_v18 = vpop.f32.mrf.mxu0  ;;  %v9305_v0 = vpop.f32.mrf.mxu1 }
 0xf0d   : > { %v18127_v58 = vadd.f32 %v9416_v18, %v9303_v37  ;;  %v19230_v37 = vld [vmem:[#allocation31_spill] sm:$0xff] }
 0xf0e   : > { %v9418_v6 = vpop.f32.mrf.mxu0  ;;  %v9307_v20 = vpop.f32.mrf.mxu1  ;;  %v18157_v18 = vrot.slane %v9693_v52, %v19230_v37 }
 0xf0f   : > { %v18129_v62 = vadd.f32 %v9418_v6, %v9305_v0 }
 0xf10   : > { %v9420_v41 = vpop.f32.mrf.mxu0  ;;  %v9309_v50 = vpop.f32.mrf.mxu1 }
 0xf11   : > { %v18131_v46 = vadd.f32 %v9420_v41, %v9307_v20  ;;  %v19231_v41 = vld [vmem:[#allocation32_spill] sm:$0xff] }
 0xf12   : > { %v9422_v14 = vpop.f32.mrf.mxu0 }
 0xf13   : > { %v18133_v5 = vadd.f32 %v9422_v14, %v9309_v50 }
 0xf1d   : > { %v9313_v3 = vpop.f32.mrf.mxu1 }
 0xf1f   : > { %v9315_v36 = vpop.f32.mrf.mxu1 }
 0xf21   : > { %v9426_v4 = vpop.f32.mrf.mxu0  ;;  %v9317_v39 = vpop.f32.mrf.mxu1 }
 0xf22   : > { %v18135_v17 = vadd.f32 %v9426_v4, %v9313_v3  ;;  %v19232_v3 = vld [vmem:[#allocation30_spill] sm:$0xff] }
 0xf23   : > { %v9428_v22 = vpop.f32.mrf.mxu0  ;;  %v9319_v32 = vpop.f32.mrf.mxu1 }
 0xf24   : > { %v18137_v31 = vadd.f32 %v9428_v22, %v9315_v36  ;;  %v18161_v36 = vrot.slane %v9693_v52, %v19232_v3 }
 0xf25   : > { %v9430_v7 = vpop.f32.mrf.mxu0 }
 0xf26   : > { %v18139_v29 = vadd.f32 %v9430_v7, %v9317_v39  ;;  %v19233_v7 = vld [vmem:[#allocation34_spill] sm:$0xff] }
 0xf27   : > { %v9432_v54 = vpop.f32.mrf.mxu0 }
 0xf28   : > { %v18141_v9 = vadd.f32 %v9432_v54, %v9319_v32 }
 0xf35   : > { %v9469_v27 = vpop.f32.mrf.mxu1 }
 0xf36   : > { %v9470_v16 = vadd.f32 %v9469_v27, %v9357_v57  ;;  %v19234_v57 = vld [vmem:[#allocation33_spill] sm:$0xff] }
 0xf37   : > { %v9471_v19 = vpop.f32.mrf.mxu1 }
 0xf38   : > { %v9472_v2 = vadd.f32 %v9471_v19, %v9359_v38  ;;  %v19235_v38 = vld [vmem:[#allocation38_spill] sm:$0xff] }
 0xf39   : > { %v9582_v12 = vpop.f32.mrf.mxu0  ;;  %v9473_v24 = vpop.f32.mrf.mxu1 }
 0xf3a   : > { %v9583_v63 = vadd.f32 %v9582_v12, %v9470_v16  ;;  %v9474_v0 = vadd.f32 %v9473_v24, %v9361_v26 }
 0xf3b   : > { %v9584_v6 = vpop.f32.mrf.mxu0  ;;  %v9475_v20 = vpop.f32.mrf.mxu1 }
 0xf3c   : > { %v9661_v50 = vadd.f32 %v9583_v63, %v19231_v41  ;;  %v9585_v14 = vadd.f32 %v9584_v6, %v9472_v2  ;;  %v9476_v4 = vadd.f32 %v9475_v20, %v9363_v53  ;;  %v19237_v41 = vld [vmem:[#allocation36_spill] sm:$0xff] }
 0xf3d   : > { %v9586_v39 = vpop.f32.mrf.mxu0 }
 0xf3e   : > { %v18164_v22 = vadd.f32 %v18157_v18, %v9661_v50  ;;  %v9662_v32 = vadd.f32 %v9585_v14, %v19233_v7  ;;  %v9587_v54 = vadd.f32 %v9586_v39, %v9474_v0 }
 0xf3f   : > { %v9588_v51 = vpop.f32.mrf.mxu0 }
 0xf40   : > { %9737 = vst [vmem:[#allocation2 + $0xb0] sm:$0xff] %v18164_v22  ;;  %v18169_v40 = vadd.f32 %v18161_v36, %v9662_v32  ;;  %v9663_v27 = vadd.f32 %v9587_v54, %v19234_v57  ;;  %v9589_v25 = vadd.f32 %v9588_v51, %v9476_v4  ;;  %v19238_v4 = vld [vmem:[#allocation35_spill] sm:$0xff]  ;;  %v19239_v32 = vld [vmem:[#allocation40_spill] sm:$0xff] }
 0xf42   : > { %9738 = vst [vmem:[#allocation2] sm:$0xff] %v18169_v40  ;;  %v18174_v21 = vadd.f32 %v18157_v18, %v9663_v27  ;;  %v9664_v16 = vadd.f32 %v9589_v25, %v19235_v38 }
 0xf44   : > { %9739 = vst [vmem:[#allocation2 + $0xd8] sm:$0xff] %v18174_v21  ;;  %v18179_v52 = vadd.f32 %v18161_v36, %v9664_v16 }
 0xf46   : > { %9740 = vst [vmem:[#allocation2 + $0x18] sm:$0xff] %v18179_v52 }
 0xf4b   : > { %v9479_v19 = vpop.f32.mrf.mxu1 }
 0xf4c   : > { %v9480_v15 = vadd.f32 %v9479_v19, %v18049_v55  ;;  %v9592_v56 = vpop.f32.mrf.mxu0 }
 0xf4d   : > { %v9481_v26 = vpop.f32.mrf.mxu1 }
 0xf4e   : > { %v9593_v2 = vadd.f32 %v9592_v56, %v9480_v15  ;;  %v9482_v12 = vadd.f32 %v9481_v26, %v18053_v10  ;;  %v9594_v24 = vpop.f32.mrf.mxu0 }
 0xf4f   : > { %v9483_v34 = vpop.f32.mrf.mxu1 }
 0xf50   : > { %v9665_v53 = vadd.f32 %v9593_v2, %v19236_v33  ;;  %v9595_v63 = vadd.f32 %v9594_v24, %v9482_v12  ;;  %v9484_v37 = vadd.f32 %v9483_v34, %v18057_v1  ;;  %v9596_v0 = vpop.f32.mrf.mxu0  ;;  %v19240_v2 = vld [vmem:[#allocation39_spill] sm:$0xff] }
 0xf51   : > { %v9485_v6 = vpop.f32.mrf.mxu1 }
 0xf52   : > { %v18187_v20 = vadd.f32 %v18157_v18, %v9665_v53  ;;  %v9666_v50 = vadd.f32 %v9595_v63, %v19237_v41  ;;  %v9597_v55 = vadd.f32 %v9596_v0, %v9484_v37  ;;  %v9486_v14 = vadd.f32 %v9485_v6, %v18061_v43  ;;  %v9598_v3 = vpop.f32.mrf.mxu0 }
 0xf54   : > { %9741 = vst [vmem:[#allocation2 + $0x50] sm:$0xff] %v18187_v20  ;;  %v18193_v10 = vadd.f32 %v18161_v36, %v9666_v50  ;;  %v9667_v39 = vadd.f32 %v9597_v55, %v19238_v4  ;;  %v9599_v7 = vadd.f32 %v9598_v3, %v9486_v14  ;;  %v19243_v50 = vld [vmem:[#allocation43_spill] sm:$0xff] }
 0xf56   : > { %9742 = vst [vmem:[#allocation2 + $0x68] sm:$0xff] %v18193_v10  ;;  %v18198_v1 = vadd.f32 %v18157_v18, %v9667_v39  ;;  %v9668_v54 = vadd.f32 %v9599_v7, %v19239_v32 }
 0xf58   : > { %9743 = vst [vmem:[#allocation2 + $0x30] sm:$0xff] %v18198_v1  ;;  %v18203_v43 = vadd.f32 %v18161_v36, %v9668_v54 }
 0xf5a   : > { %9744 = vst [vmem:[#allocation2 + $0x48] sm:$0xff] %v18203_v43 }
 0xf5d   : > { %v9489_v51 = vpop.f32.mrf.mxu1 }
 0xf5e   : > { %v9490_v57 = vadd.f32 %v9489_v51, %v18064_v13  ;;  %v19241_v13 = vld [vmem:[#allocation41_spill] sm:$0xff] }
 0xf5f   : > { %v9491_v27 = vpop.f32.mrf.mxu1 }
 0xf60   : > { %v9492_v25 = vadd.f32 %v9491_v27, %v18066_v47 }
 0xf61   : > { %v9602_v38 = vpop.f32.mrf.mxu0  ;;  %v9493_v16 = vpop.f32.mrf.mxu1 }
 0xf62   : > { %v9603_v19 = vadd.f32 %v9602_v38, %v9490_v57  ;;  %v9494_v15 = vadd.f32 %v9493_v16, %v18068_v44  ;;  %v19242_v44 = vld [vmem:[#allocation42_spill] sm:$0xff]  ;;  %v19244_v38 = vld [vmem:[#allocation44_spill] sm:$0xff] }
 0xf63   : > { %v9604_v56 = vpop.f32.mrf.mxu0  ;;  %v9495_v26 = vpop.f32.mrf.mxu1 }
 0xf64   : > { %v9669_v12 = vadd.f32 %v9603_v19, %v19240_v2  ;;  %v9605_v24 = vadd.f32 %v9604_v56, %v9492_v25  ;;  %v9496_v34 = vadd.f32 %v9495_v26, %v18073_v49 }
 0xf65   : > { %v9606_v33 = vpop.f32.mrf.mxu0 }
 0xf66   : > { %v18212_v53 = vadd.f32 %v18157_v18, %v9669_v12  ;;  %v9670_v63 = vadd.f32 %v9605_v24, %v19241_v13  ;;  %v9607_v37 = vadd.f32 %v9606_v33, %v9494_v15 }
 0xf67   : > { %v9608_v47 = vpop.f32.mrf.mxu0 }
 0xf68   : > { %9745 = vst [vmem:[#allocation2 + $0x80] sm:$0xff] %v18212_v53  ;;  %v18217_v0 = vadd.f32 %v18161_v36, %v9670_v63  ;;  %v9671_v6 = vadd.f32 %v9607_v37, %v19242_v44  ;;  %v9609_v41 = vadd.f32 %v9608_v47, %v9496_v34  ;;  %v19246_v34 = vld [vmem:[#allocation46_spill] sm:$0xff]  ;;  %v19247_v37 = vld [vmem:[#allocation47_spill] sm:$0xff] }
 0xf6a   : > { %9746 = vst [vmem:[#allocation2 + $0x88] sm:$0xff] %v18217_v0  ;;  %v18222_v49 = vadd.f32 %v18157_v18, %v9671_v6  ;;  %v9672_v55 = vadd.f32 %v9609_v41, %v19243_v50 }
 0xf6c   : > { %9747 = vst [vmem:[#allocation2 + $0xe8] sm:$0xff] %v18222_v49  ;;  %v18227_v14 = vadd.f32 %v18161_v36, %v9672_v55 }
 0xf6d   : > { %v9499_v3 = vpop.f32.mrf.mxu1 }
 0xf6e   : > { %9748 = vst [vmem:[#allocation2 + $0xb8] sm:$0xff] %v18227_v14  ;;  %v9500_v4 = vadd.f32 %v9499_v3, %v18088_v11  ;;  %v19245_v11 = vld [vmem:[#allocation45_spill] sm:$0xff] }
 0xf6f   : > { %v9501_v39 = vpop.f32.mrf.mxu1 }
 0xf70   : > { %v9502_v7 = vadd.f32 %v9501_v39, %v18090_v42 }
 0xf71   : > { %v9612_v32 = vpop.f32.mrf.mxu0  ;;  %v9503_v54 = vpop.f32.mrf.mxu1 }
 0xf72   : > { %v9613_v51 = vadd.f32 %v9612_v32, %v9500_v4  ;;  %v9504_v57 = vadd.f32 %v9503_v54, %v18094_v28 }
 0xf73   : > { %v9614_v27 = vpop.f32.mrf.mxu0  ;;  %v9505_v25 = vpop.f32.mrf.mxu1 }
 0xf74   : > { %v9673_v16 = vadd.f32 %v9613_v51, %v19244_v38  ;;  %v9615_v19 = vadd.f32 %v9614_v27, %v9502_v7  ;;  %v9506_v15 = vadd.f32 %v9505_v25, %v18099_v23 }
 0xf75   : > { %v9616_v56 = vpop.f32.mrf.mxu0 }
 0xf76   : > { %v18236_v26 = vadd.f32 %v18157_v18, %v9673_v16  ;;  %v9674_v2 = vadd.f32 %v9615_v19, %v19245_v11  ;;  %v9617_v12 = vadd.f32 %v9616_v56, %v9504_v57  ;;  %v9509_v42 = vpop.f32.mrf.mxu1 }
 0xf77   : > { %v9618_v24 = vpop.f32.mrf.mxu0  ;;  %v9510_v38 = vadd.f32 %v9509_v42, %v18109_v35 }
 0xf78   : > { %9749 = vst [vmem:[#allocation2 + $0x60] sm:$0xff] %v18236_v26  ;;  %v18241_v28 = vadd.f32 %v18161_v36, %v9674_v2  ;;  %v9675_v33 = vadd.f32 %v9617_v12, %v19246_v34  ;;  %v9619_v13 = vadd.f32 %v9618_v24, %v9506_v15  ;;  %v9511_v63 = vpop.f32.mrf.mxu1  ;;  %v19249_v2 = vld [vmem:[#allocation48_spill] sm:$0xff] }
 0xf79   : > { %v9512_v19 = vadd.f32 %v9511_v63, %v18111_v59 }
 0xf7a   : > { %9750 = vst [vmem:[#allocation2 + $0xf0] sm:$0xff] %v18241_v28  ;;  %v18246_v23 = vadd.f32 %v18157_v18, %v9675_v33  ;;  %v9676_v47 = vadd.f32 %v9619_v13, %v19247_v37  ;;  %v9513_v44 = vpop.f32.mrf.mxu1  ;;  %v19250_v37 = vld [vmem:[#allocation49_spill] sm:$0xff] }
 0xf7b   : > { %v9514_v11 = vadd.f32 %v9513_v44, %v18113_v45  ;;  %v19251_v45 = vld [vmem:[#allocation50_spill] sm:$0xff] }
 0xf7c   : > { %9751 = vst [vmem:[#allocation2 + $0x8] sm:$0xff] %v18246_v23  ;;  %v18251_v6 = vadd.f32 %v18161_v36, %v9676_v47  ;;  %v9515_v41 = vpop.f32.mrf.mxu1 }
 0xf7d   : > { %v9516_v33 = vadd.f32 %v9515_v41, %v18116_v61 }
 0xf7e   : > { %19248 = vst [vmem:[#allocation68_spill] sm:$0xff] %v18251_v6  ;;  %9752 = vst [vmem:[#allocation2 + $0x78] sm:$0xff] %v18251_v6  ;;  %v9519_v50 = vpop.f32.mrf.mxu1 }
 0xf7f   : > { %v9520_v42 = vadd.f32 %v9519_v50, %v18119_v60 }
 0xf80   : > { %v9521_v55 = vpop.f32.mrf.mxu1 }
 0xf81   : > { %v9522_v61 = vadd.f32 %v9521_v55, %v18121_v8 }
 0xf82   : > { %v9523_v3 = vpop.f32.mrf.mxu1 }
 0xf83   : > { %v9524_v50 = vadd.f32 %v9523_v3, %v18123_v48 }
 0xf84   : > { %v9525_v4 = vpop.f32.mrf.mxu1 }
 0xf85   : > { %v9526_v55 = vadd.f32 %v9525_v4, %v18125_v30 }
 0xf86   : > { %v9529_v39 = vpop.f32.mrf.mxu1 }
 0xf87   : > { %v9530_v3 = vadd.f32 %v9529_v39, %v18127_v58 }
 0xf88   : > { %v9531_v7 = vpop.f32.mrf.mxu1 }
 0xf89   : > { %v9532_v4 = vadd.f32 %v9531_v7, %v18129_v62 }
 0xf8a   : > { %v9533_v32 = vpop.f32.mrf.mxu1 }
 0xf8b   : > { %v9534_v39 = vadd.f32 %v9533_v32, %v18131_v46 }
 0xf8c   : > { %v9535_v54 = vpop.f32.mrf.mxu1 }
 0xf8d   : > { %v9536_v7 = vadd.f32 %v9535_v54, %v18133_v5 }
 0xf8e   : > { %v18254_v51 = vpop.f32.mrf.mxu1 }
 0xf8f   : > { %v9540_v32 = vadd.f32 %v18254_v51, %v18135_v17 }
 0xf90   : > { %v18256_v57 = vpop.f32.mrf.mxu1 }
 0xf92   : > { %v18258_v27 = vpop.f32.mrf.mxu1 }
 0xf94   : > { %v18260_v25 = vpop.f32.mrf.mxu1 }
 0xf96   : > { %v9622_v16 = vpop.f32.mrf.mxu1 }
 0xf97   : > { %v9623_v15 = vadd.f32 %v9622_v16, %v9510_v38  ;;  %v19252_v16 = vld [vmem:[#allocation51_spill] sm:$0xff] }
 0xf98   : > { %v9624_v56 = vpop.f32.mrf.mxu1 }
 0xf99   : > { %v9677_v12 = vadd.f32 %v9623_v15, %v19249_v2  ;;  %v9625_v24 = vadd.f32 %v9624_v56, %v9512_v19 }
 0xf9a   : > { %v9626_v34 = vpop.f32.mrf.mxu1 }
 0xf9b   : > { %v18268_v13 = vadd.f32 %v18157_v18, %v9677_v12  ;;  %v9678_v47 = vadd.f32 %v9625_v24, %v19250_v37  ;;  %v9627_v6 = vadd.f32 %v9626_v34, %v9514_v11  ;;  %v19254_v24 = vld [vmem:[#allocation53_spill] sm:$0xff] }
 0xf9c   : > { %v9628_v35 = vpop.f32.mrf.mxu1 }
 0xf9d   : > { %9753 = vst [vmem:[#allocation2 + $0x38] sm:$0xff] %v18268_v13  ;;  %v18274_v59 = vadd.f32 %v18161_v36, %v9678_v47  ;;  %v9679_v63 = vadd.f32 %v9627_v6, %v19251_v45  ;;  %v9629_v44 = vadd.f32 %v9628_v35, %v9516_v33  ;;  %v19253_v6 = vld [vmem:[#allocation52_spill] sm:$0xff]  ;;  %v19255_v47 = vld [vmem:[#allocation54_spill] sm:$0xff] }
 0xf9e   : > { %v9632_v38 = vpop.f32.mrf.mxu1 }
 0xf9f   : > { %9754 = vst [vmem:[#allocation2 + $0x58] sm:$0xff] %v18274_v59  ;;  %v18280_v41 = vadd.f32 %v18157_v18, %v9679_v63  ;;  %v9680_v19 = vadd.f32 %v9629_v44, %v19252_v16  ;;  %v9633_v15 = vadd.f32 %v9632_v38, %v9520_v42  ;;  %v19256_v63 = vld [vmem:[#allocation55_spill] sm:$0xff]  ;;  %v19257_v16 = vld [vmem:[#allocation56_spill] sm:$0xff] }
 0xfa0   : > { %v9634_v60 = vpop.f32.mrf.mxu1 }
 0xfa1   : > { %9755 = vst [vmem:[#allocation2 + $0x40] sm:$0xff] %v18280_v41  ;;  %v18286_v56 = vadd.f32 %v18161_v36, %v9680_v19  ;;  %v9681_v11 = vadd.f32 %v9633_v15, %v19253_v6  ;;  %v9635_v2 = vadd.f32 %v9634_v60, %v9522_v61 }
 0xfa2   : > { %v9636_v8 = vpop.f32.mrf.mxu1 }
 0xfa3   : > { %9756 = vst [vmem:[#allocation2 + $0xc8] sm:$0xff] %v18286_v56  ;;  %v18292_v12 = vadd.f32 %v18157_v18, %v9681_v11  ;;  %v9682_v34 = vadd.f32 %v9635_v2, %v19254_v24  ;;  %v9637_v33 = vadd.f32 %v9636_v8, %v9524_v50  ;;  %v19258_v50 = vld [vmem:[#allocation57_spill] sm:$0xff]  ;;  %v19259_v8 = vld [vmem:[#allocation58_spill] sm:$0xff]  ;;  %v9542_v24 = vadd.f32 %v18256_v57, %v18137_v31 }
 0xfa4   : > { %v9638_v48 = vpop.f32.mrf.mxu1 }
 0xfa5   : > { %9757 = vst [vmem:[#allocation2 + $0xe0] sm:$0xff] %v18292_v12  ;;  %v18298_v37 = vadd.f32 %v18161_v36, %v9682_v34  ;;  %v9683_v35 = vadd.f32 %v9637_v33, %v19255_v47  ;;  %v9639_v42 = vadd.f32 %v9638_v48, %v9526_v55  ;;  %v19260_v33 = vld [vmem:[#allocation59_spill] sm:$0xff] }
 0xfa6   : > { %v9642_v30 = vpop.f32.mrf.mxu1 }
 0xfa7   : > { %9758 = vst [vmem:[#allocation2 + $0x90] sm:$0xff] %v18298_v37  ;;  %v18304_v45 = vadd.f32 %v18157_v18, %v9683_v35  ;;  %v9684_v44 = vadd.f32 %v9639_v42, %v19256_v63  ;;  %v9643_v38 = vadd.f32 %v9642_v30, %v9530_v3  ;;  %v9544_v3 = vadd.f32 %v18258_v27, %v18139_v29  ;;  %v19261_v35 = vld [vmem:[#allocation60_spill] sm:$0xff]  ;;  %v19262_v63 = vld [vmem:[#allocation61_spill] sm:$0xff] }
 0xfa8   : > { %v9644_v58 = vpop.f32.mrf.mxu1  ;;  %v9546_v30 = vadd.f32 %v18260_v25, %v18141_v9  ;;  %v19264_v25 = vld [vmem:[#allocation63_spill] sm:$0xff] }
 0xfa9   : > { %9759 = vst [vmem:[#allocation2 + $0x70] sm:$0xff] %v18304_v45  ;;  %v18310_v61 = vadd.f32 %v18161_v36, %v9684_v44  ;;  %v9685_v19 = vadd.f32 %v9643_v38, %v19257_v16  ;;  %v9645_v15 = vadd.f32 %v9644_v58, %v9532_v4  ;;  %v19263_v58 = vld [vmem:[#allocation62_spill] sm:$0xff] }
 0xfaa   : > { %v9646_v62 = vpop.f32.mrf.mxu1 }
 0xfab   : > { %9760 = vst [vmem:[#allocation2 + $0xc0] sm:$0xff] %v18310_v61  ;;  %v18316_v60 = vadd.f32 %v18157_v18, %v9685_v19  ;;  %v9686_v6 = vadd.f32 %v9645_v15, %v19258_v50  ;;  %v9647_v11 = vadd.f32 %v9646_v62, %v9534_v39 }
 0xfac   : > { %v9648_v46 = vpop.f32.mrf.mxu1 }
 0xfad   : > { %9761 = vst [vmem:[#allocation2 + $0xa8] sm:$0xff] %v18316_v60  ;;  %v18323_v2 = vadd.f32 %v18161_v36, %v9686_v6  ;;  %v9687_v55 = vadd.f32 %v9647_v11, %v19259_v8  ;;  %v9649_v5 = vadd.f32 %v9648_v46, %v9536_v7 }
 0xfae   : > { %v9652_v54 = vpop.f32.mrf.mxu1 }
 0xfaf   : > { %9762 = vst [vmem:[#allocation2 + $0xd0] sm:$0xff] %v18323_v2  ;;  %v18330_v34 = vadd.f32 %v18157_v18, %v9687_v55  ;;  %v9688_v48 = vadd.f32 %v9649_v5, %v19260_v33  ;;  %v9653_v17 = vadd.f32 %v9652_v54, %v9540_v32 }
 0xfb0   : > { %v9654_v51 = vpop.f32.mrf.mxu1 }
 0xfb1   : > { %9763 = vst [vmem:[#allocation2 + $0x10] sm:$0xff] %v18330_v34  ;;  %v18337_v47 = vadd.f32 %v18161_v36, %v9688_v48  ;;  %v9689_v42 = vadd.f32 %v9653_v17, %v19261_v35  ;;  %v9655_v31 = vadd.f32 %v9654_v51, %v9542_v24 }
 0xfb2   : > { %v9656_v57 = vpop.f32.mrf.mxu1 }
 0xfb3   : > { %9764 = vst [vmem:[#allocation2 + $0x28] sm:$0xff] %v18337_v47  ;;  %v18344_v4 = vadd.f32 %v18157_v18, %v9689_v42  ;;  %v9690_v44 = vadd.f32 %v9655_v31, %v19262_v63  ;;  %v9657_v29 = vadd.f32 %v9656_v57, %v9544_v3 }
 0xfb4   : > { %v9658_v27 = vpop.f32.mrf.mxu1 }
 0xfb5   : > { %9765 = vst [vmem:[#allocation2 + $0xa0] sm:$0xff] %v18344_v4  ;;  %v18349_v38 = vadd.f32 %v18161_v36, %v9690_v44  ;;  %v9691_v39 = vadd.f32 %v9657_v29, %v19263_v58  ;;  %v9659_v16 = vadd.f32 %v9658_v27, %v9546_v30 }
 0xfb7   : > { %9766 = vst [vmem:[#allocation2 + $0xf8] sm:$0xff] %v18349_v38  ;;  %v18354_v9 = vadd.f32 %v18157_v18, %v9691_v39  ;;  %v9692_v19 = vadd.f32 %v9659_v16, %v19264_v25  ;;  %9772 = sbr.rel (%p10942_p13) target bundleno = 4378 (0x111a), region = 124 }
 0xfb9   : > { %9767 = vst [vmem:[#allocation2 + $0x20] sm:$0xff] %v18354_v9  ;;  %v18359_v15 = vadd.f32 %v18161_v36, %v9692_v19 }
 0xfbb   : > { %9768 = vst [vmem:[#allocation2 + $0x98] sm:$0xff] %v18359_v15 }
 0xfbc   : > { %v9775_v62 = vadd.f32 %v18169_v40, %v18164_v22  ;;  %v9781_v7 = vadd.f32 %v18193_v10, %v18187_v20  ;;  %v9778_v18 = vadd.f32 %v18179_v52, %v18174_v21  ;;  %v9784_v36 = vadd.f32 %v18203_v43, %v18198_v1  ;;  %v19265_v46 = vld [vmem:[#allocation68_spill] sm:$0xff] }
 0xfbd   : > { %v9787_v50 = vadd.f32 %v18217_v0, %v18212_v53  ;;  %v9790_v6 = vadd.f32 %v18227_v14, %v18222_v49  ;;  %v9793_v11 = vadd.f32 %v18241_v28, %v18236_v26  ;;  %v9796_v32 = vadd.f32 %v19265_v46, %v18246_v23 }
 0xfbe   : > { %9776 = vadd.xlane.f32.xlu0 %v9775_v62  ;;  %9782 = vadd.xlane.f32.xlu1 %v9781_v7  ;;  %v9799_v8 = vadd.f32 %v18274_v59, %v18268_v13  ;;  %v9802_v55 = vadd.f32 %v18286_v56, %v18280_v41  ;;  %v9805_v5 = vadd.f32 %v18298_v37, %v18292_v12 }
 0xfbf   : > { %v9808_v54 = vadd.f32 %v18310_v61, %v18304_v45  ;;  %v9811_v24 = vadd.f32 %v18323_v2, %v18316_v60  ;;  %v9814_v33 = vadd.f32 %v18337_v47, %v18330_v34  ;;  %v9817_v48 = vadd.f32 %v18349_v38, %v18344_v4 }
 0xfc0   : > { %v9820_v17 = vadd.f32 %v18359_v15, %v18354_v9 }
 0xfc2   : > { %9779 = vadd.xlane.f32.xlu0 %v9778_v18  ;;  %9785 = vadd.xlane.f32.xlu1 %v9784_v36 }
 0xfc6   : > { %9788 = vadd.xlane.f32.xlu0 %v9787_v50  ;;  %9791 = vadd.xlane.f32.xlu1 %v9790_v6 }
 0xfca   : > { %9794 = vadd.xlane.f32.xlu0 %v9793_v11  ;;  %9797 = vadd.xlane.f32.xlu1 %v9796_v32 }
 0xfce   : > { %9800 = vadd.xlane.f32.xlu0 %v9799_v8  ;;  %9803 = vadd.xlane.f32.xlu1 %v9802_v55 }
 0xfd2   : > { %9806 = vadd.xlane.f32.xlu0 %v9805_v5  ;;  %9809 = vadd.xlane.f32.xlu1 %v9808_v54 }
 0xfd6   : > { %9812 = vadd.xlane.f32.xlu0 %v9811_v24  ;;  %9815 = vadd.xlane.f32.xlu1 %v9814_v33 }
 0xfda   : > { %9818 = vadd.xlane.f32.xlu0 %v9817_v48  ;;  %9821 = vadd.xlane.f32.xlu1 %v9820_v17 }
0x1047   : > { %v9777_v51 = vpop.xlane.xlu0 %9776  ;;  %v9783_v3 = vpop.xlane.xlu1 %9782 }
0x1048   : > { %v9823_v35 = vmul.f32 0.00390625, %v9777_v51  ;;  %v9825_v42 = vmul.f32 0.00390625, %v9783_v3 }
0x104a   : > { %v18396_v31 = vsub.f32 %v18164_v22, %v9823_v35  ;;  %v18399_v57 = vsub.f32 %v18169_v40, %v9823_v35  ;;  %v18402_v30 = vsub.f32 %v18187_v20, %v9825_v42  ;;  %v18405_v63 = vsub.f32 %v18193_v10, %v9825_v42 }
0x104b   : > { %v9780_v44 = vpop.xlane.xlu0 %9779  ;;  %v9786_v29 = vpop.xlane.xlu1 %9785 }
0x104c   : > { %v9824_v27 = vmul.f32 0.00390625, %v9780_v44  ;;  %v9826_v58 = vmul.f32 0.00390625, %v9786_v29  ;;  %v9871_v39 = vmul.f32 %v18396_v31, %v18396_v31  ;;  %v9872_v22 = vmul.f32 %v18399_v57, %v18399_v57 }
0x104d   : > { %v9875_v40 = vmul.f32 %v18402_v30, %v18402_v30  ;;  %v9876_v20 = vmul.f32 %v18405_v63, %v18405_v63 }
0x104e   : > { %v18416_v16 = vsub.f32 %v18174_v21, %v9824_v27  ;;  %v18419_v10 = vsub.f32 %v18179_v52, %v9824_v27  ;;  %v18422_v25 = vsub.f32 %v18198_v1, %v9826_v58  ;;  %v18425_v19 = vsub.f32 %v18203_v43, %v9826_v58 }
0x104f   : > { %v9789_v62 = vpop.xlane.xlu0 %9788  ;;  %v9903_v7 = vadd.f32 %v9872_v22, %v9871_v39  ;;  %v9792_v18 = vpop.xlane.xlu1 %9791  ;;  %v9909_v52 = vadd.f32 %v9876_v20, %v9875_v40 }
0x1050   : > { %v9827_v36 = vmul.f32 0.00390625, %v9789_v62  ;;  %v9828_v50 = vmul.f32 0.00390625, %v9792_v18  ;;  %v9873_v6 = vmul.f32 %v18416_v16, %v18416_v16  ;;  %v9874_v21 = vmul.f32 %v18419_v10, %v18419_v10 }
0x1051   : > { %9904 = vadd.xlane.f32.xlu0 %v9903_v7  ;;  %v9877_v1 = vmul.f32 %v18422_v25, %v18422_v25  ;;  %v9878_v43 = vmul.f32 %v18425_v19, %v18425_v19 }
0x1052   : > { %v18436_v11 = vsub.f32 %v18212_v53, %v9827_v36  ;;  %v18439_v32 = vsub.f32 %v18217_v0, %v9827_v36  ;;  %v18442_v8 = vsub.f32 %v18222_v49, %v9828_v50  ;;  %v18445_v55 = vsub.f32 %v18227_v14, %v9828_v50 }
0x1053   : > { %v9795_v5 = vpop.xlane.xlu0 %9794  ;;  %v9906_v54 = vadd.f32 %v9874_v21, %v9873_v6  ;;  %v9798_v24 = vpop.xlane.xlu1 %9797  ;;  %v9912_v0 = vadd.f32 %v9878_v43, %v9877_v1 }
0x1054   : > { %v9829_v33 = vmul.f32 0.00390625, %v9795_v5  ;;  %v9830_v48 = vmul.f32 0.00390625, %v9798_v24  ;;  %v9879_v17 = vmul.f32 %v18436_v11, %v18436_v11  ;;  %v9880_v53 = vmul.f32 %v18439_v32, %v18439_v32 }
0x1055   : > { %9910 = vadd.xlane.f32.xlu0 %v9909_v52  ;;  %9907 = vadd.xlane.f32.xlu1 %v9906_v54  ;;  %v9881_v49 = vmul.f32 %v18442_v8, %v18442_v8  ;;  %v9882_v14 = vmul.f32 %v18445_v55, %v18445_v55 }
0x1056   : > { %v18456_v51 = vsub.f32 %v18236_v26, %v9829_v33  ;;  %v18459_v3 = vsub.f32 %v18241_v28, %v9829_v33  ;;  %v18462_v35 = vsub.f32 %v18246_v23, %v9830_v48  ;;  %v18465_v42 = vsub.f32 %v19265_v46, %v9830_v48 }
0x1057   : > { %v9801_v44 = vpop.xlane.xlu0 %9800  ;;  %v9915_v29 = vadd.f32 %v9880_v53, %v9879_v17  ;;  %v9804_v27 = vpop.xlane.xlu1 %9803  ;;  %v9918_v28 = vadd.f32 %v9882_v14, %v9881_v49 }
0x1058   : > { %v9831_v58 = vmul.f32 0.00390625, %v9801_v44  ;;  %v9832_v39 = vmul.f32 0.00390625, %v9804_v27  ;;  %v9883_v22 = vmul.f32 %v18456_v51, %v18456_v51  ;;  %v9884_v26 = vmul.f32 %v18459_v3, %v18459_v3 }
0x1059   : > { %9913 = vadd.xlane.f32.xlu1 %v9912_v0  ;;  %9916 = vadd.xlane.f32.xlu0 %v9915_v29  ;;  %v9885_v23 = vmul.f32 %v18462_v35, %v18462_v35  ;;  %v9886_v46 = vmul.f32 %v18465_v42, %v18465_v42 }
0x105a   : > { %v18476_v40 = vsub.f32 %v18268_v13, %v9831_v58  ;;  %v18479_v20 = vsub.f32 %v18274_v59, %v9831_v58  ;;  %v18482_v62 = vsub.f32 %v18280_v41, %v9832_v39  ;;  %v18485_v7 = vsub.f32 %v18286_v56, %v9832_v39 }
0x105b   : > { %v9807_v18 = vpop.xlane.xlu0 %9806  ;;  %v9921_v36 = vadd.f32 %v9884_v26, %v9883_v22  ;;  %v9810_v50 = vpop.xlane.xlu1 %9809  ;;  %v9924_v59 = vadd.f32 %v9886_v46, %v9885_v23 }
0x105c   : > { %v9833_v6 = vmul.f32 0.00390625, %v9807_v18  ;;  %v9834_v21 = vmul.f32 0.00390625, %v9810_v50  ;;  %v9887_v52 = vmul.f32 %v18476_v40, %v18476_v40  ;;  %v9888_v13 = vmul.f32 %v18479_v20, %v18479_v20 }
0x105d   : > { %9919 = vadd.xlane.f32.xlu1 %v9918_v28  ;;  %9922 = vadd.xlane.f32.xlu0 %v9921_v36  ;;  %v9889_v41 = vmul.f32 %v18482_v62, %v18482_v62  ;;  %v9890_v56 = vmul.f32 %v18485_v7, %v18485_v7 }
0x105e   : > { %v18496_v1 = vsub.f32 %v18292_v12, %v9833_v6  ;;  %v18499_v43 = vsub.f32 %v18298_v37, %v9833_v6  ;;  %v18502_v5 = vsub.f32 %v18304_v45, %v9834_v21  ;;  %v18505_v54 = vsub.f32 %v18310_v61, %v9834_v21 }
0x105f   : > { %v9813_v24 = vpop.xlane.xlu0 %9812  ;;  %v9927_v33 = vadd.f32 %v9888_v13, %v9887_v52  ;;  %v9816_v48 = vpop.xlane.xlu1 %9815  ;;  %v9930_v37 = vadd.f32 %v9890_v56, %v9889_v41 }
0x1060   : > { %v9835_v17 = vmul.f32 0.00390625, %v9813_v24  ;;  %v9836_v53 = vmul.f32 0.00390625, %v9816_v48  ;;  %v9891_v0 = vmul.f32 %v18496_v1, %v18496_v1  ;;  %v9892_v12 = vmul.f32 %v18499_v43, %v18499_v43 }
0x1061   : > { %9925 = vadd.xlane.f32.xlu1 %v9924_v59  ;;  %9928 = vadd.xlane.f32.xlu0 %v9927_v33  ;;  %v9893_v45 = vmul.f32 %v18502_v5, %v18502_v5  ;;  %v9894_v61 = vmul.f32 %v18505_v54, %v18505_v54 }
0x1062   : > { %v18516_v49 = vsub.f32 %v18316_v60, %v9835_v17  ;;  %v18519_v14 = vsub.f32 %v18323_v2, %v9835_v17  ;;  %v18522_v44 = vsub.f32 %v18330_v34, %v9836_v53  ;;  %v18525_v29 = vsub.f32 %v18337_v47, %v9836_v53 }
0x1063   : > { %v9819_v27 = vpop.xlane.xlu0 %9818  ;;  %v9933_v58 = vadd.f32 %v9892_v12, %v9891_v0  ;;  %v9822_v39 = vpop.xlane.xlu1 %9821  ;;  %v9936_v2 = vadd.f32 %v9894_v61, %v9893_v45 }
0x1064   : > { %v9837_v22 = vmul.f32 0.00390625, %v9819_v27  ;;  %v9838_v26 = vmul.f32 0.00390625, %v9822_v39  ;;  %v9895_v28 = vmul.f32 %v18516_v49, %v18516_v49  ;;  %v9896_v60 = vmul.f32 %v18519_v14, %v18519_v14 }
0x1065   : > { %9931 = vadd.xlane.f32.xlu1 %v9930_v37  ;;  %9934 = vadd.xlane.f32.xlu0 %v9933_v58  ;;  %v9897_v34 = vmul.f32 %v18522_v44, %v18522_v44  ;;  %v9898_v47 = vmul.f32 %v18525_v29, %v18525_v29 }
0x1066   : > { %v18536_v23 = vsub.f32 %v18344_v4, %v9837_v22  ;;  %v18539_v46 = vsub.f32 %v18349_v38, %v9837_v22  ;;  %v18542_v18 = vsub.f32 %v18354_v9, %v9838_v26  ;;  %v18545_v36 = vsub.f32 %v18359_v15, %v9838_v26  ;;  %v9773_v22 = vld [vmem:[%s19266_s26] sm:$0x3] }
0x1067   : > { %v9939_v50 = vadd.f32 %v9896_v60, %v9895_v28  ;;  %v9942_v4 = vadd.f32 %v9898_v47, %v9897_v34  ;;  %v9774_v60 = vld [vmem:[%s19267_s14] sm:$0x3]  ;;  %v19268_v47 = vld [vmem:[#allocation31_spill] sm:$0xff] }
0x1068   : > { %v9899_v6 = vmul.f32 %v18536_v23, %v18536_v23  ;;  %v9900_v21 = vmul.f32 %v18539_v46, %v18539_v46  ;;  %v9901_v38 = vmul.f32 %v18542_v18, %v18542_v18  ;;  %v9902_v9 = vmul.f32 %v18545_v36, %v18545_v36 }
0x1069   : > { %9937 = vadd.xlane.f32.xlu1 %v9936_v2  ;;  %9940 = vadd.xlane.f32.xlu0 %v9939_v50  ;;  %v18562_v50 = vrot.slane %v9773_v22, %v19268_v47 }
0x106a   : > { %v9945_v52 = vadd.f32 %v9900_v21, %v9899_v6  ;;  %v9948_v15 = vadd.f32 %v9902_v9, %v9901_v38 }
0x106d   : > { %9943 = vadd.xlane.f32.xlu1 %v9942_v4  ;;  %9946 = vadd.xlane.f32.xlu0 %v9945_v52  ;;  %v19269_v4 = vld [vmem:[#allocation30_spill] sm:$0xff] }
0x106e   : > { %v18565_v38 = vrot.slane %v9773_v22, %v19269_v4 }
0x1071   : > { %9949 = vadd.xlane.f32.xlu1 %v9948_v15 }
0x10da   : > { %v9905_v13 = vpop.xlane.xlu0 %9904 }
0x10db   : > { %v9951_v59 = vmul.f32 0.00390625, %v9905_v13  ;;  %v18568_v13 = vrot.slane %v9774_v60, %v19268_v47 }
0x10dd   : > { %v9967_v41 = vadd.f32 1e-05, %v9951_v59  ;;  %v18571_v59 = vrot.slane %v9774_v60, %v19269_v4 }
0x10de   : > { %v9908_v56 = vpop.xlane.xlu1 %9907  ;;  %v9911_v24 = vpop.xlane.xlu0 %9910 }
0x10df   : > { %12545 = vrsqrt.f32 %v9967_v41  ;;  %v9952_v33 = vmul.f32 0.00390625, %v9908_v56  ;;  %v9953_v48 = vmul.f32 0.00390625, %v9911_v24 }
0x10e1   : > { %v9968_v17 = vadd.f32 1e-05, %v9952_v33  ;;  %v9969_v53 = vadd.f32 1e-05, %v9953_v48 }
0x10e2   : > { %v9914_v0 = vpop.xlane.xlu1 %9913  ;;  %v9917_v12 = vpop.xlane.xlu0 %9916 }
0x10e3   : > { %12547 = vrsqrt.f32 %v9968_v17  ;;  %v9954_v37 = vmul.f32 0.00390625, %v9914_v0  ;;  %v9955_v45 = vmul.f32 0.00390625, %v9917_v12 }
0x10e4   : > { %12549 = vrsqrt.f32 %v9969_v53 }
0x10e5   : > { %v9970_v61 = vadd.f32 1e-05, %v9954_v37  ;;  %v9971_v27 = vadd.f32 1e-05, %v9955_v45 }
0x10e6   : > { %v9920_v58 = vpop.xlane.xlu1 %9919  ;;  %v9923_v39 = vpop.xlane.xlu0 %9922 }
0x10e7   : > { %12551 = vrsqrt.f32 %v9970_v61  ;;  %v9956_v26 = vmul.f32 0.00390625, %v9920_v58  ;;  %v9957_v28 = vmul.f32 0.00390625, %v9923_v39 }
0x10e8   : > { %12553 = vrsqrt.f32 %v9971_v27 }
0x10e9   : > { %v9972_v2 = vadd.f32 1e-05, %v9956_v26  ;;  %v9973_v34 = vadd.f32 1e-05, %v9957_v28 }
0x10ea   : > { %v9926_v6 = vpop.xlane.xlu1 %9925  ;;  %v9929_v21 = vpop.xlane.xlu0 %9928 }
0x10eb   : > { %12555 = vrsqrt.f32 %v9972_v2  ;;  %v9958_v9 = vmul.f32 0.00390625, %v9926_v6  ;;  %v9959_v52 = vmul.f32 0.00390625, %v9929_v21 }
0x10ec   : > { %v12546_v15 = vpop.eup %12545  ;;  %12557 = vrsqrt.f32 %v9973_v34 }
0x10ed   : > { %v9999_v41 = vmul.f32 %v12546_v15, %v18396_v31  ;;  %v10000_v56 = vmul.f32 %v12546_v15, %v18399_v57  ;;  %v9974_v24 = vadd.f32 1e-05, %v9958_v9  ;;  %v9975_v33 = vadd.f32 1e-05, %v9959_v52 }
0x10ee   : > { %v9932_v48 = vpop.xlane.xlu1 %9931  ;;  %v9935_v17 = vpop.xlane.xlu0 %9934 }
0x10ef   : > { %v10042_v53 = vmul.f32 %v18562_v50, %v9999_v41  ;;  %v10043_v0 = vmul.f32 %v18565_v38, %v10000_v56  ;;  %12559 = vrsqrt.f32 %v9974_v24  ;;  %v9960_v12 = vmul.f32 0.00390625, %v9932_v48 }
0x10f0   : > { %v12548_v37 = vpop.eup %12547  ;;  %12561 = vrsqrt.f32 %v9975_v33  ;;  %v9961_v45 = vmul.f32 0.00390625, %v9935_v17 }
0x10f1   : > { %v12550_v61 = vpop.eup %12549  ;;  %v10085_v31 = vadd.f32 %v18568_v13, %v10042_v53  ;;  %v10086_v57 = vadd.f32 %v18571_v59, %v10043_v0  ;;  %v10001_v27 = vmul.f32 %v12548_v37, %v18416_v16  ;;  %v10002_v58 = vmul.f32 %v12548_v37, %v18419_v10 }
0x10f2   : > { %v10003_v39 = vmul.f32 %v12550_v61, %v18402_v30  ;;  %v10004_v22 = vmul.f32 %v12550_v61, %v18405_v63  ;;  %v9976_v26 = vadd.f32 1e-05, %v9960_v12  ;;  %v9938_v28 = vpop.xlane.xlu1 %9937  ;;  %v9941_v60 = vpop.xlane.xlu0 %9940  ;;  %v9977_v47 = vadd.f32 1e-05, %v9961_v45 }
0x10f3   : > { %10117 = vst [vmem:[%s13096_s19] sm:$0xff] %v10085_v31  ;;  %10118 = vst [vmem:[%s13096_s19 + $0x8] sm:$0xff] %v10086_v57  ;;  %v10044_v2 = vmul.f32 %v18562_v50, %v10001_v27  ;;  %v10045_v34 = vmul.f32 %v18565_v38, %v10002_v58  ;;  %v9962_v6 = vmul.f32 0.00390625, %v9938_v28  ;;  %v9963_v63 = vmul.f32 0.00390625, %v9941_v60 }
0x10f4   : > { %v12552_v21 = vpop.eup %12551  ;;  %v10046_v16 = vmul.f32 %v18562_v50, %v10003_v39  ;;  %v10047_v30 = vmul.f32 %v18565_v38, %v10004_v22  ;;  %12563 = vrsqrt.f32 %v9976_v26 }
0x10f5   : > { %v12554_v10 = vpop.eup %12553  ;;  %v10087_v4 = vadd.f32 %v18568_v13, %v10044_v2  ;;  %v10088_v9 = vadd.f32 %v18571_v59, %v10045_v34  ;;  %v10005_v52 = vmul.f32 %v12552_v21, %v18422_v25  ;;  %v10006_v15 = vmul.f32 %v12552_v21, %v18425_v19 }
0x10f6   : > { %v10089_v41 = vadd.f32 %v18568_v13, %v10046_v16  ;;  %v10090_v56 = vadd.f32 %v18571_v59, %v10047_v30  ;;  %v10007_v24 = vmul.f32 %v12554_v10, %v18436_v11  ;;  %v10008_v33 = vmul.f32 %v12554_v10, %v18439_v32  ;;  %v9944_v48 = vpop.xlane.xlu1 %9943  ;;  %v9947_v27 = vpop.xlane.xlu0 %9946 }
0x10f7   : > { %10119 = vst [vmem:[%s13096_s19 + $0x10] sm:$0xff] %v10087_v4  ;;  %10120 = vst [vmem:[%s13096_s19 + $0x18] sm:$0xff] %v10088_v9  ;;  %v10048_v17 = vmul.f32 %v18562_v50, %v10005_v52  ;;  %v10049_v53 = vmul.f32 %v18565_v38, %v10006_v15  ;;  %12565 = vrsqrt.f32 %v9977_v47  ;;  %v9978_v0 = vadd.f32 1e-05, %v9962_v6 }
0x10f8   : > { %v12556_v25 = vpop.eup %12555  ;;  %10121 = vst [vmem:[%s13096_s19 + $0x20] sm:$0xff] %v10089_v41  ;;  %10122 = vst [vmem:[%s13096_s19 + $0x28] sm:$0xff] %v10090_v56  ;;  %v10050_v19 = vmul.f32 %v18562_v50, %v10007_v24  ;;  %v10051_v11 = vmul.f32 %v18565_v38, %v10008_v33  ;;  %v9979_v12 = vadd.f32 1e-05, %v9963_v63  ;;  %v9964_v32 = vmul.f32 0.00390625, %v9944_v48 }
0x10f9   : > { %v12558_v37 = vpop.eup %12557  ;;  %v10091_v45 = vadd.f32 %v18568_v13, %v10048_v17  ;;  %v10092_v61 = vadd.f32 %v18571_v59, %v10049_v53  ;;  %v10009_v31 = vmul.f32 %v12556_v25, %v18442_v8  ;;  %v10010_v57 = vmul.f32 %v12556_v25, %v18445_v55 }
0x10fa   : > { %v10093_v58 = vadd.f32 %v18568_v13, %v10050_v19  ;;  %v10094_v39 = vadd.f32 %v18571_v59, %v10051_v11  ;;  %v10011_v22 = vmul.f32 %v12558_v37, %v18456_v51  ;;  %v10012_v26 = vmul.f32 %v12558_v37, %v18459_v3  ;;  %v9950_v30 = vpop.xlane.xlu1 %9949 }
0x10fb   : > { %10123 = vst [vmem:[%s13096_s19 + $0x30] sm:$0xff] %v10091_v45  ;;  %10124 = vst [vmem:[%s13096_s19 + $0x38] sm:$0xff] %v10092_v61  ;;  %v10052_v28 = vmul.f32 %v18562_v50, %v10009_v31  ;;  %v10053_v60 = vmul.f32 %v18565_v38, %v10010_v57  ;;  %12567 = vrsqrt.f32 %v9978_v0  ;;  %v9980_v2 = vadd.f32 1e-05, %v9964_v32 }
0x10fc   : > { %v12560_v8 = vpop.eup %12559  ;;  %10125 = vst [vmem:[%s13096_s19 + $0x40] sm:$0xff] %v10093_v58  ;;  %10126 = vst [vmem:[%s13096_s19 + $0x48] sm:$0xff] %v10094_v39  ;;  %v10054_v55 = vmul.f32 %v18562_v50, %v10011_v22  ;;  %v10055_v34 = vmul.f32 %v18565_v38, %v10012_v26  ;;  %12569 = vrsqrt.f32 %v9979_v12  ;;  %v9965_v51 = vmul.f32 0.00390625, %v9947_v27 }
0x10fd   : > { %v12562_v3 = vpop.eup %12561  ;;  %v10095_v47 = vadd.f32 %v18568_v13, %v10052_v28  ;;  %v10096_v6 = vadd.f32 %v18571_v59, %v10053_v60  ;;  %v10013_v21 = vmul.f32 %v12560_v8, %v18462_v35  ;;  %v10014_v16 = vmul.f32 %v12560_v8, %v18465_v42 }
0x10fe   : > { %v10097_v63 = vadd.f32 %v18568_v13, %v10054_v55  ;;  %v10098_v10 = vadd.f32 %v18571_v59, %v10055_v34  ;;  %v10015_v4 = vmul.f32 %v12562_v3, %v18476_v40  ;;  %v10016_v9 = vmul.f32 %v12562_v3, %v18479_v20 }
0x10ff   : > { %10127 = vst [vmem:[%s13096_s19 + $0x50] sm:$0xff] %v10095_v47  ;;  %10128 = vst [vmem:[%s13096_s19 + $0x58] sm:$0xff] %v10096_v6  ;;  %v10056_v52 = vmul.f32 %v18562_v50, %v10013_v21  ;;  %v10057_v15 = vmul.f32 %v18565_v38, %v10014_v16  ;;  %12571 = vrsqrt.f32 %v9980_v2  ;;  %v9981_v35 = vadd.f32 1e-05, %v9965_v51 }
0x1100   : > { %10129 = vst [vmem:[%s13096_s19 + $0x60] sm:$0xff] %v10097_v63  ;;  %10130 = vst [vmem:[%s13096_s19 + $0x68] sm:$0xff] %v10098_v10  ;;  %v10058_v42 = vmul.f32 %v18562_v50, %v10015_v4  ;;  %v10059_v40 = vmul.f32 %v18565_v38, %v10016_v9  ;;  %v9966_v41 = vmul.f32 0.00390625, %v9950_v30 }
0x1101   : > { %v12564_v20 = vpop.eup %12563  ;;  %v10099_v56 = vadd.f32 %v18568_v13, %v10056_v52  ;;  %v10100_v24 = vadd.f32 %v18571_v59, %v10057_v15  ;;  %12573 = vrsqrt.f32 %v9981_v35 }
0x1102   : > { %v10101_v33 = vadd.f32 %v18568_v13, %v10058_v42  ;;  %v10102_v48 = vadd.f32 %v18571_v59, %v10059_v40  ;;  %v10017_v17 = vmul.f32 %v12564_v20, %v18482_v62  ;;  %v10018_v53 = vmul.f32 %v12564_v20, %v18485_v7 }
0x1103   : > { %10131 = vst [vmem:[%s13096_s19 + $0x70] sm:$0xff] %v10099_v56  ;;  %10132 = vst [vmem:[%s13096_s19 + $0x78] sm:$0xff] %v10100_v24  ;;  %v9982_v0 = vadd.f32 1e-05, %v9966_v41 }
0x1104   : > { %v12566_v25 = vpop.eup %12565  ;;  %10133 = vst [vmem:[%s13096_s19 + $0x80] sm:$0xff] %v10101_v33  ;;  %10134 = vst [vmem:[%s13096_s19 + $0x88] sm:$0xff] %v10102_v48  ;;  %v10060_v19 = vmul.f32 %v18562_v50, %v10017_v17  ;;  %v10061_v11 = vmul.f32 %v18565_v38, %v10018_v53 }
0x1105   : > { %v10019_v12 = vmul.f32 %v12566_v25, %v18496_v1  ;;  %v10020_v32 = vmul.f32 %v12566_v25, %v18499_v43  ;;  %12575 = vrsqrt.f32 %v9982_v0 }
0x1106   : > { %v10103_v62 = vadd.f32 %v18568_v13, %v10060_v19  ;;  %v10104_v7 = vadd.f32 %v18571_v59, %v10061_v11 }
0x1107   : > { %v10062_v37 = vmul.f32 %v18562_v50, %v10019_v12  ;;  %v10063_v45 = vmul.f32 %v18565_v38, %v10020_v32 }
0x1108   : > { %v12568_v61 = vpop.eup %12567  ;;  %10135 = vst [vmem:[%s13096_s19 + $0x90] sm:$0xff] %v10103_v62  ;;  %10136 = vst [vmem:[%s13096_s19 + $0x98] sm:$0xff] %v10104_v7 }
0x1109   : > { %v12570_v31 = vpop.eup %12569  ;;  %v10105_v57 = vadd.f32 %v18568_v13, %v10062_v37  ;;  %v10106_v1 = vadd.f32 %v18571_v59, %v10063_v45  ;;  %v10021_v43 = vmul.f32 %v12568_v61, %v18502_v5  ;;  %v10022_v27 = vmul.f32 %v12568_v61, %v18505_v54 }
0x110a   : > { %v10023_v58 = vmul.f32 %v12570_v31, %v18516_v49  ;;  %v10024_v39 = vmul.f32 %v12570_v31, %v18519_v14 }
0x110b   : > { %10137 = vst [vmem:[%s13096_s19 + $0xa0] sm:$0xff] %v10105_v57  ;;  %10138 = vst [vmem:[%s13096_s19 + $0xa8] sm:$0xff] %v10106_v1  ;;  %v10064_v22 = vmul.f32 %v18562_v50, %v10021_v43  ;;  %v10065_v26 = vmul.f32 %v18565_v38, %v10022_v27 }
0x110c   : > { %v12572_v28 = vpop.eup %12571  ;;  %v10066_v60 = vmul.f32 %v18562_v50, %v10023_v58  ;;  %v10067_v5 = vmul.f32 %v18565_v38, %v10024_v39 }
0x110d   : > { %v10107_v54 = vadd.f32 %v18568_v13, %v10064_v22  ;;  %v10108_v49 = vadd.f32 %v18571_v59, %v10065_v26  ;;  %v10025_v14 = vmul.f32 %v12572_v28, %v18522_v44  ;;  %v10026_v2 = vmul.f32 %v12572_v28, %v18525_v29 }
0x110e   : > { %v12574_v8 = vpop.eup %12573  ;;  %v10109_v55 = vadd.f32 %v18568_v13, %v10066_v60  ;;  %v10110_v34 = vadd.f32 %v18571_v59, %v10067_v5 }
0x110f   : > { %10139 = vst [vmem:[%s13096_s19 + $0xb0] sm:$0xff] %v10107_v54  ;;  %10140 = vst [vmem:[%s13096_s19 + $0xb8] sm:$0xff] %v10108_v49  ;;  %v10068_v51 = vmul.f32 %v18562_v50, %v10025_v14  ;;  %v10069_v3 = vmul.f32 %v18565_v38, %v10026_v2  ;;  %v10027_v47 = vmul.f32 %v12574_v8, %v18536_v23 }
0x1110   : > { %v10028_v44 = vmul.f32 %v12574_v8, %v18539_v46  ;;  %10141 = vst [vmem:[%s13096_s19 + $0xc0] sm:$0xff] %v10109_v55  ;;  %10142 = vst [vmem:[%s13096_s19 + $0xc8] sm:$0xff] %v10110_v34 }
0x1111   : > { %v10111_v29 = vadd.f32 %v18568_v13, %v10068_v51  ;;  %v10112_v6 = vadd.f32 %v18571_v59, %v10069_v3  ;;  %v10070_v21 = vmul.f32 %v18562_v50, %v10027_v47 }
0x1112   : > { %v10071_v16 = vmul.f32 %v18565_v38, %v10028_v44  ;;  %v12576_v30 = vpop.eup %12575 }
0x1113   : > { %10143 = vst [vmem:[%s13096_s19 + $0xd0] sm:$0xff] %v10111_v29  ;;  %10144 = vst [vmem:[%s13096_s19 + $0xd8] sm:$0xff] %v10112_v6  ;;  %v10113_v23 = vadd.f32 %v18568_v13, %v10070_v21  ;;  %v10029_v46 = vmul.f32 %v12576_v30, %v18542_v18  ;;  %v10030_v10 = vmul.f32 %v12576_v30, %v18545_v36 }
0x1114   : > { %v10114_v63 = vadd.f32 %v18571_v59, %v10071_v16 }
0x1115   : > { %10145 = vst [vmem:[%s13096_s19 + $0xe0] sm:$0xff] %v10113_v23  ;;  %v10072_v4 = vmul.f32 %v18562_v50, %v10029_v46  ;;  %v10073_v9 = vmul.f32 %v18565_v38, %v10030_v10 }
0x1116   : > { %10146 = vst [vmem:[%s13096_s19 + $0xe8] sm:$0xff] %v10114_v63 }
0x1117   : > { %v10115_v52 = vadd.f32 %v18568_v13, %v10072_v4  ;;  %v10116_v15 = vadd.f32 %v18571_v59, %v10073_v9 }
0x1119   : > { %10147 = vst [vmem:[%s13096_s19 + $0xf0] sm:$0xff] %v10115_v52  ;;  %10148 = vst [vmem:[%s13096_s19 + $0xf8] sm:$0xff] %v10116_v15 }
0x111a PF: > { %s19270_s5 = sld [smem:[#allocation17_spill]]  ;;  %s10163_s0 = sshll.u32 %s13096_s19, 4  ;;  %s18708_s0 = int_to_ptr.vmem [resolvable:$true] %s10163_s0 }
0x111b   : > { %s19271_s3 = sld [smem:[#allocation13_spill]]  ;;  %s12631_s29 = scalar_lea.vmem %s18708_s0, 4096 }
0x111c   : > { %s19272_s21 = sld [smem:[#allocation21_spill]]  ;;  %p12632_p4 = scmp.ne.s32.totalorder %s18708_s0, %s12631_s29 }
0x111d   : > { %s19273_s16 = sld [smem:[#allocation109_spill]]  ;;  %s12761_s30 = smov [#allocation8]  }
0x111e   : > { %s12635_s1 = sshll.u32 %s12761_s30, 4  ;;  %s12636_s1 = int_to_ptr.vmem [resolvable:$false] %s12635_s1 }
0x111f   : > { %s12637_s2 = scalar_lea.vmem %s12636_s1, 8192  ;;  %p12638_p7 = scmp.lt.s32.totalorder %s18708_s0, %s12636_s1 }
0x1120   : > { %s10952_s15 = sshll.u32 %s19270_s5, 12  ;;  %p12639_p9 = scmp.lt.s32.totalorder %s12637_s2, %s12631_s29 }
0x1121   : > { %s19274_s25 = sand.u32 1, %s19271_s3  }
0x1122   : > { %s18712_s7 = scalar_lea.sflag [#allocation5], %s19274_s25  ;;  %p19275_p5 = scmp.ne.s32.totalorder %s19272_s21, 0 }
0x1123   : > { %s18705_s28 = scalar_lea.hbm %s19273_s16, %s10952_s15  ;;  %p12640_p10 = por %p12639_p9, %p12638_p7 }
0x1124   : > { %p12633_p6 = pnand %p12632_p4, %p19275_p5 }
0x1126   : > { %p12634_p8 = pneg %p12633_p6 }
0x1128   : > { %p12641_p12 = pnand %p12640_p10, %p12634_p8 }
0x112a   : > { %12644 = shalt.err (!%p12641_p12)
}
0x112b   : > { %s12645_s19 = scalar_lea.hbm %s18705_s28, 4096  ;;  %s12649_s11 = scalar_lea.hbm %s19273_s16, 8192 }
0x112c   : > { %p12646_p0 = scmp.ne.s32.totalorder %s18705_s28, %s12645_s19  ;;  %p12650_p11 = scmp.lt.s32.totalorder %s18705_s28, %s19273_s16 }
0x112d   : > { %p12651_p3 = scmp.lt.s32.totalorder %s12649_s11, %s12645_s19 }
0x112e   : > { %p12647_p2 = pnand %p12646_p0, %p19275_p5 }
0x112f   : > { %p12652_p13 = por %p12651_p3, %p12650_p11 }
0x1130   : > { %p12648_p1 = pneg %p12647_p2 }
0x1132   : > { %p12653_p4 = pnand %p12652_p13, %p12648_p1 }
0x1134   : > { %12656 = shalt.err (!%p12653_p4)
}
0x1135   : > { %s12762_s23 = smov 256   ;;  %s12763_s22 = smov 16  }
0x1136   : > { %11217 = dma.vmem_to_hbm [thread:$0]  (%p19275_p5), %s18708_s0, 4096, %s18705_s28, %s18712_s7, %s12762_s23, %s12762_s23, %s12763_s22  }
0x1137 PF: > { %s19276_s26 = sld [smem:[#allocation20_spill]] }
0x1138   : > { %s19277_s20 = sld [smem:[#allocation12_spill]] }
0x1139   : > { %s19278_s17 = sld [smem:[#allocation22_spill]] }
0x113d   : > { %p11234_p6 = scmp.ge.s32.totalorder %s19276_s26, 2 }
0x113e   : > { %s10178_s14 = sand.u32 1, %s19277_s20  }
0x113f   : > { %p19279_p8 = scmp.ne.s32.totalorder %s19278_s17, 0  ;;  %s10179_s5 = scalar_lea.sflag [#allocation5], %s10178_s14 }
0x1141   : > { %p11228_p7 = pnand %p11234_p6, %p19279_p8 }
0x1143   : > { %p11229_p9 = pneg %p11228_p7 }
0x1145   : > { %12710 = dma.done.wait (%p11229_p9), %s10179_s5, 4096  }
0x1146   : > { %12712 = vsyncadd (%p11229_p9), %s10179_s5, 4294963200  ;;  %s39_s6 = sadd.s32 1, %s19276_s26   ;;  %s19280_s3 = sld [smem:[#allocation13_spill]] }
0x1147   : > { %p36_p10 = scmp.ge.s32.totalorder %s39_s6, 6   ;;  %s19281_s28 = sld [smem:[#allocation14_spill]] }
0x1148   : > { %s19282_s29 = sld [smem:[#allocation26_spill]] }
0x1149   : > { %s19283_s30 = sld [smem:[#allocation15_spill]] }
0x114a   : > { %s19284_s4 = sld [smem:[#allocation16_spill]] }
0x114b   : > { %s19285_s0 = sld [smem:[#allocation25_spill]]  ;;  %38 = sbr.rel (!%p36_p10) target bundleno = 31 (0x1f), region = 202 }
0x114c   : > { %s19286_s23 = sld [smem:[#allocation18_spill]] }
0x114d   : > { %s19287_s1 = sld [smem:[#allocation19_spill]] }
0x114e   : > { %s19288_s5 = sld [smem:[#allocation23_spill]] }
0x114f   : > { %s19289_s24 = sld [smem:[#allocation24_spill]] }
0x1150   :  { %10184 = vsyncpa [#allocation4], 1 }
0x1151   :  { %10186 = vsyncpa [#allocation4 + $0x1], 1 }
0x1152   :  { %10187 = vsyncpa [#allocation7], 1 }
0x1153   :  { %10189 = vsyncpa [#allocation7 + $0x1], 1 }
0x1154   :  { %10190 = vsyncpa [#allocation5], 1 }
0x1155   :  { %10192 = vsyncpa [#allocation5 + $0x1], 1 }

</bundles_post_ra>
